<compile_context>
chip_gen: v7x
topology: tpu7x:2x2x1
jax: 0.10.0
libtpu: 0.0.40
codegen_flags: <defaults>
</compile_context>

<pallas_src>
import functools
import math

import jax
import jax.numpy as jnp
from jax.experimental import pallas as pl
from jax.experimental.pallas import tpu as pltpu

_LANE = 128
_NEG_BIG = -1e30


def _mutual_flash_kernel(q1_ref, k1_ref, v1_ref, q2_ref, k2_ref, v2_ref,
                         a1_ref, a2_ref,
                         m1_ref, l1_ref, acc1_ref, m2_ref, l2_ref, acc2_ref,
                         *, qk_scale, tk, valid_len, needs_mask):
    j = pl.program_id(2)
    nk = pl.num_programs(2)

    @pl.when(j == 0)
    def _init():
        for m_ref, l_ref, acc_ref in ((m1_ref, l1_ref, acc1_ref),
                                      (m2_ref, l2_ref, acc2_ref)):
            m_ref[...] = jnp.full(m_ref.shape, -jnp.inf, dtype=m_ref.dtype)
            l_ref[...] = jnp.zeros(l_ref.shape, dtype=l_ref.dtype)
            acc_ref[...] = jnp.zeros(acc_ref.shape, dtype=acc_ref.dtype)

    # Key-position validity mask for this key block (shared by both key sources).
    if needs_mask:
        kpos = j * tk + jax.lax.broadcasted_iota(jnp.int32, (1, 1, tk), 2)
        kmask = kpos < valid_len
    else:
        kmask = None

    # Fold the two-sided scale into q only: (q*s) . (k*s) == (q*s*s) . k
    q1 = q1_ref[...] * qk_scale      # (G, ch, tq)
    q2 = q2_ref[...] * qk_scale      # (G, ch, tq)

    def update(q, k_ref, v_ref, m_ref, l_ref, acc_ref):
        k = k_ref[...]               # (G, ch, tk)
        v = v_ref[...]               # (G, ch, tk)
        # QK: only the small q tile is in transposed-LHS form.
        s = jnp.einsum('gct,gcs->gts', q, k,
                       preferred_element_type=jnp.float32)    # (G, tq, tk) f32
        if kmask is not None:
            s = jnp.where(kmask, s, _NEG_BIG)
        m_prev = m_ref[...]                                    # (G, tq, 1)
        m_new = jnp.maximum(m_prev, jnp.max(s, axis=-1, keepdims=True))
        alpha = jnp.exp(m_prev - m_new)
        p = jnp.exp(s - m_new)                                 # (G, tq, tk) f32
        l_ref[...] = alpha * l_ref[...] + jnp.sum(p, axis=-1, keepdims=True)
        # PV in (tq, ch) orientation: only the small v tile is in transposed-RHS form,
        # the large probability tile is never relayouted.
        pv = jnp.einsum('gts,gcs->gtc', p.astype(v.dtype), v,
                        preferred_element_type=jnp.float32)    # (G, tq, ch)
        acc_ref[...] = alpha * acc_ref[...] + pv
        m_ref[...] = m_new

    # Stream 1: q1 attends over concat([k1, k2]) / concat([v1, v2]).
    update(q1, k1_ref, v1_ref, m1_ref, l1_ref, acc1_ref)
    update(q1, k2_ref, v2_ref, m1_ref, l1_ref, acc1_ref)
    # Stream 2: plain self-attention of qkv2 (reuses the already-loaded k2/v2 tiles).
    update(q2, k2_ref, v2_ref, m2_ref, l2_ref, acc2_ref)

    @pl.when(j == nk - 1)
    def _finalize():
        o1 = acc1_ref[...] * pl.reciprocal(l1_ref[...], approx=True)  # (G, tq, ch)
        o2 = acc2_ref[...] * pl.reciprocal(l2_ref[...], approx=True)
        # Small per-tile transpose -> lane-dense (G, ch, tq) store (tq % 128 == 0).
        a1_ref[...] = jnp.swapaxes(o1, 1, 2).astype(a1_ref.dtype)
        a2_ref[...] = jnp.swapaxes(o2, 1, 2).astype(a2_ref.dtype)


def _pick_tile(Lp, prefs):
    for t in prefs:
        if t <= Lp and Lp % t == 0:
            return t
    return Lp


def _pick_group(b, cap=8):
    cands = [g for g in range(1, min(b, cap) + 1) if b % g == 0]
    # Prefer >= 2 head groups so both megacore TensorCores get work.
    pref = [g for g in cands if b // g >= 2]
    return max(pref) if pref else max(cands)


def mutual_qkv_attention_legacy(qkv1, qkv2, n_heads, *,
                                q_tile=256, k_tile=512, max_group=8):
    """Pallas implementation of MutualQKVAttentionLegacy.forward."""
    assert qkv1.shape == qkv2.shape, "QKV1 and QKV2 should have the same dimension"
    bs, width, length = qkv1.shape
    assert width % (3 * n_heads) == 0
    ch = width // (3 * n_heads)
    assert ch % 8 == 0, "per-head channel count must be a multiple of 8 for TPU tiling"
    B = bs * n_heads
    scale = 1.0 / math.sqrt(math.sqrt(ch))
    qk_scale = scale * scale

    Lp = ((length + _LANE - 1) // _LANE) * _LANE
    tq = _pick_tile(Lp, (q_tile, 256, 128))
    tk = _pick_tile(Lp, (k_tile, 512, 256, 128))
    G = _pick_group(B, max_group)

    q1h = qkv1.reshape(B, 3 * ch, length)
    q2h = qkv2.reshape(B, 3 * ch, length)
    if Lp != length:
        pad = ((0, 0), (0, 0), (0, Lp - length))
        q1h = jnp.pad(q1h, pad)
        q2h = jnp.pad(q2h, pad)

    # Channel-block index 0/1/2 selects q/k/v rows of the (B, 3*ch, Lp) slab.
    q_spec = pl.BlockSpec((G, ch, tq), lambda g, qi, j: (g, 0, qi))
    k_spec = pl.BlockSpec((G, ch, tk), lambda g, qi, j: (g, 1, j))
    v_spec = pl.BlockSpec((G, ch, tk), lambda g, qi, j: (g, 2, j))
    out_spec = pl.BlockSpec((G, ch, tq), lambda g, qi, j: (g, 0, qi))

    kernel = functools.partial(
        _mutual_flash_kernel,
        qk_scale=qk_scale, tk=tk, valid_len=length, needs_mask=(Lp != length))

    a1, a2 = pl.pallas_call(
        kernel,
        out_shape=(
            jax.ShapeDtypeStruct((B, ch, Lp), qkv1.dtype),
            jax.ShapeDtypeStruct((B, ch, Lp), qkv2.dtype),
        ),
        grid_spec=pltpu.PrefetchScalarGridSpec(
            num_scalar_prefetch=0,
            grid=(B // G, Lp // tq, Lp // tk),
            in_specs=[q_spec, k_spec, v_spec, q_spec, k_spec, v_spec],
            out_specs=[out_spec, out_spec],
            scratch_shapes=[
                pltpu.VMEM((G, tq, 1), jnp.float32),   # m1 (running max, stream 1)
                pltpu.VMEM((G, tq, 1), jnp.float32),   # l1 (running denom, stream 1)
                pltpu.VMEM((G, tq, ch), jnp.float32),  # acc1 (stored as (tq, ch))
                pltpu.VMEM((G, tq, 1), jnp.float32),   # m2
                pltpu.VMEM((G, tq, 1), jnp.float32),   # l2
                pltpu.VMEM((G, tq, ch), jnp.float32),  # acc2
            ]),
        compiler_params=pltpu.CompilerParams(
            dimension_semantics=("parallel", "parallel", "arbitrary"),
            vmem_limit_bytes=48 * 1024 * 1024),
    )(q1h, q1h, q1h, q2h, q2h, q2h)

    if Lp != length:
        a1 = a1[..., :length]
        a2 = a2[..., :length]
    return (a1.reshape(bs, n_heads * ch, length),
            a2.reshape(bs, n_heads * ch, length))


def _reference(qkv1, qkv2, n_heads):
    """Pure-JAX reference mirroring the PyTorch forward."""
    bs, width, length = qkv1.shape
    ch = width // (3 * n_heads)
    B = bs * n_heads
    scale = 1.0 / math.sqrt(math.sqrt(ch))

    h1 = qkv1.reshape(B, 3 * ch, length)
    h2 = qkv2.reshape(B, 3 * ch, length)
    q1, k1, v1 = h1[:, :ch], h1[:, ch:2 * ch], h1[:, 2 * ch:]
    q2, k2, v2 = h2[:, :ch], h2[:, ch:2 * ch], h2[:, 2 * ch:]

    kc = jnp.concatenate([k1, k2], axis=-1)
    vc = jnp.concatenate([v1, v2], axis=-1)

    w1 = jnp.einsum('bct,bcs->bts', q1 * scale, kc * scale)
    w1 = jax.nn.softmax(w1.astype(jnp.float32), axis=-1).astype(w1.dtype)
    a1 = jnp.einsum('bts,bcs->bct', w1, vc)

    w2 = jnp.einsum('bct,bcs->bts', q2 * scale, k2 * scale)
    w2 = jax.nn.softmax(w2.astype(jnp.float32), axis=-1).astype(w2.dtype)
    a2 = jnp.einsum('bts,bcs->bct', w2, v2)

    return a1.reshape(bs, -1, length), a2.reshape(bs, -1, length)


if __name__ == "__main__":
    def run_case(bs, n_heads, ch, length, case_id, **kw):
        width = 3 * n_heads * ch
        key = jax.random.PRNGKey(0)
        k1, k2 = jax.random.split(jax.random.fold_in(key, case_id))
        qkv1 = jax.random.normal(k1, (bs, width, length), dtype=jnp.float32)
        qkv2 = jax.random.normal(k2, (bs, width, length), dtype=jnp.float32)

        a1, a2 = mutual_qkv_attention_legacy(qkv1, qkv2, n_heads, **kw)
        jax.block_until_ready((a1, a2))

        r1, r2 = _reference(qkv1, qkv2, n_heads)
        assert a1.shape == (bs, n_heads * ch, length)
        assert a2.shape == (bs, n_heads * ch, length)
        assert jnp.allclose(a1, r1, atol=2e-3, rtol=2e-3), \
            float(jnp.max(jnp.abs(a1 - r1)))
        assert jnp.allclose(a2, r2, atol=2e-3, rtol=2e-3), \
            float(jnp.max(jnp.abs(a2 - r2)))

    # Lane-dense case: bs=2, heads=2, ch=64, L=128 (width=384), head grouping G=2.
    run_case(2, 2, 64, 128, 0)
    # Ragged-length case exercising the key-position mask: bs=1, heads=3, ch=32,
    # L=200 -> Lp=256.
    run_case(1, 3, 32, 200, 1)
    # Multi-key-tile case exercising the online-softmax accumulator across key steps:
    # bs=2, heads=2, ch=64, L=256 with tq=tk=128 -> grid k-axis length 2.
    run_case(2, 2, 64, 256, 2, q_tile=128, k_tile=128)

    print("KERNEL_OK")
</pallas_src>

<mosaic_0001>
module attributes {stable_mosaic.version = 11 : i64} {
  func.func @_mutual_flash_kernel(%arg0: i32, %arg1: i32, %arg2: i32, %arg3: memref<2x64x128xf32, #tpu.memory_space<vmem>>, %arg4: memref<2x64x128xf32, #tpu.memory_space<vmem>>, %arg5: memref<2x64x128xf32, #tpu.memory_space<vmem>>, %arg6: memref<2x64x128xf32, #tpu.memory_space<vmem>>, %arg7: memref<2x64x128xf32, #tpu.memory_space<vmem>>, %arg8: memref<2x64x128xf32, #tpu.memory_space<vmem>>, %arg9: memref<2x64x128xf32, #tpu.memory_space<vmem>>, %arg10: memref<2x64x128xf32, #tpu.memory_space<vmem>>, %arg11: memref<2x128x1xf32, #tpu.memory_space<vmem>>, %arg12: memref<2x128x1xf32, #tpu.memory_space<vmem>>, %arg13: memref<2x128x64xf32, #tpu.memory_space<vmem>>, %arg14: memref<2x128x1xf32, #tpu.memory_space<vmem>>, %arg15: memref<2x128x1xf32, #tpu.memory_space<vmem>>, %arg16: memref<2x128x64xf32, #tpu.memory_space<vmem>>) attributes {dimension_semantics = [#tpu.dimension_semantics<parallel>, #tpu.dimension_semantics<parallel>, #tpu.dimension_semantics<arbitrary>], iteration_bounds = array<i64: 2, 1, 1>, scalar_prefetch = 0 : i64, scratch_operands = 6 : i64, tpu.core_type = #tpu.core_type<tc>, window_params = [{transform_indices = @transform_0, window_bounds = array<i64: 2, 64, 128>}, {transform_indices = @transform_1, window_bounds = array<i64: 2, 64, 128>}, {transform_indices = @transform_2, window_bounds = array<i64: 2, 64, 128>}, {transform_indices = @transform_3, window_bounds = array<i64: 2, 64, 128>}, {transform_indices = @transform_4, window_bounds = array<i64: 2, 64, 128>}, {transform_indices = @transform_5, window_bounds = array<i64: 2, 64, 128>}, {transform_indices = @transform_6, window_bounds = array<i64: 2, 64, 128>}, {transform_indices = @transform_7, window_bounds = array<i64: 2, 64, 128>}]} {
    %c0_i32 = arith.constant 0 : i32
    %0 = arith.cmpi eq, %arg2, %c0_i32 : i32
    %1 = arith.extui %0 : i1 to i32
    %c0_i32_0 = arith.constant 0 : i32
    %2 = arith.cmpi ne, %1, %c0_i32_0 : i32
    scf.if %2 {
      %cst_93 = arith.constant 0xFF800000 : f32
      %87 = vector.broadcast %cst_93 : f32 to vector<2x128x1xf32>
      %c0_94 = arith.constant 0 : index
      %c0_95 = arith.constant 0 : index
      %c0_96 = arith.constant 0 : index
      %88 = vector.load %arg11[%c0_94, %c0_95, %c0_96] : memref<2x128x1xf32, #tpu.memory_space<vmem>>, vector<2x128x1xf32>
      tpu.vector_store %arg11[%c0_94, %c0_95, %c0_96], %87 {strides = array<i32>} : memref<2x128x1xf32, #tpu.memory_space<vmem>>, vector<2x128x1xf32>,
      %cst_97 = arith.constant 0.000000e+00 : f32
      %89 = vector.broadcast %cst_97 : f32 to vector<2x128x1xf32>
      %c0_98 = arith.constant 0 : index
      %c0_99 = arith.constant 0 : index
      %c0_100 = arith.constant 0 : index
      %90 = vector.load %arg12[%c0_98, %c0_99, %c0_100] : memref<2x128x1xf32, #tpu.memory_space<vmem>>, vector<2x128x1xf32>
      tpu.vector_store %arg12[%c0_98, %c0_99, %c0_100], %89 {strides = array<i32>} : memref<2x128x1xf32, #tpu.memory_space<vmem>>, vector<2x128x1xf32>,
      %cst_101 = arith.constant 0.000000e+00 : f32
      %91 = vector.broadcast %cst_101 : f32 to vector<2x128x64xf32>
      %c0_102 = arith.constant 0 : index
      %c0_103 = arith.constant 0 : index
      %c0_104 = arith.constant 0 : index
      %92 = vector.load %arg13[%c0_102, %c0_103, %c0_104] : memref<2x128x64xf32, #tpu.memory_space<vmem>>, vector<2x128x64xf32>
      tpu.vector_store %arg13[%c0_102, %c0_103, %c0_104], %91 {strides = array<i32>} : memref<2x128x64xf32, #tpu.memory_space<vmem>>, vector<2x128x64xf32>,
      %cst_105 = arith.constant 0xFF800000 : f32
      %93 = vector.broadcast %cst_105 : f32 to vector<2x128x1xf32>
      %c0_106 = arith.constant 0 : index
      %c0_107 = arith.constant 0 : index
      %c0_108 = arith.constant 0 : index
      %94 = vector.load %arg14[%c0_106, %c0_107, %c0_108] : memref<2x128x1xf32, #tpu.memory_space<vmem>>, vector<2x128x1xf32>
      tpu.vector_store %arg14[%c0_106, %c0_107, %c0_108], %93 {strides = array<i32>} : memref<2x128x1xf32, #tpu.memory_space<vmem>>, vector<2x128x1xf32>,
      %cst_109 = arith.constant 0.000000e+00 : f32
      %95 = vector.broadcast %cst_109 : f32 to vector<2x128x1xf32>
      %c0_110 = arith.constant 0 : index
      %c0_111 = arith.constant 0 : index
      %c0_112 = arith.constant 0 : index
      %96 = vector.load %arg15[%c0_110, %c0_111, %c0_112] : memref<2x128x1xf32, #tpu.memory_space<vmem>>, vector<2x128x1xf32>
      tpu.vector_store %arg15[%c0_110, %c0_111, %c0_112], %95 {strides = array<i32>} : memref<2x128x1xf32, #tpu.memory_space<vmem>>, vector<2x128x1xf32>,
      %cst_113 = arith.constant 0.000000e+00 : f32
      %97 = vector.broadcast %cst_113 : f32 to vector<2x128x64xf32>
      %c0_114 = arith.constant 0 : index
      %c0_115 = arith.constant 0 : index
      %c0_116 = arith.constant 0 : index
      %98 = vector.load %arg16[%c0_114, %c0_115, %c0_116] : memref<2x128x64xf32, #tpu.memory_space<vmem>>, vector<2x128x64xf32>
      tpu.vector_store %arg16[%c0_114, %c0_115, %c0_116], %97 {strides = array<i32>} : memref<2x128x64xf32, #tpu.memory_space<vmem>>, vector<2x128x64xf32>,
    } else {
    }
    %c0 = arith.constant 0 : index
    %c0_1 = arith.constant 0 : index
    %c0_2 = arith.constant 0 : index
    %3 = vector.load %arg3[%c0, %c0_1, %c0_2] : memref<2x64x128xf32, #tpu.memory_space<vmem>>, vector<2x64x128xf32>
    %cst = arith.constant 1.250000e-01 : f32
    %4 = vector.broadcast %cst : f32 to vector<2x64x128xf32>
    %5 = arith.mulf %3, %4 : vector<2x64x128xf32>
    %c0_3 = arith.constant 0 : index
    %c0_4 = arith.constant 0 : index
    %c0_5 = arith.constant 0 : index
    %6 = vector.load %arg6[%c0_3, %c0_4, %c0_5] : memref<2x64x128xf32, #tpu.memory_space<vmem>>, vector<2x64x128xf32>
    %cst_6 = arith.constant 1.250000e-01 : f32
    %7 = vector.broadcast %cst_6 : f32 to vector<2x64x128xf32>
    %8 = arith.mulf %6, %7 : vector<2x64x128xf32>
    %c0_7 = arith.constant 0 : index
    %c0_8 = arith.constant 0 : index
    %c0_9 = arith.constant 0 : index
    %9 = vector.load %arg4[%c0_7, %c0_8, %c0_9] : memref<2x64x128xf32, #tpu.memory_space<vmem>>, vector<2x64x128xf32>
    %c0_10 = arith.constant 0 : index
    %c0_11 = arith.constant 0 : index
    %c0_12 = arith.constant 0 : index
    %10 = vector.load %arg5[%c0_10, %c0_11, %c0_12] : memref<2x64x128xf32, #tpu.memory_space<vmem>>, vector<2x64x128xf32>
    "tpu.trace_start"() <{level = 10 : i32, message = "gct,gcs->gts"}> : () -> ()
    %cst_13 = arith.constant dense<0.000000e+00> : vector<2x128x128xf32>
    %11 = tpu.matmul %5, %9, %cst_13 {dimension_numbers = #tpu.dot_dimension_numbers<[1], [1], [2], [2], [0, 0, 0, 2, 1, 2], [0], [0]>} : vector<2x64x128xf32>, vector<2x64x128xf32>, vector<2x128x128xf32> -> vector<2x128x128xf32>
    "tpu.trace_stop"() : () -> ()
    %c0_14 = arith.constant 0 : index
    %c0_15 = arith.constant 0 : index
    %c0_16 = arith.constant 0 : index
    %12 = vector.load %arg11[%c0_14, %c0_15, %c0_16] : memref<2x128x1xf32, #tpu.memory_space<vmem>>, vector<2x128x1xf32>
    %cst_17 = arith.constant dense<0xFF800000> : vector<2x128xf32>
    %13 = vector.multi_reduction <maximumf>, %11, %cst_17 [2] : vector<2x128x128xf32> to vector<2x128xf32>
    %14 = vector.shape_cast %13 : vector<2x128xf32> to vector<2x128x1xf32>
    %15 = arith.maximumf %12, %14 : vector<2x128x1xf32>
    %16 = arith.subf %12, %15 : vector<2x128x1xf32>
    %17 = math.exp %16 : vector<2x128x1xf32>
    %18 = vector.broadcast %15 : vector<2x128x1xf32> to vector<2x128x128xf32>
    %19 = arith.subf %11, %18 : vector<2x128x128xf32>
    %20 = math.exp %19 : vector<2x128x128xf32>
    %c0_18 = arith.constant 0 : index
    %c0_19 = arith.constant 0 : index
    %c0_20 = arith.constant 0 : index
    %21 = vector.load %arg12[%c0_18, %c0_19, %c0_20] : memref<2x128x1xf32, #tpu.memory_space<vmem>>, vector<2x128x1xf32>
    %22 = arith.mulf %17, %21 : vector<2x128x1xf32>
    %cst_21 = arith.constant dense<0.000000e+00> : vector<2x128xf32>
    %23 = vector.multi_reduction <add>, %20, %cst_21 [2] : vector<2x128x128xf32> to vector<2x128xf32>
    %24 = vector.shape_cast %23 : vector<2x128xf32> to vector<2x128x1xf32>
    %25 = arith.addf %22, %24 : vector<2x128x1xf32>
    %c0_22 = arith.constant 0 : index
    %c0_23 = arith.constant 0 : index
    %c0_24 = arith.constant 0 : index
    %26 = vector.load %arg12[%c0_22, %c0_23, %c0_24] : memref<2x128x1xf32, #tpu.memory_space<vmem>>, vector<2x128x1xf32>
    tpu.vector_store %arg12[%c0_22, %c0_23, %c0_24], %25 {strides = array<i32>} : memref<2x128x1xf32, #tpu.memory_space<vmem>>, vector<2x128x1xf32>,
    "tpu.trace_start"() <{level = 10 : i32, message = "gts,gcs->gtc"}> : () -> ()
    %cst_25 = arith.constant dense<0.000000e+00> : vector<2x128x64xf32>
    %27 = tpu.matmul %20, %10, %cst_25 {dimension_numbers = #tpu.dot_dimension_numbers<[2], [2], [1], [1], [0, 0, 0, 1, 1, 1], [0], [0]>} : vector<2x128x128xf32>, vector<2x64x128xf32>, vector<2x128x64xf32> -> vector<2x128x64xf32>
    "tpu.trace_stop"() : () -> ()
    %c0_26 = arith.constant 0 : index
    %c0_27 = arith.constant 0 : index
    %c0_28 = arith.constant 0 : index
    %28 = vector.load %arg13[%c0_26, %c0_27, %c0_28] : memref<2x128x64xf32, #tpu.memory_space<vmem>>, vector<2x128x64xf32>
    %29 = vector.broadcast %17 : vector<2x128x1xf32> to vector<2x128x64xf32>
    %30 = arith.mulf %29, %28 : vector<2x128x64xf32>
    %31 = arith.addf %30, %27 : vector<2x128x64xf32>
    %c0_29 = arith.constant 0 : index
    %c0_30 = arith.constant 0 : index
    %c0_31 = arith.constant 0 : index
    %32 = vector.load %arg13[%c0_29, %c0_30, %c0_31] : memref<2x128x64xf32, #tpu.memory_space<vmem>>, vector<2x128x64xf32>
    tpu.vector_store %arg13[%c0_29, %c0_30, %c0_31], %31 {strides = array<i32>} : memref<2x128x64xf32, #tpu.memory_space<vmem>>, vector<2x128x64xf32>,
    %c0_32 = arith.constant 0 : index
    %c0_33 = arith.constant 0 : index
    %c0_34 = arith.constant 0 : index
    %33 = vector.load %arg11[%c0_32, %c0_33, %c0_34] : memref<2x128x1xf32, #tpu.memory_space<vmem>>, vector<2x128x1xf32>
    tpu.vector_store %arg11[%c0_32, %c0_33, %c0_34], %15 {strides = array<i32>} : memref<2x128x1xf32, #tpu.memory_space<vmem>>, vector<2x128x1xf32>,
    %c0_35 = arith.constant 0 : index
    %c0_36 = arith.constant 0 : index
    %c0_37 = arith.constant 0 : index
    %34 = vector.load %arg7[%c0_35, %c0_36, %c0_37] : memref<2x64x128xf32, #tpu.memory_space<vmem>>, vector<2x64x128xf32>
    %c0_38 = arith.constant 0 : index
    %c0_39 = arith.constant 0 : index
    %c0_40 = arith.constant 0 : index
    %35 = vector.load %arg8[%c0_38, %c0_39, %c0_40] : memref<2x64x128xf32, #tpu.memory_space<vmem>>, vector<2x64x128xf32>
    "tpu.trace_start"() <{level = 10 : i32, message = "gct,gcs->gts"}> : () -> ()
    %cst_41 = arith.constant dense<0.000000e+00> : vector<2x128x128xf32>
    %36 = tpu.matmul %5, %34, %cst_41 {dimension_numbers = #tpu.dot_dimension_numbers<[1], [1], [2], [2], [0, 0, 0, 2, 1, 2], [0], [0]>} : vector<2x64x128xf32>, vector<2x64x128xf32>, vector<2x128x128xf32> -> vector<2x128x128xf32>
    "tpu.trace_stop"() : () -> ()
    %c0_42 = arith.constant 0 : index
    %c0_43 = arith.constant 0 : index
    %c0_44 = arith.constant 0 : index
    %37 = vector.load %arg11[%c0_42, %c0_43, %c0_44] : memref<2x128x1xf32, #tpu.memory_space<vmem>>, vector<2x128x1xf32>
    %cst_45 = arith.constant dense<0xFF800000> : vector<2x128xf32>
    %38 = vector.multi_reduction <maximumf>, %36, %cst_45 [2] : vector<2x128x128xf32> to vector<2x128xf32>
    %39 = vector.shape_cast %38 : vector<2x128xf32> to vector<2x128x1xf32>
    %40 = arith.maximumf %37, %39 : vector<2x128x1xf32>
    %41 = arith.subf %37, %40 : vector<2x128x1xf32>
    %42 = math.exp %41 : vector<2x128x1xf32>
    %43 = vector.broadcast %40 : vector<2x128x1xf32> to vector<2x128x128xf32>
    %44 = arith.subf %36, %43 : vector<2x128x128xf32>
    %45 = math.exp %44 : vector<2x128x128xf32>
    %c0_46 = arith.constant 0 : index
    %c0_47 = arith.constant 0 : index
    %c0_48 = arith.constant 0 : index
    %46 = vector.load %arg12[%c0_46, %c0_47, %c0_48] : memref<2x128x1xf32, #tpu.memory_space<vmem>>, vector<2x128x1xf32>
    %47 = arith.mulf %42, %46 : vector<2x128x1xf32>
    %cst_49 = arith.constant dense<0.000000e+00> : vector<2x128xf32>
    %48 = vector.multi_reduction <add>, %45, %cst_49 [2] : vector<2x128x128xf32> to vector<2x128xf32>
    %49 = vector.shape_cast %48 : vector<2x128xf32> to vector<2x128x1xf32>
    %50 = arith.addf %47, %49 : vector<2x128x1xf32>
    %c0_50 = arith.constant 0 : index
    %c0_51 = arith.constant 0 : index
    %c0_52 = arith.constant 0 : index
    %51 = vector.load %arg12[%c0_50, %c0_51, %c0_52] : memref<2x128x1xf32, #tpu.memory_space<vmem>>, vector<2x128x1xf32>
    tpu.vector_store %arg12[%c0_50, %c0_51, %c0_52], %50 {strides = array<i32>} : memref<2x128x1xf32, #tpu.memory_space<vmem>>, vector<2x128x1xf32>,
    "tpu.trace_start"() <{level = 10 : i32, message = "gts,gcs->gtc"}> : () -> ()
    %cst_53 = arith.constant dense<0.000000e+00> : vector<2x128x64xf32>
    %52 = tpu.matmul %45, %35, %cst_53 {dimension_numbers = #tpu.dot_dimension_numbers<[2], [2], [1], [1], [0, 0, 0, 1, 1, 1], [0], [0]>} : vector<2x128x128xf32>, vector<2x64x128xf32>, vector<2x128x64xf32> -> vector<2x128x64xf32>
    "tpu.trace_stop"() : () -> ()
    %c0_54 = arith.constant 0 : index
    %c0_55 = arith.constant 0 : index
    %c0_56 = arith.constant 0 : index
    %53 = vector.load %arg13[%c0_54, %c0_55, %c0_56] : memref<2x128x64xf32, #tpu.memory_space<vmem>>, vector<2x128x64xf32>
    %54 = vector.broadcast %42 : vector<2x128x1xf32> to vector<2x128x64xf32>
    %55 = arith.mulf %54, %53 : vector<2x128x64xf32>
    %56 = arith.addf %55, %52 : vector<2x128x64xf32>
    %c0_57 = arith.constant 0 : index
    %c0_58 = arith.constant 0 : index
    %c0_59 = arith.constant 0 : index
    %57 = vector.load %arg13[%c0_57, %c0_58, %c0_59] : memref<2x128x64xf32, #tpu.memory_space<vmem>>, vector<2x128x64xf32>
    tpu.vector_store %arg13[%c0_57, %c0_58, %c0_59], %56 {strides = array<i32>} : memref<2x128x64xf32, #tpu.memory_space<vmem>>, vector<2x128x64xf32>,
    %c0_60 = arith.constant 0 : index
    %c0_61 = arith.constant 0 : index
    %c0_62 = arith.constant 0 : index
    %58 = vector.load %arg11[%c0_60, %c0_61, %c0_62] : memref<2x128x1xf32, #tpu.memory_space<vmem>>, vector<2x128x1xf32>
    tpu.vector_store %arg11[%c0_60, %c0_61, %c0_62], %40 {strides = array<i32>} : memref<2x128x1xf32, #tpu.memory_space<vmem>>, vector<2x128x1xf32>,
    %c0_63 = arith.constant 0 : index
    %c0_64 = arith.constant 0 : index
    %c0_65 = arith.constant 0 : index
    %59 = vector.load %arg7[%c0_63, %c0_64, %c0_65] : memref<2x64x128xf32, #tpu.memory_space<vmem>>, vector<2x64x128xf32>
    %c0_66 = arith.constant 0 : index
    %c0_67 = arith.constant 0 : index
    %c0_68 = arith.constant 0 : index
    %60 = vector.load %arg8[%c0_66, %c0_67, %c0_68] : memref<2x64x128xf32, #tpu.memory_space<vmem>>, vector<2x64x128xf32>
    "tpu.trace_start"() <{level = 10 : i32, message = "gct,gcs->gts"}> : () -> ()
    %cst_69 = arith.constant dense<0.000000e+00> : vector<2x128x128xf32>
    %61 = tpu.matmul %8, %59, %cst_69 {dimension_numbers = #tpu.dot_dimension_numbers<[1], [1], [2], [2], [0, 0, 0, 2, 1, 2], [0], [0]>} : vector<2x64x128xf32>, vector<2x64x128xf32>, vector<2x128x128xf32> -> vector<2x128x128xf32>
    "tpu.trace_stop"() : () -> ()
    %c0_70 = arith.constant 0 : index
    %c0_71 = arith.constant 0 : index
    %c0_72 = arith.constant 0 : index
    %62 = vector.load %arg14[%c0_70, %c0_71, %c0_72] : memref<2x128x1xf32, #tpu.memory_space<vmem>>, vector<2x128x1xf32>
    %cst_73 = arith.constant dense<0xFF800000> : vector<2x128xf32>
    %63 = vector.multi_reduction <maximumf>, %61, %cst_73 [2] : vector<2x128x128xf32> to vector<2x128xf32>
    %64 = vector.shape_cast %63 : vector<2x128xf32> to vector<2x128x1xf32>
    %65 = arith.maximumf %62, %64 : vector<2x128x1xf32>
    %66 = arith.subf %62, %65 : vector<2x128x1xf32>
    %67 = math.exp %66 : vector<2x128x1xf32>
    %68 = vector.broadcast %65 : vector<2x128x1xf32> to vector<2x128x128xf32>
    %69 = arith.subf %61, %68 : vector<2x128x128xf32>
    %70 = math.exp %69 : vector<2x128x128xf32>
    %c0_74 = arith.constant 0 : index
    %c0_75 = arith.constant 0 : index
    %c0_76 = arith.constant 0 : index
    %71 = vector.load %arg15[%c0_74, %c0_75, %c0_76] : memref<2x128x1xf32, #tpu.memory_space<vmem>>, vector<2x128x1xf32>
    %72 = arith.mulf %67, %71 : vector<2x128x1xf32>
    %cst_77 = arith.constant dense<0.000000e+00> : vector<2x128xf32>
    %73 = vector.multi_reduction <add>, %70, %cst_77 [2] : vector<2x128x128xf32> to vector<2x128xf32>
    %74 = vector.shape_cast %73 : vector<2x128xf32> to vector<2x128x1xf32>
    %75 = arith.addf %72, %74 : vector<2x128x1xf32>
    %c0_78 = arith.constant 0 : index
    %c0_79 = arith.constant 0 : index
    %c0_80 = arith.constant 0 : index
    %76 = vector.load %arg15[%c0_78, %c0_79, %c0_80] : memref<2x128x1xf32, #tpu.memory_space<vmem>>, vector<2x128x1xf32>
    tpu.vector_store %arg15[%c0_78, %c0_79, %c0_80], %75 {strides = array<i32>} : memref<2x128x1xf32, #tpu.memory_space<vmem>>, vector<2x128x1xf32>,
    "tpu.trace_start"() <{level = 10 : i32, message = "gts,gcs->gtc"}> : () -> ()
    %cst_81 = arith.constant dense<0.000000e+00> : vector<2x128x64xf32>
    %77 = tpu.matmul %70, %60, %cst_81 {dimension_numbers = #tpu.dot_dimension_numbers<[2], [2], [1], [1], [0, 0, 0, 1, 1, 1], [0], [0]>} : vector<2x128x128xf32>, vector<2x64x128xf32>, vector<2x128x64xf32> -> vector<2x128x64xf32>
    "tpu.trace_stop"() : () -> ()
    %c0_82 = arith.constant 0 : index
    %c0_83 = arith.constant 0 : index
    %c0_84 = arith.constant 0 : index
    %78 = vector.load %arg16[%c0_82, %c0_83, %c0_84] : memref<2x128x64xf32, #tpu.memory_space<vmem>>, vector<2x128x64xf32>
    %79 = vector.broadcast %67 : vector<2x128x1xf32> to vector<2x128x64xf32>
    %80 = arith.mulf %79, %78 : vector<2x128x64xf32>
    %81 = arith.addf %80, %77 : vector<2x128x64xf32>
    %c0_85 = arith.constant 0 : index
    %c0_86 = arith.constant 0 : index
    %c0_87 = arith.constant 0 : index
    %82 = vector.load %arg16[%c0_85, %c0_86, %c0_87] : memref<2x128x64xf32, #tpu.memory_space<vmem>>, vector<2x128x64xf32>
    tpu.vector_store %arg16[%c0_85, %c0_86, %c0_87], %81 {strides = array<i32>} : memref<2x128x64xf32, #tpu.memory_space<vmem>>, vector<2x128x64xf32>,
    %c0_88 = arith.constant 0 : index
    %c0_89 = arith.constant 0 : index
    %c0_90 = arith.constant 0 : index
    %83 = vector.load %arg14[%c0_88, %c0_89, %c0_90] : memref<2x128x1xf32, #tpu.memory_space<vmem>>, vector<2x128x1xf32>
    tpu.vector_store %arg14[%c0_88, %c0_89, %c0_90], %65 {strides = array<i32>} : memref<2x128x1xf32, #tpu.memory_space<vmem>>, vector<2x128x1xf32>,
    %c0_i32_91 = arith.constant 0 : i32
    %84 = arith.cmpi eq, %arg2, %c0_i32_91 : i32
    %85 = arith.extui %84 : i1 to i32
    %c0_i32_92 = arith.constant 0 : i32
    %86 = arith.cmpi ne, %85, %c0_i32_92 : i32
    scf.if %86 {
      %c0_93 = arith.constant 0 : index
      %c0_94 = arith.constant 0 : index
      %c0_95 = arith.constant 0 : index
      %87 = vector.load %arg13[%c0_93, %c0_94, %c0_95] : memref<2x128x64xf32, #tpu.memory_space<vmem>>, vector<2x128x64xf32>
      %c0_96 = arith.constant 0 : index
      %c0_97 = arith.constant 0 : index
      %c0_98 = arith.constant 0 : index
      %88 = vector.load %arg12[%c0_96, %c0_97, %c0_98] : memref<2x128x1xf32, #tpu.memory_space<vmem>>, vector<2x128x1xf32>
      %89 = tpu.reciprocal %88 {approx = true} : vector<2x128x1xf32> -> vector<2x128x1xf32>
      %90 = vector.broadcast %89 : vector<2x128x1xf32> to vector<2x128x64xf32>
      %91 = arith.mulf %87, %90 : vector<2x128x64xf32>
      %c0_99 = arith.constant 0 : index
      %c0_100 = arith.constant 0 : index
      %c0_101 = arith.constant 0 : index
      %92 = vector.load %arg16[%c0_99, %c0_100, %c0_101] : memref<2x128x64xf32, #tpu.memory_space<vmem>>, vector<2x128x64xf32>
      %c0_102 = arith.constant 0 : index
      %c0_103 = arith.constant 0 : index
      %c0_104 = arith.constant 0 : index
      %93 = vector.load %arg15[%c0_102, %c0_103, %c0_104] : memref<2x128x1xf32, #tpu.memory_space<vmem>>, vector<2x128x1xf32>
      %94 = tpu.reciprocal %93 {approx = true} : vector<2x128x1xf32> -> vector<2x128x1xf32>
      %95 = vector.broadcast %94 : vector<2x128x1xf32> to vector<2x128x64xf32>
      %96 = arith.mulf %92, %95 : vector<2x128x64xf32>
      %97 = tpu.transpose %91, [0, 2, 1] : vector<2x128x64xf32> -> vector<2x64x128xf32>
      %c0_105 = arith.constant 0 : index
      %c0_106 = arith.constant 0 : index
      %c0_107 = arith.constant 0 : index
      %98 = vector.load %arg9[%c0_105, %c0_106, %c0_107] : memref<2x64x128xf32, #tpu.memory_space<vmem>>, vector<2x64x128xf32>
      tpu.vector_store %arg9[%c0_105, %c0_106, %c0_107], %97 {strides = array<i32>} : memref<2x64x128xf32, #tpu.memory_space<vmem>>, vector<2x64x128xf32>,
      %99 = tpu.transpose %96, [0, 2, 1] : vector<2x128x64xf32> -> vector<2x64x128xf32>
      %c0_108 = arith.constant 0 : index
      %c0_109 = arith.constant 0 : index
      %c0_110 = arith.constant 0 : index
      %100 = vector.load %arg10[%c0_108, %c0_109, %c0_110] : memref<2x64x128xf32, #tpu.memory_space<vmem>>, vector<2x64x128xf32>
      tpu.vector_store %arg10[%c0_108, %c0_109, %c0_110], %99 {strides = array<i32>} : memref<2x64x128xf32, #tpu.memory_space<vmem>>, vector<2x64x128xf32>,
    } else {
    }
    return
  }
  func.func @transform_0(%arg0: i32, %arg1: i32, %arg2: i32) -> (i32, i32, i32) {
    %c0_i32 = arith.constant 0 : i32
    %c0_i32_0 = arith.constant 0 : i32
    return %arg0, %c0_i32, %arg1 : i32, i32, i32
  }
  func.func @transform_1(%arg0: i32, %arg1: i32, %arg2: i32) -> (i32, i32, i32) {
    %c1_i32 = arith.constant 1 : i32
    %c0_i32 = arith.constant 0 : i32
    return %arg0, %c1_i32, %arg2 : i32, i32, i32
  }
  func.func @transform_2(%arg0: i32, %arg1: i32, %arg2: i32) -> (i32, i32, i32) {
    %c2_i32 = arith.constant 2 : i32
    %c0_i32 = arith.constant 0 : i32
    return %arg0, %c2_i32, %arg2 : i32, i32, i32
  }
  func.func @transform_3(%arg0: i32, %arg1: i32, %arg2: i32) -> (i32, i32, i32) {
    %c0_i32 = arith.constant 0 : i32
    %c0_i32_0 = arith.constant 0 : i32
    return %arg0, %c0_i32, %arg1 : i32, i32, i32
  }
  func.func @transform_4(%arg0: i32, %arg1: i32, %arg2: i32) -> (i32, i32, i32) {
    %c1_i32 = arith.constant 1 : i32
    %c0_i32 = arith.constant 0 : i32
    return %arg0, %c1_i32, %arg2 : i32, i32, i32
  }
  func.func @transform_5(%arg0: i32, %arg1: i32, %arg2: i32) -> (i32, i32, i32) {
    %c2_i32 = arith.constant 2 : i32
    %c0_i32 = arith.constant 0 : i32
    return %arg0, %c2_i32, %arg2 : i32, i32, i32
  }
  func.func @transform_6(%arg0: i32, %arg1: i32, %arg2: i32) -> (i32, i32, i32) {
    %c0_i32 = arith.constant 0 : i32
    %c0_i32_0 = arith.constant 0 : i32
    return %arg0, %c0_i32, %arg1 : i32, i32, i32
  }
  func.func @transform_7(%arg0: i32, %arg1: i32, %arg2: i32) -> (i32, i32, i32) {
    %c0_i32 = arith.constant 0 : i32
    %c0_i32_0 = arith.constant 0 : i32
    return %arg0, %c0_i32, %arg1 : i32, i32, i32
  }
}

</mosaic_0001>

<bundles_post_ra>
// kernel: tpu_custom_call.1
= control target key start
LH: loop header
LB: loop body
LE: loop exit
PB: predicated region body
PF: predicated region fallthrough
CT: control target
= control target key end

     0   :  { %s12851_s0 = inlined_call_operand.hbm [shape: f32[4,192,128], index: 0, kind: input, shape index: {}]   ;;  %s12852_s1 = inlined_call_operand.hbm [shape: f32[4,192,128], index: 1, kind: input, shape index: {}]   ;;  %s12853_s2 = inlined_call_operand.hbm [shape: f32[4,192,128], index: 2, kind: input, shape index: {}]   ;;  %s12854_s3 = inlined_call_operand.hbm [shape: f32[4,192,128], index: 3, kind: input, shape index: {}]   ;;  %s12855_s4 = inlined_call_operand.hbm [shape: f32[4,192,128], index: 4, kind: input, shape index: {}]   ;;  %s12856_s5 = inlined_call_operand.hbm [shape: f32[4,192,128], index: 5, kind: input, shape index: {}]   ;;  %s12857_s6 = inlined_call_operand.hbm [shape: f32[4,64,128], index: 6, kind: output, shape index: {0}]   ;;  %s12858_s7 = inlined_call_operand.hbm [shape: f32[4,64,128], index: 7, kind: output, shape index: {1}]  }
   0x1   :  { %13015 = sst [smem:[#allocation149_spill]] %s12851_s0 }
   0x2   :  { %13 = vsyncpa [#allocation9], 0 }
   0x3   :  { %15 = vsyncpa [#allocation9 + $0x1], 0 }
   0x4   :  { %16 = vsyncpa [#allocation12], 0 }
   0x5   :  { %18 = vsyncpa [#allocation12 + $0x1], 0 }
   0x6   :  { %19 = vsyncpa [#allocation15], 0 }
   0x7   :  { %21 = vsyncpa [#allocation15 + $0x1], 0 }
   0x8   :  { %22 = vsyncpa [#allocation18], 0 }
   0x9   :  { %24 = vsyncpa [#allocation18 + $0x1], 0 }
   0xa   :  { %25 = vsyncpa [#allocation10], 0 }
   0xb   :  { %27 = vsyncpa [#allocation10 + $0x1], 0 }
   0xc   :  { %28 = vsyncpa [#allocation21], 0 }
   0xd   :  { %30 = vsyncpa [#allocation21 + $0x1], 0  ;;  %s9111_s24 = smov 0   ;;  %s9113_s25 = smov 0  }
   0xe   :  { %s9115_s26 = smov 0   ;;  %s9117_s27 = smov 0  }
   0xf   :  { %s9119_s28 = smov 0   ;;  %s9121_s29 = smov 0  }
  0x10 LB: > { %13016 = sst [smem:[#allocation46_spill]] %s9020_s26  ;;  %s9142_s30 = sadd.s32 4294967295, %s9032_s29   ;;  %s9032_s29 = sphi %s9121_s29, %s36_s29   ;;  %s9028_s28 = sphi %s9119_s28, %s13492_s28   ;;  %s9024_s27 = sphi %s9117_s27, %s13488_s27   ;;  %s9020_s26 = sphi %s9115_s26, %s13487_s26   ;;  %s9016_s25 = sphi %s9113_s25, %s13491_s25   ;;  %s9012_s24 = sphi %s9111_s24, %s13490_s24  }
  0x11   : > { %13017 = sst [smem:[#allocation47_spill]] %s9028_s28  ;;  %s7131_s8 = sadd.s32 4294967294, %s9032_s29  }
  0x12   : > { %s55_s9 = sadd.s32 1, %s9028_s28  ;;  %s64_s10 = sadd.s32 1, %s9020_s26 }
  0x13   : > { %p57_p0 = scmp.ge.s32.totalorder %s55_s9, 2  ;;  %p71_p1 = scmp.ne.s32.totalorder %s9020_s26, %s9016_s25 }
  0x14   : > { %p72_p2 = scmp.eq.s32.totalorder %s9032_s29, 0  ;;  %p77_p3 = scmp.ne.s32.totalorder %s9016_s25, %s9012_s24 }
  0x15   : > { %s13494_s9 = smov (%p57_p0, %s55_s9), 0  ;;  %p78_p5 = scmp.eq.s32.totalorder %s9142_s30, 0 }
  0x16   : > { %13018 = sst [smem:[#allocation48_spill]] %s13494_s9  ;;  %p9154_p4 = por %p72_p2, %p71_p1 }
  0x17   : > { %s59_s12 = ssub.s32 %s9028_s28, %s13494_s9  ;;  %p243_p6 = scmp.eq.s32.totalorder %s9142_s30, 1 }
  0x18   : > { %p62_p7 = scmp.eq.s32.totalorder %s59_s12, 0  ;;  %p9162_p8 = por %p78_p5, %p77_p3 }
  0x19   : > { %p9166_p9 = por %p243_p6, %p71_p1  ;;  %p249_p10 = scmp.eq.s32.totalorder %s7131_s8, 1 }
  0x1a   : > { %s9171_s15 = scalar_select %p62_p7, %s9020_s26, %s64_s10  }
  0x1b   : > { %p9173_p11 = por %p249_p10, %p77_p3  ;;  %p7133_p12 = scmp.ge.s32.totalorder %s9032_s29, 2 }
  0x1c   : > { %13022 = sst [smem:[#allocation49_spill]] %s9171_s15 }
  0x1d   : > { %293 = sbr.rel (%p7133_p12) target bundleno = 110 (0x6e), region = 16 }
  0x24   : > { %s9181_s17 = sand.u32 1, %s9020_s26   ;;  %s9184_s18 = smul.u32 6144, %s9028_s28 }
  0x25   : > { %s9187_s19 = sshll.u32 %s9181_s17, 7  ;;  %s13024_s0 = sld [smem:[#allocation149_spill]] }
  0x26   : > { %s8243_s20 = scalar_select %p9154_p4, [#allocation0], [#allocation34] }
  0x27   : > { %s301_s10 = scalar_lea.vmem [#allocation8], %s9187_s19  ;;  %s9034_s9 = smov 3072  }
  0x28   : > { %s314_s8 = sld [smem:[%s8243_s20]]   ;;  %s322_s12 = sshll.u32 %s301_s10, 4  ;;  %s323_s12 = int_to_ptr.vmem [resolvable:$true] %s322_s12 }
  0x29   : > { %8244 = sst [smem:[#allocation23]] (%p9154_p4), %s9034_s9  ;;  %s9035_s28 = smov 1024  }
  0x2a   : > { %8245 = sst [smem:[#allocation23 + $0x1]] (%p9154_p4), %s9035_s28  ;;  %s9036_s15 = smov 8  }
  0x2b   : > { %s309_s23 = scalar_lea.hbm %s13024_s0, %s9184_s18  ;;  %8246 = sst [smem:[#allocation23 + $0x2]] (%p9154_p4), %s9036_s15 }
  0x2c   : > { %s9037_s26 = smov 128   ;;  %8249 = sst [smem:[#allocation23 + $0x5]] (%p9154_p4), %s9036_s15 }
  0x2d   : > { %8247 = sst [smem:[#allocation23 + $0x3]] (%p9154_p4), %s9037_s26  ;;  %s298_s22 = scalar_lea.sflag [#allocation9], %s9181_s17 }
  0x2e   : > { %8248 = sst [smem:[#allocation23 + $0x4]] (%p9154_p4), %s9037_s26  ;;  %s7138_s20 = sshll.u32 %s314_s8, 26 }
  0x2f   : > { %s7139_s21 = sadd.s32 134217728, %s7138_s20  ;;  %s9038_s10 = smov [#allocation22]  }
  0x30   : > { %8250 = dma.general (%p9154_p4), %s309_s23, 2048, %s323_s12, %s298_s22, %s9038_s10, [#allocation23], %s7139_s21, 0  }
  0x31   : > { %s12862_s28 = sand.u32 1, %s9032_s29   ;;  %s6946_s26 = scalar_lea.hbm %s12852_s1, %s9184_s18 }
  0x32   : > { %s8251_s15 = scalar_select %p9154_p4, [#allocation0], [#allocation35] }
  0x33   : > { %s349_s8 = scalar_lea.vmem [#allocation11], %s9187_s19  ;;  %s9039_s12 = smov 3072  }
  0x34   : > { %s371_s20 = sshll.u32 %s349_s8, 4  ;;  %s363_s23 = sld [smem:[%s8251_s15]]   ;;  %s372_s20 = int_to_ptr.vmem [resolvable:$true] %s371_s20 }
  0x35   : > { %8252 = sst [smem:[#allocation25]] (%p9154_p4), %s9039_s12  ;;  %s9040_s21 = smov 1024  }
  0x36   : > { %8253 = sst [smem:[#allocation25 + $0x1]] (%p9154_p4), %s9040_s21  ;;  %s6947_s22 = scalar_lea.hbm %s6946_s26, 1024 }
  0x37   : > { %s9041_s10 = smov 8   ;;  %s9042_s0 = smov 128  }
  0x38   : > { %8254 = sst [smem:[#allocation25 + $0x2]] (%p9154_p4), %s9041_s10  ;;  %s346_s8 = scalar_lea.sflag [#allocation12], %s12862_s28 }
  0x39   : > { %8255 = sst [smem:[#allocation25 + $0x3]] (%p9154_p4), %s9042_s0  ;;  %s9043_s12 = smov [#allocation24]  }
  0x3a   : > { %8256 = sst [smem:[#allocation25 + $0x4]] (%p9154_p4), %s9042_s0  ;;  %s7142_s9 = sshll.u32 %s363_s23, 26 }
  0x3b   : > { %8257 = sst [smem:[#allocation25 + $0x5]] (%p9154_p4), %s9041_s10  ;;  %s7143_s15 = sadd.s32 134217728, %s7142_s9 }
  0x3c   : > { %8258 = dma.general (%p9154_p4), %s6947_s22, 2048, %s372_s20, %s346_s8, %s9043_s12, [#allocation25], %s7143_s15, 0  }
  0x3d   : > { %s6954_s23 = scalar_lea.hbm %s12853_s2, %s9184_s18  ;;  %s398_s0 = scalar_lea.vmem [#allocation13], %s9187_s19 }
  0x3e   : > { %s8259_s10 = scalar_select %p9154_p4, [#allocation0], [#allocation36] }
  0x3f   : > { %s420_s9 = sshll.u32 %s398_s0, 4  ;;  %s9044_s20 = smov 3072   ;;  %s421_s9 = int_to_ptr.vmem [resolvable:$true] %s420_s9 }
  0x40   : > { %s412_s28 = sld [smem:[%s8259_s10]]   ;;  %s9045_s22 = smov 1024  }
  0x41   : > { %8260 = sst [smem:[#allocation27]] (%p9154_p4), %s9044_s20  ;;  %s6955_s15 = scalar_lea.hbm %s6954_s23, 2048 }
  0x42   : > { %8261 = sst [smem:[#allocation27 + $0x1]] (%p9154_p4), %s9045_s22  ;;  %s9046_s12 = smov 8  }
  0x43   : > { %8262 = sst [smem:[#allocation27 + $0x2]] (%p9154_p4), %s9046_s12  ;;  %s9047_s26 = smov 128  }
  0x44   : > { %8263 = sst [smem:[#allocation27 + $0x3]] (%p9154_p4), %s9047_s26  ;;  %s9048_s0 = smov [#allocation26]  }
  0x45   : > { %8264 = sst [smem:[#allocation27 + $0x4]] (%p9154_p4), %s9047_s26 }
  0x46   : > { %s7146_s21 = sshll.u32 %s412_s28, 26  ;;  %8265 = sst [smem:[#allocation27 + $0x5]] (%p9154_p4), %s9046_s12 }
  0x47   : > { %s7147_s10 = sadd.s32 134217728, %s7146_s21 }
  0x48   : > { %8266 = dma.general (%p9154_p4), %s6955_s15, 2048, %s421_s9, %s346_s8, %s9048_s0, [#allocation27], %s7147_s10, 0  }
  0x49   : > { %s8267_s23 = scalar_select %p9154_p4, [#allocation0], [#allocation37] }
  0x4a   : > { %s447_s20 = scalar_lea.vmem [#allocation14], %s9187_s19  ;;  %s9049_s12 = smov 3072  }
  0x4b   : > { %s468_s22 = sshll.u32 %s447_s20, 4  ;;  %s460_s28 = sld [smem:[%s8267_s23]]   ;;  %s469_s22 = int_to_ptr.vmem [resolvable:$true] %s468_s22 }
  0x4c   : > { %8268 = sst [smem:[#allocation29]] (%p9154_p4), %s9049_s12  ;;  %s9050_s8 = smov 1024  }
  0x4d   : > { %8269 = sst [smem:[#allocation29 + $0x1]] (%p9154_p4), %s9050_s8  ;;  %s455_s26 = scalar_lea.hbm %s12854_s3, %s9184_s18 }
  0x4e   : > { %s9051_s21 = smov 8   ;;  %s9052_s10 = smov 128  }
  0x4f   : > { %8270 = sst [smem:[#allocation29 + $0x2]] (%p9154_p4), %s9051_s21  ;;  %s13025_s20 = sand.u32 1, %s9032_s29  }
  0x50   : > { %8271 = sst [smem:[#allocation29 + $0x3]] (%p9154_p4), %s9052_s10  ;;  %s444_s12 = scalar_lea.sflag [#allocation15], %s13025_s20 }
  0x51   : > { %8272 = sst [smem:[#allocation29 + $0x4]] (%p9154_p4), %s9052_s10  ;;  %s7152_s0 = sshll.u32 %s460_s28, 26 }
  0x52   : > { %8273 = sst [smem:[#allocation29 + $0x5]] (%p9154_p4), %s9051_s21  ;;  %s7153_s23 = sadd.s32 134217728, %s7152_s0 }
  0x53   : > { %s9053_s8 = smov [#allocation28]  }
  0x54   : > { %8274 = dma.general (%p9154_p4), %s455_s26, 2048, %s469_s22, %s444_s12, %s9053_s8, [#allocation29], %s7153_s23, 0  }
  0x55   : > { %s6969_s28 = scalar_lea.hbm %s12855_s4, %s9184_s18  ;;  %s495_s10 = scalar_lea.vmem [#allocation16], %s9187_s19 }
  0x56   : > { %s8275_s21 = scalar_select %p9154_p4, [#allocation0], [#allocation38] }
  0x57   : > { %s517_s0 = sshll.u32 %s495_s10, 4  ;;  %s9054_s22 = smov 3072   ;;  %s518_s0 = int_to_ptr.vmem [resolvable:$true] %s517_s0 }
  0x58   : > { %s509_s20 = sld [smem:[%s8275_s21]]   ;;  %s9055_s26 = smov 1024  }
  0x59   : > { %8276 = sst [smem:[#allocation31]] (%p9154_p4), %s9054_s22  ;;  %s6970_s23 = scalar_lea.hbm %s6969_s28, 1024 }
  0x5a   : > { %8277 = sst [smem:[#allocation31 + $0x1]] (%p9154_p4), %s9055_s26  ;;  %s9056_s8 = smov 8  }
  0x5b   : > { %8278 = sst [smem:[#allocation31 + $0x2]] (%p9154_p4), %s9056_s8  ;;  %s9057_s9 = smov 128  }
  0x5c   : > { %8279 = sst [smem:[#allocation31 + $0x3]] (%p9154_p4), %s9057_s9  ;;  %s9058_s10 = smov [#allocation30]  }
  0x5d   : > { %8280 = sst [smem:[#allocation31 + $0x4]] (%p9154_p4), %s9057_s9 }
  0x5e   : > { %s7156_s15 = sshll.u32 %s509_s20, 26  ;;  %8281 = sst [smem:[#allocation31 + $0x5]] (%p9154_p4), %s9056_s8 }
  0x5f   : > { %s7157_s21 = sadd.s32 134217728, %s7156_s15 }
  0x60   : > { %8282 = dma.general (%p9154_p4), %s6970_s23, 2048, %s518_s0, %s444_s12, %s9058_s10, [#allocation31], %s7157_s21, 0  }
  0x61   : > { %s6977_s28 = scalar_lea.hbm %s12856_s5, %s9184_s18  ;;  %s544_s20 = scalar_lea.vmem [#allocation17], %s9187_s19 }
  0x62   : > { %s566_s9 = sshll.u32 %s544_s20, 4  ;;  %s9059_s12 = smov 3072   ;;  %s567_s9 = int_to_ptr.vmem [resolvable:$true] %s566_s9 }
  0x63   : > { %s8283_s8 = scalar_select %p9154_p4, [#allocation0], [#allocation39] }
  0x64   : > { %8284 = sst [smem:[#allocation33]] (%p9154_p4), %s9059_s12  ;;  %s9060_s0 = smov 1024  }
  0x65   : > { %s558_s15 = sld [smem:[%s8283_s8]]   ;;  %s9061_s23 = smov 8  }
  0x66   : > { %8285 = sst [smem:[#allocation33 + $0x1]] (%p9154_p4), %s9060_s0  ;;  %s6978_s21 = scalar_lea.hbm %s6977_s28, 2048 }
  0x67   : > { %8286 = sst [smem:[#allocation33 + $0x2]] (%p9154_p4), %s9061_s23  ;;  %s9062_s10 = smov 128  }
  0x68   : > { %8287 = sst [smem:[#allocation33 + $0x3]] (%p9154_p4), %s9062_s10  ;;  %s541_s22 = scalar_lea.sflag [#allocation18], %s9181_s17 }
  0x69   : > { %8288 = sst [smem:[#allocation33 + $0x4]] (%p9154_p4), %s9062_s10  ;;  %s9063_s26 = smov [#allocation32]  }
  0x6a   : > { %8289 = sst [smem:[#allocation33 + $0x5]] (%p9154_p4), %s9061_s23 }
  0x6b   : > { %s7160_s18 = sshll.u32 %s558_s15, 26 }
  0x6c   : > { %s7161_s19 = sadd.s32 134217728, %s7160_s18 }
  0x6d   : > { %8290 = dma.general (%p9154_p4), %s6978_s21, 2048, %s567_s9, %s541_s22, %s9063_s26, [#allocation33], %s7161_s19, 0  }
  0x6e PF: > { %p7162_p13 = scmp.ge.s32.totalorder %s9032_s29, 1  ;;  %p587_p0 = scmp.lt.s32.totalorder %s9032_s29, 3 }
  0x70   : > { %p588_p1 = pnand %p7162_p13, %p587_p0 }
  0x72   : > { %591 = sbr.rel (%p588_p1) target bundleno = 2739 (0xab3), region = 44 }
  0x79   : > { %s9325_s28 = sand.u32 1, %s9016_s25  }
  0x7a   : > { %s9328_s20 = sshll.u32 %s9325_s28, 7  ;;  %s594_s17 = scalar_lea.sflag [#allocation9], %s9325_s28 }
  0x7b   : > { %s9332_s8 = scalar_lea.vmem [#allocation8], %s9328_s20 }
  0x7c   : > { %8987 = dma.done.wait (%p9162_p8), %s594_s17, 2048  }
  0x7d   : > { %8989 = vsyncadd (%p9162_p8), %s594_s17, 4294965248  ;;  %s602_s11 = sand.u32 1, %s9142_s30   ;;  %s9340_s15 = scalar_lea.vmem [#allocation11], %s9328_s20 }
  0x7e   : > { %s603_s9 = scalar_lea.sflag [#allocation12], %s602_s11 }
  0x7f   : > { %8991 = dma.done.wait (%p9162_p8), %s603_s9, 4096  }
  0x80   : > { %8993 = vsyncadd (%p9162_p8), %s603_s9, 4294963200  ;;  %s9347_s12 = scalar_lea.vmem [#allocation13], %s9328_s20  ;;  %s621_s0 = scalar_lea.sflag [#allocation15], %s602_s11 }
  0x81   : > { %s9350_s23 = scalar_lea.vmem [#allocation14], %s9328_s20 }
  0x82   : > { %8995 = dma.done.wait (%p9162_p8), %s621_s0, 4096  }
  0x83   : > { %8997 = vsyncadd (%p9162_p8), %s621_s0, 4294963200  ;;  %s9357_s30 = scalar_lea.vmem [#allocation16], %s9328_s20  ;;  %s639_s21 = scalar_lea.sflag [#allocation18], %s9325_s28 }
  0x84   : > { %s9361_s10 = scalar_lea.vmem [#allocation17], %s9328_s20 }
  0x85   : > { %8999 = dma.done.wait (%p9162_p8), %s639_s21, 2048  }
  0x86   : > { %9001 = vsyncadd (%p9162_p8), %s639_s21, 4294965248  ;;  %v909_v0 = vld [vmem:[%s9332_s8] sm:$0xff]  ;;  %v910_v2 = vld [vmem:[%s9332_s8 + $0x8] sm:$0xff]  ;;  %vm780_vm0 = vcmask 523264   ;;  %vm715_vm1 = vcmask 7168   ;;  %s12274_s13 = scalar_lea.vmem [#allocation19], %s9328_s20 }
  0x87   : > { %v917_v1 = vld [vmem:[%s9332_s8 + $0x40] sm:$0xff]  ;;  %v925_v3 = vmul.f32 0.125, %v909_v0  ;;  %v918_v5 = vld [vmem:[%s9332_s8 + $0x48] sm:$0xff]  ;;  %v926_v6 = vmul.f32 0.125, %v910_v2  ;;  %v911_v8 = vld [vmem:[%s9332_s8 + $0x10] sm:$0xff]  ;;  %s7278_s18 = sshll.u32 %s9024_s27, 11 }
  0x88   : > { %v933_v4 = vmul.f32 0.125, %v917_v1  ;;  %v934_v7 = vmul.f32 0.125, %v918_v5  ;;  %v919_v9 = vld [vmem:[%s9332_s8 + $0x50] sm:$0xff]  ;;  %v973_v10 = vld [vmem:[%s9340_s15] sm:$0xff]  ;;  %v974_v11 = vld [vmem:[%s9340_s15 + $0x8] sm:$0xff]  ;;  %v927_v17 = vmul.f32 0.125, %v911_v8  ;;  %s12740_s26 = scalar_lea.hbm %s12857_s6, %s7278_s18 }
  0x89   : > { %1005 = vxpose.xlu0.b32.start [1/8] (short) %v925_v3, 128  ;;  %v912_v12 = vld [vmem:[%s9332_s8 + $0x18] sm:$0xff]  ;;  %v8049_v13 = vpack.c.bf16 %v974_v11, %v973_v10  ;;  %v981_v14 = vld [vmem:[%s9340_s15 + $0x40] sm:$0xff]  ;;  %v982_v15 = vld [vmem:[%s9340_s15 + $0x48] sm:$0xff]  ;;  %v935_v18 = vmul.f32 0.125, %v919_v9  ;;  %s6867_s17 = sshll.u32 %s12274_s13, 4  ;;  %s9067_s9 = smov [#allocation19]   ;;  %s12743_s17 = int_to_ptr.vmem [resolvable:$true] %s6867_s17 }
  0x8a   : > { %1231 = vxpose.xlu1.b32.start [1/8] (short) %v933_v4, 128  ;;  %v975_v16 = vld [vmem:[%s9340_s15 + $0x10] sm:$0xff]  ;;  %v8065_v19 = vpack.c.bf16 %v982_v15, %v981_v14  ;;  %v976_v20 = vld [vmem:[%s9340_s15 + $0x18] sm:$0xff]  ;;  %v977_v26 = vld [vmem:[%s9340_s15 + $0x20] sm:$0xff]  ;;  %v928_v31 = vmul.f32 0.125, %v912_v12  ;;  %s8906_s11 = scalar_lea.vmem %s12743_s17, 2048 }
  0x8b   : > { %v983_v21 = vld [vmem:[%s9340_s15 + $0x50] sm:$0xff]  ;;  %v984_v22 = vld [vmem:[%s9340_s15 + $0x58] sm:$0xff]  ;;  %8050 = vmatprep.subr.bf16.mxu0 %v8049_v13  ;;  %v8053_v24 = vpack.c.bf16 %v976_v20, %v975_v16  ;;  %v978_v27 = vld [vmem:[%s9340_s15 + $0x28] sm:$0xff]  ;;  %p8907_p2 = scmp.ne.s32.totalorder %s12743_s17, %s8906_s11 }
  0x8c   : > { %v920_v23 = vld [vmem:[%s9332_s8 + $0x58] sm:$0xff]  ;;  %v8069_v25 = vpack.c.bf16 %v984_v22, %v983_v21  ;;  %8052 = vmatpush3.bf16.msra.mxu0 %v8049_v13  ;;  %8066 = vmatprep.subr.bf16.mxu1 %v8065_v19  ;;  %v985_v28 = vld [vmem:[%s9340_s15 + $0x60] sm:$0xff]  ;;  %v986_v29 = vld [vmem:[%s9340_s15 + $0x68] sm:$0xff]  ;;  %v8057_v30 = vpack.c.bf16 %v978_v27, %v977_v26 }
  0x8d   : > { %1006 = vxpose.xlu0.b32.cont [2/8] (short) %v926_v6, 128  ;;  %8054 = vmatprep.subr.bf16.mxu0 %v8053_v24  ;;  %v936_v32 = vmul.f32 0.125, %v920_v23  ;;  %v979_v33 = vld [vmem:[%s9340_s15 + $0x30] sm:$0xff]  ;;  %v980_v34 = vld [vmem:[%s9340_s15 + $0x38] sm:$0xff]  ;;  %v913_v35 = vld [vmem:[%s9332_s8 + $0x20] sm:$0xff]  ;;  %v8073_v37 = vpack.c.bf16 %v986_v29, %v985_v28  ;;  %p8908_p3 = pnand %p8907_p2, %p9166_p9 }
  0x8e   : > { %1232 = vxpose.xlu1.b32.cont [2/8] (short) %v934_v7, 128  ;;  %8068 = vmatpush3.bf16.msra.mxu1 %v8065_v19  ;;  %v921_v36 = vld [vmem:[%s9332_s8 + $0x60] sm:$0xff]  ;;  %v987_v38 = vld [vmem:[%s9340_s15 + $0x70] sm:$0xff]  ;;  %v988_v39 = vld [vmem:[%s9340_s15 + $0x78] sm:$0xff]  ;;  %v8061_v40 = vpack.c.bf16 %v980_v34, %v979_v33  ;;  %v929_v41 = vmul.f32 0.125, %v913_v35  ;;  %s8910_s15 = sshll.u32 %s9067_s9, 4  ;;  %s8911_s15 = int_to_ptr.vmem [resolvable:$false] %s8910_s15 }
  0x8f   : > { %8070 = vmatprep.subr.bf16.mxu1 %v8069_v25  ;;  %v937_v42 = vmul.f32 0.125, %v921_v36  ;;  %v914_v43 = vld [vmem:[%s9332_s8 + $0x28] sm:$0xff]  ;;  %v8077_v45 = vpack.c.bf16 %v988_v39, %v987_v38  ;;  %v915_v48 = vld [vmem:[%s9332_s8 + $0x30] sm:$0xff]  ;;  %v916_v52 = vld [vmem:[%s9332_s8 + $0x38] sm:$0xff]  ;;  %p8909_p4 = pneg %p8908_p3  ;;  %p8913_p5 = scmp.lt.s32.totalorder %s12743_s17, %s8911_s15 }
  0x90   : > { %8056 = vmatpush3.bf16.msra.mxu0 %v8053_v24  ;;  %v922_v44 = vld [vmem:[%s9332_s8 + $0x68] sm:$0xff]  ;;  %v930_v46 = vmul.f32 0.125, %v914_v43  ;;  %v923_v49 = vld [vmem:[%s9332_s8 + $0x70] sm:$0xff]  ;;  %v931_v50 = vmul.f32 0.125, %v915_v48  ;;  %v924_v53 = vld [vmem:[%s9332_s8 + $0x78] sm:$0xff]  ;;  %v932_v54 = vmul.f32 0.125, %v916_v52 }
  0x91   : > { %1007 = vxpose.xlu0.b32.cont [3/8] (short) %v927_v17, 128  ;;  %8058 = vmatprep.subr.bf16.mxu0 %v8057_v30  ;;  %v938_v47 = vmul.f32 0.125, %v922_v44  ;;  %v939_v51 = vmul.f32 0.125, %v923_v49  ;;  %v940_v55 = vmul.f32 0.125, %v924_v53  ;;  %v941_v56 = vld [vmem:[%s9350_s23] sm:$0xff]  ;;  %v942_v57 = vld [vmem:[%s9350_s23 + $0x8] sm:$0xff]  ;;  %v943_v60 = vld [vmem:[%s9350_s23 + $0x10] sm:$0xff] }
  0x92   : > { %1233 = vxpose.xlu1.b32.cont [3/8] (short) %v935_v18, 128  ;;  %8072 = vmatpush3.bf16.msra.mxu1 %v8069_v25  ;;  %v957_v58 = vmul.f32 0.125, %v941_v56  ;;  %v958_v59 = vmul.f32 0.125, %v942_v57  ;;  %v959_v61 = vmul.f32 0.125, %v943_v60  ;;  %v944_v62 = vld [vmem:[%s9350_s23 + $0x18] sm:$0xff]  ;;  %v945_v0 = vld [vmem:[%s9350_s23 + $0x20] sm:$0xff]  ;;  %v946_v2 = vld [vmem:[%s9350_s23 + $0x28] sm:$0xff] }
  0x93   : > { %8074 = vmatprep.subr.bf16.mxu1 %v8073_v37  ;;  %v960_v63 = vmul.f32 0.125, %v944_v62  ;;  %v961_v1 = vmul.f32 0.125, %v945_v0  ;;  %v962_v3 = vmul.f32 0.125, %v946_v2  ;;  %v947_v4 = vld [vmem:[%s9350_s23 + $0x30] sm:$0xff]  ;;  %v948_v6 = vld [vmem:[%s9350_s23 + $0x38] sm:$0xff]  ;;  %v9064_v44 = vmov -inf  }
  0x94   : > { %8060 = vmatpush3.bf16.msra.mxu0 %v8057_v30  ;;  %v963_v5 = vmul.f32 0.125, %v947_v4  ;;  %v964_v7 = vmul.f32 0.125, %v948_v6  ;;  %717 = vst.msk [vmem:[#allocation2 + $0x8] sm:$0xff] %vm715_vm1, %v9064_v44  ;;  %716 = vst.msk [vmem:[#allocation2] sm:$0xff] %vm715_vm1, %v9064_v44  ;;  %v9066_v56 = vmov 0.0   ;;  %s6847_s8 = scalar_lea.sflag [#allocation10], %s9325_s28 }
  0x95   : > { %1008 = vxpose.xlu0.b32.cont [4/8] (short) %v928_v31, 128  ;;  %8062 = vmatprep.subr.bf16.mxu0 %v8061_v40  ;;  %718 = vst.msk [vmem:[#allocation2 + $0x10] sm:$0xff] %vm715_vm1, %v9064_v44  ;;  %719 = vst.msk [vmem:[#allocation2 + $0x18] sm:$0xff] %vm715_vm1, %v9064_v44 }
  0x96   : > { %1234 = vxpose.xlu1.b32.cont [4/8] (short) %v936_v32, 128  ;;  %8076 = vmatpush3.bf16.msra.mxu1 %v8073_v37  ;;  %720 = vst.msk [vmem:[#allocation2 + $0x20] sm:$0xff] %vm715_vm1, %v9064_v44  ;;  %721 = vst.msk [vmem:[#allocation2 + $0x28] sm:$0xff] %vm715_vm1, %v9064_v44 }
  0x97   : > { %8078 = vmatprep.subr.bf16.mxu1 %v8077_v45  ;;  %722 = vst.msk [vmem:[#allocation2 + $0x30] sm:$0xff] %vm715_vm1, %v9064_v44  ;;  %723 = vst.msk [vmem:[#allocation2 + $0x38] sm:$0xff] %vm715_vm1, %v9064_v44 }
  0x98   : > { %8064 = vmatpush3.bf16.msra.mxu0 %v8061_v40  ;;  %724 = vst.msk [vmem:[#allocation2 + $0x40] sm:$0xff] %vm715_vm1, %v9064_v44  ;;  %725 = vst.msk [vmem:[#allocation2 + $0x48] sm:$0xff] %vm715_vm1, %v9064_v44 }
  0x99   : > { %1009 = vxpose.xlu0.b32.cont [5/8] (short) %v929_v41, 128  ;;  %726 = vst.msk [vmem:[#allocation2 + $0x50] sm:$0xff] %vm715_vm1, %v9064_v44  ;;  %727 = vst.msk [vmem:[#allocation2 + $0x58] sm:$0xff] %vm715_vm1, %v9064_v44 }
  0x9a   : > { %1235 = vxpose.xlu1.b32.cont [5/8] (short) %v937_v42, 128  ;;  %8080 = vmatpush3.bf16.msra.mxu1 %v8077_v45  ;;  %728 = vst.msk [vmem:[#allocation2 + $0x60] sm:$0xff] %vm715_vm1, %v9064_v44  ;;  %729 = vst.msk [vmem:[#allocation2 + $0x68] sm:$0xff] %vm715_vm1, %v9064_v44 }
  0x9b   : > { %730 = vst.msk [vmem:[#allocation2 + $0x70] sm:$0xff] %vm715_vm1, %v9064_v44  ;;  %731 = vst.msk [vmem:[#allocation2 + $0x78] sm:$0xff] %vm715_vm1, %v9064_v44 }
  0x9c   : > { %732 = vst.msk [vmem:[#allocation2 + $0x80] sm:$0xff] %vm715_vm1, %v9064_v44  ;;  %733 = vst.msk [vmem:[#allocation2 + $0x88] sm:$0xff] %vm715_vm1, %v9064_v44 }
  0x9d   : > { %1010 = vxpose.xlu0.b32.cont [6/8] (short) %v930_v46, 128  ;;  %734 = vst.msk [vmem:[#allocation2 + $0x90] sm:$0xff] %vm715_vm1, %v9064_v44  ;;  %735 = vst.msk [vmem:[#allocation2 + $0x98] sm:$0xff] %vm715_vm1, %v9064_v44 }
  0x9e   : > { %1236 = vxpose.xlu1.b32.cont [6/8] (short) %v938_v47, 128  ;;  %736 = vst.msk [vmem:[#allocation2 + $0xa0] sm:$0xff] %vm715_vm1, %v9064_v44  ;;  %737 = vst.msk [vmem:[#allocation2 + $0xa8] sm:$0xff] %vm715_vm1, %v9064_v44 }
  0x9f   : > { %738 = vst.msk [vmem:[#allocation2 + $0xb0] sm:$0xff] %vm715_vm1, %v9064_v44  ;;  %739 = vst.msk [vmem:[#allocation2 + $0xb8] sm:$0xff] %vm715_vm1, %v9064_v44 }
  0xa0   : > { %740 = vst.msk [vmem:[#allocation2 + $0xc0] sm:$0xff] %vm715_vm1, %v9064_v44  ;;  %741 = vst.msk [vmem:[#allocation2 + $0xc8] sm:$0xff] %vm715_vm1, %v9064_v44 }
  0xa1   : > { %1011 = vxpose.xlu0.b32.cont [7/8] (short) %v931_v50, 128  ;;  %742 = vst.msk [vmem:[#allocation2 + $0xd0] sm:$0xff] %vm715_vm1, %v9064_v44  ;;  %743 = vst.msk [vmem:[#allocation2 + $0xd8] sm:$0xff] %vm715_vm1, %v9064_v44 }
  0xa2   : > { %1237 = vxpose.xlu1.b32.cont [7/8] (short) %v939_v51, 128  ;;  %744 = vst.msk [vmem:[#allocation2 + $0xe0] sm:$0xff] %vm715_vm1, %v9064_v44  ;;  %745 = vst.msk [vmem:[#allocation2 + $0xe8] sm:$0xff] %vm715_vm1, %v9064_v44  ;;  %v12863_v51 = vmov 0  }
  0xa3   : > { %746 = vst.msk [vmem:[#allocation2 + $0xf0] sm:$0xff] %vm715_vm1, %v9064_v44  ;;  %747 = vst.msk [vmem:[#allocation2 + $0xf8] sm:$0xff] %vm715_vm1, %v9064_v44 }
  0xa4   : > { %813 = vst.msk [vmem:[#allocation5] sm:$0xff] %vm715_vm1, %v9064_v44  ;;  %814 = vst.msk [vmem:[#allocation5 + $0x8] sm:$0xff] %vm715_vm1, %v9064_v44 }
  0xa5   : > { %1012 = vxpose.xlu0.b32.end [8/8] (short) %v932_v54, 128  ;;  %815 = vst.msk [vmem:[#allocation5 + $0x10] sm:$0xff] %vm715_vm1, %v9064_v44  ;;  %816 = vst.msk [vmem:[#allocation5 + $0x18] sm:$0xff] %vm715_vm1, %v9064_v44 }
  0xa6   : > { %1238 = vxpose.xlu1.b32.end [8/8] (short) %v940_v55, 128  ;;  %817 = vst.msk [vmem:[#allocation5 + $0x20] sm:$0xff] %vm715_vm1, %v9064_v44  ;;  %818 = vst.msk [vmem:[#allocation5 + $0x28] sm:$0xff] %vm715_vm1, %v9064_v44 }
  0xa7   : > { %819 = vst.msk [vmem:[#allocation5 + $0x30] sm:$0xff] %vm715_vm1, %v9064_v44  ;;  %820 = vst.msk [vmem:[#allocation5 + $0x38] sm:$0xff] %vm715_vm1, %v9064_v44 }
  0xa8   : > { %821 = vst.msk [vmem:[#allocation5 + $0x40] sm:$0xff] %vm715_vm1, %v9064_v44  ;;  %822 = vst.msk [vmem:[#allocation5 + $0x48] sm:$0xff] %vm715_vm1, %v9064_v44 }
  0xa9   : > { %823 = vst.msk [vmem:[#allocation5 + $0x50] sm:$0xff] %vm715_vm1, %v9064_v44  ;;  %824 = vst.msk [vmem:[#allocation5 + $0x58] sm:$0xff] %vm715_vm1, %v9064_v44 }
  0xaa   : > { %825 = vst.msk [vmem:[#allocation5 + $0x60] sm:$0xff] %vm715_vm1, %v9064_v44  ;;  %826 = vst.msk [vmem:[#allocation5 + $0x68] sm:$0xff] %vm715_vm1, %v9064_v44 }
  0xab   : > { %827 = vst.msk [vmem:[#allocation5 + $0x70] sm:$0xff] %vm715_vm1, %v9064_v44  ;;  %828 = vst.msk [vmem:[#allocation5 + $0x78] sm:$0xff] %vm715_vm1, %v9064_v44 }
  0xac   : > { %829 = vst.msk [vmem:[#allocation5 + $0x80] sm:$0xff] %vm715_vm1, %v9064_v44  ;;  %830 = vst.msk [vmem:[#allocation5 + $0x88] sm:$0xff] %vm715_vm1, %v9064_v44 }
  0xad   : > { %831 = vst.msk [vmem:[#allocation5 + $0x90] sm:$0xff] %vm715_vm1, %v9064_v44  ;;  %832 = vst.msk [vmem:[#allocation5 + $0x98] sm:$0xff] %vm715_vm1, %v9064_v44 }
  0xae   : > { %833 = vst.msk [vmem:[#allocation5 + $0xa0] sm:$0xff] %vm715_vm1, %v9064_v44  ;;  %834 = vst.msk [vmem:[#allocation5 + $0xa8] sm:$0xff] %vm715_vm1, %v9064_v44 }
  0xaf   : > { %835 = vst.msk [vmem:[#allocation5 + $0xb0] sm:$0xff] %vm715_vm1, %v9064_v44  ;;  %836 = vst.msk [vmem:[#allocation5 + $0xb8] sm:$0xff] %vm715_vm1, %v9064_v44 }
  0xb0   : > { %837 = vst.msk [vmem:[#allocation5 + $0xc0] sm:$0xff] %vm715_vm1, %v9064_v44  ;;  %838 = vst.msk [vmem:[#allocation5 + $0xc8] sm:$0xff] %vm715_vm1, %v9064_v44 }
  0xb1   : > { %839 = vst.msk [vmem:[#allocation5 + $0xd0] sm:$0xff] %vm715_vm1, %v9064_v44  ;;  %840 = vst.msk [vmem:[#allocation5 + $0xd8] sm:$0xff] %vm715_vm1, %v9064_v44 }
  0xb2   : > { %841 = vst.msk [vmem:[#allocation5 + $0xe0] sm:$0xff] %vm715_vm1, %v9064_v44  ;;  %842 = vst.msk [vmem:[#allocation5 + $0xe8] sm:$0xff] %vm715_vm1, %v9064_v44 }
  0xb3   : > { %843 = vst.msk [vmem:[#allocation5 + $0xf0] sm:$0xff] %vm715_vm1, %v9064_v44  ;;  %844 = vst.msk [vmem:[#allocation5 + $0xf8] sm:$0xff] %vm715_vm1, %v9064_v44 }
  0xb4   : > { %781 = vst.msk [vmem:[#allocation4] sm:$0xff] %vm780_vm0, %v9066_v56  ;;  %782 = vst.msk [vmem:[#allocation4 + $0x8] sm:$0xff] %vm780_vm0, %v9066_v56 }
  0xb5   : > { %748 = vst.msk [vmem:[#allocation3] sm:$0xff] %vm715_vm1, %v9066_v56  ;;  %749 = vst.msk [vmem:[#allocation3 + $0x8] sm:$0xff] %vm715_vm1, %v9066_v56 }
  0xb6   : > { %750 = vst.msk [vmem:[#allocation3 + $0x10] sm:$0xff] %vm715_vm1, %v9066_v56  ;;  %751 = vst.msk [vmem:[#allocation3 + $0x18] sm:$0xff] %vm715_vm1, %v9066_v56 }
  0xb7   : > { %752 = vst.msk [vmem:[#allocation3 + $0x20] sm:$0xff] %vm715_vm1, %v9066_v56  ;;  %753 = vst.msk [vmem:[#allocation3 + $0x28] sm:$0xff] %vm715_vm1, %v9066_v56 }
  0xb8   : > { %754 = vst.msk [vmem:[#allocation3 + $0x30] sm:$0xff] %vm715_vm1, %v9066_v56  ;;  %755 = vst.msk [vmem:[#allocation3 + $0x38] sm:$0xff] %vm715_vm1, %v9066_v56 }
  0xb9   : > { %756 = vst.msk [vmem:[#allocation3 + $0x40] sm:$0xff] %vm715_vm1, %v9066_v56  ;;  %757 = vst.msk [vmem:[#allocation3 + $0x48] sm:$0xff] %vm715_vm1, %v9066_v56 }
  0xba   : > { %758 = vst.msk [vmem:[#allocation3 + $0x50] sm:$0xff] %vm715_vm1, %v9066_v56  ;;  %759 = vst.msk [vmem:[#allocation3 + $0x58] sm:$0xff] %vm715_vm1, %v9066_v56 }
  0xbb   : > { %760 = vst.msk [vmem:[#allocation3 + $0x60] sm:$0xff] %vm715_vm1, %v9066_v56  ;;  %761 = vst.msk [vmem:[#allocation3 + $0x68] sm:$0xff] %vm715_vm1, %v9066_v56 }
  0xbc   : > { %762 = vst.msk [vmem:[#allocation3 + $0x70] sm:$0xff] %vm715_vm1, %v9066_v56  ;;  %763 = vst.msk [vmem:[#allocation3 + $0x78] sm:$0xff] %vm715_vm1, %v9066_v56 }
  0xbd   : > { %764 = vst.msk [vmem:[#allocation3 + $0x80] sm:$0xff] %vm715_vm1, %v9066_v56  ;;  %765 = vst.msk [vmem:[#allocation3 + $0x88] sm:$0xff] %vm715_vm1, %v9066_v56 }
  0xbe   : > { %766 = vst.msk [vmem:[#allocation3 + $0x90] sm:$0xff] %vm715_vm1, %v9066_v56  ;;  %767 = vst.msk [vmem:[#allocation3 + $0x98] sm:$0xff] %vm715_vm1, %v9066_v56 }
  0xbf   : > { %768 = vst.msk [vmem:[#allocation3 + $0xa0] sm:$0xff] %vm715_vm1, %v9066_v56  ;;  %769 = vst.msk [vmem:[#allocation3 + $0xa8] sm:$0xff] %vm715_vm1, %v9066_v56 }
  0xc0   : > { %770 = vst.msk [vmem:[#allocation3 + $0xb0] sm:$0xff] %vm715_vm1, %v9066_v56  ;;  %771 = vst.msk [vmem:[#allocation3 + $0xb8] sm:$0xff] %vm715_vm1, %v9066_v56 }
  0xc1   : > { %772 = vst.msk [vmem:[#allocation3 + $0xc0] sm:$0xff] %vm715_vm1, %v9066_v56  ;;  %773 = vst.msk [vmem:[#allocation3 + $0xc8] sm:$0xff] %vm715_vm1, %v9066_v56 }
  0xc2   : > { %774 = vst.msk [vmem:[#allocation3 + $0xd0] sm:$0xff] %vm715_vm1, %v9066_v56  ;;  %775 = vst.msk [vmem:[#allocation3 + $0xd8] sm:$0xff] %vm715_vm1, %v9066_v56 }
  0xc3   : > { %776 = vst.msk [vmem:[#allocation3 + $0xe0] sm:$0xff] %vm715_vm1, %v9066_v56  ;;  %777 = vst.msk [vmem:[#allocation3 + $0xe8] sm:$0xff] %vm715_vm1, %v9066_v56 }
  0xc4   : > { %778 = vst.msk [vmem:[#allocation3 + $0xf0] sm:$0xff] %vm715_vm1, %v9066_v56  ;;  %779 = vst.msk [vmem:[#allocation3 + $0xf8] sm:$0xff] %vm715_vm1, %v9066_v56 }
  0xc5   : > { %783 = vst.msk [vmem:[#allocation4 + $0x10] sm:$0xff] %vm780_vm0, %v9066_v56  ;;  %784 = vst.msk [vmem:[#allocation4 + $0x18] sm:$0xff] %vm780_vm0, %v9066_v56 }
  0xc6   : > { %785 = vst.msk [vmem:[#allocation4 + $0x20] sm:$0xff] %vm780_vm0, %v9066_v56  ;;  %786 = vst.msk [vmem:[#allocation4 + $0x28] sm:$0xff] %vm780_vm0, %v9066_v56 }
  0xc7   : > { %4375 = vxpose.xlu1.b32.start [1/8] (short) %v957_v58, 128  ;;  %787 = vst.msk [vmem:[#allocation4 + $0x30] sm:$0xff] %vm780_vm0, %v9066_v56  ;;  %788 = vst.msk [vmem:[#allocation4 + $0x38] sm:$0xff] %vm780_vm0, %v9066_v56 }
  0xc8   : > { %789 = vst.msk [vmem:[#allocation4 + $0x40] sm:$0xff] %vm780_vm0, %v9066_v56  ;;  %790 = vst.msk [vmem:[#allocation4 + $0x48] sm:$0xff] %vm780_vm0, %v9066_v56 }
  0xc9   : > { %791 = vst.msk [vmem:[#allocation4 + $0x50] sm:$0xff] %vm780_vm0, %v9066_v56  ;;  %792 = vst.msk [vmem:[#allocation4 + $0x58] sm:$0xff] %vm780_vm0, %v9066_v56 }
  0xca   : > { %793 = vst.msk [vmem:[#allocation4 + $0x60] sm:$0xff] %vm780_vm0, %v9066_v56  ;;  %794 = vst.msk [vmem:[#allocation4 + $0x68] sm:$0xff] %vm780_vm0, %v9066_v56 }
  0xcb   : > { %4376 = vxpose.xlu1.b32.cont [2/8] (short) %v958_v59, 128  ;;  %795 = vst.msk [vmem:[#allocation4 + $0x70] sm:$0xff] %vm780_vm0, %v9066_v56  ;;  %796 = vst.msk [vmem:[#allocation4 + $0x78] sm:$0xff] %vm780_vm0, %v9066_v56 }
  0xcc   : > { %797 = vst.msk [vmem:[#allocation4 + $0x80] sm:$0xff] %vm780_vm0, %v9066_v56  ;;  %798 = vst.msk [vmem:[#allocation4 + $0x88] sm:$0xff] %vm780_vm0, %v9066_v56 }
  0xcd   : > { %799 = vst.msk [vmem:[#allocation4 + $0x90] sm:$0xff] %vm780_vm0, %v9066_v56  ;;  %800 = vst.msk [vmem:[#allocation4 + $0x98] sm:$0xff] %vm780_vm0, %v9066_v56 }
  0xce   : > { %801 = vst.msk [vmem:[#allocation4 + $0xa0] sm:$0xff] %vm780_vm0, %v9066_v56  ;;  %802 = vst.msk [vmem:[#allocation4 + $0xa8] sm:$0xff] %vm780_vm0, %v9066_v56 }
  0xcf   : > { %4377 = vxpose.xlu1.b32.cont [3/8] (short) %v959_v61, 128  ;;  %803 = vst.msk [vmem:[#allocation4 + $0xb0] sm:$0xff] %vm780_vm0, %v9066_v56  ;;  %804 = vst.msk [vmem:[#allocation4 + $0xb8] sm:$0xff] %vm780_vm0, %v9066_v56 }
  0xd0   : > { %805 = vst.msk [vmem:[#allocation4 + $0xc0] sm:$0xff] %vm780_vm0, %v9066_v56  ;;  %806 = vst.msk [vmem:[#allocation4 + $0xc8] sm:$0xff] %vm780_vm0, %v9066_v56 }
  0xd1   : > { %807 = vst.msk [vmem:[#allocation4 + $0xd0] sm:$0xff] %vm780_vm0, %v9066_v56  ;;  %808 = vst.msk [vmem:[#allocation4 + $0xd8] sm:$0xff] %vm780_vm0, %v9066_v56 }
  0xd2   : > { %809 = vst.msk [vmem:[#allocation4 + $0xe0] sm:$0xff] %vm780_vm0, %v9066_v56  ;;  %810 = vst.msk [vmem:[#allocation4 + $0xe8] sm:$0xff] %vm780_vm0, %v9066_v56 }
  0xd3   : > { %4378 = vxpose.xlu1.b32.cont [4/8] (short) %v960_v63, 128  ;;  %811 = vst.msk [vmem:[#allocation4 + $0xf0] sm:$0xff] %vm780_vm0, %v9066_v56  ;;  %812 = vst.msk [vmem:[#allocation4 + $0xf8] sm:$0xff] %vm780_vm0, %v9066_v56 }
  0xd4   : > { %845 = vst.msk [vmem:[#allocation6] sm:$0xff] %vm715_vm1, %v9066_v56  ;;  %846 = vst.msk [vmem:[#allocation6 + $0x8] sm:$0xff] %vm715_vm1, %v9066_v56 }
  0xd5   : > { %847 = vst.msk [vmem:[#allocation6 + $0x10] sm:$0xff] %vm715_vm1, %v9066_v56  ;;  %848 = vst.msk [vmem:[#allocation6 + $0x18] sm:$0xff] %vm715_vm1, %v9066_v56 }
  0xd6   : > { %849 = vst.msk [vmem:[#allocation6 + $0x20] sm:$0xff] %vm715_vm1, %v9066_v56  ;;  %850 = vst.msk [vmem:[#allocation6 + $0x28] sm:$0xff] %vm715_vm1, %v9066_v56 }
  0xd7   : > { %4379 = vxpose.xlu1.b32.cont [5/8] (short) %v961_v1, 128  ;;  %851 = vst.msk [vmem:[#allocation6 + $0x30] sm:$0xff] %vm715_vm1, %v9066_v56  ;;  %852 = vst.msk [vmem:[#allocation6 + $0x38] sm:$0xff] %vm715_vm1, %v9066_v56 }
  0xd8   : > { %853 = vst.msk [vmem:[#allocation6 + $0x40] sm:$0xff] %vm715_vm1, %v9066_v56  ;;  %854 = vst.msk [vmem:[#allocation6 + $0x48] sm:$0xff] %vm715_vm1, %v9066_v56 }
  0xd9   : > { %855 = vst.msk [vmem:[#allocation6 + $0x50] sm:$0xff] %vm715_vm1, %v9066_v56  ;;  %856 = vst.msk [vmem:[#allocation6 + $0x58] sm:$0xff] %vm715_vm1, %v9066_v56 }
  0xda   : > { %857 = vst.msk [vmem:[#allocation6 + $0x60] sm:$0xff] %vm715_vm1, %v9066_v56  ;;  %858 = vst.msk [vmem:[#allocation6 + $0x68] sm:$0xff] %vm715_vm1, %v9066_v56 }
  0xdb   : > { %4380 = vxpose.xlu1.b32.cont [6/8] (short) %v962_v3, 128  ;;  %859 = vst.msk [vmem:[#allocation6 + $0x70] sm:$0xff] %vm715_vm1, %v9066_v56  ;;  %860 = vst.msk [vmem:[#allocation6 + $0x78] sm:$0xff] %vm715_vm1, %v9066_v56 }
  0xdc   : > { %861 = vst.msk [vmem:[#allocation6 + $0x80] sm:$0xff] %vm715_vm1, %v9066_v56  ;;  %862 = vst.msk [vmem:[#allocation6 + $0x88] sm:$0xff] %vm715_vm1, %v9066_v56 }
  0xdd   : > { %863 = vst.msk [vmem:[#allocation6 + $0x90] sm:$0xff] %vm715_vm1, %v9066_v56  ;;  %864 = vst.msk [vmem:[#allocation6 + $0x98] sm:$0xff] %vm715_vm1, %v9066_v56 }
  0xde   : > { %865 = vst.msk [vmem:[#allocation6 + $0xa0] sm:$0xff] %vm715_vm1, %v9066_v56  ;;  %866 = vst.msk [vmem:[#allocation6 + $0xa8] sm:$0xff] %vm715_vm1, %v9066_v56 }
  0xdf   : > { %4381 = vxpose.xlu1.b32.cont [7/8] (short) %v963_v5, 128  ;;  %867 = vst.msk [vmem:[#allocation6 + $0xb0] sm:$0xff] %vm715_vm1, %v9066_v56  ;;  %868 = vst.msk [vmem:[#allocation6 + $0xb8] sm:$0xff] %vm715_vm1, %v9066_v56 }
  0xe0   : > { %869 = vst.msk [vmem:[#allocation6 + $0xc0] sm:$0xff] %vm715_vm1, %v9066_v56  ;;  %870 = vst.msk [vmem:[#allocation6 + $0xc8] sm:$0xff] %vm715_vm1, %v9066_v56 }
  0xe1   : > { %871 = vst.msk [vmem:[#allocation6 + $0xd0] sm:$0xff] %vm715_vm1, %v9066_v56  ;;  %872 = vst.msk [vmem:[#allocation6 + $0xd8] sm:$0xff] %vm715_vm1, %v9066_v56 }
  0xe2   : > { %873 = vst.msk [vmem:[#allocation6 + $0xe0] sm:$0xff] %vm715_vm1, %v9066_v56  ;;  %874 = vst.msk [vmem:[#allocation6 + $0xe8] sm:$0xff] %vm715_vm1, %v9066_v56 }
  0xe3   : > { %4382 = vxpose.xlu1.b32.end [8/8] (short) %v964_v7, 128  ;;  %875 = vst.msk [vmem:[#allocation6 + $0xf0] sm:$0xff] %vm715_vm1, %v9066_v56  ;;  %876 = vst.msk [vmem:[#allocation6 + $0xf8] sm:$0xff] %vm715_vm1, %v9066_v56 }
  0xe4   : > { %877 = vst.msk [vmem:[#allocation7] sm:$0xff] %vm780_vm0, %v9066_v56  ;;  %878 = vst.msk [vmem:[#allocation7 + $0x8] sm:$0xff] %vm780_vm0, %v9066_v56 }
  0xe5   : > { %879 = vst.msk [vmem:[#allocation7 + $0x10] sm:$0xff] %vm780_vm0, %v9066_v56  ;;  %880 = vst.msk [vmem:[#allocation7 + $0x18] sm:$0xff] %vm780_vm0, %v9066_v56 }
  0xe6   : > { %881 = vst.msk [vmem:[#allocation7 + $0x20] sm:$0xff] %vm780_vm0, %v9066_v56  ;;  %882 = vst.msk [vmem:[#allocation7 + $0x28] sm:$0xff] %vm780_vm0, %v9066_v56 }
  0xe7   : > { %883 = vst.msk [vmem:[#allocation7 + $0x30] sm:$0xff] %vm780_vm0, %v9066_v56  ;;  %884 = vst.msk [vmem:[#allocation7 + $0x38] sm:$0xff] %vm780_vm0, %v9066_v56 }
  0xe8   : > { %885 = vst.msk [vmem:[#allocation7 + $0x40] sm:$0xff] %vm780_vm0, %v9066_v56  ;;  %886 = vst.msk [vmem:[#allocation7 + $0x48] sm:$0xff] %vm780_vm0, %v9066_v56 }
  0xe9   : > { %887 = vst.msk [vmem:[#allocation7 + $0x50] sm:$0xff] %vm780_vm0, %v9066_v56  ;;  %888 = vst.msk [vmem:[#allocation7 + $0x58] sm:$0xff] %vm780_vm0, %v9066_v56 }
  0xea   : > { %889 = vst.msk [vmem:[#allocation7 + $0x60] sm:$0xff] %vm780_vm0, %v9066_v56  ;;  %890 = vst.msk [vmem:[#allocation7 + $0x68] sm:$0xff] %vm780_vm0, %v9066_v56 }
  0xeb   : > { %891 = vst.msk [vmem:[#allocation7 + $0x70] sm:$0xff] %vm780_vm0, %v9066_v56  ;;  %892 = vst.msk [vmem:[#allocation7 + $0x78] sm:$0xff] %vm780_vm0, %v9066_v56 }
  0xec   : > { %893 = vst.msk [vmem:[#allocation7 + $0x80] sm:$0xff] %vm780_vm0, %v9066_v56  ;;  %894 = vst.msk [vmem:[#allocation7 + $0x88] sm:$0xff] %vm780_vm0, %v9066_v56 }
  0xed   : > { %895 = vst.msk [vmem:[#allocation7 + $0x90] sm:$0xff] %vm780_vm0, %v9066_v56  ;;  %896 = vst.msk [vmem:[#allocation7 + $0x98] sm:$0xff] %vm780_vm0, %v9066_v56 }
  0xee   : > { %897 = vst.msk [vmem:[#allocation7 + $0xa0] sm:$0xff] %vm780_vm0, %v9066_v56  ;;  %898 = vst.msk [vmem:[#allocation7 + $0xa8] sm:$0xff] %vm780_vm0, %v9066_v56 }
  0xef   : > { %899 = vst.msk [vmem:[#allocation7 + $0xb0] sm:$0xff] %vm780_vm0, %v9066_v56  ;;  %900 = vst.msk [vmem:[#allocation7 + $0xb8] sm:$0xff] %vm780_vm0, %v9066_v56 }
  0xf0   : > { %901 = vst.msk [vmem:[#allocation7 + $0xc0] sm:$0xff] %vm780_vm0, %v9066_v56  ;;  %902 = vst.msk [vmem:[#allocation7 + $0xc8] sm:$0xff] %vm780_vm0, %v9066_v56 }
  0xf1   : > { %903 = vst.msk [vmem:[#allocation7 + $0xd0] sm:$0xff] %vm780_vm0, %v9066_v56  ;;  %904 = vst.msk [vmem:[#allocation7 + $0xd8] sm:$0xff] %vm780_vm0, %v9066_v56 }
  0xf2   : > { %905 = vst.msk [vmem:[#allocation7 + $0xe0] sm:$0xff] %vm780_vm0, %v9066_v56  ;;  %906 = vst.msk [vmem:[#allocation7 + $0xe8] sm:$0xff] %vm780_vm0, %v9066_v56 }
  0xf3   : > { %907 = vst.msk [vmem:[#allocation7 + $0xf0] sm:$0xff] %vm780_vm0, %v9066_v56  ;;  %908 = vst.msk [vmem:[#allocation7 + $0xf8] sm:$0xff] %vm780_vm0, %v9066_v56 }
 0x101   : > { %8392 = vset.pattern.permute.xlu1 %v12863_v51 }
 0x109   : > { %v9407_v8 = vpop.trf.xlu0 }
 0x10a   : > { %13026 = vst [vmem:[#allocation50_spill] sm:$0xff] %v9407_v8  ;;  %v9409_v9 = vpop.trf.xlu1  ;;  %7585 = vmatprep.mubr.msk.f32.mxu0 %vm780_vm0, %v9407_v8 }
 0x10b   : > { %13027 = vst [vmem:[#allocation51_spill] sm:$0xff] %v9409_v9  ;;  %7625 = vmatprep.mubr.msk.f32.mxu1 %vm780_vm0, %v9409_v9 }
 0x10d   : > { %v9415_v10 = vpop.trf.xlu0 }
 0x10e   : > { %13028 = vst [vmem:[#allocation52_spill] sm:$0xff] %v9415_v10  ;;  %v9417_v11 = vpop.trf.xlu1  ;;  %7586 = vmatmul.mubr.msk.f32.vlgmr.msra.gmra.mrb[0].mxu0 %vm780_vm0, %v9415_v10 }
 0x10f   : > { %13029 = vst [vmem:[#allocation53_spill] sm:$0xff] %v9417_v11  ;;  %7626 = vmatmul.mubr.msk.f32.vlgmr.msra.gmra.mrb[0].mxu1 %vm780_vm0, %v9417_v11  ;;  %v10136_v11 = vld [vmem:[#allocation2 + $0x38] sm:$0xff] }
 0x111   : > { %v9423_v12 = vpop.trf.xlu0 }
 0x112   : > { %13030 = vst [vmem:[#allocation54_spill] sm:$0xff] %v9423_v12  ;;  %v9425_v13 = vpop.trf.xlu1  ;;  %7588 = vmatprep.mubr.msk.f32.mxu0 %vm780_vm0, %v9423_v12 }
 0x113   : > { %13031 = vst [vmem:[#allocation55_spill] sm:$0xff] %v9425_v13  ;;  %7628 = vmatprep.mubr.msk.f32.mxu1 %vm780_vm0, %v9425_v13  ;;  %v10119_v13 = vld [vmem:[#allocation2 + $0xa8] sm:$0xff] }
 0x115   : > { %v9431_v14 = vpop.trf.xlu0 }
 0x116   : > { %13032 = vst [vmem:[#allocation56_spill] sm:$0xff] %v9431_v14  ;;  %v9433_v15 = vpop.trf.xlu1  ;;  %7589 = vmatmul.mubr.msk.f32.gmra.mrb[2].mxu0 %vm780_vm0, %v9431_v14 }
 0x117   : > { %13033 = vst [vmem:[#allocation57_spill] sm:$0xff] %v9433_v15  ;;  %7629 = vmatmul.mubr.msk.f32.gmra.mrb[2].mxu1 %vm780_vm0, %v9433_v15  ;;  %v10104_v15 = vld [vmem:[#allocation2 + $0x28] sm:$0xff] }
 0x119   : > { %v9439_v16 = vpop.trf.xlu0 }
 0x11a   : > { %13034 = vst [vmem:[#allocation58_spill] sm:$0xff] %v9439_v16  ;;  %v9441_v17 = vpop.trf.xlu1  ;;  %7591 = vmatprep.mubr.msk.f32.mxu0 %vm780_vm0, %v9439_v16  ;;  %v10144_v16 = vld [vmem:[#allocation2 + $0xb0] sm:$0xff] }
 0x11b   : > { %13035 = vst [vmem:[#allocation59_spill] sm:$0xff] %v9441_v17  ;;  %7631 = vmatprep.mubr.msk.f32.mxu1 %vm780_vm0, %v9441_v17 }
 0x11d   : > { %v9447_v18 = vpop.trf.xlu0 }
 0x11e   : > { %13036 = vst [vmem:[#allocation60_spill] sm:$0xff] %v9447_v18  ;;  %v9449_v19 = vpop.trf.xlu1  ;;  %7592 = vmatmul.mubr.msk.f32.gmra.mrb[4].mxu0 %vm780_vm0, %v9447_v18 }
 0x11f   : > { %13037 = vst [vmem:[#allocation61_spill] sm:$0xff] %v9449_v19  ;;  %7632 = vmatmul.mubr.msk.f32.gmra.mrb[4].mxu1 %vm780_vm0, %v9449_v19  ;;  %v10095_v19 = vld [vmem:[#allocation2 + $0x10] sm:$0xff] }
 0x121   : > { %v9455_v20 = vpop.trf.xlu0 }
 0x122   : > { %13038 = vst [vmem:[#allocation62_spill] sm:$0xff] %v9455_v20  ;;  %v9457_v21 = vpop.trf.xlu1  ;;  %7594 = vmatprep.mubr.msk.f32.mxu0 %vm780_vm0, %v9455_v20 }
 0x123   : > { %13039 = vst [vmem:[#allocation63_spill] sm:$0xff] %v9457_v21  ;;  %7634 = vmatprep.mubr.msk.f32.mxu1 %vm780_vm0, %v9457_v21 }
 0x125   : > { %v9463_v22 = vpop.trf.xlu0 }
 0x126   : > { %13040 = vst [vmem:[#allocation64_spill] sm:$0xff] %v9463_v22  ;;  %v9465_v23 = vpop.trf.xlu1  ;;  %7595 = vmatmul.mubr.msk.f32.gmra.mrb[6].mxu0 %vm780_vm0, %v9463_v22 }
 0x127   : > { %13041 = vst [vmem:[#allocation65_spill] sm:$0xff] %v9465_v23  ;;  %7635 = vmatmul.mubr.msk.f32.gmra.mrb[6].mxu1 %vm780_vm0, %v9465_v23 }
 0x129   : > { %v9471_v24 = vpop.trf.xlu0 }
 0x12a   : > { %13042 = vst [vmem:[#allocation66_spill] sm:$0xff] %v9471_v24  ;;  %v9473_v25 = vpop.trf.xlu1  ;;  %7597 = vmatprep.mubr.msk.f32.mxu0 %vm780_vm0, %v9471_v24 }
 0x12b   : > { %13043 = vst [vmem:[#allocation67_spill] sm:$0xff] %v9473_v25  ;;  %7637 = vmatprep.mubr.msk.f32.mxu1 %vm780_vm0, %v9473_v25 }
 0x12d   : > { %v9479_v26 = vpop.trf.xlu0 }
 0x12e   : > { %13044 = vst [vmem:[#allocation68_spill] sm:$0xff] %v9479_v26  ;;  %v9481_v27 = vpop.trf.xlu1  ;;  %7598 = vmatmul.mubr.msk.f32.gmra.mrb[8].mxu0 %vm780_vm0, %v9479_v26  ;;  %v10083_v26 = vld [vmem:[#allocation2 + $0x98] sm:$0xff] }
 0x12f   : > { %13045 = vst [vmem:[#allocation69_spill] sm:$0xff] %v9481_v27  ;;  %7638 = vmatmul.mubr.msk.f32.gmra.mrb[8].mxu1 %vm780_vm0, %v9481_v27 }
 0x131   : > { %v9487_v28 = vpop.trf.xlu0 }
 0x132   : > { %13046 = vst [vmem:[#allocation70_spill] sm:$0xff] %v9487_v28  ;;  %v9489_v29 = vpop.trf.xlu1  ;;  %7600 = vmatprep.mubr.msk.f32.mxu0 %vm780_vm0, %v9487_v28 }
 0x133   : > { %13047 = vst [vmem:[#allocation71_spill] sm:$0xff] %v9489_v29  ;;  %7640 = vmatprep.mubr.msk.f32.mxu1 %vm780_vm0, %v9489_v29 }
 0x135   : > { %v9495_v30 = vpop.trf.xlu0 }
 0x136   : > { %13048 = vst [vmem:[#allocation72_spill] sm:$0xff] %v9495_v30  ;;  %v9497_v31 = vpop.trf.xlu1  ;;  %7601 = vmatmul.mubr.msk.f32.gmra.mrb[10].mxu0 %vm780_vm0, %v9495_v30  ;;  %v953_v30 = vld [vmem:[%s9350_s23 + $0x60] sm:$0xff] }
 0x137   : > { %13049 = vst [vmem:[#allocation73_spill] sm:$0xff] %v9497_v31  ;;  %7641 = vmatmul.mubr.msk.f32.gmra.mrb[10].mxu1 %vm780_vm0, %v9497_v31  ;;  %v949_v31 = vld [vmem:[%s9350_s23 + $0x40] sm:$0xff] }
 0x138   : > { %v965_v29 = vmul.f32 0.125, %v949_v31  ;;  %v969_v31 = vmul.f32 0.125, %v953_v30 }
 0x139   : > { %v9503_v32 = vpop.trf.xlu0 }
 0x13a   : > { %13050 = vst [vmem:[#allocation74_spill] sm:$0xff] %v9503_v32  ;;  %v9505_v33 = vpop.trf.xlu1  ;;  %7603 = vmatprep.mubr.msk.f32.mxu0 %vm780_vm0, %v9503_v32 }
 0x13b   : > { %13051 = vst [vmem:[#allocation75_spill] sm:$0xff] %v9505_v33  ;;  %7643 = vmatprep.mubr.msk.f32.mxu1 %vm780_vm0, %v9505_v33 }
 0x13d   : > { %v9511_v34 = vpop.trf.xlu0 }
 0x13e   : > { %13052 = vst [vmem:[#allocation76_spill] sm:$0xff] %v9511_v34  ;;  %v9513_v35 = vpop.trf.xlu1  ;;  %7604 = vmatmul.mubr.msk.f32.gmra.mrb[12].mxu0 %vm780_vm0, %v9511_v34 }
 0x13f   : > { %13053 = vst [vmem:[#allocation77_spill] sm:$0xff] %v9513_v35  ;;  %7644 = vmatmul.mubr.msk.f32.gmra.mrb[12].mxu1 %vm780_vm0, %v9513_v35 }
 0x141   : > { %v9519_v36 = vpop.trf.xlu0 }
 0x142   : > { %13054 = vst [vmem:[#allocation78_spill] sm:$0xff] %v9519_v36  ;;  %v9521_v37 = vpop.trf.xlu1  ;;  %7606 = vmatprep.mubr.msk.f32.mxu0 %vm780_vm0, %v9519_v36 }
 0x143   : > { %13055 = vst [vmem:[#allocation79_spill] sm:$0xff] %v9521_v37  ;;  %7646 = vmatprep.mubr.msk.f32.mxu1 %vm780_vm0, %v9521_v37 }
 0x145   : > { %v9527_v38 = vpop.trf.xlu0 }
 0x146   : > { %13056 = vst [vmem:[#allocation80_spill] sm:$0xff] %v9527_v38  ;;  %v9529_v39 = vpop.trf.xlu1  ;;  %7607 = vmatmul.mubr.msk.f32.gmra.mrb[14].mxu0 %vm780_vm0, %v9527_v38 }
 0x147   : > { %13057 = vst [vmem:[#allocation81_spill] sm:$0xff] %v9529_v39  ;;  %7647 = vmatmul.mubr.msk.f32.gmra.mrb[14].mxu1 %vm780_vm0, %v9529_v39 }
 0x14a   : > { %v9991_v3 = vpop.trf.xlu1 }
 0x14b   : > { %13078 = vst [vmem:[#allocation102_spill] sm:$0xff] %v9991_v3 }
 0x14e   : > { %v10003_v44 = vpop.trf.xlu1 }
 0x14f   : > { %13083 = vst [vmem:[#allocation107_spill] sm:$0xff] %v10003_v44 }
 0x152   : > { %v10017_v37 = vpop.trf.xlu1 }
 0x153   : > { %13088 = vst [vmem:[#allocation112_spill] sm:$0xff] %v10017_v37 }
 0x156   : > { %v10021_v44 = vpop.trf.xlu1 }
 0x157   : > { %13089 = vst [vmem:[#allocation113_spill] sm:$0xff] %v10021_v44  ;;  %v950_v44 = vld [vmem:[%s9350_s23 + $0x48] sm:$0xff] }
 0x158   : > { %v966_v27 = vmul.f32 0.125, %v950_v44  ;;  %v955_v44 = vld [vmem:[%s9350_s23 + $0x70] sm:$0xff] }
 0x15a   : > { %v10024_v35 = vpop.trf.xlu1 }
 0x15b   : > { %13090 = vst [vmem:[#allocation114_spill] sm:$0xff] %v10024_v35  ;;  %v951_v35 = vld [vmem:[%s9350_s23 + $0x50] sm:$0xff] }
 0x15e   : > { %v10026_v38 = vpop.trf.xlu1 }
 0x15f   : > { %13091 = vst [vmem:[#allocation115_spill] sm:$0xff] %v10026_v38  ;;  %v967_v38 = vmul.f32 0.125, %v951_v35  ;;  %v956_v35 = vld [vmem:[%s9350_s23 + $0x78] sm:$0xff] }
 0x162   : > { %v10028_v33 = vpop.trf.xlu1 }
 0x163   : > { %13092 = vst [vmem:[#allocation116_spill] sm:$0xff] %v10028_v33  ;;  %v952_v33 = vld [vmem:[%s9350_s23 + $0x58] sm:$0xff] }
 0x166   : > { %v10030_v36 = vpop.trf.xlu1 }
 0x167   : > { %13093 = vst [vmem:[#allocation117_spill] sm:$0xff] %v10030_v36 }
 0x16a   : > { %v10032_v37 = vpop.trf.xlu1 }
 0x16b   : > { %13094 = vst [vmem:[#allocation118_spill] sm:$0xff] %v10032_v37  ;;  %v968_v37 = vmul.f32 0.125, %v952_v33 }
 0x16e   : > { %v10035_v34 = vpop.trf.xlu1 }
 0x16f   : > { %13095 = vst [vmem:[#allocation119_spill] sm:$0xff] %v10035_v34  ;;  %v954_v34 = vld [vmem:[%s9350_s23 + $0x68] sm:$0xff] }
 0x172   : > { %v10038_v32 = vpop.trf.xlu1 }
 0x173   : > { %13096 = vst [vmem:[#allocation120_spill] sm:$0xff] %v10038_v32  ;;  %v970_v32 = vmul.f32 0.125, %v954_v34 }
 0x176   : > { %v10042_v36 = vpop.trf.xlu1 }
 0x177   : > { %13097 = vst [vmem:[#allocation121_spill] sm:$0xff] %v10042_v36  ;;  %v972_v36 = vmul.f32 0.125, %v956_v35 }
 0x17a   : > { %v10045_v25 = vpop.trf.xlu1 }
 0x17b   : > { %13098 = vst [vmem:[#allocation122_spill] sm:$0xff] %v10045_v25 }
 0x1e1   : > { %v9535_v40 = vpop.f32.mrb[0].mxu0 }
 0x1e2   : > { %v9537_v41 = vpop.f32.mrb[0].mxu1  ;;  %1490 = vmax.xlane.f32.xlu1 %v9535_v40  ;;  %v9540_v42 = vpop.f32.mrb[1].mxu0 }
 0x1e3   : > { %13058 = vst [vmem:[#allocation82_spill] sm:$0xff] %v9537_v41  ;;  %v9542_v43 = vpop.f32.mrb[1].mxu1  ;;  %1488 = vmax.xlane.f32.xlu0 %v9540_v42 }
 0x1e6   : > { %1522 = vmax.xlane.f32.xlu1 %v9537_v41  ;;  %v10277_v41 = vld [vmem:[#allocation2 + $0xe8] sm:$0xff] }
 0x1e7   : > { %1520 = vmax.xlane.f32.xlu0 %v9542_v43 }
 0x1e9   : > { %v9675_v45 = vpop.f32.mrb[2].mxu0 }
 0x1ea   : > { %13059 = vst [vmem:[#allocation83_spill] sm:$0xff] %v9675_v45  ;;  %v9677_v46 = vpop.f32.mrb[2].mxu1  ;;  %1494 = vmax.xlane.f32.xlu1 %v9675_v45  ;;  %v9680_v47 = vpop.f32.mrb[3].mxu0 }
 0x1eb   : > { %13060 = vst [vmem:[#allocation84_spill] sm:$0xff] %v9677_v46  ;;  %v9682_v48 = vpop.f32.mrb[3].mxu1 }
 0x1ec   : > { %13061 = vst [vmem:[#allocation85_spill] sm:$0xff] %v9682_v48  ;;  %1524 = vmax.xlane.f32.xlu0 %v9682_v48 }
 0x1ee   : > { %1526 = vmax.xlane.f32.xlu1 %v9677_v46 }
 0x1f1   : > { %v9686_v49 = vpop.f32.mrb[4].mxu0 }
 0x1f2   : > { %13062 = vst [vmem:[#allocation86_spill] sm:$0xff] %v9686_v49  ;;  %v9688_v50 = vpop.f32.mrb[4].mxu1  ;;  %1492 = vmax.xlane.f32.xlu1 %v9680_v47  ;;  %v9692_v52 = vpop.f32.mrb[5].mxu0 }
 0x1f3   : > { %13063 = vst [vmem:[#allocation87_spill] sm:$0xff] %v9688_v50  ;;  %13064 = vst [vmem:[#allocation88_spill] sm:$0xff] %v9692_v52  ;;  %v9694_v53 = vpop.f32.mrb[5].mxu1  ;;  %1496 = vmax.xlane.f32.xlu0 %v9692_v52  ;;  %v998_v52 = vld [vmem:[%s9347_s12 + $0x48] sm:$0xff] }
 0x1f4   : > { %13065 = vst [vmem:[#allocation89_spill] sm:$0xff] %v9694_v53 }
 0x1f6   : > { %1498 = vmax.xlane.f32.xlu1 %v9686_v49  ;;  %v10302_v49 = vld [vmem:[#allocation2 + $0x78] sm:$0xff] }
 0x1f7   : > { %1528 = vmax.xlane.f32.xlu0 %v9694_v53 }
 0x1f9   : > { %v9699_v54 = vpop.f32.mrb[6].mxu0 }
 0x1fa   : > { %13066 = vst [vmem:[#allocation90_spill] sm:$0xff] %v9699_v54  ;;  %v9701_v55 = vpop.f32.mrb[6].mxu1  ;;  %v9959_v57 = vpop.f32.mrb[7].mxu0  ;;  %1530 = vmax.xlane.f32.xlu1 %v9688_v50 }
 0x1fb   : > { %13067 = vst [vmem:[#allocation91_spill] sm:$0xff] %v9701_v55  ;;  %13068 = vst [vmem:[#allocation92_spill] sm:$0xff] %v9959_v57  ;;  %v9961_v58 = vpop.f32.mrb[7].mxu1  ;;  %1500 = vmax.xlane.f32.xlu0 %v9959_v57 }
 0x1fc   : > { %13069 = vst [vmem:[#allocation93_spill] sm:$0xff] %v9961_v58 }
 0x1fe   : > { %1502 = vmax.xlane.f32.xlu1 %v9699_v54 }
 0x1ff   : > { %1532 = vmax.xlane.f32.xlu0 %v9961_v58 }
 0x201   : > { %v9967_v59 = vpop.f32.mrb[8].mxu0 }
 0x202   : > { %13070 = vst [vmem:[#allocation94_spill] sm:$0xff] %v9967_v59  ;;  %v9969_v60 = vpop.f32.mrb[8].mxu1  ;;  %v9971_v61 = vpop.f32.mrb[9].mxu0  ;;  %1534 = vmax.xlane.f32.xlu1 %v9701_v55 }
 0x203   : > { %13071 = vst [vmem:[#allocation95_spill] sm:$0xff] %v9969_v60  ;;  %13072 = vst [vmem:[#allocation96_spill] sm:$0xff] %v9971_v61  ;;  %v9973_v62 = vpop.f32.mrb[9].mxu1  ;;  %1504 = vmax.xlane.f32.xlu0 %v9971_v61 }
 0x204   : > { %13073 = vst [vmem:[#allocation97_spill] sm:$0xff] %v9973_v62 }
 0x206   : > { %1506 = vmax.xlane.f32.xlu1 %v9967_v59 }
 0x207   : > { %1536 = vmax.xlane.f32.xlu0 %v9973_v62 }
 0x209   : > { %v9979_v63 = vpop.f32.mrb[10].mxu0 }
 0x20a   : > { %13074 = vst [vmem:[#allocation98_spill] sm:$0xff] %v9979_v63  ;;  %v9981_v0 = vpop.f32.mrb[10].mxu1  ;;  %v9983_v1 = vpop.f32.mrb[11].mxu0  ;;  %1538 = vmax.xlane.f32.xlu1 %v9969_v60 }
 0x20b   : > { %13075 = vst [vmem:[#allocation99_spill] sm:$0xff] %v9981_v0  ;;  %13076 = vst [vmem:[#allocation100_spill] sm:$0xff] %v9983_v1  ;;  %v9985_v2 = vpop.f32.mrb[11].mxu1  ;;  %1508 = vmax.xlane.f32.xlu0 %v9983_v1  ;;  %v990_v1 = vld [vmem:[%s9347_s12 + $0x8] sm:$0xff] }
 0x20c   : > { %13077 = vst [vmem:[#allocation101_spill] sm:$0xff] %v9985_v2 }
 0x20e   : > { %1510 = vmax.xlane.f32.xlu1 %v9979_v63  ;;  %v10254_v63 = vld [vmem:[#allocation2 + $0x68] sm:$0xff] }
 0x20f   : > { %1540 = vmax.xlane.f32.xlu0 %v9985_v2 }
 0x211   : > { %v9993_v4 = vpop.f32.mrb[12].mxu0 }
 0x212   : > { %13079 = vst [vmem:[#allocation103_spill] sm:$0xff] %v9993_v4  ;;  %v9995_v5 = vpop.f32.mrb[12].mxu1  ;;  %v9997_v6 = vpop.f32.mrb[13].mxu0  ;;  %1542 = vmax.xlane.f32.xlu1 %v9981_v0 }
 0x213   : > { %13080 = vst [vmem:[#allocation104_spill] sm:$0xff] %v9995_v5  ;;  %13081 = vst [vmem:[#allocation105_spill] sm:$0xff] %v9997_v6  ;;  %v9999_v7 = vpop.f32.mrb[13].mxu1  ;;  %1512 = vmax.xlane.f32.xlu0 %v9997_v6 }
 0x214   : > { %13082 = vst [vmem:[#allocation106_spill] sm:$0xff] %v9999_v7 }
 0x216   : > { %1514 = vmax.xlane.f32.xlu1 %v9993_v4  ;;  %v10214_v4 = vld [vmem:[#allocation2 + $0x58] sm:$0xff] }
 0x217   : > { %1544 = vmax.xlane.f32.xlu0 %v9999_v7 }
 0x219   : > { %v10007_v56 = vpop.f32.mrb[14].mxu0 }
 0x21a   : > { %13084 = vst [vmem:[#allocation108_spill] sm:$0xff] %v10007_v56  ;;  %v10009_v51 = vpop.f32.mrb[14].mxu1  ;;  %v10011_v3 = vpop.f32.mrb[15].mxu0  ;;  %1546 = vmax.xlane.f32.xlu1 %v9995_v5 }
 0x21b   : > { %13085 = vst [vmem:[#allocation109_spill] sm:$0xff] %v10009_v51  ;;  %13086 = vst [vmem:[#allocation110_spill] sm:$0xff] %v10011_v3  ;;  %v10013_v39 = vpop.f32.mrb[15].mxu1  ;;  %1516 = vmax.xlane.f32.xlu0 %v10011_v3 }
 0x21c   : > { %13087 = vst [vmem:[#allocation111_spill] sm:$0xff] %v10013_v39 }
 0x21e   : > { %1518 = vmax.xlane.f32.xlu1 %v10007_v56  ;;  %v13104_v56 = vmov 0  }
 0x21f   : > { %1548 = vmax.xlane.f32.xlu0 %v10013_v39 }
 0x222   : > { %1550 = vmax.xlane.f32.xlu1 %v10009_v51 }
 0x24c   : > { %4600 = vxpose.xlu0.b32.start [1/8] (short) %v965_v29, 128  ;;  %v10048_v29 = vpop.trf.xlu1 }
 0x24d   : > { %13099 = vst [vmem:[#allocation123_spill] sm:$0xff] %v10048_v29 }
 0x250   : > { %4601 = vxpose.xlu0.b32.cont [2/8] (short) %v966_v27, 128  ;;  %v971_v27 = vmul.f32 0.125, %v955_v44  ;;  %v10052_v28 = vpop.trf.xlu1  ;;  %v10079_v44 = vld [vmem:[#allocation2 + $0x90] sm:$0xff] }
 0x251   : > { %13100 = vst [vmem:[#allocation124_spill] sm:$0xff] %v10052_v28 }
 0x254   : > { %4602 = vxpose.xlu0.b32.cont [3/8] (short) %v967_v38, 128  ;;  %v10054_v33 = vpop.trf.xlu1  ;;  %v10056_v38 = vld [vmem:[#allocation2 + $0x8] sm:$0xff] }
 0x255   : > { %13101 = vst [vmem:[#allocation125_spill] sm:$0xff] %v10054_v33  ;;  %v10075_v33 = vld [vmem:[#allocation2 + $0x18] sm:$0xff] }
 0x258   : > { %4603 = vxpose.xlu0.b32.cont [4/8] (short) %v968_v37, 128  ;;  %v1456_v37 = vld [vmem:[#allocation2] sm:$0xff] }
 0x25c   : > { %4604 = vxpose.xlu0.b32.cont [5/8] (short) %v969_v31, 128 }
 0x260   : > { %4605 = vxpose.xlu0.b32.cont [6/8] (short) %v970_v32, 128  ;;  %v10063_v32 = vld [vmem:[#allocation2 + $0x88] sm:$0xff] }
 0x264   : > { %4606 = vxpose.xlu0.b32.cont [7/8] (short) %v971_v27, 128 }
 0x268   : > { %4607 = vxpose.xlu0.b32.end [8/8] (short) %v972_v36, 128  ;;  %v1472_v36 = vld [vmem:[#allocation2 + $0x80] sm:$0xff] }
 0x26f   : > { %v1491_v30 = vpop.xlane.xlu1 %1490 }
 0x270   : > { %v10059_v31 = vmax.f32 %v10056_v38, %v1491_v30  ;;  %v1489_v34 = vpop.xlane.xlu0 %1488 }
 0x271   : > { %v10061_v29 = vmax.f32 %v1456_v37, %v1489_v34 }
 0x272   : > { %2708 = vst.msk [vmem:[#allocation2 + $0x8] sm:$0xff] %vm715_vm1, %v10059_v31  ;;  %1687 = vperm.xlu1 %8392, %v10059_v31  }
 0x273   : > { %2707 = vst.msk [vmem:[#allocation2] sm:$0xff] %vm715_vm1, %v10061_v29  ;;  %v1523_v27 = vpop.xlane.xlu1 %1522 }
 0x274   : > { %v10073_v35 = vmax.f32 %v10063_v32, %v1523_v27  ;;  %v1521_v30 = vpop.xlane.xlu0 %1520 }
 0x275   : > { %v1568_v34 = vmax.f32 %v1472_v36, %v1521_v30  ;;  %v1584_v30 = vsub.f32 %v1456_v37, %v10061_v29 }
 0x276   : > { %2724 = vst.msk [vmem:[#allocation2 + $0x88] sm:$0xff] %vm715_vm1, %v10073_v35 }
 0x277   : > { %2723 = vst.msk [vmem:[#allocation2 + $0x80] sm:$0xff] %vm715_vm1, %v1568_v34  ;;  %v1495_v28 = vpop.xlane.xlu1 %1494  ;;  %1762 = vperm.xlu1 %8392, %v1568_v34   ;;  %v1600_v22 = vsub.f32 %v1472_v36, %v1568_v34 }
 0x278   : > { %v1555_v25 = vmax.f32 %v10075_v33, %v1495_v28  ;;  %v10099_v28 = vld [vmem:[#allocation2 + $0x20] sm:$0xff] }
 0x279   : > { %v1525_v23 = vpop.xlane.xlu0 %1524 }
 0x27a   : > { %v10086_v27 = vmax.f32 %v10079_v44, %v1525_v23  ;;  %2710 = vst.msk [vmem:[#allocation2 + $0x18] sm:$0xff] %vm715_vm1, %v1555_v25  ;;  %v1616_v23 = vmul.f32 1.442695, %v1584_v30  ;;  %v1648_v30 = vmul.f32 1.442695, %v1600_v22  ;;  %v10129_v22 = vld [vmem:[#allocation2 + $0x30] sm:$0xff] }
 0x27b   : > { %v1527_v21 = vpop.xlane.xlu1 %1526  ;;  %1697 = vperm.xlu1 %8392, %v1555_v25  }
 0x27c   : > { %2725 = vst.msk [vmem:[#allocation2 + $0x90] sm:$0xff] %vm715_vm1, %v10086_v27  ;;  %v10093_v24 = vmax.f32 %v10083_v26, %v1527_v21  ;;  %v10112_v21 = vld [vmem:[#allocation2 + $0xa0] sm:$0xff]  ;;  %8394 = vpow2.f32 %v1616_v23 }
 0x27d   : > { %8396 = vpow2.f32 %v1648_v30  ;;  %v1587_v30 = vsub.f32 %v10075_v33, %v1555_v25  ;;  %v10164_v33 = vld [vmem:[#allocation2 + $0x40] sm:$0xff] }
 0x27e   : > { %2726 = vst.msk [vmem:[#allocation2 + $0x98] sm:$0xff] %vm715_vm1, %v10093_v24 }
 0x27f   : > { %v1493_v17 = vpop.xlane.xlu1 %1492 }
 0x280   : > { %v10102_v37 = vmax.f32 %v10095_v19, %v1493_v17  ;;  %v1497_v20 = vpop.xlane.xlu0 %1496 }
 0x281   : > { %v10107_v18 = vmax.f32 %v10099_v28, %v1497_v20 }
 0x282   : > { %2709 = vst.msk [vmem:[#allocation2 + $0x10] sm:$0xff] %vm715_vm1, %v10102_v37  ;;  %1692 = vperm.xlu1 %8392, %v10102_v37   ;;  %v1586_v7 = vsub.f32 %v10095_v19, %v10102_v37  ;;  %v10203_v19 = vld [vmem:[#allocation2 + $0x50] sm:$0xff] }
 0x283   : > { %v1499_v36 = vpop.xlane.xlu1 %1498  ;;  %2711 = vst.msk [vmem:[#allocation2 + $0x20] sm:$0xff] %vm715_vm1, %v10107_v18 }
 0x284   : > { %v10117_v17 = vmax.f32 %v10104_v15, %v1499_v36  ;;  %v1529_v34 = vpop.xlane.xlu0 %1528  ;;  %v1620_v37 = vmul.f32 1.442695, %v1586_v7  ;;  %v10233_v7 = vld [vmem:[#allocation2 + $0xd8] sm:$0xff] }
 0x285   : > { %v10122_v20 = vmax.f32 %v10112_v21, %v1529_v34 }
 0x286   : > { %1772 = vperm.xlu1 %8392, %v10086_v27   ;;  %2712 = vst.msk [vmem:[#allocation2 + $0x28] sm:$0xff] %vm715_vm1, %v10117_v17  ;;  %v10152_v10 = vpop.eup %8394 }
 0x287   : > { %v1531_v23 = vpop.xlane.xlu1 %1530  ;;  %2727 = vst.msk [vmem:[#allocation2 + $0xa0] sm:$0xff] %vm715_vm1, %v10122_v20  ;;  %13102 = vst [vmem:[#allocation126_spill] sm:$0xff] %v10152_v10  ;;  %v10171_v3 = vpop.eup %8396  ;;  %v1604_v59 = vsub.f32 %v10112_v21, %v10122_v20 }
 0x288   : > { %v10134_v36 = vmax.f32 %v10119_v13, %v1531_v23  ;;  %v1501_v34 = vpop.xlane.xlu0 %1500  ;;  %13103 = vst [vmem:[#allocation127_spill] sm:$0xff] %v10171_v3 }
 0x289   : > { %v10139_v14 = vmax.f32 %v10129_v22, %v1501_v34  ;;  %v10154_v34 = vld [vmem:[#allocation2 + $0xb8] sm:$0xff] }
 0x28a   : > { %1707 = vperm.xlu1 %8392, %v10117_v17   ;;  %2728 = vst.msk [vmem:[#allocation2 + $0xa8] sm:$0xff] %vm715_vm1, %v10134_v36 }
 0x28b   : > { %v1503_v9 = vpop.xlane.xlu1 %1502  ;;  %2713 = vst.msk [vmem:[#allocation2 + $0x30] sm:$0xff] %vm715_vm1, %v10139_v14 }
 0x28c   : > { %v10150_v23 = vmax.f32 %v10136_v11, %v1503_v9  ;;  %v1533_v12 = vpop.xlane.xlu0 %1532  ;;  %v1622_v9 = vmul.f32 1.442695, %v1587_v30 }
 0x28d   : > { %v10157_v8 = vmax.f32 %v10144_v16, %v1533_v12 }
 0x28e   : > { %2453 = vperm.xlu1 %8392, %v10152_v10   ;;  %2714 = vst.msk [vmem:[#allocation2 + $0x38] sm:$0xff] %vm715_vm1, %v10150_v23  ;;  %v10173_v10 = vld [vmem:[#allocation2 + $0x48] sm:$0xff]  ;;  %8398 = vpow2.f32 %v1622_v9 }
 0x28f   : > { %v1535_v39 = vpop.xlane.xlu1 %1534  ;;  %2729 = vst.msk [vmem:[#allocation2 + $0xb0] sm:$0xff] %vm715_vm1, %v10157_v8  ;;  %8400 = vpow2.f32 %v1620_v37  ;;  %v10243_v37 = vld [vmem:[#allocation2 + $0x60] sm:$0xff] }
 0x290   : > { %v10169_v51 = vmax.f32 %v10154_v34, %v1535_v39  ;;  %v1505_v12 = vpop.xlane.xlu0 %1504  ;;  %v10184_v39 = vld [vmem:[#allocation2 + $0xc0] sm:$0xff] }
 0x291   : > { %v10176_v25 = vmax.f32 %v10164_v33, %v1505_v12  ;;  %8393 = vset.pattern.permute.xlu0 %v13104_v56 }
 0x292   : > { %2533 = vperm.xlu1 %8392, %v10171_v3   ;;  %2730 = vst.msk [vmem:[#allocation2 + $0xb8] sm:$0xff] %vm715_vm1, %v10169_v51  ;;  %v10193_v3 = vld [vmem:[#allocation2 + $0xc8] sm:$0xff] }
 0x293   : > { %v1507_v5 = vpop.xlane.xlu1 %1506  ;;  %2715 = vst.msk [vmem:[#allocation2 + $0x40] sm:$0xff] %vm715_vm1, %v10176_v25 }
 0x294   : > { %v10191_v56 = vmax.f32 %v10173_v10, %v1507_v5  ;;  %v1537_v12 = vpop.xlane.xlu0 %1536  ;;  %v1602_v5 = vsub.f32 %v10079_v44, %v10086_v27  ;;  %v10224_v44 = vld [vmem:[#allocation2 + $0xd0] sm:$0xff] }
 0x295   : > { %v10196_v30 = vmax.f32 %v10184_v39, %v1537_v12 }
 0x296   : > { %1702 = vperm.xlu1 %8392, %v10107_v18   ;;  %2716 = vst.msk [vmem:[#allocation2 + $0x48] sm:$0xff] %vm715_vm1, %v10191_v56 }
 0x297   : > { %v1539_v6 = vpop.xlane.xlu1 %1538  ;;  %2731 = vst.msk [vmem:[#allocation2 + $0xc0] sm:$0xff] %vm715_vm1, %v10196_v30 }
 0x298   : > { %v10212_v12 = vmax.f32 %v10193_v3, %v1539_v6  ;;  %v1509_v9 = vpop.xlane.xlu0 %1508  ;;  %v1652_v6 = vmul.f32 1.442695, %v1602_v5  ;;  %v10231_v2 = vpop.eup %8398 }
 0x299   : > { %v10217_v60 = vmax.f32 %v10203_v19, %v1509_v9  ;;  %13105 = vst [vmem:[#allocation128_spill] sm:$0xff] %v10231_v2  ;;  %v10275_v58 = vpop.eup %8400 }
 0x29a   : > { %1782 = vperm.xlu1 %8392, %v10122_v20   ;;  %2732 = vst.msk [vmem:[#allocation2 + $0xc8] sm:$0xff] %vm715_vm1, %v10212_v12  ;;  %8402 = vpow2.f32 %v1652_v6  ;;  %13106 = vst [vmem:[#allocation129_spill] sm:$0xff] %v10275_v58  ;;  %v1656_v20 = vmul.f32 1.442695, %v1604_v59  ;;  %v993_v59 = vld [vmem:[%s9347_s12 + $0x20] sm:$0xff] }
 0x29b   : > { %v1511_v27 = vpop.xlane.xlu1 %1510  ;;  %2717 = vst.msk [vmem:[#allocation2 + $0x50] sm:$0xff] %vm715_vm1, %v10217_v60 }
 0x29c   : > { %v10229_v9 = vmax.f32 %v10214_v4, %v1511_v27  ;;  %v1541_v0 = vpop.xlane.xlu0 %1540  ;;  %v989_v27 = vld [vmem:[%s9347_s12] sm:$0xff] }
 0x29d   : > { %v10236_v55 = vmax.f32 %v10224_v44, %v1541_v0  ;;  %v8081_v0 = vpack.c.bf16 %v990_v1, %v989_v27  ;;  %v10264_v1 = vld [vmem:[#allocation2 + $0xe0] sm:$0xff] }
 0x29e   : > { %2468 = vperm.xlu1 %8392, %v10231_v2   ;;  %2718 = vst.msk [vmem:[#allocation2 + $0x58] sm:$0xff] %vm715_vm1, %v10229_v9 }
 0x29f   : > { %v1543_v62 = vpop.xlane.xlu1 %1542  ;;  %2733 = vst.msk [vmem:[#allocation2 + $0xd0] sm:$0xff] %vm715_vm1, %v10236_v55  ;;  %8082 = vmatprep.subr.bf16.mxu0 %v8081_v0 }
 0x2a0   : > { %v10252_v2 = vmax.f32 %v10233_v7, %v1543_v62  ;;  %v1513_v5 = vpop.xlane.xlu0 %1512  ;;  %8084 = vmatpush3.bf16.xpose.msra.mxu0 %v8081_v0  ;;  %v1588_v62 = vsub.f32 %v10099_v28, %v10107_v18  ;;  %v10287_v28 = vld [vmem:[#allocation2 + $0x70] sm:$0xff] }
 0x2a1   : > { %v10257_v46 = vmax.f32 %v10243_v37, %v1513_v5  ;;  %v992_v5 = vld [vmem:[%s9347_s12 + $0x18] sm:$0xff] }
 0x2a2   : > { %1717 = vperm.xlu1 %8392, %v10150_v23   ;;  %2734 = vst.msk [vmem:[#allocation2 + $0xd8] sm:$0xff] %vm715_vm1, %v10252_v2  ;;  %v1624_v61 = vmul.f32 1.442695, %v1588_v62 }
 0x2a3   : > { %v1515_v27 = vpop.xlane.xlu1 %1514  ;;  %2719 = vst.msk [vmem:[#allocation2 + $0x60] sm:$0xff] %vm715_vm1, %v10257_v46 }
 0x2a4   : > { %v10273_v6 = vmax.f32 %v10254_v63, %v1515_v27  ;;  %v1545_v50 = vpop.xlane.xlu0 %1544  ;;  %v991_v27 = vld [vmem:[%s9347_s12 + $0x10] sm:$0xff]  ;;  %v10300_v57 = vpop.eup %8402  ;;  %8404 = vpow2.f32 %v1624_v61  ;;  %v994_v61 = vld [vmem:[%s9347_s12 + $0x28] sm:$0xff] }
 0x2a5   : > { %v10280_v0 = vmax.f32 %v10264_v1, %v1545_v50  ;;  %13107 = vst [vmem:[#allocation130_spill] sm:$0xff] %v10300_v57  ;;  %v10321_v50 = vld [vmem:[#allocation2 + $0xf8] sm:$0xff]  ;;  %8406 = vpow2.f32 %v1656_v20 }
 0x2a6   : > { %2463 = vperm.xlu1 %8392, %v10275_v58   ;;  %2720 = vst.msk [vmem:[#allocation2 + $0x68] sm:$0xff] %vm715_vm1, %v10273_v6  ;;  %v8085_v58 = vpack.c.bf16 %v992_v5, %v991_v27  ;;  %v996_v20 = vld [vmem:[%s9347_s12 + $0x38] sm:$0xff] }
 0x2a7   : > { %v1547_v53 = vpop.xlane.xlu1 %1546  ;;  %2735 = vst.msk [vmem:[#allocation2 + $0xe0] sm:$0xff] %vm715_vm1, %v10280_v0 }
 0x2a8   : > { %v10298_v18 = vmax.f32 %v10277_v41, %v1547_v53  ;;  %v1517_v54 = vpop.xlane.xlu0 %1516  ;;  %8086 = vmatprep.subr.bf16.mxu0 %v8085_v58  ;;  %v10312_v53 = vld [vmem:[#allocation2 + $0xf0] sm:$0xff] }
 0x2a9   : > { %v10305_v62 = vmax.f32 %v10287_v28, %v1517_v54  ;;  %8088 = vmatpush3.bf16.xpose.msra.mxu0 %v8085_v58  ;;  %v997_v58 = vld [vmem:[%s9347_s12 + $0x40] sm:$0xff] }
 0x2aa   : > { %2543 = vperm.xlu1 %8392, %v10300_v57   ;;  %2736 = vst.msk [vmem:[#allocation2 + $0xe8] sm:$0xff] %vm715_vm1, %v10298_v18 }
 0x2ab   : > { %v1519_v5 = vpop.xlane.xlu1 %1518  ;;  %2721 = vst.msk [vmem:[#allocation2 + $0x70] sm:$0xff] %vm715_vm1, %v10305_v62 }
 0x2ac   : > { %v10319_v27 = vmax.f32 %v10302_v49, %v1519_v5  ;;  %v1549_v21 = vpop.xlane.xlu0 %1548 }
 0x2ad   : > { %v10324_v57 = vmax.f32 %v10312_v53, %v1549_v21  ;;  %v8089_v21 = vpack.c.bf16 %v994_v61, %v993_v59  ;;  %v8097_v59 = vpack.c.bf16 %v998_v52, %v997_v58  ;;  %v1590_v61 = vsub.f32 %v10129_v22, %v10139_v14  ;;  %v1000_v22 = vld [vmem:[%s9347_s12 + $0x58] sm:$0xff] }
 0x2ae   : > { %1712 = vperm.xlu1 %8392, %v10139_v14   ;;  %2722 = vst.msk [vmem:[#allocation2 + $0x78] sm:$0xff] %vm715_vm1, %v10319_v27  ;;  %v999_v14 = vld [vmem:[%s9347_s12 + $0x50] sm:$0xff] }
 0x2af   : > { %v1551_v5 = vpop.xlane.xlu1 %1550  ;;  %2737 = vst.msk [vmem:[#allocation2 + $0xf0] sm:$0xff] %vm715_vm1, %v10324_v57  ;;  %8090 = vmatprep.subr.bf16.mxu0 %v8089_v21  ;;  %8098 = vmatprep.subr.bf16.mxu1 %v8097_v59  ;;  %v1628_v54 = vmul.f32 1.442695, %v1590_v61  ;;  %v8101_v58 = vpack.c.bf16 %v1000_v22, %v999_v14  ;;  %v1004_v14 = vld [vmem:[%s9347_s12 + $0x78] sm:$0xff] }
 0x2b0   : > { %v10338_v48 = vmax.f32 %v10321_v50, %v1551_v5  ;;  %8100 = vmatpush3.bf16.xpose.msra.mxu1 %v8097_v59  ;;  %v995_v5 = vld [vmem:[%s9347_s12 + $0x30] sm:$0xff] }
 0x2b1   : > { %1682 = vperm.xlu0 %8393, %v10061_v29   ;;  %8092 = vmatpush3.bf16.xpose.msra.mxu0 %v8089_v21  ;;  %v10350_v29 = vpop.eup %8404  ;;  %v1606_v21 = vsub.f32 %v10144_v16, %v10157_v8  ;;  %v8093_v45 = vpack.c.bf16 %v996_v20, %v995_v5  ;;  %8408 = vpow2.f32 %v1628_v54  ;;  %v1002_v16 = vld [vmem:[%s9347_s12 + $0x68] sm:$0xff] }
 0x2b2   : > { %1792 = vperm.xlu1 %8392, %v10157_v8   ;;  %2738 = vst.msk [vmem:[#allocation2 + $0xf8] sm:$0xff] %vm715_vm1, %v10338_v48  ;;  %v10358_v52 = vpop.eup %8406  ;;  %8102 = vmatprep.subr.bf16.mxu1 %v8101_v58  ;;  %v1001_v8 = vld [vmem:[%s9347_s12 + $0x60] sm:$0xff] }
 0x2b3   : > { %8094 = vmatprep.subr.bf16.mxu0 %v8093_v45  ;;  %v1660_v59 = vmul.f32 1.442695, %v1606_v21  ;;  %v8105_v20 = vpack.c.bf16 %v1002_v16, %v1001_v8  ;;  %v1003_v21 = vld [vmem:[%s9347_s12 + $0x70] sm:$0xff]  ;;  %v13109_v8 = vsub.f32 %v10056_v38, %v10059_v31  ;;  %v2739_v38 = vld [vmem:[%s9357_s30] sm:$0xff]  ;;  %v2740_v31 = vld [vmem:[%s9357_s30 + $0x8] sm:$0xff]  ;;  %s8912_s12 = scalar_lea.vmem %s8911_s15, 4096 }
 0x2b4   : > { %v8109_v22 = vpack.c.bf16 %v1004_v14, %v1003_v21  ;;  %v10413_v14 = vpack.c.bf16 %v2740_v31, %v2739_v38  ;;  %p8914_p6 = scmp.lt.s32.totalorder %s8912_s12, %s8906_s11 }
 0x2b5   : > { %1727 = vperm.xlu0 %8393, %v10191_v56   ;;  %8410 = vpow2.f32 %v1660_v59  ;;  %v1618_v16 = vmul.f32 1.442695, %v13109_v8 }
 0x2b6   : > { %2473 = vperm.xlu1 %8392, %v10350_v29   ;;  %p8915_p7 = por %p8914_p6, %p8913_p5 }
 0x2b8   : > { %8104 = vmatpush3.bf16.xpose.msra.mxu1 %v8101_v58  ;;  %p8916_p8 = pnand %p8915_p7, %p8909_p4 }
 0x2b9   : > { %1737 = vperm.xlu0 %8393, %v10229_v9   ;;  %8096 = vmatpush3.bf16.xpose.msra.mxu0 %v8093_v45  ;;  %v1592_v45 = vsub.f32 %v10164_v33, %v10176_v25 }
 0x2ba   : > { %2553 = vperm.xlu1 %8392, %v10358_v52   ;;  %8106 = vmatprep.subr.bf16.mxu1 %v8105_v20 }
 0x2bb   : > { %v10372_v54 = vpop.eup %8408  ;;  %v1632_v61 = vmul.f32 1.442695, %v1592_v45  ;;  %8114 = vmatprep.subr.bf16.mxu0 %v10413_v14 }
 0x2bd   : > { %1747 = vperm.xlu0 %8393, %v10273_v6   ;;  %8412 = vpow2.f32 %v1632_v61  ;;  %v13113_v61 = vsub.f32 %v10136_v11, %v10150_v23  ;;  %v13115_v11 = vsub.f32 %v10173_v10, %v10191_v56  ;;  %v1601_v10 = vsub.f32 %v10063_v32, %v10073_v35 }
 0x2be   : > { %1722 = vperm.xlu1 %8392, %v10176_v25   ;;  %v1594_v25 = vsub.f32 %v10203_v19, %v10217_v60  ;;  %v13111_v19 = vsub.f32 %v10104_v15, %v10117_v17  ;;  %v13114_v15 = vsub.f32 %v10184_v39, %v10196_v30  ;;  %v13118_v56 = vsub.f32 %v10214_v4, %v10229_v9 }
 0x2bf   : > { %v10376_v5 = vpop.eup %8410  ;;  %v1630_v21 = vmul.f32 1.442695, %v13113_v61  ;;  %v1634_v23 = vmul.f32 1.442695, %v13115_v11  ;;  %v1650_v61 = vmul.f32 1.442695, %v1601_v10  ;;  %v1603_v32 = vsub.f32 %v10083_v26, %v10093_v24 }
 0x2c0   : > { %8108 = vmatpush3.bf16.xpose.msra.mxu1 %v8105_v20  ;;  %v1636_v58 = vmul.f32 1.442695, %v1594_v25  ;;  %v1626_v20 = vmul.f32 1.442695, %v13111_v19  ;;  %v1664_v17 = vmul.f32 1.442695, %v13114_v15  ;;  %v13121_v4 = vsub.f32 %v10264_v1, %v10280_v0 }
 0x2c1   : > { %1757 = vperm.xlu0 %8393, %v10319_v27   ;;  %8110 = vmatprep.subr.bf16.mxu1 %v8109_v22  ;;  %v2747_v25 = vld [vmem:[%s9357_s30 + $0x40] sm:$0xff]  ;;  %v13123_v26 = vsub.f32 %v10287_v28, %v10305_v62  ;;  %v13126_v11 = vsub.f32 %v10154_v34, %v10169_v51 }
 0x2c2   : > { %1802 = vperm.xlu1 %8392, %v10196_v30   ;;  %8414 = vpow2.f32 %v1636_v58  ;;  %v2748_v58 = vld [vmem:[%s9357_s30 + $0x48] sm:$0xff]  ;;  %v13117_v30 = vsub.f32 %v10224_v44, %v10236_v55 }
 0x2c3   : > { %8416 = vpow2.f32 %v1618_v16  ;;  %v10430_v16 = vpack.c.bf16 %v2748_v58, %v2747_v25  ;;  %v1644_v1 = vmul.f32 1.442695, %v13123_v26  ;;  %v13132_v26 = vsub.f32 %v10277_v41, %v10298_v18 }
 0x2c4   : > { %8418 = vpow2.f32 %v1626_v20  ;;  %v1668_v39 = vmul.f32 1.442695, %v13117_v30  ;;  %v1638_v20 = vmul.f32 1.442695, %v13118_v56  ;;  %v13127_v56 = vsub.f32 %v10193_v3, %v10212_v12 }
 0x2c5   : > { %1767 = vperm.xlu0 %8393, %v10073_v35   ;;  %8420 = vpow2.f32 %v1630_v21  ;;  %v1672_v35 = vmul.f32 1.442695, %v13121_v4  ;;  %v1605_v21 = vsub.f32 %v10119_v13, %v10134_v36  ;;  %v13124_v13 = vsub.f32 %v10312_v53, %v10324_v57 }
 0x2c6   : > { %2483 = vperm.xlu1 %8392, %v10372_v54   ;;  %8422 = vpow2.f32 %v1664_v17 }
 0x2c7   : > { %v10390_v59 = vpop.eup %8412  ;;  %8424 = vpow2.f32 %v1634_v23  ;;  %v1658_v25 = vmul.f32 1.442695, %v1605_v21  ;;  %v1662_v23 = vmul.f32 1.442695, %v13126_v11 }
 0x2c8   : > { %8112 = vmatpush3.bf16.xpose.msra.mxu1 %v8109_v22  ;;  %8426 = vpow2.f32 %v1668_v39 }
 0x2c9   : > { %1777 = vperm.xlu0 %8393, %v10093_v24   ;;  %8130 = vmatprep.subr.bf16.mxu1 %v10430_v16  ;;  %8428 = vpow2.f32 %v1638_v20  ;;  %v1666_v20 = vmul.f32 1.442695, %v13127_v56 }
 0x2ca   : > { %2563 = vperm.xlu1 %8392, %v10376_v5  }
 0x2cc   : > { %v10386_v33 = vpop.trf.xlu0  ;;  %v10419_v22 = vpop.eup %8414 }
 0x2cd   : > { %1787 = vperm.xlu0 %8393, %v10134_v36   ;;  %13108 = vst [vmem:[#allocation131_spill] sm:$0xff] %v10386_v33  ;;  %v10435_v19 = vpop.eup %8416  ;;  %v1676_v36 = vmul.f32 1.442695, %v13124_v13  ;;  %v13134_v13 = vsub.f32 %v10302_v49, %v10319_v27  ;;  %v2750_v33 = vld [vmem:[%s9357_s30 + $0x58] sm:$0xff] }
 0x2ce   : > { %1732 = vperm.xlu1 %8392, %v10217_v60   ;;  %v10448_v38 = vpop.eup %8418 }
 0x2d0   : > { %v10397_v60 = vpop.trf.xlu0 }
 0x2d1   : > { %1797 = vperm.xlu0 %8393, %v10169_v51   ;;  %13110 = vst [vmem:[#allocation132_spill] sm:$0xff] %v10397_v60 }
 0x2d2   : > { %1812 = vperm.xlu1 %8392, %v10236_v55   ;;  %v13119_v55 = vsub.f32 %v10243_v37, %v10257_v46  ;;  %v1654_v37 = vmul.f32 1.442695, %v1603_v32 }
 0x2d4   : > { %v10404_v45 = vpop.trf.xlu0  ;;  %v1640_v44 = vmul.f32 1.442695, %v13119_v55 }
 0x2d5   : > { %1807 = vperm.xlu0 %8393, %v10212_v12   ;;  %13112 = vst [vmem:[#allocation133_spill] sm:$0xff] %v10404_v45  ;;  %v2743_v45 = vld [vmem:[%s9357_s30 + $0x20] sm:$0xff] }
 0x2d6   : > { %2493 = vperm.xlu1 %8392, %v10390_v59   ;;  %8430 = vpow2.f32 %v1640_v44  ;;  %v13129_v44 = vsub.f32 %v10233_v7, %v10252_v2 }
 0x2d7   : > { %8432 = vpow2.f32 %v1650_v61 }
 0x2d8   : > { %v10428_v8 = vpop.trf.xlu0  ;;  %8434 = vpow2.f32 %v1672_v35  ;;  %v1670_v61 = vmul.f32 1.442695, %v13129_v44  ;;  %v13131_v35 = vsub.f32 %v10254_v63, %v10273_v6 }
 0x2d9   : > { %1817 = vperm.xlu0 %8393, %v10252_v2   ;;  %13116 = vst [vmem:[#allocation134_spill] sm:$0xff] %v10428_v8  ;;  %8436 = vpow2.f32 %v1654_v37 }
 0x2da   : > { %1742 = vperm.xlu1 %8392, %v10257_v46   ;;  %v10459_v46 = vpop.eup %8420  ;;  %8438 = vpow2.f32 %v1644_v1  ;;  %v1642_v37 = vmul.f32 1.442695, %v13131_v35  ;;  %v1674_v1 = vmul.f32 1.442695, %v13132_v26 }
 0x2db   : > { %v10461_v9 = vpop.eup %8422  ;;  %8440 = vpow2.f32 %v1658_v25 }
 0x2dc   : > { %v10450_v31 = vpop.trf.xlu0  ;;  %8442 = vpow2.f32 %v1676_v36  ;;  %v1646_v36 = vmul.f32 1.442695, %v13134_v13 }
 0x2dd   : > { %1827 = vperm.xlu0 %8393, %v10298_v18   ;;  %13120 = vst [vmem:[#allocation135_spill] sm:$0xff] %v10450_v31  ;;  %8444 = vpow2.f32 %v1662_v23  ;;  %v13136_v18 = vsub.f32 %v10321_v50, %v10338_v48  ;;  %v13146_v31 = vld [vmem:[#allocation85_spill] sm:$0xff] }
 0x2de   : > { %1822 = vperm.xlu1 %8392, %v10280_v0   ;;  %v10472_v0 = vpop.eup %8424 }
 0x2df   : > { %v10474_v15 = vpop.eup %8426 }
 0x2e0   : > { %v10467_v24 = vpop.trf.xlu0  ;;  %v10483_v58 = vpop.eup %8428 }
 0x2e1   : > { %1837 = vperm.xlu0 %8393, %v10338_v48   ;;  %13122 = vst [vmem:[#allocation136_spill] sm:$0xff] %v10467_v24 }
 0x2e2   : > { %2503 = vperm.xlu1 %8392, %v10419_v22  }
 0x2e4   : > { %v10485_v28 = vpop.trf.xlu0 }
 0x2e5   : > { %2458 = vperm.xlu0 %8393, %v10435_v19   ;;  %13125 = vst [vmem:[#allocation137_spill] sm:$0xff] %v10485_v28  ;;  %v13145_v28 = vld [vmem:[#allocation88_spill] sm:$0xff] }
 0x2e6   : > { %1752 = vperm.xlu1 %8392, %v10305_v62   ;;  %v10487_v62 = vpop.eup %8430 }
 0x2e7   : > { %v10495_v53 = vpop.eup %8432 }
 0x2e8   : > { %v10497_v39 = vpop.eup %8434  ;;  %v10504_v51 = vpop.trf.xlu0 }
 0x2e9   : > { %2478 = vperm.xlu0 %8393, %v10448_v38   ;;  %13128 = vst [vmem:[#allocation138_spill] sm:$0xff] %v10504_v51  ;;  %v10506_v34 = vpop.eup %8436 }
 0x2ea   : > { %1832 = vperm.xlu1 %8392, %v10324_v57  }
 0x2ec   : > { %v10519_v12 = vpop.trf.xlu0 }
 0x2ed   : > { %2488 = vperm.xlu0 %8393, %v10459_v46   ;;  %13130 = vst [vmem:[#allocation139_spill] sm:$0xff] %v10519_v12 }
 0x2ee   : > { %2573 = vperm.xlu1 %8392, %v10461_v9  }
 0x2f0   : > { %v10537_v25 = vpop.trf.xlu0 }
 0x2f1   : > { %v10476_v17 = vpop.permute.xlu1 %1687  ;;  %2498 = vperm.xlu0 %8393, %v10472_v0   ;;  %13133 = vst [vmem:[#allocation140_spill] sm:$0xff] %v10537_v25 }
 0x2f2   : > { %2583 = vperm.xlu1 %8392, %v10474_v15   ;;  %v1841_v13 = vsub.f32 %v9535_v40, %v10476_v17 }
 0x2f4   : > { %v10547_v23 = vpop.trf.xlu0 }
 0x2f5   : > { %2508 = vperm.xlu0 %8393, %v10483_v58   ;;  %13135 = vst [vmem:[#allocation141_spill] sm:$0xff] %v10547_v23 }
 0x2f6   : > { %v1763_v30 = vpop.permute.xlu1 %1762  ;;  %2513 = vperm.xlu1 %8392, %v10487_v62  }
 0x2f7   : > { %v1856_v57 = vsub.f32 %v9542_v43, %v1763_v30  ;;  %v10508_v43 = vpop.eup %8438  ;;  %v1678_v30 = vmul.f32 1.442695, %v13136_v18 }
 0x2f8   : > { %v10517_v3 = vpop.eup %8440  ;;  %v10560_v49 = vpop.trf.xlu0 }
 0x2f9   : > { %v1904_v10 = vmul.f32 1.442695, %v1856_v57  ;;  %2538 = vperm.xlu0 %8393, %v10495_v53   ;;  %v10521_v32 = vpop.eup %8442  ;;  %13138 = vst [vmem:[#allocation143_spill] sm:$0xff] %v10560_v49 }
 0x2fa   : > { %2593 = vperm.xlu1 %8392, %v10497_v39   ;;  %v10510_v55 = vpop.permute.xlu1 %1697  ;;  %v10528_v2 = vpop.eup %8444 }
 0x2fb   : > { %8446 = vpow2.f32 %v1904_v10 }
 0x2fc   : > { %8448 = vpow2.f32 %v1666_v20  ;;  %v10567_v44 = vpop.trf.xlu0 }
 0x2fd   : > { %2548 = vperm.xlu0 %8393, %v10506_v34   ;;  %8450 = vpow2.f32 %v1670_v61  ;;  %13139 = vst [vmem:[#allocation144_spill] sm:$0xff] %v10567_v44 }
 0x2fe   : > { %2523 = vperm.xlu1 %8392, %v10508_v43   ;;  %8452 = vpow2.f32 %v1642_v37 }
 0x2ff   : > { %8454 = vpow2.f32 %v1674_v1 }
 0x300   : > { %8456 = vpow2.f32 %v1646_v36  ;;  %v10575_v35 = vpop.trf.xlu0 }
 0x301   : > { %v1693_v4 = vpop.permute.xlu1 %1692  ;;  %2558 = vperm.xlu0 %8393, %v10517_v3   ;;  %8458 = vpow2.f32 %v1678_v30  ;;  %13140 = vst [vmem:[#allocation145_spill] sm:$0xff] %v10575_v35  ;;  %v1874_v30 = vmul.f32 1.442695, %v1841_v13 }
 0x302   : > { %2603 = vperm.xlu1 %8392, %v10521_v32   ;;  %v1842_v49 = vsub.f32 %v9680_v47, %v1693_v4  ;;  %v13147_v4 = vld [vmem:[#allocation86_spill] sm:$0xff] }
 0x303   : > { %8460 = vpow2.f32 %v1874_v30 }
 0x304   : > { %v10577_v26 = vpop.trf.xlu0  ;;  %v1876_v51 = vmul.f32 1.442695, %v1842_v49 }
 0x305   : > { %v10530_v7 = vpop.eup %8446  ;;  %v1773_v21 = vpop.permute.xlu1 %1772  ;;  %2568 = vperm.xlu0 %8393, %v10528_v2   ;;  %13141 = vst [vmem:[#allocation146_spill] sm:$0xff] %v10577_v26  ;;  %v13144_v26 = vld [vmem:[#allocation83_spill] sm:$0xff] }
 0x306   : > { %7705 = vmatprep.mubr.f32.mxu1 %v10530_v7  ;;  %v10539_v63 = vpop.eup %8448  ;;  %v1843_v12 = vsub.f32 %v13144_v26, %v10510_v55 }
 0x307   : > { %v10545_v11 = vpop.eup %8450 }
 0x308   : > { %v10555_v57 = vpop.eup %8452  ;;  %v10585_v18 = vpop.trf.xlu0  ;;  %v1878_v47 = vmul.f32 1.442695, %v1843_v12 }
 0x309   : > { %v1708_v6 = vpop.permute.xlu1 %1707  ;;  %2578 = vperm.xlu0 %8393, %v10539_v63   ;;  %v10562_v27 = vpop.eup %8454  ;;  %13143 = vst [vmem:[#allocation148_spill] sm:$0xff] %v10585_v18  ;;  %v1858_v18 = vsub.f32 %v13146_v31, %v1773_v21 }
 0x30a   : > { %v10565_v20 = vpop.eup %8456  ;;  %v1845_v30 = vsub.f32 %v13147_v4, %v1708_v6  ;;  %v2741_v6 = vld [vmem:[%s9357_s30 + $0x10] sm:$0xff] }
 0x30b   : > { %v10570_v50 = vpop.eup %8458  ;;  %v1908_v49 = vmul.f32 1.442695, %v1858_v18 }
 0x30c   : > { %v1882_v31 = vmul.f32 1.442695, %v1845_v30 }
 0x30d   : > { %2588 = vperm.xlu0 %8393, %v10545_v11   ;;  %v10550_v41 = vpop.permute.xlu1 %2453  ;;  %v8461_v21 = vpop.eup %8460 }
 0x311   : > { %2518 = vperm.xlu0 %8393, %v10555_v57   ;;  %v10558_v10 = vpop.permute.xlu1 %2533 }
 0x312   : > { %13137 = vst [vmem:[#allocation142_spill] sm:$0xff] %v10558_v10 }
 0x315   : > { %2598 = vperm.xlu0 %8393, %v10562_v27   ;;  %v1703_v56 = vpop.permute.xlu1 %1702 }
 0x316   : > { %v1844_v40 = vsub.f32 %v13145_v28, %v1703_v56  ;;  %v13149_v28 = vld [vmem:[#allocation90_spill] sm:$0xff] }
 0x319   : > { %2528 = vperm.xlu0 %8393, %v10565_v20   ;;  %v1783_v48 = vpop.permute.xlu1 %1782 }
 0x31d   : > { %2608 = vperm.xlu0 %8393, %v10570_v50   ;;  %v10573_v61 = vpop.permute.xlu1 %2468 }
 0x321   : > { %v1718_v37 = vpop.permute.xlu1 %1717 }
 0x322   : > { %v1847_v56 = vsub.f32 %v13149_v28, %v1718_v37  ;;  %v13152_v37 = vld [vmem:[#allocation94_spill] sm:$0xff] }
 0x324   : > { %v1886_v18 = vmul.f32 1.442695, %v1847_v56 }
 0x325   : > { %v10579_v1 = vpop.permute.xlu1 %2463 }
 0x329   : > { %v10583_v36 = vpop.permute.xlu1 %2543 }
 0x32a   : > { %13142 = vst [vmem:[#allocation147_spill] sm:$0xff] %v10583_v36  ;;  %v2752_v36 = vld [vmem:[%s9357_s30 + $0x68] sm:$0xff] }
 0x32d   : > { %v1713_v44 = vpop.permute.xlu1 %1712 }
 0x330   : > { %v1683_v23 = vpop.permute.xlu0 %1682 }
 0x331   : > { %v1840_v35 = vsub.f32 %v9540_v42, %v1683_v23  ;;  %v10589_v25 = vpop.permute.xlu1 %1792  ;;  %v1880_v42 = vmul.f32 1.442695, %v1844_v40  ;;  %v13148_v23 = vld [vmem:[#allocation92_spill] sm:$0xff] }
 0x332   : > { %v1846_v8 = vsub.f32 %v13148_v23, %v1713_v44  ;;  %v13151_v44 = vld [vmem:[#allocation89_spill] sm:$0xff] }
 0x333   : > { %v1872_v17 = vmul.f32 1.442695, %v1840_v35  ;;  %v1860_v40 = vsub.f32 %v13151_v44, %v1783_v48  ;;  %v2745_v44 = vld [vmem:[%s9357_s30 + $0x30] sm:$0xff] }
 0x334   : > { %v1728_v24 = vpop.permute.xlu0 %1727  ;;  %v1884_v12 = vmul.f32 1.442695, %v1846_v8 }
 0x335   : > { %8462 = vpow2.f32 %v1872_v17  ;;  %v10595_v13 = vpop.permute.xlu1 %2473  ;;  %v1849_v4 = vsub.f32 %v13152_v37, %v1728_v24  ;;  %v1912_v56 = vmul.f32 1.442695, %v1860_v40 }
 0x336   : > { %8464 = vpow2.f32 %v1876_v51  ;;  %v2742_v51 = vld [vmem:[%s9357_s30 + $0x18] sm:$0xff] }
 0x337   : > { %8466 = vpow2.f32 %v1878_v47  ;;  %v13153_v47 = vld [vmem:[#allocation96_spill] sm:$0xff]  ;;  %v8117_v8 = vpack.c.bf16 %v2742_v51, %v2741_v6 }
 0x338   : > { %v10599_v55 = vpop.permute.xlu0 %1737  ;;  %8468 = vpow2.f32 %v1880_v42 }
 0x339   : > { %v10602_v35 = vpop.permute.xlu1 %2553  ;;  %8470 = vpow2.f32 %v1908_v49  ;;  %v2744_v49 = vld [vmem:[%s9357_s30 + $0x28] sm:$0xff] }
 0x33a   : > { %13150 = vst [vmem:[#allocation83_spill] sm:$0xff] %v10602_v35  ;;  %8472 = vpow2.f32 %v1882_v31  ;;  %v1890_v31 = vmul.f32 1.442695, %v1849_v4  ;;  %v13155_v4 = vld [vmem:[#allocation93_spill] sm:$0xff]  ;;  %v2751_v35 = vld [vmem:[%s9357_s30 + $0x60] sm:$0xff] }
 0x33b   : > { %8474 = vpow2.f32 %v1884_v12  ;;  %v8121_v12 = vpack.c.bf16 %v2744_v49, %v2743_v45  ;;  %v13156_v49 = vld [vmem:[#allocation84_spill] sm:$0xff] }
 0x33c   : > { %2002 = vadd.xlane.f32.xlu0 %v8461_v21  ;;  %v10604_v26 = vpop.permute.xlu0 %1747  ;;  %8476 = vpow2.f32 %v1886_v18 }
 0x33d   : > { %v1723_v17 = vpop.permute.xlu1 %1722 }
 0x33e   : > { %v1848_v30 = vsub.f32 %v13153_v47, %v1723_v17  ;;  %v2746_v17 = vld [vmem:[%s9357_s30 + $0x38] sm:$0xff] }
 0x33f   : > { %v8463_v23 = vpop.eup %8462 }
 0x340   : > { %v1888_v42 = vmul.f32 1.442695, %v1848_v30  ;;  %7665 = vmatprep.mubr.f32.mxu0 %v8463_v23  ;;  %v10611_v28 = vpop.permute.xlu0 %1757  ;;  %2000 = vadd.xlane.f32.xlu1 %v8463_v23  ;;  %v10615_v48 = vpop.eup %8464 }
 0x341   : > { %7666 = vmatmul.mubr.f32.vlgmr.msra.gmra.mrb[16].mxu0 %v8461_v21  ;;  %v10617_v24 = vpop.permute.xlu1 %1802  ;;  %v10621_v6 = vpop.eup %8466  ;;  %v13154_v21 = vld [vmem:[#allocation82_spill] sm:$0xff] }
 0x342   : > { %8478 = vpow2.f32 %v1888_v42  ;;  %7668 = vmatprep.mubr.f32.mxu0 %v10615_v48  ;;  %8116 = vmatpush3.bf16.msra.mxu0 %v10413_v14  ;;  %v8469_v40 = vpop.eup %8468  ;;  %v1862_v14 = vsub.f32 %v13155_v4, %v10589_v25  ;;  %v13159_v4 = vld [vmem:[#allocation87_spill] sm:$0xff] }
 0x343   : > { %8118 = vmatprep.subr.bf16.mxu0 %v8117_v8  ;;  %8480 = vpow2.f32 %v1912_v56  ;;  %v8471_v45 = vpop.eup %8470 }
 0x344   : > { %v1768_v51 = vpop.permute.xlu0 %1767  ;;  %2032 = vadd.xlane.f32.xlu1 %v10530_v7  ;;  %8482 = vpow2.f32 %v1890_v31  ;;  %v8125_v7 = vpack.c.bf16 %v2746_v17, %v2745_v44  ;;  %v10632_v30 = vpop.eup %8472  ;;  %v1916_v25 = vmul.f32 1.442695, %v1862_v14  ;;  %v13158_v31 = vld [vmem:[#allocation98_spill] sm:$0xff] }
 0x345   : > { %v1857_v18 = vsub.f32 %v13154_v21, %v1768_v51  ;;  %7669 = vmatmul.mubr.f32.gmra.mrb[18].mxu0 %v10621_v6  ;;  %v10628_v37 = vpop.permute.xlu1 %2483  ;;  %v8475_v42 = vpop.eup %8474  ;;  %v1851_v44 = vsub.f32 %v13158_v31, %v10599_v55 }
 0x346   : > { %7671 = vmatprep.mubr.f32.mxu0 %v8469_v40  ;;  %8120 = vmatpush3.bf16.msra.mxu0 %v8117_v8  ;;  %v10638_v8 = vpop.eup %8476 }
 0x347   : > { %v1906_v47 = vmul.f32 1.442695, %v1857_v18  ;;  %8122 = vmatprep.subr.bf16.mxu0 %v8121_v12  ;;  %v1894_v31 = vmul.f32 1.442695, %v1851_v44 }
 0x348   : > { %v1778_v23 = vpop.permute.xlu0 %1777  ;;  %2036 = vadd.xlane.f32.xlu1 %v8471_v45 }
 0x349   : > { %8484 = vpow2.f32 %v1906_v47  ;;  %v1859_v56 = vsub.f32 %v13156_v49, %v1778_v23  ;;  %7672 = vmatmul.mubr.f32.gmra.mrb[20].mxu0 %v10632_v30  ;;  %v10636_v51 = vpop.permute.xlu1 %2563  ;;  %v13161_v49 = vld [vmem:[#allocation100_spill] sm:$0xff] }
 0x34a   : > { %13157 = vst [vmem:[#allocation88_spill] sm:$0xff] %v10636_v51  ;;  %7674 = vmatprep.mubr.f32.mxu0 %v8475_v42  ;;  %8124 = vmatpush3.bf16.msra.mxu0 %v8121_v12  ;;  %v13160_v12 = vld [vmem:[#allocation97_spill] sm:$0xff] }
 0x34b   : > { %v1910_v17 = vmul.f32 1.442695, %v1859_v56  ;;  %8126 = vmatprep.subr.bf16.mxu0 %v8125_v7  ;;  %v1864_v23 = vsub.f32 %v13160_v12, %v10617_v24 }
 0x34c   : > { %v10642_v21 = vpop.eup %8478  ;;  %v1788_v18 = vpop.permute.xlu0 %1787  ;;  %2008 = vadd.xlane.f32.xlu1 %v8469_v40 }
 0x34d   : > { %8486 = vpow2.f32 %v1910_v17  ;;  %v1861_v47 = vsub.f32 %v13159_v4, %v1788_v18  ;;  %7675 = vmatmul.mubr.f32.gmra.mrb[22].mxu0 %v10638_v8  ;;  %v1733_v14 = vpop.permute.xlu1 %1732  ;;  %v8481_v56 = vpop.eup %8480  ;;  %v2749_v4 = vld [vmem:[%s9357_s30 + $0x50] sm:$0xff]  ;;  %v1920_v12 = vmul.f32 1.442695, %v1864_v23 }
 0x34e   : > { %8488 = vpow2.f32 %v1916_v25  ;;  %v1850_v55 = vsub.f32 %v13161_v49, %v1733_v14  ;;  %7677 = vmatprep.mubr.f32.mxu0 %v10642_v21  ;;  %8128 = vmatpush3.bf16.msra.mxu0 %v8125_v7  ;;  %v10650_v17 = vpop.eup %8482  ;;  %v13162_v25 = vld [vmem:[#allocation91_spill] sm:$0xff]  ;;  %v13163_v7 = vld [vmem:[#allocation101_spill] sm:$0xff] }
 0x34f   : > { %v1914_v40 = vmul.f32 1.442695, %v1861_v47 }
 0x350   : > { %v1892_v60 = vmul.f32 1.442695, %v1850_v55  ;;  %v1798_v18 = vpop.permute.xlu0 %1797  ;;  %2040 = vadd.xlane.f32.xlu1 %v8481_v56  ;;  %v8133_v55 = vpack.c.bf16 %v2750_v33, %v2749_v4 }
 0x351   : > { %8490 = vpow2.f32 %v1914_v40  ;;  %v1863_v24 = vsub.f32 %v13162_v25, %v1798_v18  ;;  %7678 = vmatmul.mubr.f32.gmra.mrb[24].mxu0 %v10650_v17  ;;  %v1813_v14 = vpop.permute.xlu1 %1812  ;;  %v13164_v40 = vld [vmem:[#allocation95_spill] sm:$0xff]  ;;  %v8137_v25 = vpack.c.bf16 %v2752_v36, %v2751_v35  ;;  %v2753_v35 = vld [vmem:[%s9357_s30 + $0x70] sm:$0xff] }
 0x352   : > { %8492 = vpow2.f32 %v1892_v60  ;;  %v1866_v44 = vsub.f32 %v13163_v7, %v1813_v14  ;;  %v13167_v14 = vld [vmem:[#allocation105_spill] sm:$0xff] }
 0x353   : > { %v8485_v47 = vpop.eup %8484  ;;  %8494 = vpow2.f32 %v1894_v31  ;;  %v1918_v49 = vmul.f32 1.442695, %v1863_v24  ;;  %v13165_v31 = vld [vmem:[#allocation103_spill] sm:$0xff]  ;;  %v2754_v7 = vld [vmem:[%s9357_s30 + $0x78] sm:$0xff] }
 0x354   : > { %2034 = vadd.xlane.f32.xlu0 %v8485_v47  ;;  %7706 = vmatmul.mubr.f32.vlgmr.msra.gmra.mrb[16].mxu1 %v8485_v47  ;;  %v1808_v51 = vpop.permute.xlu0 %1807  ;;  %v1924_v60 = vmul.f32 1.442695, %v1866_v44  ;;  %v1853_v33 = vsub.f32 %v13165_v31, %v10604_v26 }
 0x355   : > { %8496 = vpow2.f32 %v1918_v49  ;;  %v1865_v10 = vsub.f32 %v13164_v40, %v1808_v51  ;;  %2012 = vadd.xlane.f32.xlu1 %v8475_v42  ;;  %7708 = vmatprep.mubr.f32.mxu1 %v8471_v45  ;;  %v10660_v18 = vpop.permute.xlu1 %2493  ;;  %v13166_v42 = vld [vmem:[#allocation99_spill] sm:$0xff] }
 0x356   : > { %8498 = vpow2.f32 %v1920_v12  ;;  %8132 = vmatpush3.bf16.msra.mxu1 %v10430_v16  ;;  %v1898_v26 = vmul.f32 1.442695, %v1853_v33  ;;  %v8141_v33 = vpack.c.bf16 %v2754_v7, %v2753_v35  ;;  %v13172_v7 = vld [vmem:[#allocation109_spill] sm:$0xff] }
 0x357   : > { %v8487_v23 = vpop.eup %8486  ;;  %v1922_v4 = vmul.f32 1.442695, %v1865_v10  ;;  %8134 = vmatprep.subr.bf16.mxu1 %v8133_v55 }
 0x358   : > { %v8489_v24 = vpop.eup %8488  ;;  %2006 = vadd.xlane.f32.xlu0 %v10621_v6  ;;  %7709 = vmatmul.mubr.f32.gmra.mrb[18].mxu1 %v8487_v23  ;;  %v1818_v45 = vpop.permute.xlu0 %1817 }
 0x359   : > { %8500 = vpow2.f32 %v1922_v4  ;;  %v1867_v51 = vsub.f32 %v13166_v42, %v1818_v45  ;;  %2044 = vadd.xlane.f32.xlu1 %v8489_v24  ;;  %7711 = vmatprep.mubr.f32.mxu1 %v8481_v56  ;;  %v1743_v16 = vpop.permute.xlu1 %1742  ;;  %v13168_v56 = vld [vmem:[#allocation104_spill] sm:$0xff] }
 0x35a   : > { %8502 = vpow2.f32 %v1924_v60  ;;  %v1852_v12 = vsub.f32 %v13167_v14, %v1743_v16  ;;  %8136 = vmatpush3.bf16.msra.mxu1 %v8133_v55  ;;  %v13169_v60 = vld [vmem:[#allocation106_spill] sm:$0xff] }
 0x35b   : > { %v8491_v10 = vpop.eup %8490  ;;  %v1926_v36 = vmul.f32 1.442695, %v1867_v51  ;;  %8138 = vmatprep.subr.bf16.mxu1 %v8137_v25  ;;  %v13170_v51 = vld [vmem:[#allocation108_spill] sm:$0xff] }
 0x35c   : > { %v8493_v6 = vpop.eup %8492  ;;  %v1896_v44 = vmul.f32 1.442695, %v1852_v12  ;;  %2038 = vadd.xlane.f32.xlu0 %v8487_v23  ;;  %v1828_v47 = vpop.permute.xlu0 %1827  ;;  %7712 = vmatmul.mubr.f32.gmra.mrb[20].mxu1 %v8491_v10  ;;  %v1855_v16 = vsub.f32 %v13170_v51, %v10611_v28 }
 0x35d   : > { %v10670_v49 = vpop.eup %8494  ;;  %8504 = vpow2.f32 %v1926_v36  ;;  %v1869_v40 = vsub.f32 %v13168_v56, %v1828_v47  ;;  %2016 = vadd.xlane.f32.xlu1 %v10642_v21  ;;  %7680 = vmatprep.mubr.f32.mxu0 %v8493_v6  ;;  %v1823_v55 = vpop.permute.xlu1 %1822 }
 0x35e   : > { %8506 = vpow2.f32 %v1896_v44  ;;  %7714 = vmatprep.mubr.f32.mxu1 %v8489_v24  ;;  %v1868_v31 = vsub.f32 %v13169_v60, %v1823_v55  ;;  %7681 = vmatmul.mubr.f32.gmra.mrb[26].mxu0 %v10670_v49  ;;  %v1902_v35 = vmul.f32 1.442695, %v1855_v16 }
 0x35f   : > { %v8497_v4 = vpop.eup %8496  ;;  %8508 = vpow2.f32 %v1898_v26  ;;  %v1930_v23 = vmul.f32 1.442695, %v1869_v40  ;;  %8140 = vmatpush3.bf16.msra.mxu1 %v8137_v25  ;;  %v13171_v25 = vld [vmem:[#allocation110_spill] sm:$0xff] }
 0x360   : > { %v8499_v45 = vpop.eup %8498  ;;  %v1928_v42 = vmul.f32 1.442695, %v1868_v31  ;;  %2004 = vadd.xlane.f32.xlu0 %v10615_v48  ;;  %7715 = vmatmul.mubr.f32.gmra.mrb[22].mxu1 %v8497_v4  ;;  %v1838_v12 = vpop.permute.xlu0 %1837 }
 0x361   : > { %2048 = vadd.xlane.f32.xlu1 %v8499_v45  ;;  %7717 = vmatprep.mubr.f32.mxu1 %v8499_v45  ;;  %v10677_v21 = vpop.permute.xlu1 %2503  ;;  %v1871_v44 = vsub.f32 %v13172_v7, %v1838_v12  ;;  %v13183_v7 = vld [vmem:[#allocation57_spill] sm:$0xff] }
 0x362   : > { %8510 = vpow2.f32 %v1928_v42  ;;  %8142 = vmatprep.subr.bf16.mxu1 %v8141_v33 }
 0x363   : > { %v8501_v24 = vpop.eup %8500  ;;  %8512 = vpow2.f32 %v1930_v23  ;;  %8144 = vmatpush3.bf16.msra.mxu1 %v8141_v33 }
 0x364   : > { %v8503_v14 = vpop.eup %8502  ;;  %2010 = vadd.xlane.f32.xlu0 %v10632_v30  ;;  %7718 = vmatmul.mubr.f32.gmra.mrb[24].mxu1 %v8501_v24  ;;  %v13173_v30 = vld [vmem:[#allocation111_spill] sm:$0xff] }
 0x365   : > { %2020 = vadd.xlane.f32.xlu1 %v8493_v6  ;;  %7720 = vmatprep.mubr.f32.mxu1 %v8503_v14  ;;  %v1753_v48 = vpop.permute.xlu1 %1752  ;;  %v1934_v6 = vmul.f32 1.442695, %v1871_v44  ;;  %v13184_v44 = vld [vmem:[#allocation62_spill] sm:$0xff] }
 0x366   : > { %v1854_v26 = vsub.f32 %v13171_v25, %v1753_v48  ;;  %v13178_v48 = vld [vmem:[#allocation56_spill] sm:$0xff]  ;;  %v13180_v25 = vld [vmem:[#allocation58_spill] sm:$0xff] }
 0x367   : > { %v8505_v36 = vpop.eup %8504 }
 0x368   : > { %v8507_v47 = vpop.eup %8506  ;;  %v1900_v56 = vmul.f32 1.442695, %v1854_v26  ;;  %2042 = vadd.xlane.f32.xlu0 %v8491_v10  ;;  %7721 = vmatmul.mubr.f32.gmra.mrb[26].mxu1 %v8505_v36  ;;  %v10686_v10 = vpop.permute.xlu0 %2458  ;;  %v13181_v26 = vld [vmem:[#allocation55_spill] sm:$0xff] }
 0x369   : > { %v8509_v28 = vpop.eup %8508  ;;  %2052 = vadd.xlane.f32.xlu1 %v8503_v14  ;;  %7683 = vmatprep.mubr.f32.mxu0 %v8507_v47  ;;  %v1833_v40 = vpop.permute.xlu1 %1832  ;;  %v13176_v14 = vld [vmem:[#allocation54_spill] sm:$0xff] }
 0x36a   : > { %8514 = vpow2.f32 %v1900_v56  ;;  %v1870_v55 = vsub.f32 %v13173_v30, %v1833_v40  ;;  %7684 = vmatmul.mubr.f32.gmra.mrb[28].mxu0 %v8509_v28  ;;  %v13186_v56 = vld [vmem:[#allocation64_spill] sm:$0xff]  ;;  %v13187_v40 = vld [vmem:[#allocation61_spill] sm:$0xff]  ;;  %v13189_v30 = vld [vmem:[#allocation63_spill] sm:$0xff] }
 0x36b   : > { %8516 = vpow2.f32 %v1902_v35  ;;  %v13182_v35 = vld [vmem:[#allocation60_spill] sm:$0xff] }
 0x36c   : > { %v8511_v60 = vpop.eup %8510  ;;  %v1932_v31 = vmul.f32 1.442695, %v1870_v55  ;;  %2014 = vadd.xlane.f32.xlu0 %v10638_v8  ;;  %v10689_v42 = vpop.permute.xlu0 %2478  ;;  %v13174_v8 = vld [vmem:[#allocation50_spill] sm:$0xff] }
 0x36d   : > { %v8513_v33 = vpop.eup %8512  ;;  %2024 = vadd.xlane.f32.xlu1 %v8507_v47  ;;  %7723 = vmatprep.mubr.f32.mxu1 %v8511_v60  ;;  %v13185_v47 = vld [vmem:[#allocation59_spill] sm:$0xff] }
 0x36e   : > { %8518 = vpow2.f32 %v1932_v31  ;;  %7724 = vmatmul.mubr.f32.gmra.mrb[28].mxu1 %v8513_v33  ;;  %v13193_v31 = vld [vmem:[#allocation67_spill] sm:$0xff] }
 0x36f   : > { %8520 = vpow2.f32 %v1934_v6  ;;  %v13190_v6 = vld [vmem:[#allocation68_spill] sm:$0xff] }
 0x370   : > { %2046 = vadd.xlane.f32.xlu0 %v8497_v4  ;;  %v13175_v4 = vld [vmem:[#allocation52_spill] sm:$0xff]  ;;  %v10700_v12 = vpop.permute.xlu0 %2488 }
 0x371   : > { %2056 = vadd.xlane.f32.xlu1 %v8511_v60  ;;  %v13191_v60 = vld [vmem:[#allocation65_spill] sm:$0xff] }
 0x374   : > { %v8515_v23 = vpop.eup %8514  ;;  %2018 = vadd.xlane.f32.xlu0 %v10650_v17  ;;  %v13177_v17 = vld [vmem:[#allocation51_spill] sm:$0xff] }
 0x375   : > { %v8517_v45 = vpop.eup %8516  ;;  %2028 = vadd.xlane.f32.xlu1 %v8515_v23  ;;  %7686 = vmatprep.mubr.f32.mxu0 %v8515_v23  ;;  %v13194_v23 = vld [vmem:[#allocation72_spill] sm:$0xff] }
 0x376   : > { %7687 = vmatmul.mubr.f32.gmra.mrb[30].mxu0 %v8517_v45 }
 0x377   : > { %7745 = vmatprep.mubr.msk.f32.mxu0 %vm780_vm0, %v13174_v8  ;;  %v13195_v8 = vld [vmem:[#allocation69_spill] sm:$0xff] }
 0x378   : > { %v8519_v51 = vpop.eup %8518  ;;  %2050 = vadd.xlane.f32.xlu0 %v8501_v24  ;;  %v13179_v24 = vld [vmem:[#allocation53_spill] sm:$0xff] }
 0x379   : > { %v8521_v16 = vpop.eup %8520  ;;  %2060 = vadd.xlane.f32.xlu1 %v8519_v51  ;;  %7726 = vmatprep.mubr.f32.mxu1 %v8519_v51  ;;  %v13196_v51 = vld [vmem:[#allocation74_spill] sm:$0xff] }
 0x37a   : > { %7727 = vmatmul.mubr.f32.gmra.mrb[30].mxu1 %v8521_v16  ;;  %7746 = vmatmul.mubr.msk.f32.vlgmr.msra.gmra.mrb[32].mxu0 %vm780_vm0, %v13175_v4  ;;  %v13197_v4 = vld [vmem:[#allocation71_spill] sm:$0xff] }
 0x37b   : > { %7748 = vmatprep.mubr.msk.f32.mxu0 %vm780_vm0, %v13176_v14  ;;  %7785 = vmatprep.mubr.msk.f32.mxu1 %vm780_vm0, %v13177_v17  ;;  %v13198_v14 = vld [vmem:[#allocation76_spill] sm:$0xff]  ;;  %v13199_v17 = vld [vmem:[#allocation73_spill] sm:$0xff] }
 0x37c   : > { %2022 = vadd.xlane.f32.xlu0 %v10670_v49  ;;  %v10714_v49 = vpop.permute.xlu0 %2498 }
 0x37e   : > { %7749 = vmatmul.mubr.msk.f32.gmra.mrb[34].mxu0 %vm780_vm0, %v13178_v48  ;;  %7786 = vmatmul.mubr.msk.f32.vlgmr.msra.gmra.mrb[32].mxu1 %vm780_vm0, %v13179_v24  ;;  %v13201_v48 = vld [vmem:[#allocation75_spill] sm:$0xff] }
 0x37f   : > { %7751 = vmatprep.mubr.msk.f32.mxu0 %vm780_vm0, %v13180_v25  ;;  %7788 = vmatprep.mubr.msk.f32.mxu1 %vm780_vm0, %v13181_v26  ;;  %v13202_v25 = vld [vmem:[#allocation80_spill] sm:$0xff]  ;;  %v13203_v26 = vld [vmem:[#allocation77_spill] sm:$0xff] }
 0x380   : > { %2054 = vadd.xlane.f32.xlu0 %v8505_v36  ;;  %v13188_v36 = vld [vmem:[#allocation66_spill] sm:$0xff]  ;;  %v10728_v55 = vpop.permute.xlu0 %2508 }
 0x382   : > { %7752 = vmatmul.mubr.msk.f32.gmra.mrb[36].mxu0 %vm780_vm0, %v13182_v35  ;;  %7789 = vmatmul.mubr.msk.f32.gmra.mrb[34].mxu1 %vm780_vm0, %v13183_v7  ;;  %v13205_v35 = vld [vmem:[#allocation81_spill] sm:$0xff] }
 0x383   : > { %7754 = vmatprep.mubr.msk.f32.mxu0 %vm780_vm0, %v13184_v44  ;;  %7791 = vmatprep.mubr.msk.f32.mxu1 %vm780_vm0, %v13185_v47 }
 0x384   : > { %2026 = vadd.xlane.f32.xlu0 %v8509_v28  ;;  %v13192_v28 = vld [vmem:[#allocation70_spill] sm:$0xff] }
 0x386   : > { %7755 = vmatmul.mubr.msk.f32.gmra.mrb[38].mxu0 %vm780_vm0, %v13186_v56  ;;  %7792 = vmatmul.mubr.msk.f32.gmra.mrb[36].mxu1 %vm780_vm0, %v13187_v40  ;;  %v10772_v56 = vpop.permute.xlu1 %2573 }
 0x387   : > { %7757 = vmatprep.mubr.msk.f32.mxu0 %vm780_vm0, %v13188_v36  ;;  %7794 = vmatprep.mubr.msk.f32.mxu1 %vm780_vm0, %v13189_v30 }
 0x388   : > { %2058 = vadd.xlane.f32.xlu0 %v8513_v33  ;;  %v10742_v33 = vpop.permute.xlu0 %2538 }
 0x38a   : > { %7758 = vmatmul.mubr.msk.f32.gmra.mrb[40].mxu0 %vm780_vm0, %v13190_v6  ;;  %7795 = vmatmul.mubr.msk.f32.gmra.mrb[38].mxu1 %vm780_vm0, %v13191_v60  ;;  %v10776_v36 = vpop.permute.xlu1 %2583 }
 0x38b   : > { %7760 = vmatprep.mubr.msk.f32.mxu0 %vm780_vm0, %v13192_v28  ;;  %7797 = vmatprep.mubr.msk.f32.mxu1 %vm780_vm0, %v13193_v31 }
 0x38c   : > { %2030 = vadd.xlane.f32.xlu0 %v8517_v45  ;;  %v13200_v45 = vld [vmem:[#allocation78_spill] sm:$0xff]  ;;  %v10756_v24 = vpop.permute.xlu0 %2548 }
 0x38e   : > { %7761 = vmatmul.mubr.msk.f32.gmra.mrb[42].mxu0 %vm780_vm0, %v13194_v23  ;;  %7798 = vmatmul.mubr.msk.f32.gmra.mrb[40].mxu1 %vm780_vm0, %v13195_v8  ;;  %v10780_v6 = vpop.permute.xlu1 %2513 }
 0x38f   : > { %7763 = vmatprep.mubr.msk.f32.mxu0 %vm780_vm0, %v13196_v51  ;;  %7800 = vmatprep.mubr.msk.f32.mxu1 %vm780_vm0, %v13197_v4  ;;  %13206 = vst [vmem:[#allocation85_spill] sm:$0xff] %v10780_v6  ;;  %v1937_v51 = vld [vmem:[#allocation3 + $0x8] sm:$0xff] }
 0x390   : > { %2062 = vadd.xlane.f32.xlu0 %v8521_v16  ;;  %v13204_v16 = vld [vmem:[#allocation79_spill] sm:$0xff]  ;;  %v10766_v7 = vpop.permute.xlu0 %2558  ;;  %v1969_v4 = vmul.f32 %v10435_v19, %v1937_v51  ;;  %v13215_v19 = vld [vmem:[#allocation130_spill] sm:$0xff] }
 0x392   : > { %7764 = vmatmul.mubr.msk.f32.gmra.mrb[44].mxu0 %vm780_vm0, %v13198_v14  ;;  %7801 = vmatmul.mubr.msk.f32.gmra.mrb[42].mxu1 %vm780_vm0, %v13199_v17  ;;  %v10784_v28 = vpop.permute.xlu1 %2593 }
 0x393   : > { %7766 = vmatprep.mubr.msk.f32.mxu0 %vm780_vm0, %v13200_v45  ;;  %7803 = vmatprep.mubr.msk.f32.mxu1 %vm780_vm0, %v13201_v48  ;;  %13208 = vst [vmem:[#allocation92_spill] sm:$0xff] %v10784_v28  ;;  %v1936_v45 = vld [vmem:[#allocation3] sm:$0xff] }
 0x394   : > { %v10768_v44 = vpop.permute.xlu0 %2568 }
 0x396   : > { %7767 = vmatmul.mubr.msk.f32.gmra.mrb[46].mxu0 %vm780_vm0, %v13202_v25  ;;  %7804 = vmatmul.mubr.msk.f32.gmra.mrb[44].mxu1 %vm780_vm0, %v13203_v26  ;;  %v10788_v23 = vpop.permute.xlu1 %2523  ;;  %v13213_v25 = vld [vmem:[#allocation126_spill] sm:$0xff] }
 0x397   : > { %7806 = vmatprep.mubr.msk.f32.mxu1 %vm780_vm0, %v13204_v16  ;;  %13210 = vst [vmem:[#allocation89_spill] sm:$0xff] %v10788_v23  ;;  %v1968_v26 = vmul.f32 %v13213_v25, %v1936_v45  ;;  %v13214_v23 = vld [vmem:[#allocation127_spill] sm:$0xff]  ;;  %v1956_v25 = vld [vmem:[#allocation3 + $0xa0] sm:$0xff] }
 0x398   : > { %v10770_v47 = vpop.permute.xlu0 %2578 }
 0x39a   : > { %7807 = vmatmul.mubr.msk.f32.gmra.mrb[46].mxu1 %vm780_vm0, %v13205_v35  ;;  %v10793_v14 = vpop.permute.xlu1 %2603  ;;  %v1952_v35 = vld [vmem:[#allocation3 + $0x80] sm:$0xff] }
 0x39b   : > { %13212 = vst [vmem:[#allocation96_spill] sm:$0xff] %v10793_v14 }
 0x39c   : > { %v10774_v40 = vpop.permute.xlu0 %2588 }
 0x3a0   : > { %v10778_v30 = vpop.permute.xlu0 %2518 }
 0x3a4   : > { %v10782_v60 = vpop.permute.xlu0 %2598 }
 0x3a5   : > { %13207 = vst [vmem:[#allocation86_spill] sm:$0xff] %v10782_v60  ;;  %v1954_v60 = vld [vmem:[#allocation3 + $0x90] sm:$0xff] }
 0x3a6   : > { %v1986_v51 = vmul.f32 %v13215_v19, %v1954_v60 }
 0x3a8   : > { %v10786_v31 = vpop.permute.xlu0 %2528 }
 0x3a9   : > { %13209 = vst [vmem:[#allocation90_spill] sm:$0xff] %v10786_v31  ;;  %v1984_v31 = vmul.f32 %v13214_v23, %v1952_v35  ;;  %v1939_v35 = vld [vmem:[#allocation3 + $0x18] sm:$0xff] }
 0x3ac   : > { %v10790_v8 = vpop.permute.xlu0 %2608 }
 0x3ad   : > { %13211 = vst [vmem:[#allocation94_spill] sm:$0xff] %v10790_v8 }
 0x3c9   : > { %v2003_v17 = vpop.xlane.xlu0 %2002 }
 0x3ca   : > { %v2065_v48 = vadd.f32 %v2003_v17, %v1969_v4  ;;  %v1940_v4 = vld [vmem:[#allocation3 + $0x20] sm:$0xff] }
 0x3cb   : > { %v1972_v45 = vmul.f32 %v10350_v29, %v1940_v4 }
 0x3cc   : > { %2098 = vst.msk [vmem:[#allocation3 + $0x8] sm:$0xff] %vm715_vm1, %v2065_v48 }
 0x3cd   : > { %v2001_v16 = vpop.xlane.xlu1 %2000 }
 0x3ce   : > { %v2064_v28 = vadd.f32 %v2001_v16, %v1968_v26 }
 0x3d0   : > { %2097 = vst.msk [vmem:[#allocation3] sm:$0xff] %vm715_vm1, %v2064_v28  ;;  %v1988_v28 = vmul.f32 %v10358_v52, %v1956_v25  ;;  %v1955_v25 = vld [vmem:[#allocation3 + $0x98] sm:$0xff] }
 0x3d1   : > { %v2033_v8 = vpop.xlane.xlu1 %2032 }
 0x3d2   : > { %v2080_v6 = vadd.f32 %v2033_v8, %v1984_v31  ;;  %v1953_v31 = vld [vmem:[#allocation3 + $0x88] sm:$0xff] }
 0x3d3   : > { %v1985_v60 = vmul.f32 %v10495_v53, %v1953_v31 }
 0x3d4   : > { %2113 = vst.msk [vmem:[#allocation3 + $0x80] sm:$0xff] %vm715_vm1, %v2080_v6  ;;  %v1942_v6 = vld [vmem:[#allocation3 + $0x30] sm:$0xff] }
 0x3d5   : > { %v2037_v14 = vpop.xlane.xlu1 %2036  ;;  %v1974_v16 = vmul.f32 %v10372_v54, %v1942_v6  ;;  %v1987_v54 = vmul.f32 %v10506_v34, %v1955_v25  ;;  %v1938_v6 = vld [vmem:[#allocation3 + $0x10] sm:$0xff]  ;;  %v1941_v34 = vld [vmem:[#allocation3 + $0x28] sm:$0xff] }
 0x3d6   : > { %v2082_v17 = vadd.f32 %v2037_v14, %v1986_v51  ;;  %v1958_v51 = vld [vmem:[#allocation3 + $0xb0] sm:$0xff] }
 0x3d8   : > { %2115 = vst.msk [vmem:[#allocation3 + $0x90] sm:$0xff] %vm715_vm1, %v2082_v17  ;;  %v13216_v17 = vld [vmem:[#allocation128_spill] sm:$0xff] }
 0x3d9   : > { %v2009_v48 = vpop.xlane.xlu1 %2008  ;;  %v1971_v52 = vmul.f32 %v13216_v17, %v1939_v35 }
 0x3da   : > { %v2068_v26 = vadd.f32 %v2009_v48, %v1972_v45  ;;  %v1990_v48 = vmul.f32 %v10376_v5, %v1958_v51  ;;  %v13217_v5 = vld [vmem:[#allocation129_spill] sm:$0xff] }
 0x3dc   : > { %2101 = vst.msk [vmem:[#allocation3 + $0x20] sm:$0xff] %vm715_vm1, %v2068_v26 }
 0x3dd   : > { %v2041_v23 = vpop.xlane.xlu1 %2040 }
 0x3de   : > { %v2084_v8 = vadd.f32 %v2041_v23, %v1988_v28  ;;  %v1944_v28 = vld [vmem:[#allocation3 + $0x40] sm:$0xff] }
 0x3e0   : > { %2117 = vst.msk [vmem:[#allocation3 + $0xa0] sm:$0xff] %vm715_vm1, %v2084_v8  ;;  %v1976_v8 = vmul.f32 %v10390_v59, %v1944_v28  ;;  %v1973_v59 = vmul.f32 %v10448_v38, %v1941_v34  ;;  %v1943_v38 = vld [vmem:[#allocation3 + $0x38] sm:$0xff] }
 0x3e1   : > { %v2035_v14 = vpop.xlane.xlu0 %2034 }
 0x3e2   : > { %v2081_v29 = vadd.f32 %v2035_v14, %v1985_v60  ;;  %v2013_v19 = vpop.xlane.xlu1 %2012 }
 0x3e3   : > { %v2070_v4 = vadd.f32 %v2013_v19, %v1974_v16  ;;  %v1960_v16 = vld [vmem:[#allocation3 + $0xc0] sm:$0xff] }
 0x3e4   : > { %2114 = vst.msk [vmem:[#allocation3 + $0x88] sm:$0xff] %vm715_vm1, %v2081_v29  ;;  %v1970_v29 = vmul.f32 %v13217_v5, %v1938_v6  ;;  %v1992_v51 = vmul.f32 %v10461_v9, %v1960_v16 }
 0x3e5   : > { %2103 = vst.msk [vmem:[#allocation3 + $0x30] sm:$0xff] %vm715_vm1, %v2070_v4  ;;  %v2007_v45 = vpop.xlane.xlu0 %2006 }
 0x3e6   : > { %v2067_v26 = vadd.f32 %v2007_v45, %v1971_v52  ;;  %v2045_v53 = vpop.xlane.xlu1 %2044  ;;  %v1946_v52 = vld [vmem:[#allocation3 + $0x50] sm:$0xff] }
 0x3e7   : > { %v2086_v23 = vadd.f32 %v2045_v53, %v1990_v48  ;;  %v1978_v25 = vmul.f32 %v10419_v22, %v1946_v52  ;;  %v1975_v22 = vmul.f32 %v10459_v46, %v1943_v38  ;;  %v1945_v46 = vld [vmem:[#allocation3 + $0x48] sm:$0xff] }
 0x3e8   : > { %2100 = vst.msk [vmem:[#allocation3 + $0x18] sm:$0xff] %vm715_vm1, %v2067_v26  ;;  %v1957_v26 = vld [vmem:[#allocation3 + $0xa8] sm:$0xff] }
 0x3e9   : > { %2119 = vst.msk [vmem:[#allocation3 + $0xb0] sm:$0xff] %vm715_vm1, %v2086_v23  ;;  %v2039_v31 = vpop.xlane.xlu0 %2038  ;;  %v1962_v23 = vld [vmem:[#allocation3 + $0xd0] sm:$0xff]  ;;  %v1989_v9 = vmul.f32 %v10517_v3, %v1957_v26  ;;  %v1959_v3 = vld [vmem:[#allocation3 + $0xb8] sm:$0xff] }
 0x3ea   : > { %v2083_v60 = vadd.f32 %v2039_v31, %v1987_v54  ;;  %v2017_v14 = vpop.xlane.xlu1 %2016 }
 0x3eb   : > { %v2072_v35 = vadd.f32 %v2017_v14, %v1976_v8  ;;  %v1994_v8 = vmul.f32 %v10474_v15, %v1962_v23  ;;  %v1948_v14 = vld [vmem:[#allocation3 + $0x60] sm:$0xff]  ;;  %v1991_v15 = vmul.f32 %v10528_v2, %v1959_v3  ;;  %v1961_v2 = vld [vmem:[#allocation3 + $0xc8] sm:$0xff]  ;;  %v1966_v23 = vld [vmem:[#allocation3 + $0xf0] sm:$0xff] }
 0x3ec   : > { %2116 = vst.msk [vmem:[#allocation3 + $0x98] sm:$0xff] %vm715_vm1, %v2083_v60  ;;  %v1980_v5 = vmul.f32 %v10487_v62, %v1948_v14  ;;  %v1977_v62 = vmul.f32 %v10472_v0, %v1945_v46  ;;  %v1947_v0 = vld [vmem:[#allocation3 + $0x58] sm:$0xff]  ;;  %v2421_v46 = vld [vmem:[#allocation4 + $0x10] sm:$0xff] }
 0x3ed   : > { %2105 = vst.msk [vmem:[#allocation3 + $0x40] sm:$0xff] %vm715_vm1, %v2072_v35  ;;  %v2005_v19 = vpop.xlane.xlu0 %2004  ;;  %v1963_v14 = vld [vmem:[#allocation3 + $0xd8] sm:$0xff] }
 0x3ee   : > { %v2066_v4 = vadd.f32 %v2005_v19, %v1970_v29  ;;  %v2049_v17 = vpop.xlane.xlu1 %2048 }
 0x3ef   : > { %v2088_v45 = vadd.f32 %v2049_v17, %v1992_v51  ;;  %v1964_v51 = vld [vmem:[#allocation3 + $0xe0] sm:$0xff] }
 0x3f0   : > { %2099 = vst.msk [vmem:[#allocation3 + $0x10] sm:$0xff] %vm715_vm1, %v2066_v4  ;;  %v1996_v17 = vmul.f32 %v10497_v39, %v1964_v51  ;;  %v1993_v39 = vmul.f32 %v10539_v63, %v1961_v2  ;;  %v1995_v63 = vmul.f32 %v10545_v11, %v1963_v14  ;;  %v2423_v2 = vld [vmem:[#allocation4 + $0x20] sm:$0xff] }
 0x3f1   : > { %2121 = vst.msk [vmem:[#allocation3 + $0xc0] sm:$0xff] %vm715_vm1, %v2088_v45  ;;  %v2011_v48 = vpop.xlane.xlu0 %2010 }
 0x3f2   : > { %v2069_v53 = vadd.f32 %v2011_v48, %v1973_v59  ;;  %v2021_v28 = vpop.xlane.xlu1 %2020  ;;  %v1950_v59 = vld [vmem:[#allocation3 + $0x70] sm:$0xff] }
 0x3f3   : > { %v2074_v54 = vadd.f32 %v2021_v28, %v1978_v25  ;;  %v1982_v26 = vmul.f32 %v10508_v43, %v1950_v59  ;;  %v1979_v43 = vmul.f32 %v10483_v58, %v1947_v0  ;;  %v1965_v58 = vld [vmem:[#allocation3 + $0xe8] sm:$0xff] }
 0x3f4   : > { %2102 = vst.msk [vmem:[#allocation3 + $0x28] sm:$0xff] %vm715_vm1, %v2069_v53 }
 0x3f5   : > { %2107 = vst.msk [vmem:[#allocation3 + $0x50] sm:$0xff] %vm715_vm1, %v2074_v54  ;;  %v2043_v31 = vpop.xlane.xlu0 %2042 }
 0x3f6   : > { %v2085_v6 = vadd.f32 %v2043_v31, %v1989_v9  ;;  %v2053_v60 = vpop.xlane.xlu1 %2052  ;;  %v1998_v31 = vmul.f32 %v10521_v32, %v1966_v23 }
 0x3f7   : > { %v2090_v16 = vadd.f32 %v2053_v60, %v1994_v8 }
 0x3f8   : > { %2118 = vst.msk [vmem:[#allocation3 + $0xa8] sm:$0xff] %vm715_vm1, %v2085_v6 }
 0x3f9   : > { %2123 = vst.msk [vmem:[#allocation3 + $0xd0] sm:$0xff] %vm715_vm1, %v2090_v16  ;;  %v2015_v35 = vpop.xlane.xlu0 %2014 }
 0x3fa   : > { %v2071_v29 = vadd.f32 %v2015_v35, %v1975_v22  ;;  %v2025_v19 = vpop.xlane.xlu1 %2024  ;;  %v1949_v35 = vld [vmem:[#allocation3 + $0x68] sm:$0xff] }
 0x3fb   : > { %v2076_v34 = vadd.f32 %v2025_v19, %v1980_v5  ;;  %v2420_v5 = vld [vmem:[#allocation4 + $0x8] sm:$0xff]  ;;  %v1981_v3 = vmul.f32 %v10555_v57, %v1949_v35 }
 0x3fc   : > { %2104 = vst.msk [vmem:[#allocation3 + $0x38] sm:$0xff] %vm715_vm1, %v2071_v29  ;;  %v2419_v29 = vld [vmem:[#allocation4] sm:$0xff] }
 0x3fd   : > { %2109 = vst.msk [vmem:[#allocation3 + $0x60] sm:$0xff] %vm715_vm1, %v2076_v34  ;;  %v2047_v4 = vpop.xlane.xlu0 %2046  ;;  %v2612_v34 = vmul.f32 %v10686_v10, %v2420_v5  ;;  %v2613_v10 = vmul.f32 %v10579_v1, %v2421_v46  ;;  %v2615_v1 = vmul.f32 %v10595_v13, %v2423_v2 }
 0x3fe   : > { %v2087_v52 = vadd.f32 %v2047_v4, %v1991_v15  ;;  %v2057_v45 = vpop.xlane.xlu1 %2056  ;;  %v2611_v15 = vmul.f32 %v10550_v41, %v2419_v29  ;;  %v2422_v4 = vld [vmem:[#allocation4 + $0x18] sm:$0xff]  ;;  %v2424_v41 = vld [vmem:[#allocation4 + $0x28] sm:$0xff] }
 0x3ff   : > { %v2092_v48 = vadd.f32 %v2057_v45, %v1996_v17  ;;  %v1997_v17 = vmul.f32 %v10562_v27, %v1965_v58 }
 0x400   : > { %2120 = vst.msk [vmem:[#allocation3 + $0xb8] sm:$0xff] %vm715_vm1, %v2087_v52 }
 0x401   : > { %2125 = vst.msk [vmem:[#allocation3 + $0xe0] sm:$0xff] %vm715_vm1, %v2092_v48  ;;  %v2019_v25 = vpop.xlane.xlu0 %2018  ;;  %v1951_v48 = vld [vmem:[#allocation3 + $0x78] sm:$0xff] }
 0x402   : > { %v2073_v53 = vadd.f32 %v2019_v25, %v1977_v62  ;;  %v2029_v28 = vpop.xlane.xlu1 %2028  ;;  %v2614_v25 = vmul.f32 %v10573_v61, %v2422_v4  ;;  %v1983_v27 = vmul.f32 %v10565_v20, %v1951_v48  ;;  %v2616_v61 = vmul.f32 %v10689_v42, %v2424_v41  ;;  %v2430_v41 = vld [vmem:[#allocation4 + $0x58] sm:$0xff] }
 0x403   : > { %v2078_v54 = vadd.f32 %v2029_v28, %v1982_v26 }
 0x404   : > { %2106 = vst.msk [vmem:[#allocation3 + $0x48] sm:$0xff] %vm715_vm1, %v2073_v53 }
 0x405   : > { %2111 = vst.msk [vmem:[#allocation3 + $0x70] sm:$0xff] %vm715_vm1, %v2078_v54  ;;  %v2051_v9 = vpop.xlane.xlu0 %2050  ;;  %v1967_v54 = vld [vmem:[#allocation3 + $0xf8] sm:$0xff] }
 0x406   : > { %v2089_v8 = vadd.f32 %v2051_v9, %v1993_v39  ;;  %v2061_v38 = vpop.xlane.xlu1 %2060  ;;  %v1999_v20 = vmul.f32 %v10570_v50, %v1967_v54  ;;  %v2441_v54 = vld [vmem:[#allocation4 + $0xb0] sm:$0xff] }
 0x407   : > { %v2094_v6 = vadd.f32 %v2061_v38, %v1998_v31  ;;  %v2426_v31 = vld [vmem:[#allocation4 + $0x38] sm:$0xff] }
 0x408   : > { %2122 = vst.msk [vmem:[#allocation3 + $0xc8] sm:$0xff] %vm715_vm1, %v2089_v8  ;;  %v2425_v8 = vld [vmem:[#allocation4 + $0x30] sm:$0xff]  ;;  %v2618_v42 = vmul.f32 %v10700_v12, %v2426_v31  ;;  %v2435_v12 = vld [vmem:[#allocation4 + $0x80] sm:$0xff] }
 0x409   : > { %2127 = vst.msk [vmem:[#allocation3 + $0xf0] sm:$0xff] %vm715_vm1, %v2094_v6  ;;  %v2023_v60 = vpop.xlane.xlu0 %2022  ;;  %v2617_v13 = vmul.f32 %v10628_v37, %v2425_v8 }
 0x40a   : > { %v2075_v16 = vadd.f32 %v2023_v60, %v1979_v43 }
 0x40c   : > { %2108 = vst.msk [vmem:[#allocation3 + $0x58] sm:$0xff] %vm715_vm1, %v2075_v16  ;;  %v2428_v16 = vld [vmem:[#allocation4 + $0x48] sm:$0xff] }
 0x40d   : > { %v2055_v22 = vpop.xlane.xlu0 %2054  ;;  %v2620_v5 = vmul.f32 %v10714_v49, %v2428_v16 }
 0x40e   : > { %v2091_v32 = vadd.f32 %v2055_v22, %v1995_v63  ;;  %v2427_v22 = vld [vmem:[#allocation4 + $0x40] sm:$0xff] }
 0x40f   : > { %v2619_v29 = vmul.f32 %v10660_v18, %v2427_v22 }
 0x410   : > { %2124 = vst.msk [vmem:[#allocation3 + $0xd8] sm:$0xff] %vm715_vm1, %v2091_v32 }
 0x411   : > { %v2027_v19 = vpop.xlane.xlu0 %2026 }
 0x412   : > { %v2077_v51 = vadd.f32 %v2027_v19, %v1981_v3  ;;  %v2436_v3 = vld [vmem:[#allocation4 + $0x88] sm:$0xff] }
 0x414   : > { %2110 = vst.msk [vmem:[#allocation3 + $0x68] sm:$0xff] %vm715_vm1, %v2077_v51  ;;  %v7667_v11 = vpop.f32.mrb[16].mxu0  ;;  %v2628_v51 = vmul.f32 %v10742_v33, %v2436_v3  ;;  %v2440_v33 = vld [vmem:[#allocation4 + $0xa8] sm:$0xff] }
 0x415   : > { %v2644_v52 = vadd.f32 %v7667_v11, %v2612_v34  ;;  %v2195_v45 = vpop.f32.mrb[17].mxu0  ;;  %v2059_v59 = vpop.xlane.xlu0 %2058  ;;  %v2438_v11 = vld [vmem:[#allocation4 + $0x98] sm:$0xff]  ;;  %v2632_v2 = vmul.f32 %v10766_v7, %v2440_v33 }
 0x416   : > { %v2643_v57 = vadd.f32 %v2611_v15, %v2195_v45  ;;  %v2093_v62 = vadd.f32 %v2059_v59, %v1997_v17  ;;  %v13218_v15 = vld [vmem:[#allocation142_spill] sm:$0xff]  ;;  %v2437_v17 = vld [vmem:[#allocation4 + $0x90] sm:$0xff]  ;;  %v2630_v45 = vmul.f32 %v10756_v24, %v2438_v11  ;;  %v13219_v59 = vld [vmem:[#allocation147_spill] sm:$0xff] }
 0x417   : > { %2676 = vst.msk [vmem:[#allocation4 + $0x8] sm:$0xff] %vm780_vm0, %v2644_v52  ;;  %v2627_v4 = vmul.f32 %v13218_v15, %v2435_v12  ;;  %v2629_v48 = vmul.f32 %v13219_v59, %v2437_v17  ;;  %v2431_v12 = vld [vmem:[#allocation4 + $0x60] sm:$0xff]  ;;  %v2448_v15 = vld [vmem:[#allocation4 + $0xe8] sm:$0xff] }
 0x418   : > { %2675 = vst.msk [vmem:[#allocation4] sm:$0xff] %vm780_vm0, %v2643_v57  ;;  %v7670_v26 = vpop.f32.mrb[18].mxu0 }
 0x419   : > { %2126 = vst.msk [vmem:[#allocation3 + $0xe8] sm:$0xff] %vm715_vm1, %v2093_v62  ;;  %v2646_v53 = vadd.f32 %v7670_v26, %v2614_v25  ;;  %v2205_v28 = vpop.f32.mrb[19].mxu0  ;;  %v2031_v23 = vpop.xlane.xlu0 %2030  ;;  %v2439_v62 = vld [vmem:[#allocation4 + $0xa0] sm:$0xff] }
 0x41a   : > { %v2645_v39 = vadd.f32 %v2613_v10, %v2205_v28  ;;  %v2079_v9 = vadd.f32 %v2031_v23, %v1983_v27  ;;  %v2429_v27 = vld [vmem:[#allocation4 + $0x50] sm:$0xff]  ;;  %v2442_v28 = vld [vmem:[#allocation4 + $0xb8] sm:$0xff] }
 0x41b   : > { %2678 = vst.msk [vmem:[#allocation4 + $0x18] sm:$0xff] %vm780_vm0, %v2646_v53  ;;  %v13220_v53 = vld [vmem:[#allocation83_spill] sm:$0xff] }
 0x41c   : > { %2677 = vst.msk [vmem:[#allocation4 + $0x10] sm:$0xff] %vm780_vm0, %v2645_v39  ;;  %v7673_v0 = vpop.f32.mrb[20].mxu0  ;;  %v2631_v24 = vmul.f32 %v13220_v53, %v2439_v62  ;;  %v2622_v39 = vmul.f32 %v10728_v55, %v2430_v41  ;;  %v2443_v55 = vld [vmem:[#allocation4 + $0xc0] sm:$0xff]  ;;  %v2433_v62 = vld [vmem:[#allocation4 + $0x70] sm:$0xff]  ;;  %v13226_v41 = vld [vmem:[#allocation89_spill] sm:$0xff] }
 0x41d   : > { %2112 = vst.msk [vmem:[#allocation3 + $0x78] sm:$0xff] %vm715_vm1, %v2079_v9  ;;  %v2648_v38 = vadd.f32 %v7673_v0, %v2616_v61  ;;  %v2215_v6 = vpop.f32.mrb[21].mxu0  ;;  %v2063_v43 = vpop.xlane.xlu0 %2062  ;;  %v2635_v16 = vmul.f32 %v10772_v56, %v2443_v55  ;;  %v2449_v53 = vld [vmem:[#allocation4 + $0xf0] sm:$0xff] }
 0x41e   : > { %v2647_v60 = vadd.f32 %v2615_v1, %v2215_v6  ;;  %v2095_v14 = vadd.f32 %v2063_v43, %v1999_v20  ;;  %v2621_v1 = vmul.f32 %v10677_v21, %v2429_v27  ;;  %v2634_v20 = vmul.f32 %v10768_v44, %v2442_v28  ;;  %v2444_v43 = vld [vmem:[#allocation4 + $0xc8] sm:$0xff]  ;;  %v2450_v27 = vld [vmem:[#allocation4 + $0xf8] sm:$0xff] }
 0x41f   : > { %2680 = vst.msk [vmem:[#allocation4 + $0x28] sm:$0xff] %vm780_vm0, %v2648_v38  ;;  %v13221_v38 = vld [vmem:[#allocation88_spill] sm:$0xff]  ;;  %v2636_v44 = vmul.f32 %v10770_v47, %v2444_v43 }
 0x420   : > { %2679 = vst.msk [vmem:[#allocation4 + $0x20] sm:$0xff] %vm780_vm0, %v2647_v60  ;;  %v7676_v63 = vpop.f32.mrb[22].mxu0  ;;  %v2633_v6 = vmul.f32 %v13221_v38, %v2441_v54  ;;  %v13227_v54 = vld [vmem:[#allocation94_spill] sm:$0xff] }
 0x421   : > { %2128 = vst.msk [vmem:[#allocation3 + $0xf8] sm:$0xff] %vm715_vm1, %v2095_v14  ;;  %v2650_v50 = vadd.f32 %v7676_v63, %v2618_v42  ;;  %v2225_v35 = vpop.f32.mrb[23].mxu0  ;;  %v2446_v63 = vld [vmem:[#allocation4 + $0xd8] sm:$0xff] }
 0x422   : > { %v2649_v32 = vadd.f32 %v2617_v13, %v2225_v35 }
 0x423   : > { %2682 = vst.msk [vmem:[#allocation4 + $0x38] sm:$0xff] %vm780_vm0, %v2650_v50  ;;  %v2445_v50 = vld [vmem:[#allocation4 + $0xd0] sm:$0xff] }
 0x424   : > { %2681 = vst.msk [vmem:[#allocation4 + $0x30] sm:$0xff] %vm780_vm0, %v2649_v32  ;;  %v7679_v37 = vpop.f32.mrb[24].mxu0  ;;  %v2637_v47 = vmul.f32 %v10776_v36, %v2445_v50 }
 0x425   : > { %v2652_v19 = vadd.f32 %v7679_v37, %v2620_v5  ;;  %v2235_v58 = vpop.f32.mrb[25].mxu0  ;;  %v2432_v5 = vld [vmem:[#allocation4 + $0x68] sm:$0xff] }
 0x426   : > { %v2651_v34 = vadd.f32 %v2619_v29, %v2235_v58  ;;  %v2638_v29 = vmul.f32 %v10774_v40, %v2446_v63  ;;  %v2624_v56 = vmul.f32 %v10778_v30, %v2432_v5  ;;  %v13224_v30 = vld [vmem:[#allocation92_spill] sm:$0xff] }
 0x427   : > { %2684 = vst.msk [vmem:[#allocation4 + $0x48] sm:$0xff] %vm780_vm0, %v2652_v19  ;;  %v7707_v49 = vpop.f32.mrb[16].mxu1 }
 0x428   : > { %2683 = vst.msk [vmem:[#allocation4 + $0x40] sm:$0xff] %vm780_vm0, %v2651_v34  ;;  %v2660_v46 = vadd.f32 %v7707_v49, %v2628_v51  ;;  %v2340_v52 = vpop.f32.mrb[17].mxu1  ;;  %v13222_v51 = vld [vmem:[#allocation85_spill] sm:$0xff]  ;;  %v2447_v49 = vld [vmem:[#allocation4 + $0xe0] sm:$0xff] }
 0x429   : > { %v2659_v18 = vadd.f32 %v2627_v4, %v2340_v52  ;;  %v2623_v34 = vmul.f32 %v13222_v51, %v2431_v12 }
 0x42a   : > { %2692 = vst.msk [vmem:[#allocation4 + $0x88] sm:$0xff] %vm780_vm0, %v2660_v46  ;;  %v13223_v46 = vld [vmem:[#allocation86_spill] sm:$0xff] }
 0x42b   : > { %2691 = vst.msk [vmem:[#allocation4 + $0x80] sm:$0xff] %vm780_vm0, %v2659_v18  ;;  %v7710_v57 = vpop.f32.mrb[18].mxu1  ;;  %v2640_v52 = vmul.f32 %v13223_v46, %v2448_v15  ;;  %v2639_v18 = vmul.f32 %v13224_v30, %v2447_v49  ;;  %v2755_v49 = vld [vmem:[%s9361_s10] sm:$0xff]  ;;  %v2764_v46 = vld [vmem:[%s9361_s10 + $0x48] sm:$0xff]  ;;  %v2757_v30 = vld [vmem:[%s9361_s10 + $0x10] sm:$0xff] }
 0x42c   : > { %v2662_v25 = vadd.f32 %v7710_v57, %v2630_v45  ;;  %v2350_v10 = vpop.f32.mrb[19].mxu1  ;;  %v2434_v57 = vld [vmem:[#allocation4 + $0x78] sm:$0xff] }
 0x42d   : > { %v2661_v26 = vadd.f32 %v2629_v48, %v2350_v10 }
 0x42e   : > { %2694 = vst.msk [vmem:[#allocation4 + $0x98] sm:$0xff] %vm780_vm0, %v2662_v25  ;;  %v13225_v25 = vld [vmem:[#allocation90_spill] sm:$0xff] }
 0x42f   : > { %2693 = vst.msk [vmem:[#allocation4 + $0x90] sm:$0xff] %vm780_vm0, %v2661_v26  ;;  %v7713_v23 = vpop.f32.mrb[20].mxu1  ;;  %v2626_v10 = vmul.f32 %v13225_v25, %v2434_v57  ;;  %v2625_v26 = vmul.f32 %v13226_v41, %v2433_v62  ;;  %v11026_v57 = vld [vmem:[#allocation2 + $0x8] sm:$0xff] }
 0x430   : > { %v2664_v9 = vadd.f32 %v7713_v23, %v2632_v2  ;;  %v2360_v61 = vpop.f32.mrb[21].mxu1 }
 0x431   : > { %v2663_v31 = vadd.f32 %v2631_v24, %v2360_v61  ;;  %v7682_v0 = vpop.f32.mrb[26].mxu0 }
 0x432   : > { %2696 = vst.msk [vmem:[#allocation4 + $0xa8] sm:$0xff] %vm780_vm0, %v2664_v9  ;;  %v2654_v7 = vadd.f32 %v7682_v0, %v2622_v39  ;;  %v2245_v8 = vpop.f32.mrb[27].mxu0  ;;  %v2642_v39 = vmul.f32 %v13227_v54, %v2450_v27  ;;  %v13228_v9 = vld [vmem:[#allocation96_spill] sm:$0xff]  ;;  %v2759_v27 = vld [vmem:[%s9361_s10 + $0x20] sm:$0xff] }
 0x433   : > { %2695 = vst.msk [vmem:[#allocation4 + $0xa0] sm:$0xff] %vm780_vm0, %v2663_v31  ;;  %v2653_v60 = vadd.f32 %v2621_v1, %v2245_v8  ;;  %v7716_v14 = vpop.f32.mrb[22].mxu1  ;;  %v2641_v61 = vmul.f32 %v13228_v9, %v2449_v53  ;;  %v11049_v54 = vld [vmem:[#allocation2 + $0x80] sm:$0xff] }
 0x434   : > { %2686 = vst.msk [vmem:[#allocation4 + $0x58] sm:$0xff] %vm780_vm0, %v2654_v7  ;;  %v2666_v42 = vadd.f32 %v7716_v14, %v2634_v20  ;;  %v2370_v21 = vpop.f32.mrb[23].mxu1 }
 0x435   : > { %2685 = vst.msk [vmem:[#allocation4 + $0x50] sm:$0xff] %vm780_vm0, %v2653_v60  ;;  %v2665_v13 = vadd.f32 %v2633_v6, %v2370_v21 }
 0x436   : > { %2698 = vst.msk [vmem:[#allocation4 + $0xb8] sm:$0xff] %vm780_vm0, %v2666_v42 }
 0x437   : > { %2697 = vst.msk [vmem:[#allocation4 + $0xb0] sm:$0xff] %vm780_vm0, %v2665_v13  ;;  %v7719_v22 = vpop.f32.mrb[24].mxu1 }
 0x438   : > { %v2668_v35 = vadd.f32 %v7719_v22, %v2636_v44  ;;  %v2380_v32 = vpop.f32.mrb[25].mxu1 }
 0x439   : > { %v2667_v3 = vadd.f32 %v2635_v16, %v2380_v32 }
 0x43a   : > { %2700 = vst.msk [vmem:[#allocation4 + $0xc8] sm:$0xff] %vm780_vm0, %v2668_v35 }
 0x43b   : > { %2699 = vst.msk [vmem:[#allocation4 + $0xc0] sm:$0xff] %vm780_vm0, %v2667_v3  ;;  %v7722_v37 = vpop.f32.mrb[26].mxu1 }
 0x43c   : > { %v2670_v19 = vadd.f32 %v7722_v37, %v2638_v29  ;;  %v2390_v58 = vpop.f32.mrb[27].mxu1 }
 0x43d   : > { %v2669_v4 = vadd.f32 %v2637_v47, %v2390_v58  ;;  %v7685_v11 = vpop.f32.mrb[28].mxu0 }
 0x43e   : > { %2702 = vst.msk [vmem:[#allocation4 + $0xd8] sm:$0xff] %vm780_vm0, %v2670_v19  ;;  %v2656_v40 = vadd.f32 %v7685_v11, %v2624_v56  ;;  %v2255_v17 = vpop.f32.mrb[29].mxu0 }
 0x43f   : > { %2701 = vst.msk [vmem:[#allocation4 + $0xd0] sm:$0xff] %vm780_vm0, %v2669_v4  ;;  %v2655_v36 = vadd.f32 %v2623_v34, %v2255_v17 }
 0x440   : > { %2688 = vst.msk [vmem:[#allocation4 + $0x68] sm:$0xff] %vm780_vm0, %v2656_v40  ;;  %v2756_v40 = vld [vmem:[%s9361_s10 + $0x8] sm:$0xff] }
 0x441   : > { %2687 = vst.msk [vmem:[#allocation4 + $0x60] sm:$0xff] %vm780_vm0, %v2655_v36  ;;  %v7725_v45 = vpop.f32.mrb[28].mxu1  ;;  %v8145_v17 = vpack.c.bf16 %v2756_v40, %v2755_v49  ;;  %v2763_v36 = vld [vmem:[%s9361_s10 + $0x40] sm:$0xff]  ;;  %v11067_v40 = vld [vmem:[#allocation2 + $0x90] sm:$0xff] }
 0x442   : > { %v2672_v59 = vadd.f32 %v7725_v45, %v2640_v52  ;;  %v2400_v48 = vpop.f32.mrb[29].mxu1  ;;  %v8161_v52 = vpack.c.bf16 %v2764_v46, %v2763_v36  ;;  %v2761_v46 = vld [vmem:[%s9361_s10 + $0x30] sm:$0xff] }
 0x443   : > { %v2671_v33 = vadd.f32 %v2639_v18, %v2400_v48  ;;  %8146 = vmatprep.subr.bf16.mxu0 %v8145_v17  ;;  %v2758_v18 = vld [vmem:[%s9361_s10 + $0x18] sm:$0xff] }
 0x444   : > { %2704 = vst.msk [vmem:[#allocation4 + $0xe8] sm:$0xff] %vm780_vm0, %v2672_v59  ;;  %8148 = vmatpush3.bf16.xpose.msra.mxu0 %v8145_v17  ;;  %8162 = vmatprep.subr.bf16.mxu1 %v8161_v52  ;;  %v8149_v45 = vpack.c.bf16 %v2758_v18, %v2757_v30  ;;  %v2765_v59 = vld [vmem:[%s9361_s10 + $0x50] sm:$0xff]  ;;  %v2766_v48 = vld [vmem:[%s9361_s10 + $0x58] sm:$0xff] }
 0x445   : > { %2703 = vst.msk [vmem:[#allocation4 + $0xe0] sm:$0xff] %vm780_vm0, %v2671_v33  ;;  %8164 = vmatpush3.bf16.xpose.msra.mxu1 %v8161_v52  ;;  %v8165_v33 = vpack.c.bf16 %v2766_v48, %v2765_v59  ;;  %v2762_v52 = vld [vmem:[%s9361_s10 + $0x38] sm:$0xff]  ;;  %v11084_v48 = vld [vmem:[#allocation2 + $0x20] sm:$0xff] }
 0x446   : > { %8150 = vmatprep.subr.bf16.mxu0 %v8149_v45  ;;  %v8157_v30 = vpack.c.bf16 %v2762_v52, %v2761_v46  ;;  %v11078_v18 = vld [vmem:[#allocation2 + $0x98] sm:$0xff] }
 0x447   : > { %8166 = vmatprep.subr.bf16.mxu1 %v8165_v33 }
 0x449   : > { %v7688_v2 = vpop.f32.mrb[30].mxu0 }
 0x44a   : > { %v2658_v24 = vadd.f32 %v7688_v2, %v2626_v10  ;;  %v2265_v28 = vpop.f32.mrb[31].mxu0  ;;  %v11031_v10 = vld [vmem:[#allocation2] sm:$0xff]  ;;  %v2760_v2 = vld [vmem:[%s9361_s10 + $0x28] sm:$0xff] }
 0x44b   : > { %v2657_v23 = vadd.f32 %v2625_v26, %v2265_v28  ;;  %v8153_v53 = vpack.c.bf16 %v2760_v2, %v2759_v27  ;;  %v2770_v27 = vld [vmem:[%s9361_s10 + $0x78] sm:$0xff] }
 0x44c   : > { %2690 = vst.msk [vmem:[#allocation4 + $0x78] sm:$0xff] %vm780_vm0, %v2658_v24  ;;  %8152 = vmatpush3.bf16.xpose.msra.mxu0 %v8149_v45  ;;  %v11043_v24 = vld [vmem:[#allocation2 + $0x88] sm:$0xff] }
 0x44d   : > { %2689 = vst.msk [vmem:[#allocation4 + $0x70] sm:$0xff] %vm780_vm0, %v2657_v23  ;;  %v7728_v1 = vpop.f32.mrb[30].mxu1  ;;  %v10920_v31 = vpop.f32.mrb[32].mxu0  ;;  %8168 = vmatpush3.bf16.xpose.msra.mxu1 %v8165_v33  ;;  %8154 = vmatprep.subr.bf16.mxu0 %v8153_v53 }
 0x44e   : > { %v2674_v0 = vadd.f32 %v7728_v1, %v2642_v39  ;;  %3095 = vmax.xlane.f32.xlu0 %v10920_v31  ;;  %v2410_v20 = vpop.f32.mrb[31].mxu1  ;;  %v10923_v7 = vpop.f32.mrb[33].mxu0  ;;  %v2768_v1 = vld [vmem:[%s9361_s10 + $0x68] sm:$0xff] }
 0x44f   : > { %v2673_v8 = vadd.f32 %v2641_v61, %v2410_v20  ;;  %3093 = vmax.xlane.f32.xlu1 %v10923_v7  ;;  %v2767_v61 = vld [vmem:[%s9361_s10 + $0x60] sm:$0xff]  ;;  %v11061_v20 = vld [vmem:[#allocation2 + $0x18] sm:$0xff] }
 0x450   : > { %2706 = vst.msk [vmem:[#allocation4 + $0xf8] sm:$0xff] %vm780_vm0, %v2674_v0  ;;  %v8169_v0 = vpack.c.bf16 %v2768_v1, %v2767_v61  ;;  %v11101_v61 = vld [vmem:[#allocation2 + $0xa0] sm:$0xff] }
 0x451   : > { %2705 = vst.msk [vmem:[#allocation4 + $0xf0] sm:$0xff] %vm780_vm0, %v2673_v8  ;;  %v10928_v38 = vpop.f32.mrb[34].mxu0  ;;  %v10930_v6 = vpop.f32.mrb[32].mxu1 }
 0x452   : > { %v10932_v43 = vpop.f32.mrb[35].mxu0  ;;  %3127 = vmax.xlane.f32.xlu0 %v10930_v6  ;;  %v10935_v60 = vpop.f32.mrb[33].mxu1  ;;  %8170 = vmatprep.subr.bf16.mxu1 %v8169_v0 }
 0x453   : > { %3125 = vmax.xlane.f32.xlu1 %v10935_v60 }
 0x454   : > { %8156 = vmatpush3.bf16.xpose.msra.mxu0 %v8153_v53  ;;  %v11096_v53 = vld [vmem:[#allocation2 + $0x10] sm:$0xff] }
 0x455   : > { %v10938_v14 = vpop.f32.mrb[36].mxu0  ;;  %v10940_v55 = vpop.f32.mrb[34].mxu1  ;;  %8172 = vmatpush3.bf16.xpose.msra.mxu1 %v8169_v0  ;;  %8158 = vmatprep.subr.bf16.mxu0 %v8157_v30 }
 0x456   : > { %v10942_v42 = vpop.f32.mrb[37].mxu0  ;;  %3099 = vmax.xlane.f32.xlu0 %v10928_v38  ;;  %v10945_v21 = vpop.f32.mrb[35].mxu1 }
 0x457   : > { %3129 = vmax.xlane.f32.xlu1 %v10945_v21 }
 0x459   : > { %v10948_v13 = vpop.f32.mrb[38].mxu0  ;;  %v10950_v44 = vpop.f32.mrb[36].mxu1 }
 0x45a   : > { %v10952_v16 = vpop.f32.mrb[39].mxu0  ;;  %3131 = vmax.xlane.f32.xlu0 %v10940_v55  ;;  %v10955_v63 = vpop.f32.mrb[37].mxu1 }
 0x45b   : > { %3101 = vmax.xlane.f32.xlu1 %v10942_v42 }
 0x45c   : > { %8160 = vmatpush3.bf16.xpose.msra.mxu0 %v8157_v30  ;;  %v11118_v30 = vld [vmem:[#allocation2 + $0x30] sm:$0xff] }
 0x45d   : > { %v10958_v22 = vpop.f32.mrb[40].mxu0  ;;  %v10960_v50 = vpop.f32.mrb[38].mxu1 }
 0x45e   : > { %13229 = vst [vmem:[#allocation82_spill] sm:$0xff] %v10958_v22  ;;  %v10962_v35 = vpop.f32.mrb[41].mxu0  ;;  %3097 = vmax.xlane.f32.xlu0 %v10932_v43  ;;  %v10965_v32 = vpop.f32.mrb[39].mxu1 }
 0x45f   : > { %13230 = vst [vmem:[#allocation93_spill] sm:$0xff] %v10962_v35  ;;  %13231 = vst [vmem:[#allocation84_spill] sm:$0xff] %v10965_v32  ;;  %3133 = vmax.xlane.f32.xlu1 %v10955_v63 }
 0x461   : > { %v10968_v5 = vpop.f32.mrb[42].mxu0  ;;  %v10970_v3 = vpop.f32.mrb[40].mxu1 }
 0x462   : > { %13232 = vst [vmem:[#allocation98_spill] sm:$0xff] %v10968_v5  ;;  %13233 = vst [vmem:[#allocation87_spill] sm:$0xff] %v10970_v3  ;;  %v10972_v12 = vpop.f32.mrb[43].mxu0  ;;  %3103 = vmax.xlane.f32.xlu0 %v10938_v14  ;;  %v10975_v29 = vpop.f32.mrb[41].mxu1 }
 0x463   : > { %13234 = vst [vmem:[#allocation97_spill] sm:$0xff] %v10972_v12  ;;  %13235 = vst [vmem:[#allocation100_spill] sm:$0xff] %v10975_v29  ;;  %3105 = vmax.xlane.f32.xlu1 %v10952_v16 }
 0x465   : > { %v10978_v47 = vpop.f32.mrb[44].mxu0  ;;  %v10980_v37 = vpop.f32.mrb[42].mxu1 }
 0x466   : > { %13236 = vst [vmem:[#allocation91_spill] sm:$0xff] %v10978_v47  ;;  %13237 = vst [vmem:[#allocation101_spill] sm:$0xff] %v10980_v37  ;;  %v10982_v56 = vpop.f32.mrb[45].mxu0  ;;  %3135 = vmax.xlane.f32.xlu0 %v10950_v44  ;;  %v10985_v19 = vpop.f32.mrb[43].mxu1 }
 0x467   : > { %13238 = vst [vmem:[#allocation95_spill] sm:$0xff] %v10982_v56  ;;  %13239 = vst [vmem:[#allocation103_spill] sm:$0xff] %v10985_v19  ;;  %3137 = vmax.xlane.f32.xlu1 %v10965_v32 }
 0x469   : > { %v10988_v58 = vpop.f32.mrb[46].mxu0  ;;  %v10990_v51 = vpop.f32.mrb[44].mxu1 }
 0x46a   : > { %13240 = vst [vmem:[#allocation99_spill] sm:$0xff] %v10988_v58  ;;  %13241 = vst [vmem:[#allocation105_spill] sm:$0xff] %v10990_v51  ;;  %v10992_v34 = vpop.f32.mrb[47].mxu0  ;;  %3107 = vmax.xlane.f32.xlu0 %v10948_v13  ;;  %v10995_v15 = vpop.f32.mrb[45].mxu1 }
 0x46b   : > { %13242 = vst [vmem:[#allocation104_spill] sm:$0xff] %v10992_v34  ;;  %13243 = vst [vmem:[#allocation106_spill] sm:$0xff] %v10995_v15  ;;  %3109 = vmax.xlane.f32.xlu1 %v10962_v35 }
 0x46d   : > { %v10998_v4 = vpop.f32.mrb[46].mxu1 }
 0x46e   : > { %13244 = vst [vmem:[#allocation108_spill] sm:$0xff] %v10998_v4  ;;  %3139 = vmax.xlane.f32.xlu0 %v10960_v50  ;;  %v11001_v11 = vpop.f32.mrb[47].mxu1 }
 0x46f   : > { %13245 = vst [vmem:[#allocation110_spill] sm:$0xff] %v11001_v11  ;;  %3141 = vmax.xlane.f32.xlu1 %v10975_v29 }
 0x472   : > { %3111 = vmax.xlane.f32.xlu0 %v10958_v22 }
 0x473   : > { %3113 = vmax.xlane.f32.xlu1 %v10972_v12 }
 0x476   : > { %3143 = vmax.xlane.f32.xlu0 %v10970_v3 }
 0x477   : > { %3145 = vmax.xlane.f32.xlu1 %v10985_v19 }
 0x47a   : > { %3115 = vmax.xlane.f32.xlu0 %v10968_v5  ;;  %v11284_v5 = vld [vmem:[#allocation2 + $0x70] sm:$0xff] }
 0x47b   : > { %3117 = vmax.xlane.f32.xlu1 %v10982_v56 }
 0x47e   : > { %3147 = vmax.xlane.f32.xlu0 %v10980_v37  ;;  %v11264_v37 = vld [vmem:[#allocation2 + $0xe0] sm:$0xff] }
 0x47f   : > { %3149 = vmax.xlane.f32.xlu1 %v10995_v15 }
 0x482   : > { %3119 = vmax.xlane.f32.xlu0 %v10978_v47 }
 0x483   : > { %3121 = vmax.xlane.f32.xlu1 %v10992_v34 }
 0x486   : > { %3151 = vmax.xlane.f32.xlu0 %v10990_v51 }
 0x487   : > { %3153 = vmax.xlane.f32.xlu1 %v11001_v11 }
 0x48a   : > { %3123 = vmax.xlane.f32.xlu0 %v10988_v58 }
 0x48e   : > { %3155 = vmax.xlane.f32.xlu0 %v10998_v4  ;;  %v11194_v4 = vld [vmem:[#allocation2 + $0x50] sm:$0xff] }
 0x4db   : > { %v3096_v62 = vpop.xlane.xlu0 %3095 }
 0x4dc   : > { %v11029_v25 = vmax.f32 %v11026_v57, %v3096_v62  ;;  %v3094_v41 = vpop.xlane.xlu1 %3093 }
 0x4dd   : > { %v11034_v26 = vmax.f32 %v11031_v10, %v3094_v41  ;;  %v2769_v41 = vld [vmem:[%s9361_s10 + $0x70] sm:$0xff] }
 0x4de   : > { %4312 = vst.msk [vmem:[#allocation2 + $0x8] sm:$0xff] %vm715_vm1, %v11029_v25  ;;  %3292 = vperm.xlu0 %8393, %v11029_v25   ;;  %v8173_v2 = vpack.c.bf16 %v2770_v27, %v2769_v41  ;;  %v11133_v27 = vld [vmem:[#allocation2 + $0xa8] sm:$0xff] }
 0x4df   : > { %4311 = vst.msk [vmem:[#allocation2] sm:$0xff] %vm715_vm1, %v11034_v26  ;;  %v3128_v28 = vpop.xlane.xlu0 %3127  ;;  %3287 = vperm.xlu1 %8392, %v11034_v26   ;;  %v3189_v41 = vsub.f32 %v11031_v10, %v11034_v26  ;;  %v11138_v10 = vld [vmem:[#allocation2 + $0xb0] sm:$0xff] }
 0x4e0   : > { %v11047_v23 = vmax.f32 %v11043_v24, %v3128_v28  ;;  %v3126_v39 = vpop.xlane.xlu1 %3125  ;;  %8174 = vmatprep.subr.bf16.mxu1 %v8173_v2 }
 0x4e1   : > { %v11052_v9 = vmax.f32 %v11049_v54, %v3126_v39  ;;  %8176 = vmatpush3.bf16.xpose.msra.mxu1 %v8173_v2 }
 0x4e2   : > { %4328 = vst.msk [vmem:[#allocation2 + $0x88] sm:$0xff] %vm715_vm1, %v11047_v23  ;;  %3372 = vperm.xlu0 %8393, %v11047_v23  }
 0x4e3   : > { %4327 = vst.msk [vmem:[#allocation2 + $0x80] sm:$0xff] %vm715_vm1, %v11052_v9  ;;  %v3100_v8 = vpop.xlane.xlu0 %3099  ;;  %3367 = vperm.xlu1 %8392, %v11052_v9  }
 0x4e4   : > { %v11065_v49 = vmax.f32 %v11061_v20, %v3100_v8  ;;  %v3130_v17 = vpop.xlane.xlu1 %3129  ;;  %v3190_v8 = vsub.f32 %v11026_v57, %v11029_v25  ;;  %v3206_v25 = vsub.f32 %v11043_v24, %v11047_v23  ;;  %v3205_v23 = vsub.f32 %v11049_v54, %v11052_v9 }
 0x4e5   : > { %v11070_v36 = vmax.f32 %v11067_v40, %v3130_v17  ;;  %v11113_v17 = vld [vmem:[#allocation2 + $0x28] sm:$0xff] }
 0x4e6   : > { %4314 = vst.msk [vmem:[#allocation2 + $0x18] sm:$0xff] %vm715_vm1, %v11065_v49  ;;  %v3223_v57 = vmul.f32 1.442695, %v3190_v8  ;;  %v3255_v24 = vmul.f32 1.442695, %v3206_v25  ;;  %v11151_v8 = vld [vmem:[#allocation2 + $0x38] sm:$0xff] }
 0x4e7   : > { %4329 = vst.msk [vmem:[#allocation2 + $0x90] sm:$0xff] %vm715_vm1, %v11070_v36  ;;  %v3132_v45 = vpop.xlane.xlu0 %3131  ;;  %3302 = vperm.xlu1 %8392, %v11065_v49   ;;  %v3253_v54 = vmul.f32 1.442695, %v3205_v23  ;;  %v11211_v23 = vld [vmem:[#allocation2 + $0xc8] sm:$0xff] }
 0x4e8   : > { %v11082_v59 = vmax.f32 %v11078_v18, %v3132_v45  ;;  %v3102_v33 = vpop.xlane.xlu1 %3101  ;;  %8522 = vpow2.f32 %v3223_v57  ;;  %v11169_v57 = vld [vmem:[#allocation2 + $0xb8] sm:$0xff] }
 0x4e9   : > { %v11087_v62 = vmax.f32 %v11084_v48, %v3102_v33 }
 0x4ea   : > { %4330 = vst.msk [vmem:[#allocation2 + $0x98] sm:$0xff] %vm715_vm1, %v11082_v59  ;;  %3382 = vperm.xlu0 %8393, %v11082_v59  }
 0x4eb   : > { %4315 = vst.msk [vmem:[#allocation2 + $0x20] sm:$0xff] %vm715_vm1, %v11087_v62  ;;  %v3098_v28 = vpop.xlane.xlu0 %3097 }
 0x4ec   : > { %v11099_v39 = vmax.f32 %v11096_v53, %v3098_v28  ;;  %v3134_v1 = vpop.xlane.xlu1 %3133 }
 0x4ed   : > { %v11104_v0 = vmax.f32 %v11101_v61, %v3134_v1 }
 0x4ee   : > { %4313 = vst.msk [vmem:[#allocation2 + $0x10] sm:$0xff] %vm715_vm1, %v11099_v39  ;;  %3297 = vperm.xlu1 %8392, %v11099_v39  }
 0x4ef   : > { %4331 = vst.msk [vmem:[#allocation2 + $0xa0] sm:$0xff] %vm715_vm1, %v11104_v0  ;;  %v3104_v46 = vpop.xlane.xlu0 %3103 }
 0x4f0   : > { %v11116_v52 = vmax.f32 %v11113_v17, %v3104_v46  ;;  %v3106_v45 = vpop.xlane.xlu1 %3105  ;;  %v3221_v46 = vmul.f32 1.442695, %v3189_v41 }
 0x4f1   : > { %v11121_v33 = vmax.f32 %v11118_v30, %v3106_v45 }
 0x4f2   : > { %4316 = vst.msk [vmem:[#allocation2 + $0x28] sm:$0xff] %vm715_vm1, %v11116_v52  ;;  %3312 = vperm.xlu0 %8393, %v11116_v52   ;;  %3377 = vperm.xlu1 %8392, %v11070_v36   ;;  %8524 = vpow2.f32 %v3221_v46  ;;  %v11196_v58 = vpop.eup %8522 }
 0x4f3   : > { %4317 = vst.msk [vmem:[#allocation2 + $0x30] sm:$0xff] %vm715_vm1, %v11121_v33  ;;  %v3136_v2 = vpop.xlane.xlu0 %3135  ;;  %8526 = vpow2.f32 %v3255_v24  ;;  %v3208_v24 = vsub.f32 %v11078_v18, %v11082_v59  ;;  %13246 = vst [vmem:[#allocation109_spill] sm:$0xff] %v11196_v58  ;;  %v3192_v18 = vsub.f32 %v11061_v20, %v11065_v49 }
 0x4f4   : > { %v11136_v28 = vmax.f32 %v11133_v27, %v3136_v2  ;;  %v3138_v26 = vpop.xlane.xlu1 %3137  ;;  %v11156_v2 = vld [vmem:[#allocation2 + $0x40] sm:$0xff]  ;;  %8528 = vpow2.f32 %v3253_v54 }
 0x4f5   : > { %v11141_v1 = vmax.f32 %v11138_v10, %v3138_v26  ;;  %v3259_v59 = vmul.f32 1.442695, %v3208_v24  ;;  %v3227_v49 = vmul.f32 1.442695, %v3192_v18  ;;  %v3191_v24 = vsub.f32 %v11096_v53, %v11099_v39 }
 0x4f6   : > { %4332 = vst.msk [vmem:[#allocation2 + $0xa8] sm:$0xff] %vm715_vm1, %v11136_v28  ;;  %3392 = vperm.xlu0 %8393, %v11136_v28   ;;  %3307 = vperm.xlu1 %8392, %v11087_v62   ;;  %v3207_v53 = vsub.f32 %v11067_v40, %v11070_v36 }
 0x4f7   : > { %4333 = vst.msk [vmem:[#allocation2 + $0xb0] sm:$0xff] %vm715_vm1, %v11141_v1  ;;  %v3108_v45 = vpop.xlane.xlu0 %3107  ;;  %8530 = vpow2.f32 %v3259_v59  ;;  %v3225_v39 = vmul.f32 1.442695, %v3191_v24 }
 0x4f8   : > { %v11154_v41 = vmax.f32 %v11151_v8, %v3108_v45  ;;  %v3110_v26 = vpop.xlane.xlu1 %3109  ;;  %v11174_v45 = vld [vmem:[#allocation2 + $0xc0] sm:$0xff]  ;;  %8532 = vpow2.f32 %v3227_v49  ;;  %v3257_v24 = vmul.f32 1.442695, %v3207_v53 }
 0x4f9   : > { %v11159_v11 = vmax.f32 %v11156_v2, %v3110_v26  ;;  %8534 = vpow2.f32 %v3225_v39 }
 0x4fa   : > { %4318 = vst.msk [vmem:[#allocation2 + $0x38] sm:$0xff] %vm715_vm1, %v11154_v41  ;;  %3322 = vperm.xlu0 %8393, %v11154_v41   ;;  %3387 = vperm.xlu1 %8392, %v11104_v0   ;;  %8536 = vpow2.f32 %v3257_v24 }
 0x4fb   : > { %4319 = vst.msk [vmem:[#allocation2 + $0x40] sm:$0xff] %vm715_vm1, %v11159_v11  ;;  %v3140_v25 = vpop.xlane.xlu0 %3139 }
 0x4fc   : > { %v11172_v46 = vmax.f32 %v11169_v57, %v3140_v25  ;;  %v3142_v26 = vpop.xlane.xlu1 %3141  ;;  %v11189_v25 = vld [vmem:[#allocation2 + $0x48] sm:$0xff]  ;;  %v11213_v56 = vpop.eup %8524 }
 0x4fd   : > { %v11177_v34 = vmax.f32 %v11174_v45, %v3142_v26  ;;  %13247 = vst [vmem:[#allocation111_spill] sm:$0xff] %v11213_v56  ;;  %v11220_v47 = vpop.eup %8526 }
 0x4fe   : > { %4334 = vst.msk [vmem:[#allocation2 + $0xb8] sm:$0xff] %vm715_vm1, %v11172_v46  ;;  %3402 = vperm.xlu0 %8393, %v11172_v46   ;;  %3317 = vperm.xlu1 %8392, %v11121_v33   ;;  %13248 = vst [vmem:[#allocation50_spill] sm:$0xff] %v11220_v47  ;;  %v11242_v18 = vpop.eup %8528 }
 0x4ff   : > { %4335 = vst.msk [vmem:[#allocation2 + $0xc0] sm:$0xff] %vm715_vm1, %v11177_v34  ;;  %v3112_v26 = vpop.xlane.xlu0 %3111  ;;  %13249 = vst [vmem:[#allocation52_spill] sm:$0xff] %v11242_v18 }
 0x500   : > { %v11192_v9 = vmax.f32 %v11189_v25, %v3112_v26  ;;  %v3114_v15 = vpop.xlane.xlu1 %3113 }
 0x501   : > { %v11199_v54 = vmax.f32 %v11194_v4, %v3114_v15  ;;  %v11286_v39 = vpop.eup %8530 }
 0x502   : > { %4320 = vst.msk [vmem:[#allocation2 + $0x48] sm:$0xff] %vm715_vm1, %v11192_v9  ;;  %4062 = vperm.xlu0 %8393, %v11196_v58   ;;  %3397 = vperm.xlu1 %8392, %v11141_v1   ;;  %v11218_v58 = vld [vmem:[#allocation2 + $0xd0] sm:$0xff]  ;;  %13250 = vst [vmem:[#allocation54_spill] sm:$0xff] %v11286_v39 }
 0x503   : > { %4321 = vst.msk [vmem:[#allocation2 + $0x50] sm:$0xff] %vm715_vm1, %v11199_v54  ;;  %v3144_v15 = vpop.xlane.xlu0 %3143 }
 0x504   : > { %v11216_v51 = vmax.f32 %v11211_v23, %v3144_v15  ;;  %v3146_v19 = vpop.xlane.xlu1 %3145 }
 0x505   : > { %v11223_v20 = vmax.f32 %v11218_v58, %v3146_v19  ;;  %v11235_v19 = vld [vmem:[#allocation2 + $0x58] sm:$0xff] }
 0x506   : > { %4336 = vst.msk [vmem:[#allocation2 + $0xc8] sm:$0xff] %vm715_vm1, %v11216_v51  ;;  %4142 = vperm.xlu0 %8393, %v11220_v47   ;;  %4057 = vperm.xlu1 %8392, %v11213_v56   ;;  %v11240_v47 = vld [vmem:[#allocation2 + $0x60] sm:$0xff] }
 0x507   : > { %4337 = vst.msk [vmem:[#allocation2 + $0xd0] sm:$0xff] %vm715_vm1, %v11223_v20  ;;  %v3116_v26 = vpop.xlane.xlu0 %3115 }
 0x508   : > { %v11238_v12 = vmax.f32 %v11235_v19, %v3116_v26  ;;  %v3118_v56 = vpop.xlane.xlu1 %3117  ;;  %v3194_v26 = vsub.f32 %v11113_v17, %v11116_v52  ;;  %v3210_v52 = vsub.f32 %v11133_v27, %v11136_v28  ;;  %v11321_v28 = vld [vmem:[#allocation2 + $0x78] sm:$0xff] }
 0x509   : > { %v11245_v59 = vmax.f32 %v11240_v47, %v3118_v56  ;;  %v11259_v56 = vld [vmem:[#allocation2 + $0xd8] sm:$0xff] }
 0x50a   : > { %4322 = vst.msk [vmem:[#allocation2 + $0x58] sm:$0xff] %vm715_vm1, %v11238_v12  ;;  %3332 = vperm.xlu0 %8393, %v11192_v9   ;;  %4137 = vperm.xlu1 %8392, %v11242_v18   ;;  %v3231_v17 = vmul.f32 1.442695, %v3194_v26  ;;  %v3263_v27 = vmul.f32 1.442695, %v3210_v52  ;;  %v3193_v52 = vsub.f32 %v11084_v48, %v11087_v62  ;;  %v3196_v62 = vsub.f32 %v11151_v8, %v11154_v41 }
 0x50b   : > { %4323 = vst.msk [vmem:[#allocation2 + $0x60] sm:$0xff] %vm715_vm1, %v11245_v59  ;;  %v3148_v40 = vpop.xlane.xlu0 %3147  ;;  %v3212_v41 = vsub.f32 %v11169_v57, %v11172_v46  ;;  %v3211_v57 = vsub.f32 %v11138_v10, %v11141_v1 }
 0x50c   : > { %v11262_v36 = vmax.f32 %v11259_v56, %v3148_v40  ;;  %v3150_v18 = vpop.xlane.xlu1 %3149  ;;  %8538 = vpow2.f32 %v3231_v17  ;;  %v11304_v40 = vld [vmem:[#allocation2 + $0xf0] sm:$0xff]  ;;  %v3229_v48 = vmul.f32 1.442695, %v3193_v52  ;;  %v3235_v8 = vmul.f32 1.442695, %v3196_v62 }
 0x50d   : > { %v11267_v49 = vmax.f32 %v11264_v37, %v3150_v18  ;;  %v11279_v18 = vld [vmem:[#allocation2 + $0x68] sm:$0xff]  ;;  %8540 = vpow2.f32 %v3263_v27  ;;  %v11336_v27 = vld [vmem:[#allocation2 + $0xf8] sm:$0xff] }
 0x50e   : > { %4338 = vst.msk [vmem:[#allocation2 + $0xd8] sm:$0xff] %vm715_vm1, %v11262_v36  ;;  %3412 = vperm.xlu0 %8393, %v11216_v51   ;;  %3327 = vperm.xlu1 %8392, %v11159_v11   ;;  %8542 = vpow2.f32 %v3229_v48  ;;  %v3195_v48 = vsub.f32 %v11118_v30, %v11121_v33  ;;  %v3214_v33 = vsub.f32 %v11211_v23, %v11216_v51 }
 0x50f   : > { %4339 = vst.msk [vmem:[#allocation2 + $0xe0] sm:$0xff] %vm715_vm1, %v11267_v49  ;;  %v3120_v53 = vpop.xlane.xlu0 %3119  ;;  %v3216_v23 = vsub.f32 %v11259_v56, %v11262_v36 }
 0x510   : > { %v11282_v15 = vmax.f32 %v11279_v18, %v3120_v53  ;;  %v3122_v29 = vpop.xlane.xlu1 %3121  ;;  %v11299_v53 = vld [vmem:[#allocation2 + $0xe8] sm:$0xff]  ;;  %v3233_v46 = vmul.f32 1.442695, %v3195_v48  ;;  %v3271_v1 = vmul.f32 1.442695, %v3214_v33 }
 0x511   : > { %v11289_v26 = vmax.f32 %v11284_v5, %v3122_v29 }
 0x512   : > { %4324 = vst.msk [vmem:[#allocation2 + $0x68] sm:$0xff] %vm715_vm1, %v11282_v15  ;;  %4152 = vperm.xlu0 %8393, %v11286_v39   ;;  %3407 = vperm.xlu1 %8392, %v11177_v34   ;;  %v11306_v39 = vpop.eup %8532 }
 0x513   : > { %4325 = vst.msk [vmem:[#allocation2 + $0x70] sm:$0xff] %vm715_vm1, %v11289_v26  ;;  %v3152_v29 = vpop.xlane.xlu0 %3151  ;;  %13251 = vst [vmem:[#allocation51_spill] sm:$0xff] %v11306_v39  ;;  %v11326_v22 = vpop.eup %8534 }
 0x514   : > { %v11302_v24 = vmax.f32 %v11299_v53, %v3152_v29  ;;  %v3154_v35 = vpop.xlane.xlu1 %3153  ;;  %v11338_v29 = vpop.eup %8536 }
 0x515   : > { %v11309_v17 = vmax.f32 %v11304_v40, %v3154_v35 }
 0x516   : > { %4340 = vst.msk [vmem:[#allocation2 + $0xe8] sm:$0xff] %vm715_vm1, %v11302_v24  ;;  %3342 = vperm.xlu0 %8393, %v11238_v12   ;;  %4072 = vperm.xlu1 %8392, %v11306_v39   ;;  %v3209_v39 = vsub.f32 %v11101_v61, %v11104_v0  ;;  %v11343_v61 = vpop.eup %8538 }
 0x517   : > { %4341 = vst.msk [vmem:[#allocation2 + $0xf0] sm:$0xff] %vm715_vm1, %v11309_v17  ;;  %v3124_v35 = vpop.xlane.xlu0 %3123  ;;  %v11351_v52 = vpop.eup %8540 }
 0x518   : > { %v11324_v3 = vmax.f32 %v11321_v28, %v3124_v35  ;;  %v3261_v0 = vmul.f32 1.442695, %v3209_v39  ;;  %v3267_v39 = vmul.f32 1.442695, %v3212_v41  ;;  %v11359_v62 = vpop.eup %8542  ;;  %v3265_v41 = vmul.f32 1.442695, %v3211_v57 }
 0x519   : > { %v4343_v57 = vld [vmem:[%s9357_s30] sm:$0xff] }
 0x51a   : > { %4326 = vst.msk [vmem:[#allocation2 + $0x78] sm:$0xff] %vm715_vm1, %v11324_v3  ;;  %3422 = vperm.xlu0 %8393, %v11262_v36   ;;  %4067 = vperm.xlu1 %8392, %v11326_v22   ;;  %8544 = vpow2.f32 %v3261_v0  ;;  %v4352_v36 = vld [vmem:[%s9357_s30 + $0x48] sm:$0xff] }
 0x51b   : > { %v3156_v35 = vpop.xlane.xlu0 %3155  ;;  %8546 = vpow2.f32 %v3235_v8 }
 0x51c   : > { %v11341_v32 = vmax.f32 %v11336_v27, %v3156_v35  ;;  %8548 = vpow2.f32 %v3267_v39  ;;  %v3198_v35 = vsub.f32 %v11189_v25, %v11192_v9  ;;  %v3200_v9 = vsub.f32 %v11235_v19, %v11238_v12 }
 0x51d   : > { %8550 = vpow2.f32 %v3233_v46  ;;  %v13252_v39 = vsub.f32 %v11156_v2, %v11159_v11  ;;  %v3275_v12 = vmul.f32 1.442695, %v3216_v23  ;;  %v3202_v19 = vsub.f32 %v11279_v18, %v11282_v15  ;;  %v4344_v46 = vld [vmem:[%s9357_s30 + $0x8] sm:$0xff] }
 0x51e   : > { %4342 = vst.msk [vmem:[#allocation2 + $0xf8] sm:$0xff] %vm715_vm1, %v11341_v32  ;;  %4082 = vperm.xlu0 %8393, %v11343_v61   ;;  %4147 = vperm.xlu1 %8392, %v11338_v29   ;;  %v3239_v30 = vmul.f32 1.442695, %v3198_v35  ;;  %8552 = vpow2.f32 %v3265_v41  ;;  %v3243_v51 = vmul.f32 1.442695, %v3200_v9  ;;  %v4351_v35 = vld [vmem:[%s9357_s30 + $0x40] sm:$0xff]  ;;  %v11399_v56 = vpack.c.bf16 %v4344_v46, %v4343_v57 }
 0x51f   : > { %v3237_v48 = vmul.f32 1.442695, %v13252_v39  ;;  %v11404_v11 = vpack.c.bf16 %v4352_v36, %v4351_v35  ;;  %v13253_v2 = vsub.f32 %v11174_v45, %v11177_v34  ;;  %v3218_v18 = vsub.f32 %v11299_v53, %v11302_v24 }
 0x520   : > { %8554 = vpow2.f32 %v3239_v30  ;;  %8178 = vmatprep.subr.bf16.mxu0 %v11399_v56  ;;  %v13254_v34 = vsub.f32 %v11194_v4, %v11199_v54  ;;  %v3204_v53 = vsub.f32 %v11321_v28, %v11324_v3 }
 0x521   : > { %8556 = vpow2.f32 %v3271_v1  ;;  %v3269_v33 = vmul.f32 1.442695, %v13253_v2  ;;  %8194 = vmatprep.subr.bf16.mxu1 %v11404_v11  ;;  %v3279_v9 = vmul.f32 1.442695, %v3218_v18 }
 0x522   : > { %4162 = vperm.xlu0 %8393, %v11351_v52   ;;  %3337 = vperm.xlu1 %8392, %v11199_v54   ;;  %8558 = vpow2.f32 %v3243_v51  ;;  %v3241_v45 = vmul.f32 1.442695, %v13254_v34  ;;  %v13255_v51 = vsub.f32 %v11218_v58, %v11223_v20  ;;  %v3251_v4 = vmul.f32 1.442695, %v3204_v53 }
 0x523   : > { %8560 = vpow2.f32 %v3237_v48  ;;  %v3220_v54 = vsub.f32 %v11336_v27, %v11341_v32 }
 0x524   : > { %v11367_v0 = vpop.eup %8544  ;;  %8562 = vpow2.f32 %v3275_v12  ;;  %v3273_v23 = vmul.f32 1.442695, %v13255_v51 }
 0x525   : > { %v11369_v8 = vpop.eup %8546  ;;  %8564 = vpow2.f32 %v3269_v33  ;;  %v3283_v58 = vmul.f32 1.442695, %v3220_v54  ;;  %v4346_v54 = vld [vmem:[%s9357_s30 + $0x18] sm:$0xff] }
 0x526   : > { %3352 = vperm.xlu0 %8393, %v11282_v15   ;;  %3417 = vperm.xlu1 %8392, %v11223_v20   ;;  %v11375_v10 = vpop.eup %8548  ;;  %v3247_v15 = vmul.f32 1.442695, %v3202_v19  ;;  %v13258_v19 = vsub.f32 %v11284_v5, %v11289_v26 }
 0x527   : > { %v11385_v25 = vpop.eup %8550 }
 0x528   : > { %v11397_v41 = vpop.eup %8552  ;;  %8566 = vpow2.f32 %v3247_v15  ;;  %v3249_v57 = vmul.f32 1.442695, %v13258_v19 }
 0x529   : > { %8568 = vpow2.f32 %v3241_v45 }
 0x52a   : > { %3432 = vperm.xlu0 %8393, %v11302_v24   ;;  %4077 = vperm.xlu1 %8392, %v11359_v62   ;;  %v11402_v30 = vpop.eup %8554  ;;  %8570 = vpow2.f32 %v3279_v9 }
 0x52b   : > { %v11415_v1 = vpop.eup %8556  ;;  %8572 = vpow2.f32 %v3273_v23 }
 0x52c   : > { %v11424_v24 = vpop.eup %8558  ;;  %8574 = vpow2.f32 %v3251_v4  ;;  %v4345_v4 = vld [vmem:[%s9357_s30 + $0x10] sm:$0xff] }
 0x52d   : > { %v11433_v39 = vpop.eup %8560 }
 0x52e   : > { %4092 = vperm.xlu0 %8393, %v11369_v8   ;;  %4157 = vperm.xlu1 %8392, %v11367_v0   ;;  %v11435_v48 = vpop.eup %8562 }
 0x52f   : > { %v11442_v20 = vpop.eup %8564 }
 0x532   : > { %4172 = vperm.xlu0 %8393, %v11375_v10   ;;  %3347 = vperm.xlu1 %8392, %v11245_v59   ;;  %v11444_v12 = vpop.eup %8566 }
 0x536   : > { %3362 = vperm.xlu0 %8393, %v11324_v3   ;;  %3427 = vperm.xlu1 %8392, %v11267_v49   ;;  %v13256_v3 = vsub.f32 %v11240_v47, %v11245_v59  ;;  %v11451_v59 = vpop.eup %8568 }
 0x537   : > { %v11453_v27 = vpop.eup %8570 }
 0x538   : > { %v3245_v28 = vmul.f32 1.442695, %v13256_v3  ;;  %v11460_v46 = vpop.eup %8572 }
 0x539   : > { %v11462_v35 = vpop.eup %8574 }
 0x53a   : > { %3442 = vperm.xlu0 %8393, %v11341_v32   ;;  %4087 = vperm.xlu1 %8392, %v11385_v25   ;;  %8576 = vpow2.f32 %v3245_v28  ;;  %v13257_v32 = vsub.f32 %v11264_v37, %v11267_v49  ;;  %v13259_v37 = vsub.f32 %v11304_v40, %v11309_v17 }
 0x53b   : > { %8578 = vpow2.f32 %v3283_v58 }
 0x53c   : > { %v3277_v47 = vmul.f32 1.442695, %v13257_v32  ;;  %v3281_v49 = vmul.f32 1.442695, %v13259_v37  ;;  %v8181_v32 = vpack.c.bf16 %v4346_v54, %v4345_v4  ;;  %v4354_v37 = vld [vmem:[%s9357_s30 + $0x58] sm:$0xff] }
 0x53e   : > { %4102 = vperm.xlu0 %8393, %v11402_v30   ;;  %4167 = vperm.xlu1 %8392, %v11397_v41   ;;  %8580 = vpow2.f32 %v3277_v47  ;;  %v4353_v47 = vld [vmem:[%s9357_s30 + $0x50] sm:$0xff] }
 0x53f   : > { %8582 = vpow2.f32 %v3249_v57 }
 0x540   : > { %8584 = vpow2.f32 %v3281_v49  ;;  %v4347_v49 = vld [vmem:[%s9357_s30 + $0x20] sm:$0xff] }
 0x542   : > { %4182 = vperm.xlu0 %8393, %v11415_v1   ;;  %3357 = vperm.xlu1 %8392, %v11289_v26  }
 0x544   : > { %v11469_v36 = vpop.eup %8576 }
 0x545   : > { %v11471_v2 = vpop.eup %8578 }
 0x546   : > { %4112 = vperm.xlu0 %8393, %v11424_v24   ;;  %3437 = vperm.xlu1 %8392, %v11309_v17  }
 0x548   : > { %v11475_v5 = vpop.eup %8580 }
 0x549   : > { %v11480_v18 = vpop.eup %8582 }
 0x54a   : > { %4192 = vperm.xlu0 %8393, %v11435_v48   ;;  %4097 = vperm.xlu1 %8392, %v11433_v39   ;;  %v11485_v23 = vpop.eup %8584 }
 0x54e   : > { %4122 = vperm.xlu0 %8393, %v11444_v12   ;;  %4177 = vperm.xlu1 %8392, %v11442_v20  }
 0x552   : > { %4202 = vperm.xlu0 %8393, %v11453_v27   ;;  %4107 = vperm.xlu1 %8392, %v11451_v59  }
 0x556   : > { %4132 = vperm.xlu0 %8393, %v11462_v35   ;;  %4187 = vperm.xlu1 %8392, %v11460_v46  }
 0x55a   : > { %4212 = vperm.xlu0 %8393, %v11471_v2   ;;  %4117 = vperm.xlu1 %8392, %v11469_v36  }
 0x55d   : > { %v3293_v26 = vpop.permute.xlu0 %3292 }
 0x55e   : > { %v3446_v33 = vsub.f32 %v10920_v31, %v3293_v26  ;;  %4197 = vperm.xlu1 %8392, %v11475_v5   ;;  %v3288_v15 = vpop.permute.xlu1 %3287  ;;  %v4348_v26 = vld [vmem:[%s9357_s30 + $0x28] sm:$0xff] }
 0x55f   : > { %v3445_v40 = vsub.f32 %v10923_v7, %v3288_v15 }
 0x560   : > { %v3479_v17 = vmul.f32 1.442695, %v3446_v33 }
 0x561   : > { %v3477_v34 = vmul.f32 1.442695, %v3445_v40  ;;  %v3373_v45 = vpop.permute.xlu0 %3372 }
 0x562   : > { %v3462_v9 = vsub.f32 %v10930_v6, %v3373_v45  ;;  %4127 = vperm.xlu1 %8392, %v11480_v18   ;;  %v3368_v53 = vpop.permute.xlu1 %3367  ;;  %v8185_v45 = vpack.c.bf16 %v4348_v26, %v4347_v49 }
 0x563   : > { %8586 = vpow2.f32 %v3477_v34  ;;  %v3461_v31 = vsub.f32 %v10935_v60, %v3368_v53  ;;  %v8197_v34 = vpack.c.bf16 %v4354_v37, %v4353_v47  ;;  %v4357_v47 = vld [vmem:[%s9357_s30 + $0x70] sm:$0xff] }
 0x564   : > { %8588 = vpow2.f32 %v3479_v17  ;;  %v3511_v51 = vmul.f32 1.442695, %v3462_v9 }
 0x565   : > { %v3509_v7 = vmul.f32 1.442695, %v3461_v31  ;;  %v4355_v31 = vld [vmem:[%s9357_s30 + $0x60] sm:$0xff] }
 0x566   : > { %4207 = vperm.xlu1 %8392, %v11485_v23   ;;  %v3303_v6 = vpop.permute.xlu1 %3302 }
 0x567   : > { %8590 = vpow2.f32 %v3509_v7  ;;  %v3448_v3 = vsub.f32 %v10928_v38, %v3303_v6 }
 0x568   : > { %8592 = vpow2.f32 %v3511_v51  ;;  %v4350_v51 = vld [vmem:[%s9357_s30 + $0x38] sm:$0xff] }
 0x569   : > { %v3383_v60 = vpop.permute.xlu0 %3382  ;;  %v3483_v33 = vmul.f32 1.442695, %v3448_v3 }
 0x56a   : > { %v3464_v38 = vsub.f32 %v10940_v55, %v3383_v60  ;;  %v4356_v55 = vld [vmem:[%s9357_s30 + $0x68] sm:$0xff] }
 0x56c   : > { %v3515_v7 = vmul.f32 1.442695, %v3464_v38 }
 0x56d   : > { %v11491_v28 = vpop.eup %8586  ;;  %v3298_v58 = vpop.permute.xlu1 %3297 }
 0x56e   : > { %v8589_v19 = vpop.eup %8588  ;;  %v3447_v57 = vsub.f32 %v10932_v43, %v3298_v58  ;;  %7825 = vmatprep.mubr.f32.mxu0 %v11491_v28 }
 0x56f   : > { %7826 = vmatmul.mubr.f32.vlgmr.msra.gmra.mrb[48].mxu0 %v8589_v19 }
 0x570   : > { %v3481_v15 = vmul.f32 1.442695, %v3447_v57  ;;  %8180 = vmatpush3.bf16.msra.mxu0 %v11399_v56  ;;  %v4349_v56 = vld [vmem:[%s9357_s30 + $0x30] sm:$0xff]  ;;  %v4358_v57 = vld [vmem:[%s9357_s30 + $0x78] sm:$0xff] }
 0x571   : > { %v11501_v40 = vpop.eup %8590  ;;  %v3313_v17 = vpop.permute.xlu0 %3312  ;;  %8182 = vmatprep.subr.bf16.mxu0 %v8181_v32  ;;  %v8189_v58 = vpack.c.bf16 %v4350_v51, %v4349_v56  ;;  %v13260_v56 = vld [vmem:[#allocation84_spill] sm:$0xff] }
 0x572   : > { %v3378_v43 = vpop.permute.xlu1 %3377  ;;  %v8593_v9 = vpop.eup %8592  ;;  %8594 = vpow2.f32 %v3481_v15  ;;  %7865 = vmatprep.mubr.f32.mxu1 %v11501_v40  ;;  %v3450_v6 = vsub.f32 %v10938_v14, %v3313_v17 }
 0x573   : > { %v3463_v53 = vsub.f32 %v10945_v21, %v3378_v43  ;;  %8596 = vpow2.f32 %v3483_v33  ;;  %7866 = vmatmul.mubr.f32.vlgmr.msra.gmra.mrb[48].mxu1 %v8593_v9  ;;  %v8201_v21 = vpack.c.bf16 %v4356_v55, %v4355_v31  ;;  %v8205_v33 = vpack.c.bf16 %v4358_v57, %v4357_v47  ;;  %v13261_v47 = vld [vmem:[#allocation82_spill] sm:$0xff] }
 0x574   : > { %8196 = vmatpush3.bf16.msra.mxu1 %v11404_v11  ;;  %8184 = vmatpush3.bf16.msra.mxu0 %v8181_v32  ;;  %v3487_v37 = vmul.f32 1.442695, %v3450_v6 }
 0x575   : > { %v3513_v4 = vmul.f32 1.442695, %v3463_v53  ;;  %v3393_v54 = vpop.permute.xlu0 %3392  ;;  %8198 = vmatprep.subr.bf16.mxu1 %v8197_v34  ;;  %8186 = vmatprep.subr.bf16.mxu0 %v8185_v45 }
 0x576   : > { %v3308_v3 = vpop.permute.xlu1 %3307  ;;  %v3466_v49 = vsub.f32 %v10950_v44, %v3393_v54 }
 0x577   : > { %v3449_v60 = vsub.f32 %v10942_v42, %v3308_v3  ;;  %8598 = vpow2.f32 %v3513_v4 }
 0x578   : > { %8600 = vpow2.f32 %v3515_v7  ;;  %8200 = vmatpush3.bf16.msra.mxu1 %v8197_v34  ;;  %8188 = vmatpush3.bf16.msra.mxu0 %v8185_v45  ;;  %v3519_v38 = vmul.f32 1.442695, %v3466_v49 }
 0x579   : > { %v3485_v14 = vmul.f32 1.442695, %v3449_v60  ;;  %3607 = vadd.xlane.f32.xlu0 %v8589_v19  ;;  %v3323_v11 = vpop.permute.xlu0 %3322  ;;  %8202 = vmatprep.subr.bf16.mxu1 %v8201_v21 }
 0x57a   : > { %v3388_v32 = vpop.permute.xlu1 %3387  ;;  %8190 = vmatprep.subr.bf16.mxu0 %v8189_v58  ;;  %v3452_v15 = vsub.f32 %v10948_v13, %v3323_v11 }
 0x57b   : > { %v3465_v26 = vsub.f32 %v10955_v63, %v3388_v32  ;;  %8602 = vpow2.f32 %v3485_v14 }
 0x57c   : > { %v8595_v42 = vpop.eup %8594  ;;  %8604 = vpow2.f32 %v3487_v37  ;;  %8204 = vmatpush3.bf16.msra.mxu1 %v8201_v21  ;;  %8192 = vmatpush3.bf16.msra.mxu0 %v8189_v58  ;;  %v3491_v45 = vmul.f32 1.442695, %v3452_v15 }
 0x57d   : > { %v3517_v17 = vmul.f32 1.442695, %v3465_v26  ;;  %v8597_v44 = vpop.eup %8596  ;;  %3639 = vadd.xlane.f32.xlu0 %v8593_v9  ;;  %v3403_v43 = vpop.permute.xlu0 %3402  ;;  %7828 = vmatprep.mubr.f32.mxu0 %v8595_v42  ;;  %v13262_v26 = vld [vmem:[#allocation87_spill] sm:$0xff] }
 0x57e   : > { %v3318_v19 = vpop.permute.xlu1 %3317  ;;  %7829 = vmatmul.mubr.f32.gmra.mrb[50].mxu0 %v8597_v44  ;;  %8206 = vmatprep.subr.bf16.mxu1 %v8205_v33  ;;  %v3468_v63 = vsub.f32 %v10960_v50, %v3403_v43 }
 0x57f   : > { %v3451_v34 = vsub.f32 %v10952_v16, %v3318_v19  ;;  %8606 = vpow2.f32 %v3517_v17 }
 0x580   : > { %8608 = vpow2.f32 %v3519_v38  ;;  %8208 = vmatpush3.bf16.msra.mxu1 %v8205_v33  ;;  %v3523_v7 = vmul.f32 1.442695, %v3468_v63  ;;  %v13263_v38 = vld [vmem:[#allocation93_spill] sm:$0xff] }
 0x581   : > { %v3489_v53 = vmul.f32 1.442695, %v3451_v34  ;;  %v8599_v13 = vpop.eup %8598  ;;  %v11519_v31 = vpop.permute.xlu0 %4062  ;;  %3611 = vadd.xlane.f32.xlu0 %v8597_v44  ;;  %v13264_v34 = vld [vmem:[#allocation100_spill] sm:$0xff] }
 0x582   : > { %v3398_v55 = vpop.permute.xlu1 %3397  ;;  %v8601_v9 = vpop.eup %8600  ;;  %7868 = vmatprep.mubr.f32.mxu1 %v8599_v13 }
 0x583   : > { %v3467_v51 = vsub.f32 %v13260_v56, %v3398_v55  ;;  %8610 = vpow2.f32 %v3489_v53  ;;  %7869 = vmatmul.mubr.f32.gmra.mrb[50].mxu1 %v8601_v9  ;;  %v13265_v55 = vld [vmem:[#allocation98_spill] sm:$0xff] }
 0x584   : > { %8612 = vpow2.f32 %v3491_v45 }
 0x585   : > { %v3521_v16 = vmul.f32 1.442695, %v3467_v51  ;;  %v8603_v6 = vpop.eup %8602  ;;  %v11522_v50 = vpop.permute.xlu0 %4142  ;;  %3643 = vadd.xlane.f32.xlu0 %v8601_v9 }
 0x586   : > { %v11524_v4 = vpop.permute.xlu1 %4057  ;;  %v8605_v54 = vpop.eup %8604  ;;  %7831 = vmatprep.mubr.f32.mxu0 %v8603_v6 }
 0x587   : > { %8614 = vpow2.f32 %v3521_v16  ;;  %7832 = vmatmul.mubr.f32.gmra.mrb[52].mxu0 %v8605_v54  ;;  %v13266_v16 = vld [vmem:[#allocation101_spill] sm:$0xff] }
 0x588   : > { %8616 = vpow2.f32 %v3523_v7 }
 0x589   : > { %v8607_v3 = vpop.eup %8606  ;;  %v3333_v21 = vpop.permute.xlu0 %3332  ;;  %3609 = vadd.xlane.f32.xlu0 %v8595_v42 }
 0x58a   : > { %v11526_v60 = vpop.permute.xlu1 %4137  ;;  %v8609_v58 = vpop.eup %8608  ;;  %v3454_v57 = vsub.f32 %v13261_v47, %v3333_v21  ;;  %7871 = vmatprep.mubr.f32.mxu1 %v8607_v3  ;;  %3605 = vadd.xlane.f32.xlu1 %v11491_v28 }
 0x58b   : > { %7872 = vmatmul.mubr.f32.gmra.mrb[52].mxu1 %v8609_v58 }
 0x58c   : > { %v3495_v32 = vmul.f32 1.442695, %v3454_v57 }
 0x58d   : > { %v8611_v37 = vpop.eup %8610  ;;  %v3413_v49 = vpop.permute.xlu0 %3412  ;;  %3615 = vadd.xlane.f32.xlu0 %v8605_v54 }
 0x58e   : > { %v3328_v14 = vpop.permute.xlu1 %3327  ;;  %v8613_v11 = vpop.eup %8612  ;;  %v3470_v33 = vsub.f32 %v13262_v26, %v3413_v49  ;;  %7834 = vmatprep.mubr.f32.mxu0 %v8611_v37  ;;  %3637 = vadd.xlane.f32.xlu1 %v11501_v40  ;;  %8618 = vpow2.f32 %v3495_v32 }
 0x58f   : > { %v3453_v42 = vsub.f32 %v13263_v38, %v3328_v14  ;;  %7835 = vmatmul.mubr.f32.gmra.mrb[54].mxu0 %v8613_v11 }
 0x590   : > { %v3527_v43 = vmul.f32 1.442695, %v3470_v33 }
 0x591   : > { %v8615_v15 = vpop.eup %8614  ;;  %v3493_v17 = vmul.f32 1.442695, %v3453_v42  ;;  %v11533_v28 = vpop.permute.xlu0 %4152  ;;  %3647 = vadd.xlane.f32.xlu0 %v8609_v58 }
 0x592   : > { %v8617_v44 = vpop.eup %8616  ;;  %7874 = vmatprep.mubr.f32.mxu1 %v8615_v15  ;;  %v3408_v19 = vpop.permute.xlu1 %3407  ;;  %3641 = vadd.xlane.f32.xlu1 %v8599_v13 }
 0x593   : > { %v3469_v63 = vsub.f32 %v13264_v34, %v3408_v19  ;;  %7875 = vmatmul.mubr.f32.gmra.mrb[54].mxu1 %v8617_v44  ;;  %8620 = vpow2.f32 %v3493_v17  ;;  %v13268_v17 = vld [vmem:[#allocation91_spill] sm:$0xff] }
 0x594   : > { %8622 = vpow2.f32 %v3527_v43 }
 0x595   : > { %v3525_v45 = vmul.f32 1.442695, %v3469_v63  ;;  %v3343_v53 = vpop.permute.xlu0 %3342  ;;  %3619 = vadd.xlane.f32.xlu0 %v8613_v11 }
 0x596   : > { %v11536_v40 = vpop.permute.xlu1 %4072  ;;  %v3456_v9 = vsub.f32 %v13265_v55, %v3343_v53  ;;  %3613 = vadd.xlane.f32.xlu1 %v8603_v6 }
 0x597   : > { %8624 = vpow2.f32 %v3525_v45 }
 0x598   : > { %v3499_v56 = vmul.f32 1.442695, %v3456_v9  ;;  %v8619_v54 = vpop.eup %8618 }
 0x599   : > { %v3423_v51 = vpop.permute.xlu0 %3422  ;;  %3651 = vadd.xlane.f32.xlu0 %v8617_v44  ;;  %v13269_v44 = vld [vmem:[#allocation103_spill] sm:$0xff] }
 0x59a   : > { %v11539_v7 = vpop.permute.xlu1 %4067  ;;  %8626 = vpow2.f32 %v3499_v56  ;;  %v3472_v13 = vsub.f32 %v13266_v16, %v3423_v51  ;;  %3645 = vadd.xlane.f32.xlu1 %v8607_v3  ;;  %v13267_v3 = vld [vmem:[#allocation97_spill] sm:$0xff] }
 0x59c   : > { %v3531_v21 = vmul.f32 1.442695, %v3472_v13 }
 0x59d   : > { %v8621_v58 = vpop.eup %8620  ;;  %v11542_v47 = vpop.permute.xlu0 %4082  ;;  %3623 = vadd.xlane.f32.xlu0 %v8619_v54 }
 0x59e   : > { %v11544_v57 = vpop.permute.xlu1 %4147  ;;  %8628 = vpow2.f32 %v3531_v21  ;;  %7837 = vmatprep.mubr.f32.mxu0 %v8621_v58  ;;  %3617 = vadd.xlane.f32.xlu1 %v8611_v37  ;;  %v8623_v6 = vpop.eup %8622  ;;  %v13271_v21 = vld [vmem:[#allocation95_spill] sm:$0xff] }
 0x59f   : > { %7838 = vmatmul.mubr.f32.gmra.mrb[56].mxu0 %v8619_v54 }
 0x5a1   : > { %v8625_v49 = vpop.eup %8624  ;;  %v11546_v14 = vpop.permute.xlu0 %4162  ;;  %3655 = vadd.xlane.f32.xlu0 %v8623_v6 }
 0x5a2   : > { %7877 = vmatprep.mubr.f32.mxu1 %v8625_v49  ;;  %v3338_v11 = vpop.permute.xlu1 %3337  ;;  %3649 = vadd.xlane.f32.xlu1 %v8615_v15  ;;  %v13270_v15 = vld [vmem:[#allocation105_spill] sm:$0xff] }
 0x5a3   : > { %v3455_v32 = vsub.f32 %v13267_v3, %v3338_v11  ;;  %7878 = vmatmul.mubr.f32.gmra.mrb[56].mxu1 %v8623_v6 }
 0x5a4   : > { %v8627_v26 = vpop.eup %8626 }
 0x5a5   : > { %v3497_v33 = vmul.f32 1.442695, %v3455_v32  ;;  %v3353_v38 = vpop.permute.xlu0 %3352  ;;  %3627 = vadd.xlane.f32.xlu0 %v8627_v26 }
 0x5a6   : > { %v3418_v42 = vpop.permute.xlu1 %3417  ;;  %v3458_v37 = vsub.f32 %v13268_v17, %v3353_v38  ;;  %3621 = vadd.xlane.f32.xlu1 %v8621_v58 }
 0x5a7   : > { %8630 = vpow2.f32 %v3497_v33  ;;  %v3471_v43 = vsub.f32 %v13269_v44, %v3418_v42  ;;  %v13272_v33 = vld [vmem:[#allocation99_spill] sm:$0xff]  ;;  %v13273_v42 = vld [vmem:[#allocation106_spill] sm:$0xff] }
 0x5a8   : > { %v8629_v19 = vpop.eup %8628  ;;  %v3503_v34 = vmul.f32 1.442695, %v3458_v37 }
 0x5a9   : > { %v3529_v63 = vmul.f32 1.442695, %v3471_v43  ;;  %v3433_v45 = vpop.permute.xlu0 %3432  ;;  %3659 = vadd.xlane.f32.xlu0 %v8629_v19 }
 0x5aa   : > { %v11551_v53 = vpop.permute.xlu1 %4077  ;;  %8632 = vpow2.f32 %v3503_v34  ;;  %v3474_v55 = vsub.f32 %v13270_v15, %v3433_v45  ;;  %3653 = vadd.xlane.f32.xlu1 %v8625_v49 }
 0x5ab   : > { %8634 = vpow2.f32 %v3529_v63  ;;  %v13274_v63 = vld [vmem:[#allocation108_spill] sm:$0xff] }
 0x5ac   : > { %v3535_v9 = vmul.f32 1.442695, %v3474_v55 }
 0x5ad   : > { %v11554_v56 = vpop.permute.xlu0 %4092 }
 0x5ae   : > { %v11556_v51 = vpop.permute.xlu1 %4157  ;;  %8636 = vpow2.f32 %v3535_v9 }
 0x5b1   : > { %v8631_v16 = vpop.eup %8630  ;;  %v11558_v13 = vpop.permute.xlu0 %4172 }
 0x5b2   : > { %3625 = vadd.xlane.f32.xlu1 %v8631_v16  ;;  %7840 = vmatprep.mubr.f32.mxu0 %v8631_v16  ;;  %v3348_v54 = vpop.permute.xlu1 %3347 }
 0x5b3   : > { %v3457_v58 = vsub.f32 %v13271_v21, %v3348_v54  ;;  %7841 = vmatmul.mubr.f32.gmra.mrb[58].mxu0 %v8627_v26 }
 0x5b4   : > { %v8633_v6 = vpop.eup %8632 }
 0x5b5   : > { %v3501_v11 = vmul.f32 1.442695, %v3457_v58  ;;  %v8635_v3 = vpop.eup %8634  ;;  %v3363_v49 = vpop.permute.xlu0 %3362  ;;  %3631 = vadd.xlane.f32.xlu0 %v8633_v6 }
 0x5b6   : > { %v3428_v32 = vpop.permute.xlu1 %3427  ;;  %v3460_v38 = vsub.f32 %v13272_v33, %v3363_v49  ;;  %3657 = vadd.xlane.f32.xlu1 %v8635_v3  ;;  %7880 = vmatprep.mubr.f32.mxu1 %v8635_v3  ;;  %v13276_v49 = vld [vmem:[#allocation110_spill] sm:$0xff] }
 0x5b7   : > { %8638 = vpow2.f32 %v3501_v11  ;;  %v3473_v17 = vsub.f32 %v13273_v42, %v3428_v32  ;;  %7881 = vmatmul.mubr.f32.gmra.mrb[58].mxu1 %v8629_v19  ;;  %v13275_v19 = vld [vmem:[#allocation104_spill] sm:$0xff] }
 0x5b8   : > { %v8637_v37 = vpop.eup %8636  ;;  %v3507_v44 = vmul.f32 1.442695, %v3460_v38 }
 0x5b9   : > { %v3533_v43 = vmul.f32 1.442695, %v3473_v17  ;;  %v3443_v34 = vpop.permute.xlu0 %3442  ;;  %3663 = vadd.xlane.f32.xlu0 %v8637_v37 }
 0x5ba   : > { %v11563_v26 = vpop.permute.xlu1 %4087  ;;  %8640 = vpow2.f32 %v3507_v44  ;;  %v3476_v45 = vsub.f32 %v13274_v63, %v3443_v34  ;;  %v13278_v44 = vld [vmem:[#allocation107_spill] sm:$0xff]  ;;  %v13281_v63 = vld [vmem:[#allocation113_spill] sm:$0xff] }
 0x5bb   : > { %8642 = vpow2.f32 %v3533_v43  ;;  %v13279_v43 = vld [vmem:[#allocation112_spill] sm:$0xff] }
 0x5bc   : > { %v3539_v15 = vmul.f32 1.442695, %v3476_v45  ;;  %v13282_v45 = vld [vmem:[#allocation132_spill] sm:$0xff] }
 0x5bd   : > { %v11578_v34 = vpop.permute.xlu0 %4102 }
 0x5be   : > { %v11566_v55 = vpop.permute.xlu1 %4167  ;;  %8644 = vpow2.f32 %v3539_v15  ;;  %v13283_v15 = vld [vmem:[#allocation114_spill] sm:$0xff] }
 0x5c1   : > { %v8639_v9 = vpop.eup %8638 }
 0x5c2   : > { %3629 = vadd.xlane.f32.xlu1 %v8639_v9  ;;  %7843 = vmatprep.mubr.f32.mxu0 %v8639_v9  ;;  %v3358_v16 = vpop.permute.xlu1 %3357  ;;  %v13284_v9 = vld [vmem:[#allocation133_spill] sm:$0xff] }
 0x5c3   : > { %v3459_v54 = vsub.f32 %v13275_v19, %v3358_v16  ;;  %7844 = vmatmul.mubr.f32.gmra.mrb[60].mxu0 %v8633_v6  ;;  %v13277_v6 = vld [vmem:[#allocation102_spill] sm:$0xff]  ;;  %v11588_v16 = vpop.permute.xlu0 %4182  ;;  %v13285_v19 = vld [vmem:[#allocation115_spill] sm:$0xff] }
 0x5c4   : > { %v8641_v21 = vpop.eup %8640 }
 0x5c5   : > { %v3505_v58 = vmul.f32 1.442695, %v3459_v54  ;;  %v8643_v11 = vpop.eup %8642  ;;  %3635 = vadd.xlane.f32.xlu0 %v8641_v21  ;;  %v13286_v54 = vld [vmem:[#allocation134_spill] sm:$0xff] }
 0x5c6   : > { %v3438_v3 = vpop.permute.xlu1 %3437  ;;  %3661 = vadd.xlane.f32.xlu1 %v8643_v11  ;;  %7883 = vmatprep.mubr.f32.mxu1 %v8643_v11  ;;  %v13289_v11 = vld [vmem:[#allocation117_spill] sm:$0xff] }
 0x5c7   : > { %8646 = vpow2.f32 %v3505_v58  ;;  %v3475_v32 = vsub.f32 %v13276_v49, %v3438_v3  ;;  %7884 = vmatmul.mubr.f32.gmra.mrb[60].mxu1 %v8637_v37  ;;  %v13280_v37 = vld [vmem:[#allocation131_spill] sm:$0xff]  ;;  %v13290_v3 = vld [vmem:[#allocation136_spill] sm:$0xff]  ;;  %v13291_v49 = vld [vmem:[#allocation118_spill] sm:$0xff] }
 0x5c8   : > { %v8645_v33 = vpop.eup %8644  ;;  %v13288_v58 = vld [vmem:[#allocation135_spill] sm:$0xff] }
 0x5c9   : > { %v3537_v38 = vmul.f32 1.442695, %v3475_v32  ;;  %3667 = vadd.xlane.f32.xlu0 %v8645_v33  ;;  %v13292_v32 = vld [vmem:[#allocation137_spill] sm:$0xff] }
 0x5cb   : > { %8648 = vpow2.f32 %v3537_v38  ;;  %v13293_v38 = vld [vmem:[#allocation119_spill] sm:$0xff] }
 0x5d1   : > { %v8647_v42 = vpop.eup %8646 }
 0x5d2   : > { %3633 = vadd.xlane.f32.xlu1 %v8647_v42  ;;  %7846 = vmatprep.mubr.f32.mxu0 %v8647_v42  ;;  %v13294_v42 = vld [vmem:[#allocation138_spill] sm:$0xff] }
 0x5d3   : > { %7847 = vmatmul.mubr.f32.gmra.mrb[62].mxu0 %v8641_v21  ;;  %v13287_v21 = vld [vmem:[#allocation116_spill] sm:$0xff] }
 0x5d4   : > { %7905 = vmatprep.mubr.msk.f32.mxu0 %vm780_vm0, %v13277_v6  ;;  %v13295_v6 = vld [vmem:[#allocation120_spill] sm:$0xff] }
 0x5d5   : > { %v8649_v17 = vpop.eup %8648 }
 0x5d6   : > { %3665 = vadd.xlane.f32.xlu1 %v8649_v17  ;;  %7886 = vmatprep.mubr.f32.mxu1 %v8649_v17  ;;  %v13296_v17 = vld [vmem:[#allocation139_spill] sm:$0xff] }
 0x5d7   : > { %7887 = vmatmul.mubr.f32.gmra.mrb[62].mxu1 %v8645_v33  ;;  %7906 = vmatmul.mubr.msk.f32.vlgmr.msra.gmra.mrb[64].mxu0 %vm780_vm0, %v13278_v44  ;;  %v11606_v33 = vpop.permute.xlu0 %4112  ;;  %v11616_v44 = vpop.permute.xlu1 %4097 }
 0x5d8   : > { %7908 = vmatprep.mubr.msk.f32.mxu0 %vm780_vm0, %v13279_v43  ;;  %7945 = vmatprep.mubr.msk.f32.mxu1 %vm780_vm0, %v13280_v37  ;;  %v13298_v37 = vld [vmem:[#allocation121_spill] sm:$0xff] }
 0x5db   : > { %7909 = vmatmul.mubr.msk.f32.gmra.mrb[66].mxu0 %vm780_vm0, %v13281_v63  ;;  %7946 = vmatmul.mubr.msk.f32.vlgmr.msra.gmra.mrb[64].mxu1 %vm780_vm0, %v13282_v45  ;;  %v11618_v43 = vpop.permute.xlu0 %4192  ;;  %v13299_v63 = vld [vmem:[#allocation140_spill] sm:$0xff]  ;;  %v13300_v45 = vld [vmem:[#allocation122_spill] sm:$0xff] }
 0x5dc   : > { %7911 = vmatprep.mubr.msk.f32.mxu0 %vm780_vm0, %v13283_v15  ;;  %7948 = vmatprep.mubr.msk.f32.mxu1 %vm780_vm0, %v13284_v9  ;;  %13297 = vst [vmem:[#allocation56_spill] sm:$0xff] %v11618_v43  ;;  %v13301_v15 = vld [vmem:[#allocation141_spill] sm:$0xff]  ;;  %v13302_v9 = vld [vmem:[#allocation123_spill] sm:$0xff] }
 0x5df   : > { %7912 = vmatmul.mubr.msk.f32.gmra.mrb[68].mxu0 %vm780_vm0, %v13285_v19  ;;  %7949 = vmatmul.mubr.msk.f32.gmra.mrb[66].mxu1 %vm780_vm0, %v13286_v54  ;;  %v13303_v19 = vld [vmem:[#allocation143_spill] sm:$0xff]  ;;  %v11632_v54 = vpop.permute.xlu1 %4177 }
 0x5e0   : > { %7914 = vmatprep.mubr.msk.f32.mxu0 %vm780_vm0, %v13287_v21  ;;  %7951 = vmatprep.mubr.msk.f32.mxu1 %vm780_vm0, %v13288_v58  ;;  %v13304_v21 = vld [vmem:[#allocation124_spill] sm:$0xff] }
 0x5e1   : > { %v13305_v58 = vld [vmem:[#allocation144_spill] sm:$0xff] }
 0x5e3   : > { %7915 = vmatmul.mubr.msk.f32.gmra.mrb[70].mxu0 %vm780_vm0, %v13289_v11  ;;  %7952 = vmatmul.mubr.msk.f32.gmra.mrb[68].mxu1 %vm780_vm0, %v13290_v3  ;;  %v11638_v11 = vpop.permute.xlu0 %4122  ;;  %v13307_v3 = vld [vmem:[#allocation125_spill] sm:$0xff] }
 0x5e4   : > { %7917 = vmatprep.mubr.msk.f32.mxu0 %vm780_vm0, %v13291_v49  ;;  %7954 = vmatprep.mubr.msk.f32.mxu1 %vm780_vm0, %v13292_v32  ;;  %13306 = vst [vmem:[#allocation53_spill] sm:$0xff] %v11638_v11  ;;  %v13308_v49 = vld [vmem:[#allocation145_spill] sm:$0xff]  ;;  %v13309_v32 = vld [vmem:[#allocation146_spill] sm:$0xff] }
 0x5e7   : > { %7918 = vmatmul.mubr.msk.f32.gmra.mrb[72].mxu0 %vm780_vm0, %v13293_v38  ;;  %7955 = vmatmul.mubr.msk.f32.gmra.mrb[70].mxu1 %vm780_vm0, %v13294_v42  ;;  %v11646_v38 = vpop.permute.xlu1 %4107  ;;  %v11648_v42 = vpop.permute.xlu0 %4202 }
 0x5e8   : > { %7920 = vmatprep.mubr.msk.f32.mxu0 %vm780_vm0, %v13295_v6  ;;  %7957 = vmatprep.mubr.msk.f32.mxu1 %vm780_vm0, %v13296_v17  ;;  %13310 = vst [vmem:[#allocation58_spill] sm:$0xff] %v11646_v38  ;;  %13311 = vst [vmem:[#allocation55_spill] sm:$0xff] %v11648_v42  ;;  %v13312_v6 = vld [vmem:[#allocation148_spill] sm:$0xff]  ;;  %v3560_v38 = vld [vmem:[#allocation3 + $0x98] sm:$0xff] }
 0x5eb   : > { %7921 = vmatmul.mubr.msk.f32.gmra.mrb[74].mxu0 %vm780_vm0, %v13298_v37  ;;  %7958 = vmatmul.mubr.msk.f32.gmra.mrb[72].mxu1 %vm780_vm0, %v13299_v63  ;;  %v11652_v17 = vpop.permute.xlu1 %4187  ;;  %v11654_v37 = vpop.permute.xlu0 %4132 }
 0x5ec   : > { %7923 = vmatprep.mubr.msk.f32.mxu0 %vm780_vm0, %v13300_v45  ;;  %7960 = vmatprep.mubr.msk.f32.mxu1 %vm780_vm0, %v13301_v15  ;;  %13313 = vst [vmem:[#allocation60_spill] sm:$0xff] %v11652_v17  ;;  %13314 = vst [vmem:[#allocation57_spill] sm:$0xff] %v11654_v37  ;;  %v3542_v15 = vld [vmem:[#allocation3 + $0x8] sm:$0xff]  ;;  %v3544_v17 = vld [vmem:[#allocation3 + $0x18] sm:$0xff] }
 0x5ef   : > { %7924 = vmatmul.mubr.msk.f32.gmra.mrb[76].mxu0 %vm780_vm0, %v13302_v9  ;;  %7961 = vmatmul.mubr.msk.f32.gmra.mrb[74].mxu1 %vm780_vm0, %v13303_v19  ;;  %v11656_v63 = vpop.permute.xlu1 %4117  ;;  %v11658_v45 = vpop.permute.xlu0 %4212  ;;  %v13317_v9 = vld [vmem:[#allocation109_spill] sm:$0xff] }
 0x5f0   : > { %7926 = vmatprep.mubr.msk.f32.mxu0 %vm780_vm0, %v13304_v21  ;;  %7963 = vmatprep.mubr.msk.f32.mxu1 %vm780_vm0, %v13305_v58  ;;  %13315 = vst [vmem:[#allocation62_spill] sm:$0xff] %v11656_v63  ;;  %13316 = vst [vmem:[#allocation59_spill] sm:$0xff] %v11658_v45  ;;  %v3574_v19 = vmul.f32 %v13317_v9, %v3542_v15  ;;  %v13321_v45 = vld [vmem:[#allocation51_spill] sm:$0xff] }
 0x5f1   : > { %v3576_v63 = vmul.f32 %v13321_v45, %v3544_v17  ;;  %v3541_v17 = vld [vmem:[#allocation3] sm:$0xff] }
 0x5f3   : > { %7927 = vmatmul.mubr.msk.f32.gmra.mrb[78].mxu0 %vm780_vm0, %v13307_v3  ;;  %7964 = vmatmul.mubr.msk.f32.gmra.mrb[76].mxu1 %vm780_vm0, %v13308_v49  ;;  %v11661_v58 = vpop.permute.xlu1 %4197  ;;  %v3558_v49 = vld [vmem:[#allocation3 + $0x88] sm:$0xff] }
 0x5f4   : > { %7966 = vmatprep.mubr.msk.f32.mxu1 %vm780_vm0, %v13309_v32  ;;  %13318 = vst [vmem:[#allocation64_spill] sm:$0xff] %v11661_v58  ;;  %v13319_v32 = vld [vmem:[#allocation50_spill] sm:$0xff] }
 0x5f7   : > { %7967 = vmatmul.mubr.msk.f32.gmra.mrb[78].mxu1 %vm780_vm0, %v13312_v6  ;;  %v3590_v6 = vmul.f32 %v13319_v32, %v3558_v49  ;;  %v11665_v37 = vpop.permute.xlu1 %4127 }
 0x5f8   : > { %13320 = vst [vmem:[#allocation61_spill] sm:$0xff] %v11665_v37 }
 0x5fb   : > { %v11671_v49 = vpop.permute.xlu1 %4207 }
 0x5fc   : > { %13323 = vst [vmem:[#allocation66_spill] sm:$0xff] %v11671_v49 }
 0x606   : > { %v3608_v21 = vpop.xlane.xlu0 %3607 }
 0x607   : > { %v3670_v3 = vadd.f32 %v3608_v21, %v3574_v19  ;;  %v13322_v19 = vld [vmem:[#allocation54_spill] sm:$0xff] }
 0x608   : > { %v3592_v21 = vmul.f32 %v13322_v19, %v3560_v38  ;;  %v3546_v38 = vld [vmem:[#allocation3 + $0x28] sm:$0xff] }
 0x609   : > { %3702 = vst.msk [vmem:[#allocation3 + $0x8] sm:$0xff] %vm715_vm1, %v3670_v3  ;;  %v3578_v19 = vmul.f32 %v11343_v61, %v3546_v38 }
 0x60a   : > { %v3640_v42 = vpop.xlane.xlu0 %3639 }
 0x60b   : > { %v3686_v11 = vadd.f32 %v3640_v42, %v3590_v6  ;;  %v3543_v6 = vld [vmem:[#allocation3 + $0x10] sm:$0xff] }
 0x60d   : > { %3718 = vst.msk [vmem:[#allocation3 + $0x88] sm:$0xff] %vm715_vm1, %v3686_v11  ;;  %v3575_v11 = vmul.f32 %v11326_v22, %v3543_v6 }
 0x60e   : > { %v3612_v43 = vpop.xlane.xlu0 %3611 }
 0x60f   : > { %v3672_v15 = vadd.f32 %v3612_v43, %v3576_v63  ;;  %v13324_v63 = vld [vmem:[#allocation111_spill] sm:$0xff] }
 0x610   : > { %v6143_v9 = vld [vmem:[#allocation3 + $0x8] sm:$0xff]  ;;  %v3573_v45 = vmul.f32 %v13324_v63, %v3541_v17  ;;  %v3559_v63 = vld [vmem:[#allocation3 + $0x90] sm:$0xff] }
 0x611   : > { %8650 = vrcp.f32 %v6143_v9  ;;  %3704 = vst.msk [vmem:[#allocation3 + $0x18] sm:$0xff] %vm715_vm1, %v3672_v15 }
 0x612   : > { %v3644_v3 = vpop.xlane.xlu0 %3643 }
 0x613   : > { %v3688_v42 = vadd.f32 %v3644_v3, %v3592_v21  ;;  %v3557_v21 = vld [vmem:[#allocation3 + $0x80] sm:$0xff] }
 0x614   : > { %v6159_v32 = vld [vmem:[#allocation3 + $0x88] sm:$0xff] }
 0x615   : > { %8652 = vrcp.f32 %v6159_v32  ;;  %3720 = vst.msk [vmem:[#allocation3 + $0x98] sm:$0xff] %vm715_vm1, %v3688_v42  ;;  %v13325_v42 = vld [vmem:[#allocation52_spill] sm:$0xff] }
 0x616   : > { %v3610_v43 = vpop.xlane.xlu0 %3609  ;;  %v3589_v22 = vmul.f32 %v13325_v42, %v3557_v21 }
 0x617   : > { %v3671_v9 = vadd.f32 %v3610_v43, %v3575_v11  ;;  %v3606_v37 = vpop.xlane.xlu1 %3605  ;;  %v3562_v43 = vld [vmem:[#allocation3 + $0xa8] sm:$0xff] }
 0x618   : > { %v6145_v15 = vld [vmem:[#allocation3 + $0x18] sm:$0xff]  ;;  %v3669_v58 = vadd.f32 %v3606_v37, %v3573_v45  ;;  %v3594_v37 = vmul.f32 %v11351_v52, %v3562_v43 }
 0x619   : > { %8654 = vrcp.f32 %v6145_v15  ;;  %3703 = vst.msk [vmem:[#allocation3 + $0x10] sm:$0xff] %vm715_vm1, %v3671_v9 }
 0x61a   : > { %3701 = vst.msk [vmem:[#allocation3] sm:$0xff] %vm715_vm1, %v3669_v58  ;;  %v3616_v3 = vpop.xlane.xlu0 %3615  ;;  %v3591_v58 = vmul.f32 %v11338_v29, %v3559_v63 }
 0x61b   : > { %v8651_v32 = vpop.eup %8650  ;;  %v3674_v6 = vadd.f32 %v3616_v3, %v3578_v19  ;;  %v3638_v49 = vpop.xlane.xlu1 %3637  ;;  %v3548_v19 = vld [vmem:[#allocation3 + $0x38] sm:$0xff]  ;;  %v3545_v3 = vld [vmem:[#allocation3 + $0x20] sm:$0xff] }
 0x61c   : > { %v6161_v17 = vld [vmem:[#allocation3 + $0x98] sm:$0xff]  ;;  %v3685_v11 = vadd.f32 %v3638_v49, %v3589_v22  ;;  %6213 = vperm.xlu0 %8393, %v8651_v32   ;;  %v3580_v21 = vmul.f32 %v11369_v8, %v3548_v19  ;;  %v3577_v42 = vmul.f32 %v11359_v62, %v3545_v3  ;;  %v3550_v19 = vld [vmem:[#allocation3 + $0x48] sm:$0xff] }
 0x61d   : > { %8656 = vrcp.f32 %v6161_v17  ;;  %3706 = vst.msk [vmem:[#allocation3 + $0x28] sm:$0xff] %vm715_vm1, %v3674_v6 }
 0x61e   : > { %3717 = vst.msk [vmem:[#allocation3 + $0x80] sm:$0xff] %vm715_vm1, %v3685_v11  ;;  %v3648_v61 = vpop.xlane.xlu0 %3647  ;;  %v3564_v11 = vld [vmem:[#allocation3 + $0xb8] sm:$0xff] }
 0x61f   : > { %v8653_v45 = vpop.eup %8652  ;;  %v3690_v9 = vadd.f32 %v3648_v61, %v3594_v37  ;;  %v3642_v15 = vpop.xlane.xlu1 %3641  ;;  %v3596_v8 = vmul.f32 %v11375_v10, %v3564_v11  ;;  %v3561_v37 = vld [vmem:[#allocation3 + $0xa0] sm:$0xff]  ;;  %v3582_v10 = vmul.f32 %v11402_v30, %v3550_v19 }
 0x620   : > { %v3687_v38 = vadd.f32 %v3642_v15, %v3591_v58  ;;  %6293 = vperm.xlu0 %8393, %v8653_v45   ;;  %v3593_v62 = vmul.f32 %v11367_v0, %v3561_v37  ;;  %v6144_v58 = vld [vmem:[#allocation3 + $0x10] sm:$0xff] }
 0x621   : > { %v6142_v49 = vld [vmem:[#allocation3] sm:$0xff]  ;;  %3722 = vst.msk [vmem:[#allocation3 + $0xa8] sm:$0xff] %vm715_vm1, %v3690_v9 }
 0x622   : > { %8658 = vrcp.f32 %v6142_v49  ;;  %3719 = vst.msk [vmem:[#allocation3 + $0x90] sm:$0xff] %vm715_vm1, %v3687_v38  ;;  %v3620_v52 = vpop.xlane.xlu0 %3619  ;;  %v3547_v49 = vld [vmem:[#allocation3 + $0x30] sm:$0xff] }
 0x623   : > { %v8655_v22 = vpop.eup %8654  ;;  %v3676_v29 = vadd.f32 %v3620_v52, %v3580_v21  ;;  %v3614_v32 = vpop.xlane.xlu1 %3613  ;;  %v3579_v0 = vmul.f32 %v11385_v25, %v3547_v49 }
 0x624   : > { %v6147_v6 = vld [vmem:[#allocation3 + $0x28] sm:$0xff]  ;;  %v3673_v17 = vadd.f32 %v3614_v32, %v3577_v42  ;;  %6223 = vperm.xlu0 %8393, %v8655_v22  }
 0x625   : > { %8660 = vrcp.f32 %v6147_v6  ;;  %v6158_v43 = vld [vmem:[#allocation3 + $0x80] sm:$0xff]  ;;  %3708 = vst.msk [vmem:[#allocation3 + $0x38] sm:$0xff] %vm715_vm1, %v3676_v29  ;;  %v3566_v6 = vld [vmem:[#allocation3 + $0xc8] sm:$0xff] }
 0x626   : > { %8662 = vrcp.f32 %v6158_v43  ;;  %3705 = vst.msk [vmem:[#allocation3 + $0x20] sm:$0xff] %vm715_vm1, %v3673_v17  ;;  %v3652_v63 = vpop.xlane.xlu0 %3651  ;;  %v3598_v30 = vmul.f32 %v11415_v1, %v3566_v6  ;;  %v3563_v17 = vld [vmem:[#allocation3 + $0xb0] sm:$0xff] }
 0x627   : > { %v8657_v61 = vpop.eup %8656  ;;  %v3692_v45 = vadd.f32 %v3652_v63, %v3596_v8  ;;  %v3646_v9 = vpop.xlane.xlu1 %3645  ;;  %v3595_v25 = vmul.f32 %v11397_v41, %v3563_v17 }
 0x628   : > { %v6163_v15 = vld [vmem:[#allocation3 + $0xa8] sm:$0xff]  ;;  %v3689_v38 = vadd.f32 %v3646_v9, %v3593_v62  ;;  %6303 = vperm.xlu0 %8393, %v8657_v61   ;;  %v3549_v9 = vld [vmem:[#allocation3 + $0x40] sm:$0xff] }
 0x629   : > { %8664 = vrcp.f32 %v6163_v15  ;;  %3724 = vst.msk [vmem:[#allocation3 + $0xb8] sm:$0xff] %vm715_vm1, %v3692_v45  ;;  %v6160_v3 = vld [vmem:[#allocation3 + $0x90] sm:$0xff]  ;;  %v3552_v45 = vld [vmem:[#allocation3 + $0x58] sm:$0xff]  ;;  %v3581_v15 = vmul.f32 %v11433_v39, %v3549_v9  ;;  %v4024_v9 = vld [vmem:[#allocation4 + $0x8] sm:$0xff] }
 0x62a   : > { %8666 = vrcp.f32 %v6144_v58  ;;  %3721 = vst.msk [vmem:[#allocation3 + $0xa0] sm:$0xff] %vm715_vm1, %v3689_v38  ;;  %v3624_v21 = vpop.xlane.xlu0 %3623  ;;  %v3584_v1 = vmul.f32 %v11424_v24, %v3552_v45 }
 0x62b   : > { %v3678_v52 = vadd.f32 %v3624_v21, %v3582_v10  ;;  %v3618_v42 = vpop.xlane.xlu1 %3617 }
 0x62c   : > { %v8659_v22 = vpop.eup %8658  ;;  %v6149_v29 = vld [vmem:[#allocation3 + $0x38] sm:$0xff]  ;;  %v3675_v32 = vadd.f32 %v3618_v42, %v3579_v0  ;;  %v3565_v42 = vld [vmem:[#allocation3 + $0xc0] sm:$0xff] }
 0x62d   : > { %8668 = vrcp.f32 %v6149_v29  ;;  %3710 = vst.msk [vmem:[#allocation3 + $0x48] sm:$0xff] %vm715_vm1, %v3678_v52  ;;  %6208 = vperm.xlu1 %8392, %v8659_v22   ;;  %v6146_v8 = vld [vmem:[#allocation3 + $0x20] sm:$0xff]  ;;  %v3568_v52 = vld [vmem:[#allocation3 + $0xd8] sm:$0xff]  ;;  %v3597_v22 = vmul.f32 %v11442_v20, %v3565_v42  ;;  %v3551_v20 = vld [vmem:[#allocation3 + $0x50] sm:$0xff] }
 0x62e   : > { %8670 = vrcp.f32 %v6160_v3  ;;  %3707 = vst.msk [vmem:[#allocation3 + $0x30] sm:$0xff] %vm715_vm1, %v3675_v32  ;;  %v3656_v11 = vpop.xlane.xlu0 %3655  ;;  %v3600_v24 = vmul.f32 %v11435_v48, %v3568_v52 }
 0x62f   : > { %v8661_v43 = vpop.eup %8660  ;;  %v3694_v37 = vadd.f32 %v3656_v11, %v3598_v30  ;;  %v3650_v63 = vpop.xlane.xlu1 %3649 }
 0x630   : > { %v8663_v62 = vpop.eup %8662  ;;  %v6165_v61 = vld [vmem:[#allocation3 + $0xb8] sm:$0xff]  ;;  %v3691_v58 = vadd.f32 %v3650_v63, %v3595_v25  ;;  %6233 = vperm.xlu0 %8393, %v8661_v43   ;;  %v3583_v63 = vmul.f32 %v11451_v59, %v3551_v20  ;;  %v3567_v59 = vld [vmem:[#allocation3 + $0xd0] sm:$0xff] }
 0x631   : > { %8672 = vrcp.f32 %v6165_v61  ;;  %3726 = vst.msk [vmem:[#allocation3 + $0xc8] sm:$0xff] %vm715_vm1, %v3694_v37  ;;  %6288 = vperm.xlu1 %8392, %v8663_v62   ;;  %v6162_v19 = vld [vmem:[#allocation3 + $0xa0] sm:$0xff] }
 0x632   : > { %8674 = vrcp.f32 %v6146_v8  ;;  %3723 = vst.msk [vmem:[#allocation3 + $0xb0] sm:$0xff] %vm715_vm1, %v3691_v58  ;;  %v3628_v41 = vpop.xlane.xlu0 %3627 }
 0x633   : > { %v8665_v38 = vpop.eup %8664  ;;  %v3680_v10 = vadd.f32 %v3628_v41, %v3584_v1  ;;  %v3622_v49 = vpop.xlane.xlu1 %3621 }
 0x634   : > { %v8667_v21 = vpop.eup %8666  ;;  %v6151_v0 = vld [vmem:[#allocation3 + $0x48] sm:$0xff]  ;;  %v3677_v3 = vadd.f32 %v3622_v49, %v3581_v15  ;;  %6313 = vperm.xlu0 %8393, %v8665_v38   ;;  %v4216_v38 = vmul.f32 %v11519_v31, %v4024_v9 }
 0x635   : > { %8676 = vrcp.f32 %v6151_v0  ;;  %3712 = vst.msk [vmem:[#allocation3 + $0x58] sm:$0xff] %vm715_vm1, %v3680_v10  ;;  %6218 = vperm.xlu1 %8392, %v8667_v21   ;;  %v6148_v32 = vld [vmem:[#allocation3 + $0x30] sm:$0xff]  ;;  %v3554_v15 = vld [vmem:[#allocation3 + $0x68] sm:$0xff] }
 0x636   : > { %8678 = vrcp.f32 %v6162_v19  ;;  %3709 = vst.msk [vmem:[#allocation3 + $0x40] sm:$0xff] %vm715_vm1, %v3677_v3  ;;  %v3660_v39 = vpop.xlane.xlu0 %3659  ;;  %v4023_v19 = vld [vmem:[#allocation4] sm:$0xff]  ;;  %v3586_v10 = vmul.f32 %v11444_v12, %v3554_v15  ;;  %v3599_v3 = vmul.f32 %v11460_v46, %v3567_v59  ;;  %v3570_v12 = vld [vmem:[#allocation3 + $0xe8] sm:$0xff] }
 0x637   : > { %v8669_v29 = vpop.eup %8668  ;;  %v3696_v6 = vadd.f32 %v3660_v39, %v3600_v24  ;;  %v3654_v30 = vpop.xlane.xlu1 %3653  ;;  %v4215_v49 = vmul.f32 %v11524_v4, %v4023_v19  ;;  %v4039_v4 = vld [vmem:[#allocation4 + $0x80] sm:$0xff]  ;;  %v3602_v46 = vmul.f32 %v11453_v27, %v3570_v12  ;;  %v4041_v12 = vld [vmem:[#allocation4 + $0x90] sm:$0xff] }
 0x638   : > { %v8671_v17 = vpop.eup %8670  ;;  %v6167_v11 = vld [vmem:[#allocation3 + $0xc8] sm:$0xff]  ;;  %v3693_v25 = vadd.f32 %v3654_v30, %v3597_v22  ;;  %6243 = vperm.xlu0 %8393, %v8669_v29  }
 0x639   : > { %8680 = vrcp.f32 %v6167_v11  ;;  %3728 = vst.msk [vmem:[#allocation3 + $0xd8] sm:$0xff] %vm715_vm1, %v3696_v6  ;;  %6298 = vperm.xlu1 %8392, %v8671_v17   ;;  %v6164_v43 = vld [vmem:[#allocation3 + $0xb0] sm:$0xff]  ;;  %v4231_v11 = vmul.f32 %v11526_v60, %v4039_v4 }
 0x63a   : > { %8682 = vrcp.f32 %v6148_v32  ;;  %3725 = vst.msk [vmem:[#allocation3 + $0xc0] sm:$0xff] %vm715_vm1, %v3693_v25  ;;  %v4040_v32 = vld [vmem:[#allocation4 + $0x88] sm:$0xff] }
 0x63b   : > { %v8673_v48 = vpop.eup %8672  ;;  %v4232_v17 = vmul.f32 %v11522_v50, %v4040_v32  ;;  %v4042_v32 = vld [vmem:[#allocation4 + $0x98] sm:$0xff] }
 0x63c   : > { %v8675_v8 = vpop.eup %8674  ;;  %v6153_v37 = vld [vmem:[#allocation3 + $0x58] sm:$0xff]  ;;  %6323 = vperm.xlu0 %8393, %v8673_v48  }
 0x63d   : > { %8684 = vrcp.f32 %v6153_v37  ;;  %6228 = vperm.xlu1 %8392, %v8675_v8   ;;  %v6150_v58 = vld [vmem:[#allocation3 + $0x40] sm:$0xff] }
 0x63e   : > { %8686 = vrcp.f32 %v6164_v43 }
 0x63f   : > { %v3626_v62 = vpop.xlane.xlu1 %3625  ;;  %v8677_v61 = vpop.eup %8676 }
 0x640   : > { %v3679_v45 = vadd.f32 %v3626_v62, %v3583_v63  ;;  %v8679_v1 = vpop.eup %8678  ;;  %v6169_v41 = vld [vmem:[#allocation3 + $0xd8] sm:$0xff]  ;;  %6253 = vperm.xlu0 %8393, %v8677_v61  }
 0x641   : > { %8688 = vrcp.f32 %v6169_v41  ;;  %6308 = vperm.xlu1 %8392, %v8679_v1   ;;  %v6166_v24 = vld [vmem:[#allocation3 + $0xc0] sm:$0xff]  ;;  %v4026_v41 = vld [vmem:[#allocation4 + $0x18] sm:$0xff] }
 0x642   : > { %3711 = vst.msk [vmem:[#allocation3 + $0x50] sm:$0xff] %vm715_vm1, %v3679_v45  ;;  %8690 = vrcp.f32 %v6150_v58  ;;  %v7827_v21 = vpop.f32.mrb[48].mxu0  ;;  %v3632_v0 = vpop.xlane.xlu0 %3631  ;;  %v3553_v58 = vld [vmem:[#allocation3 + $0x60] sm:$0xff]  ;;  %v4218_v19 = vmul.f32 %v11536_v40, %v4026_v41 }
 0x643   : > { %v8681_v52 = vpop.eup %8680  ;;  %v4248_v42 = vadd.f32 %v7827_v21, %v4216_v38  ;;  %v3682_v39 = vadd.f32 %v3632_v0, %v3586_v10  ;;  %v3658_v31 = vpop.xlane.xlu1 %3657  ;;  %8692 = vrcp.f32 %v6166_v24  ;;  %v3585_v1 = vmul.f32 %v11469_v36, %v3553_v58  ;;  %v4025_v10 = vld [vmem:[#allocation4 + $0x10] sm:$0xff]  ;;  %v3569_v36 = vld [vmem:[#allocation3 + $0xe0] sm:$0xff] }
 0x644   : > { %v3799_v22 = vpop.f32.mrb[49].mxu0  ;;  %v8683_v29 = vpop.eup %8682  ;;  %v3695_v6 = vadd.f32 %v3658_v31, %v3599_v3  ;;  %6333 = vperm.xlu0 %8393, %v8681_v52   ;;  %v4217_v21 = vmul.f32 %v11539_v7, %v4025_v10 }
 0x645   : > { %v4247_v30 = vadd.f32 %v4215_v49, %v3799_v22  ;;  %4280 = vst.msk [vmem:[#allocation4 + $0x8] sm:$0xff] %vm780_vm0, %v4248_v42  ;;  %6238 = vperm.xlu1 %8392, %v8683_v29   ;;  %v3556_v49 = vld [vmem:[#allocation3 + $0x78] sm:$0xff] }
 0x646   : > { %3714 = vst.msk [vmem:[#allocation3 + $0x68] sm:$0xff] %vm715_vm1, %v3682_v39  ;;  %3727 = vst.msk [vmem:[#allocation3 + $0xd0] sm:$0xff] %vm715_vm1, %v3695_v6  ;;  %v7867_v25 = vpop.f32.mrb[48].mxu1  ;;  %v3664_v48 = vpop.xlane.xlu0 %3663  ;;  %v3588_v3 = vmul.f32 %v11462_v35, %v3556_v49  ;;  %v3601_v39 = vmul.f32 %v11475_v5, %v3569_v36  ;;  %v3572_v6 = vld [vmem:[#allocation3 + $0xf8] sm:$0xff]  ;;  %v4233_v5 = vmul.f32 %v11544_v57, %v4041_v12 }
 0x647   : > { %4279 = vst.msk [vmem:[#allocation4] sm:$0xff] %vm780_vm0, %v4247_v30  ;;  %v8685_v43 = vpop.eup %8684  ;;  %v4264_v8 = vadd.f32 %v7867_v25, %v4232_v17  ;;  %v3698_v50 = vadd.f32 %v3664_v48, %v3602_v46  ;;  %v3944_v37 = vpop.f32.mrb[49].mxu1  ;;  %v4234_v30 = vmul.f32 %v11533_v28, %v4042_v32  ;;  %v3604_v35 = vmul.f32 %v11471_v2, %v3572_v6  ;;  %v4028_v28 = vld [vmem:[#allocation4 + $0x28] sm:$0xff] }
 0x648   : > { %v8687_v20 = vpop.eup %8686  ;;  %v4263_v62 = vadd.f32 %v4231_v11, %v3944_v37  ;;  %6263 = vperm.xlu0 %8393, %v8685_v43   ;;  %v4220_v37 = vmul.f32 %v11542_v47, %v4028_v28  ;;  %v3555_v47 = vld [vmem:[#allocation3 + $0x70] sm:$0xff]  ;;  %v4047_v28 = vld [vmem:[#allocation4 + $0xc0] sm:$0xff] }
 0x649   : > { %v6152_v63 = vld [vmem:[#allocation3 + $0x50] sm:$0xff]  ;;  %4296 = vst.msk [vmem:[#allocation4 + $0x88] sm:$0xff] %vm780_vm0, %v4264_v8  ;;  %6318 = vperm.xlu1 %8392, %v8687_v20   ;;  %v4027_v20 = vld [vmem:[#allocation4 + $0x20] sm:$0xff] }
 0x64a   : > { %8694 = vrcp.f32 %v6152_v63  ;;  %3730 = vst.msk [vmem:[#allocation3 + $0xe8] sm:$0xff] %vm715_vm1, %v3698_v50  ;;  %v4219_v2 = vmul.f32 %v11551_v53, %v4027_v20 }
 0x64b   : > { %4295 = vst.msk [vmem:[#allocation4 + $0x80] sm:$0xff] %vm780_vm0, %v4263_v62  ;;  %v8689_v27 = vpop.eup %8688 }
 0x64c   : > { %v8691_v60 = vpop.eup %8690  ;;  %6343 = vperm.xlu0 %8393, %v8689_v27  }
 0x64d   : > { %v6155_v61 = vld [vmem:[#allocation3 + $0x68] sm:$0xff]  ;;  %v6168_v45 = vld [vmem:[#allocation3 + $0xd0] sm:$0xff]  ;;  %6248 = vperm.xlu1 %8392, %v8691_v60   ;;  %v8693_v38 = vpop.eup %8692 }
 0x64e   : > { %8696 = vrcp.f32 %v6155_v61  ;;  %v4044_v60 = vld [vmem:[#allocation4 + $0xa8] sm:$0xff] }
 0x64f   : > { %8698 = vrcp.f32 %v6168_v45  ;;  %v3630_v9 = vpop.xlane.xlu1 %3629  ;;  %v4236_v45 = vmul.f32 %v11546_v14, %v4044_v60 }
 0x650   : > { %v3681_v15 = vadd.f32 %v3630_v9, %v3585_v1  ;;  %v4043_v1 = vld [vmem:[#allocation4 + $0xa0] sm:$0xff]  ;;  %v3587_v9 = vmul.f32 %v11480_v18, %v3555_v47  ;;  %v13327_v47 = vld [vmem:[#allocation56_spill] sm:$0xff] }
 0x651   : > { %v6171_v59 = vld [vmem:[#allocation3 + $0xe8] sm:$0xff]  ;;  %v7830_v0 = vpop.f32.mrb[50].mxu0  ;;  %6328 = vperm.xlu1 %8392, %v8693_v38   ;;  %v4235_v53 = vmul.f32 %v11556_v51, %v4043_v1  ;;  %v4049_v1 = vld [vmem:[#allocation4 + $0xd0] sm:$0xff] }
 0x652   : > { %8700 = vrcp.f32 %v6171_v59  ;;  %3713 = vst.msk [vmem:[#allocation3 + $0x60] sm:$0xff] %vm715_vm1, %v3681_v15  ;;  %v4250_v52 = vadd.f32 %v7830_v0, %v4218_v19  ;;  %v3636_v24 = vpop.xlane.xlu0 %3635  ;;  %v3809_v42 = vpop.f32.mrb[51].mxu0  ;;  %v4030_v59 = vld [vmem:[#allocation4 + $0x38] sm:$0xff]  ;;  %v3571_v0 = vld [vmem:[#allocation3 + $0xf0] sm:$0xff] }
 0x653   : > { %v3684_v40 = vadd.f32 %v3636_v24, %v3588_v3  ;;  %v4249_v22 = vadd.f32 %v4217_v21, %v3809_v42  ;;  %v3662_v29 = vpop.xlane.xlu1 %3661  ;;  %v4222_v14 = vmul.f32 %v11554_v56, %v4030_v59  ;;  %v4029_v3 = vld [vmem:[#allocation4 + $0x30] sm:$0xff]  ;;  %v3603_v18 = vmul.f32 %v11485_v23, %v3571_v0  ;;  %v4046_v42 = vld [vmem:[#allocation4 + $0xb8] sm:$0xff] }
 0x654   : > { %v8695_v31 = vpop.eup %8694  ;;  %4282 = vst.msk [vmem:[#allocation4 + $0x18] sm:$0xff] %vm780_vm0, %v4250_v52  ;;  %v3697_v7 = vadd.f32 %v3662_v29, %v3601_v39  ;;  %v4221_v51 = vmul.f32 %v11563_v26, %v4029_v3  ;;  %v4238_v56 = vmul.f32 %v11558_v13, %v4046_v42  ;;  %v4051_v42 = vld [vmem:[#allocation4 + $0xe0] sm:$0xff] }
 0x655   : > { %3716 = vst.msk [vmem:[#allocation3 + $0x78] sm:$0xff] %vm715_vm1, %v3684_v40  ;;  %6258 = vperm.xlu1 %8392, %v8695_v31  }
 0x656   : > { %4281 = vst.msk [vmem:[#allocation4 + $0x10] sm:$0xff] %vm780_vm0, %v4249_v22  ;;  %v7870_v17 = vpop.f32.mrb[50].mxu1  ;;  %v3668_v4 = vpop.xlane.xlu0 %3667  ;;  %v4045_v22 = vld [vmem:[#allocation4 + $0xb0] sm:$0xff] }
 0x657   : > { %3729 = vst.msk [vmem:[#allocation3 + $0xe0] sm:$0xff] %vm715_vm1, %v3697_v7  ;;  %v4266_v11 = vadd.f32 %v7870_v17, %v4234_v30  ;;  %v3700_v25 = vadd.f32 %v3668_v4, %v3604_v35  ;;  %v3954_v48 = vpop.f32.mrb[51].mxu1  ;;  %v4237_v32 = vmul.f32 %v11566_v55, %v4045_v22  ;;  %v4032_v55 = vld [vmem:[#allocation4 + $0x48] sm:$0xff] }
 0x658   : > { %v8697_v46 = vpop.eup %8696  ;;  %v4265_v50 = vadd.f32 %v4233_v5, %v3954_v48  ;;  %v4224_v35 = vmul.f32 %v11578_v34, %v4032_v55  ;;  %v4031_v5 = vld [vmem:[#allocation4 + $0x40] sm:$0xff] }
 0x659   : > { %v8699_v43 = vpop.eup %8698  ;;  %v6154_v8 = vld [vmem:[#allocation3 + $0x60] sm:$0xff]  ;;  %6273 = vperm.xlu0 %8393, %v8697_v46   ;;  %4298 = vst.msk [vmem:[#allocation4 + $0x98] sm:$0xff] %vm780_vm0, %v4266_v11  ;;  %v4223_v17 = vmul.f32 %v11616_v44, %v4031_v5  ;;  %v4048_v11 = vld [vmem:[#allocation4 + $0xc8] sm:$0xff] }
 0x65a   : > { %8702 = vrcp.f32 %v6154_v8  ;;  %3732 = vst.msk [vmem:[#allocation3 + $0xf8] sm:$0xff] %vm715_vm1, %v3700_v25  ;;  %6338 = vperm.xlu1 %8392, %v8699_v43   ;;  %v7833_v57 = vpop.f32.mrb[52].mxu0  ;;  %v4240_v43 = vmul.f32 %v11588_v16, %v4048_v11  ;;  %v13336_v11 = vld [vmem:[#allocation66_spill] sm:$0xff] }
 0x65b   : > { %4297 = vst.msk [vmem:[#allocation4 + $0x90] sm:$0xff] %vm780_vm0, %v4265_v50  ;;  %v4252_v62 = vadd.f32 %v7833_v57, %v4220_v37  ;;  %v3819_v27 = vpop.f32.mrb[53].mxu0  ;;  %v4239_v50 = vmul.f32 %v11632_v54, %v4047_v28  ;;  %v4033_v57 = vld [vmem:[#allocation4 + $0x50] sm:$0xff] }
 0x65c   : > { %v8701_v63 = vpop.eup %8700  ;;  %v6157_v61 = vld [vmem:[#allocation3 + $0x78] sm:$0xff]  ;;  %v4251_v58 = vadd.f32 %v4219_v2, %v3819_v27 }
 0x65d   : > { %6353 = vperm.xlu0 %8393, %v8701_v63   ;;  %8704 = vrcp.f32 %v6157_v61  ;;  %4284 = vst.msk [vmem:[#allocation4 + $0x28] sm:$0xff] %vm780_vm0, %v4252_v62  ;;  %v4034_v2 = vld [vmem:[#allocation4 + $0x58] sm:$0xff]  ;;  %v13326_v63 = vld [vmem:[#allocation58_spill] sm:$0xff] }
 0x65e   : > { %4283 = vst.msk [vmem:[#allocation4 + $0x20] sm:$0xff] %vm780_vm0, %v4251_v58  ;;  %v7873_v41 = vpop.f32.mrb[52].mxu1  ;;  %v4226_v16 = vmul.f32 %v11606_v33, %v4034_v2  ;;  %v4225_v62 = vmul.f32 %v13326_v63, %v4033_v57  ;;  %v4050_v58 = vld [vmem:[#allocation4 + $0xd8] sm:$0xff] }
 0x65f   : > { %v3634_v15 = vpop.xlane.xlu1 %3633  ;;  %v4268_v38 = vadd.f32 %v7873_v41, %v4236_v45  ;;  %v3964_v19 = vpop.f32.mrb[53].mxu1  ;;  %v4242_v45 = vmul.f32 %v13327_v47, %v4050_v58 }
 0x660   : > { %v3683_v10 = vadd.f32 %v3634_v15, %v3587_v9  ;;  %v4267_v21 = vadd.f32 %v4235_v53, %v3964_v19  ;;  %v13328_v9 = vld [vmem:[#allocation60_spill] sm:$0xff]  ;;  %v4036_v19 = vld [vmem:[#allocation4 + $0x68] sm:$0xff] }
 0x661   : > { %v6173_v49 = vld [vmem:[#allocation3 + $0xf8] sm:$0xff]  ;;  %4300 = vst.msk [vmem:[#allocation4 + $0xa8] sm:$0xff] %vm780_vm0, %v4268_v38  ;;  %v4241_v53 = vmul.f32 %v13328_v9, %v4049_v1 }
 0x662   : > { %8706 = vrcp.f32 %v6173_v49  ;;  %3715 = vst.msk [vmem:[#allocation3 + $0x70] sm:$0xff] %vm715_vm1, %v3683_v10  ;;  %v7836_v36 = vpop.f32.mrb[54].mxu0  ;;  %v13329_v10 = vld [vmem:[#allocation53_spill] sm:$0xff]  ;;  %v4035_v49 = vld [vmem:[#allocation4 + $0x60] sm:$0xff] }
 0x663   : > { %4299 = vst.msk [vmem:[#allocation4 + $0xa0] sm:$0xff] %vm780_vm0, %v4267_v21  ;;  %v3666_v52 = vpop.xlane.xlu1 %3665  ;;  %v4254_v39 = vadd.f32 %v7836_v36, %v4222_v14  ;;  %v3829_v31 = vpop.f32.mrb[55].mxu0  ;;  %v4228_v59 = vmul.f32 %v13329_v10, %v4036_v19  ;;  %v13330_v21 = vld [vmem:[#allocation62_spill] sm:$0xff]  ;;  %v4052_v36 = vld [vmem:[#allocation4 + $0xe8] sm:$0xff] }
 0x664   : > { %v8703_v24 = vpop.eup %8702  ;;  %v3699_v40 = vadd.f32 %v3666_v52, %v3603_v18  ;;  %v4253_v29 = vadd.f32 %v4221_v51, %v3829_v31  ;;  %v4227_v0 = vmul.f32 %v13330_v21, %v4035_v49  ;;  %v13331_v52 = vld [vmem:[#allocation55_spill] sm:$0xff] }
 0x665   : > { %6268 = vperm.xlu1 %8392, %v8703_v24   ;;  %4286 = vst.msk [vmem:[#allocation4 + $0x38] sm:$0xff] %vm780_vm0, %v4254_v39  ;;  %v4244_v24 = vmul.f32 %v13331_v52, %v4052_v36  ;;  %v13332_v39 = vld [vmem:[#allocation64_spill] sm:$0xff] }
 0x666   : > { %3731 = vst.msk [vmem:[#allocation3 + $0xf0] sm:$0xff] %vm715_vm1, %v3699_v40  ;;  %v7876_v23 = vpop.f32.mrb[54].mxu1  ;;  %v4243_v31 = vmul.f32 %v13332_v39, %v4051_v42 }
 0x667   : > { %4285 = vst.msk [vmem:[#allocation4 + $0x30] sm:$0xff] %vm780_vm0, %v4253_v29  ;;  %v4270_v26 = vadd.f32 %v7876_v23, %v4238_v56  ;;  %v3974_v7 = vpop.f32.mrb[55].mxu1  ;;  %v8705_v6 = vpop.eup %8704  ;;  %v13333_v23 = vld [vmem:[#allocation57_spill] sm:$0xff] }
 0x668   : > { %v4269_v30 = vadd.f32 %v4237_v32, %v3974_v7  ;;  %6283 = vperm.xlu0 %8393, %v8705_v6   ;;  %v4038_v32 = vld [vmem:[#allocation4 + $0x78] sm:$0xff]  ;;  %v4037_v7 = vld [vmem:[#allocation4 + $0x70] sm:$0xff] }
 0x669   : > { %v6156_v12 = vld [vmem:[#allocation3 + $0x70] sm:$0xff]  ;;  %4302 = vst.msk [vmem:[#allocation4 + $0xb8] sm:$0xff] %vm780_vm0, %v4270_v26  ;;  %v4230_v26 = vmul.f32 %v13333_v23, %v4038_v32  ;;  %v13334_v6 = vld [vmem:[#allocation61_spill] sm:$0xff] }
 0x66a   : > { %8708 = vrcp.f32 %v6156_v12  ;;  %4301 = vst.msk [vmem:[#allocation4 + $0xb0] sm:$0xff] %vm780_vm0, %v4269_v30  ;;  %v4229_v30 = vmul.f32 %v13334_v6, %v4037_v7  ;;  %v6110_v6 = vld [vmem:[#allocation4] sm:$0xff] }
 0x66c   : > { %v8707_v13 = vpop.eup %8706 }
 0x66d   : > { %6363 = vperm.xlu0 %8393, %v8707_v13  }
 0x672   : > { %v7839_v4 = vpop.f32.mrb[56].mxu0 }
 0x673   : > { %v4256_v25 = vadd.f32 %v7839_v4, %v4224_v35  ;;  %v3839_v48 = vpop.f32.mrb[57].mxu0  ;;  %v4054_v35 = vld [vmem:[#allocation4 + $0xf8] sm:$0xff] }
 0x674   : > { %v8709_v46 = vpop.eup %8708  ;;  %v4255_v8 = vadd.f32 %v4223_v17, %v3839_v48  ;;  %v13335_v17 = vld [vmem:[#allocation59_spill] sm:$0xff] }
 0x675   : > { %6278 = vperm.xlu1 %8392, %v8709_v46   ;;  %4288 = vst.msk [vmem:[#allocation4 + $0x48] sm:$0xff] %vm780_vm0, %v4256_v25  ;;  %v4246_v4 = vmul.f32 %v13335_v17, %v4054_v35  ;;  %v4053_v46 = vld [vmem:[#allocation4 + $0xf0] sm:$0xff] }
 0x676   : > { %v7879_v37 = vpop.f32.mrb[56].mxu1  ;;  %4287 = vst.msk [vmem:[#allocation4 + $0x40] sm:$0xff] %vm780_vm0, %v4255_v8  ;;  %v4245_v25 = vmul.f32 %v13336_v11, %v4053_v46  ;;  %v6112_v17 = vld [vmem:[#allocation4 + $0x10] sm:$0xff]  ;;  %v6113_v11 = vld [vmem:[#allocation4 + $0x18] sm:$0xff] }
 0x677   : > { %v4272_v34 = vadd.f32 %v7879_v37, %v4240_v43  ;;  %v3984_v20 = vpop.f32.mrb[57].mxu1 }
 0x678   : > { %v4271_v44 = vadd.f32 %v4239_v50, %v3984_v20 }
 0x679   : > { %4304 = vst.msk [vmem:[#allocation4 + $0xc8] sm:$0xff] %vm780_vm0, %v4272_v34 }
 0x67a   : > { %4303 = vst.msk [vmem:[#allocation4 + $0xc0] sm:$0xff] %vm780_vm0, %v4271_v44 }
 0x686   : > { %v7842_v27 = vpop.f32.mrb[58].mxu0 }
 0x687   : > { %v4258_v54 = vadd.f32 %v7842_v27, %v4226_v16  ;;  %v3849_v60 = vpop.f32.mrb[59].mxu0 }
 0x688   : > { %v4257_v61 = vadd.f32 %v4225_v62, %v3849_v60 }
 0x689   : > { %4290 = vst.msk [vmem:[#allocation4 + $0x58] sm:$0xff] %vm780_vm0, %v4258_v54 }
 0x68a   : > { %4289 = vst.msk [vmem:[#allocation4 + $0x50] sm:$0xff] %vm780_vm0, %v4257_v61  ;;  %v7882_v41 = vpop.f32.mrb[58].mxu1 }
 0x68b   : > { %v4274_v15 = vadd.f32 %v7882_v41, %v4242_v45  ;;  %v3994_v33 = vpop.f32.mrb[59].mxu1 }
 0x68c   : > { %v4273_v38 = vadd.f32 %v4241_v53, %v3994_v33 }
 0x68d   : > { %4306 = vst.msk [vmem:[#allocation4 + $0xd8] sm:$0xff] %vm780_vm0, %v4274_v15 }
 0x68e   : > { %4305 = vst.msk [vmem:[#allocation4 + $0xd0] sm:$0xff] %vm780_vm0, %v4273_v38 }
 0x696   : > { %v7845_v14 = vpop.f32.mrb[60].mxu0 }
 0x697   : > { %v4260_v3 = vadd.f32 %v7845_v14, %v4228_v59  ;;  %v3859_v18 = vpop.f32.mrb[61].mxu0 }
 0x698   : > { %v4259_v51 = vadd.f32 %v4227_v0, %v3859_v18 }
 0x699   : > { %4292 = vst.msk [vmem:[#allocation4 + $0x68] sm:$0xff] %vm780_vm0, %v4260_v3 }
 0x69a   : > { %4291 = vst.msk [vmem:[#allocation4 + $0x60] sm:$0xff] %vm780_vm0, %v4259_v51  ;;  %v7885_v40 = vpop.f32.mrb[60].mxu1 }
 0x69b   : > { %v4276_v56 = vadd.f32 %v7885_v40, %v4244_v24  ;;  %v4004_v22 = vpop.f32.mrb[61].mxu1  ;;  %v6214_v18 = vpop.permute.xlu0 %6213 }
 0x69c   : > { %v4275_v29 = vadd.f32 %v4243_v31, %v4004_v22 }
 0x69d   : > { %4308 = vst.msk [vmem:[#allocation4 + $0xe8] sm:$0xff] %vm780_vm0, %v4276_v56 }
 0x69e   : > { %4307 = vst.msk [vmem:[#allocation4 + $0xe0] sm:$0xff] %vm780_vm0, %v4275_v29 }
 0x69f   : > { %v11888_v51 = vpop.permute.xlu0 %6293 }
 0x6a3   : > { %v6224_v52 = vpop.permute.xlu0 %6223 }
 0x6a6   : > { %v7848_v12 = vpop.f32.mrb[62].mxu0 }
 0x6a7   : > { %v4262_v13 = vadd.f32 %v7848_v12, %v4230_v26  ;;  %v3869_v55 = vpop.f32.mrb[63].mxu0  ;;  %v11894_v42 = vpop.permute.xlu0 %6303 }
 0x6a8   : > { %v4261_v5 = vadd.f32 %v4229_v30, %v3869_v55 }
 0x6a9   : > { %4294 = vst.msk [vmem:[#allocation4 + $0x78] sm:$0xff] %vm780_vm0, %v4262_v13  ;;  %v6111_v13 = vld [vmem:[#allocation4 + $0x8] sm:$0xff] }
 0x6aa   : > { %4293 = vst.msk [vmem:[#allocation4 + $0x70] sm:$0xff] %vm780_vm0, %v4261_v5  ;;  %v7888_v48 = vpop.f32.mrb[62].mxu1  ;;  %v11792_v43 = vpop.f32.mrb[64].mxu0  ;;  %v6367_v35 = vmul.f32 %v6214_v18, %v6111_v13  ;;  %v6116_v13 = vld [vmem:[#allocation4 + $0x30] sm:$0xff] }
 0x6ab   : > { %13337 = vst [vmem:[#allocation63_spill] sm:$0xff] %v11792_v43  ;;  %v4278_v28 = vadd.f32 %v7888_v48, %v4246_v4  ;;  %v4014_v8 = vpop.f32.mrb[63].mxu1  ;;  %v11794_v50 = vpop.f32.mrb[65].mxu0  ;;  %4859 = vmax.xlane.f32.xlu1 %v11792_v43  ;;  %v6369_v48 = vmul.f32 %v6224_v52, %v6113_v11  ;;  %v6117_v52 = vld [vmem:[#allocation4 + $0x38] sm:$0xff] }
 0x6ac   : > { %13338 = vst [vmem:[#allocation68_spill] sm:$0xff] %v11794_v50  ;;  %v4277_v37 = vadd.f32 %v4245_v25, %v4014_v8  ;;  %v6209_v36 = vpop.permute.xlu1 %6208 }
 0x6ad   : > { %4310 = vst.msk [vmem:[#allocation4 + $0xf8] sm:$0xff] %vm780_vm0, %v4278_v28  ;;  %v6366_v12 = vmul.f32 %v6209_v36, %v6110_v6  ;;  %v6114_v28 = vld [vmem:[#allocation4 + $0x20] sm:$0xff]  ;;  %v6115_v6 = vld [vmem:[#allocation4 + $0x28] sm:$0xff] }
 0x6ae   : > { %4309 = vst.msk [vmem:[#allocation4 + $0xf0] sm:$0xff] %vm780_vm0, %v4277_v37  ;;  %v11799_v34 = vpop.f32.mrb[66].mxu0  ;;  %v11801_v20 = vpop.f32.mrb[64].mxu1 }
 0x6af   : > { %13339 = vst [vmem:[#allocation65_spill] sm:$0xff] %v11799_v34  ;;  %13340 = vst [vmem:[#allocation70_spill] sm:$0xff] %v11801_v20  ;;  %v11803_v44 = vpop.f32.mrb[67].mxu0  ;;  %4891 = vmax.xlane.f32.xlu0 %v11801_v20  ;;  %v11806_v2 = vpop.f32.mrb[65].mxu1 }
 0x6b0   : > { %13341 = vst [vmem:[#allocation67_spill] sm:$0xff] %v11803_v44  ;;  %13342 = vst [vmem:[#allocation72_spill] sm:$0xff] %v11806_v2  ;;  %4889 = vmax.xlane.f32.xlu1 %v11806_v2  ;;  %v11892_v24 = vpop.permute.xlu1 %6288  ;;  %v6234_v31 = vpop.permute.xlu0 %6233 }
 0x6b1   : > { %v6371_v18 = vmul.f32 %v6234_v31, %v6115_v6  ;;  %v6119_v31 = vld [vmem:[#allocation4 + $0x48] sm:$0xff] }
 0x6b2   : > { %v11809_v16 = vpop.f32.mrb[68].mxu0  ;;  %v11811_v57 = vpop.f32.mrb[66].mxu1 }
 0x6b3   : > { %13343 = vst [vmem:[#allocation69_spill] sm:$0xff] %v11809_v16  ;;  %13344 = vst [vmem:[#allocation74_spill] sm:$0xff] %v11811_v57  ;;  %v11813_v63 = vpop.f32.mrb[69].mxu0  ;;  %4857 = vmax.xlane.f32.xlu0 %v11794_v50  ;;  %v11816_v62 = vpop.f32.mrb[67].mxu1 }
 0x6b4   : > { %13345 = vst [vmem:[#allocation71_spill] sm:$0xff] %v11813_v63  ;;  %13346 = vst [vmem:[#allocation76_spill] sm:$0xff] %v11816_v62  ;;  %4893 = vmax.xlane.f32.xlu1 %v11816_v62  ;;  %v6219_v39 = vpop.permute.xlu1 %6218  ;;  %v11898_v56 = vpop.permute.xlu0 %6313 }
 0x6b5   : > { %v6368_v4 = vmul.f32 %v6219_v39, %v6112_v17 }
 0x6b6   : > { %v11819_v27 = vpop.f32.mrb[70].mxu0  ;;  %v11821_v54 = vpop.f32.mrb[68].mxu1 }
 0x6b7   : > { %13347 = vst [vmem:[#allocation73_spill] sm:$0xff] %v11819_v27  ;;  %13348 = vst [vmem:[#allocation78_spill] sm:$0xff] %v11821_v54  ;;  %v11823_v60 = vpop.f32.mrb[71].mxu0  ;;  %4863 = vmax.xlane.f32.xlu0 %v11799_v34  ;;  %v11826_v61 = vpop.f32.mrb[69].mxu1 }
 0x6b8   : > { %13349 = vst [vmem:[#allocation75_spill] sm:$0xff] %v11823_v60  ;;  %13350 = vst [vmem:[#allocation80_spill] sm:$0xff] %v11826_v61  ;;  %4865 = vmax.xlane.f32.xlu1 %v11813_v63  ;;  %v11896_v40 = vpop.permute.xlu1 %6298  ;;  %v6244_v29 = vpop.permute.xlu0 %6243 }
 0x6b9   : > { %v6373_v11 = vmul.f32 %v6244_v29, %v6117_v52  ;;  %v11934_v29 = vld [vmem:[#allocation5 + $0x80] sm:$0xff] }
 0x6ba   : > { %v11829_v58 = vpop.f32.mrb[72].mxu0  ;;  %v11831_v47 = vpop.f32.mrb[70].mxu1 }
 0x6bb   : > { %13351 = vst [vmem:[#allocation77_spill] sm:$0xff] %v11829_v58  ;;  %13352 = vst [vmem:[#allocation79_spill] sm:$0xff] %v11831_v47  ;;  %v11833_v45 = vpop.f32.mrb[73].mxu0  ;;  %4895 = vmax.xlane.f32.xlu0 %v11811_v57  ;;  %v11836_v1 = vpop.f32.mrb[71].mxu1  ;;  %v12105_v57 = vld [vmem:[#allocation5 + $0xc8] sm:$0xff] }
 0x6bc   : > { %13353 = vst [vmem:[#allocation81_spill] sm:$0xff] %v11833_v45  ;;  %13354 = vst [vmem:[#allocation126_spill] sm:$0xff] %v11836_v1  ;;  %4897 = vmax.xlane.f32.xlu1 %v11826_v61  ;;  %v6229_v22 = vpop.permute.xlu1 %6228  ;;  %v11902_v23 = vpop.permute.xlu0 %6323 }
 0x6bd   : > { %v6370_v37 = vmul.f32 %v6229_v22, %v6114_v28  ;;  %v6118_v22 = vld [vmem:[#allocation4 + $0x40] sm:$0xff]  ;;  %13374 = vst [vmem:[#allocation100_spill] sm:$0xff] %v12105_v57 }
 0x6be   : > { %v11839_v9 = vpop.f32.mrb[74].mxu0  ;;  %v11841_v53 = vpop.f32.mrb[72].mxu1 }
 0x6bf   : > { %13355 = vst [vmem:[#allocation127_spill] sm:$0xff] %v11839_v9  ;;  %13356 = vst [vmem:[#allocation130_spill] sm:$0xff] %v11841_v53  ;;  %v11843_v41 = vpop.f32.mrb[75].mxu0  ;;  %4861 = vmax.xlane.f32.xlu0 %v11803_v44  ;;  %v11846_v15 = vpop.f32.mrb[73].mxu1 }
 0x6c0   : > { %13357 = vst [vmem:[#allocation128_spill] sm:$0xff] %v11843_v41  ;;  %13358 = vst [vmem:[#allocation129_spill] sm:$0xff] %v11846_v15  ;;  %4869 = vmax.xlane.f32.xlu1 %v11823_v60  ;;  %v11900_v32 = vpop.permute.xlu1 %6308  ;;  %v6254_v7 = vpop.permute.xlu0 %6253  ;;  %v12089_v60 = vld [vmem:[#allocation5 + $0xd0] sm:$0xff] }
 0x6c2   : > { %v11849_v33 = vpop.f32.mrb[76].mxu0  ;;  %v11851_v38 = vpop.f32.mrb[74].mxu1 }
 0x6c3   : > { %13359 = vst [vmem:[#allocation142_spill] sm:$0xff] %v11849_v33  ;;  %13360 = vst [vmem:[#allocation147_spill] sm:$0xff] %v11851_v38  ;;  %v11853_v19 = vpop.f32.mrb[77].mxu0  ;;  %4867 = vmax.xlane.f32.xlu0 %v11809_v16  ;;  %v11856_v10 = vpop.f32.mrb[75].mxu1 }
 0x6c4   : > { %13361 = vst [vmem:[#allocation83_spill] sm:$0xff] %v11853_v19  ;;  %13362 = vst [vmem:[#allocation88_spill] sm:$0xff] %v11856_v10  ;;  %4901 = vmax.xlane.f32.xlu1 %v11836_v1  ;;  %v6239_v26 = vpop.permute.xlu1 %6238  ;;  %v11906_v55 = vpop.permute.xlu0 %6333 }
 0x6c6   : > { %v11859_v59 = vpop.f32.mrb[78].mxu0  ;;  %v11861_v49 = vpop.f32.mrb[76].mxu1 }
 0x6c7   : > { %13363 = vst [vmem:[#allocation85_spill] sm:$0xff] %v11859_v59  ;;  %13364 = vst [vmem:[#allocation86_spill] sm:$0xff] %v11861_v49  ;;  %v11863_v21 = vpop.f32.mrb[79].mxu0  ;;  %4899 = vmax.xlane.f32.xlu0 %v11821_v54  ;;  %v11866_v0 = vpop.f32.mrb[77].mxu1 }
 0x6c8   : > { %13365 = vst [vmem:[#allocation92_spill] sm:$0xff] %v11863_v21  ;;  %13366 = vst [vmem:[#allocation90_spill] sm:$0xff] %v11866_v0  ;;  %4873 = vmax.xlane.f32.xlu1 %v11833_v45  ;;  %v11904_v30 = vpop.permute.xlu1 %6318  ;;  %v6264_v46 = vpop.permute.xlu0 %6263  ;;  %v12054_v45 = vld [vmem:[#allocation5 + $0x38] sm:$0xff] }
 0x6ca   : > { %v11869_v14 = vpop.f32.mrb[78].mxu1 }
 0x6cb   : > { %13367 = vst [vmem:[#allocation89_spill] sm:$0xff] %v11869_v14  ;;  %4871 = vmax.xlane.f32.xlu0 %v11819_v27  ;;  %v11872_v3 = vpop.f32.mrb[79].mxu1  ;;  %v4360_v27 = vld [vmem:[%s9361_s10 + $0x8] sm:$0xff] }
 0x6cc   : > { %13368 = vst [vmem:[#allocation94_spill] sm:$0xff] %v11872_v3  ;;  %4905 = vmax.xlane.f32.xlu1 %v11846_v15  ;;  %v6249_v5 = vpop.permute.xlu1 %6248  ;;  %v11910_v8 = vpop.permute.xlu0 %6343 }
 0x6cf   : > { %4903 = vmax.xlane.f32.xlu0 %v11831_v47  ;;  %v12084_v47 = vld [vmem:[#allocation5 + $0x48] sm:$0xff] }
 0x6d0   : > { %4877 = vmax.xlane.f32.xlu1 %v11843_v41  ;;  %v11908_v25 = vpop.permute.xlu1 %6328  ;;  %13371 = vst [vmem:[#allocation82_spill] sm:$0xff] %v12084_v47 }
 0x6d3   : > { %4875 = vmax.xlane.f32.xlu0 %v11829_v58  ;;  %v12069_v58 = vld [vmem:[#allocation5 + $0xb8] sm:$0xff] }
 0x6d4   : > { %4909 = vmax.xlane.f32.xlu1 %v11856_v10  ;;  %v6259_v36 = vpop.permute.xlu1 %6258 }
 0x6d7   : > { %4907 = vmax.xlane.f32.xlu0 %v11841_v53  ;;  %v12035_v53 = vld [vmem:[#allocation5 + $0xa8] sm:$0xff] }
 0x6d8   : > { %4881 = vmax.xlane.f32.xlu1 %v11853_v19 }
 0x6d9   : > { %v11914_v39 = vpop.permute.xlu1 %6338 }
 0x6db   : > { %4879 = vmax.xlane.f32.xlu0 %v11839_v9  ;;  %v6125_v9 = vld [vmem:[#allocation4 + $0x78] sm:$0xff] }
 0x6dc   : > { %4913 = vmax.xlane.f32.xlu1 %v11866_v0  ;;  %v11977_v0 = vld [vmem:[#allocation5 + $0x98] sm:$0xff] }
 0x6df   : > { %4911 = vmax.xlane.f32.xlu0 %v11851_v38  ;;  %v12014_v38 = vld [vmem:[#allocation5 + $0x28] sm:$0xff] }
 0x6e0   : > { %4885 = vmax.xlane.f32.xlu1 %v11863_v21  ;;  %v6122_v21 = vld [vmem:[#allocation4 + $0x60] sm:$0xff] }
 0x6e3   : > { %4883 = vmax.xlane.f32.xlu0 %v11849_v33  ;;  %v6124_v33 = vld [vmem:[#allocation4 + $0x70] sm:$0xff] }
 0x6e4   : > { %4917 = vmax.xlane.f32.xlu1 %v11872_v3  ;;  %v11922_v3 = vld [vmem:[#allocation5 + $0x8] sm:$0xff] }
 0x6e7   : > { %4915 = vmax.xlane.f32.xlu0 %v11861_v49  ;;  %v6123_v49 = vld [vmem:[#allocation4 + $0x68] sm:$0xff] }
 0x6eb   : > { %4887 = vmax.xlane.f32.xlu0 %v11859_v59 }
 0x6ef   : > { %4919 = vmax.xlane.f32.xlu0 %v11869_v14 }
 0x717   : > { %6686 = vxpose.xlu1.b32.start [1/16] (narrow) %v6366_v12, 64  ;;  %v11912_v12 = vpop.permute.xlu0 %6273 }
 0x71b   : > { %6687 = vxpose.xlu1.b32.cont [2/16] (narrow) %v6367_v35, 64  ;;  %v6372_v35 = vmul.f32 %v6239_v26, %v6116_v13  ;;  %v11916_v17 = vpop.permute.xlu0 %6353 }
 0x71c   : > { %13369 = vst [vmem:[#allocation96_spill] sm:$0xff] %v11916_v17 }
 0x71f   : > { %6688 = vxpose.xlu1.b32.cont [3/16] (narrow) %v6368_v4, 64  ;;  %v6269_v4 = vpop.permute.xlu1 %6268 }
 0x723   : > { %6689 = vxpose.xlu1.b32.cont [4/16] (narrow) %v6369_v48, 64  ;;  %v11918_v48 = vpop.permute.xlu0 %6283  ;;  %v11920_v28 = vpop.permute.xlu1 %6278 }
 0x727   : > { %6690 = vxpose.xlu1.b32.cont [5/16] (narrow) %v6370_v37, 64  ;;  %v6374_v37 = vmul.f32 %v6249_v5, %v6118_v22  ;;  %v11924_v6 = vpop.permute.xlu0 %6363  ;;  %v6120_v5 = vld [vmem:[#allocation4 + $0x50] sm:$0xff] }
 0x728   : > { %13370 = vst [vmem:[#allocation84_spill] sm:$0xff] %v11924_v6 }
 0x72b   : > { %6691 = vxpose.xlu1.b32.cont [6/16] (narrow) %v6371_v18, 64  ;;  %v6375_v18 = vmul.f32 %v6254_v7, %v6119_v31  ;;  %v11942_v31 = vld [vmem:[#allocation5] sm:$0xff] }
 0x72f   : > { %6692 = vxpose.xlu1.b32.cont [7/16] (narrow) %v6372_v35, 64  ;;  %v11929_v35 = vld [vmem:[#allocation5 + $0x88] sm:$0xff] }
 0x733   : > { %6693 = vxpose.xlu1.b32.cont [8/16] (narrow) %v6373_v11, 64  ;;  %v6376_v11 = vmul.f32 %v6259_v36, %v6120_v5  ;;  %v11965_v36 = vld [vmem:[#allocation5 + $0x20] sm:$0xff] }
 0x737   : > { %6694 = vxpose.xlu1.b32.cont [9/16] (narrow) %v6374_v37, 64 }
 0x738   : > { %v4860_v26 = vpop.xlane.xlu1 %4859 }
 0x739   : > { %v11927_v13 = vmax.f32 %v11922_v3, %v4860_v26  ;;  %v11947_v26 = vld [vmem:[#allocation5 + $0x90] sm:$0xff] }
 0x73b   : > { %6076 = vst.msk [vmem:[#allocation5 + $0x8] sm:$0xff] %vm715_vm1, %v11927_v13  ;;  %6695 = vxpose.xlu1.b32.cont [10/16] (narrow) %v6375_v18, 64  ;;  %5056 = vperm.xlu0 %8393, %v11927_v13   ;;  %v6121_v18 = vld [vmem:[#allocation4 + $0x58] sm:$0xff] }
 0x73c   : > { %v4892_v52 = vpop.xlane.xlu0 %4891 }
 0x73d   : > { %v11937_v22 = vmax.f32 %v11929_v35, %v4892_v52  ;;  %v4890_v7 = vpop.xlane.xlu1 %4889  ;;  %v6377_v52 = vmul.f32 %v6264_v46, %v6121_v18  ;;  %v6378_v18 = vmul.f32 %v6269_v4, %v6122_v21  ;;  %v11983_v46 = vld [vmem:[#allocation5 + $0xa0] sm:$0xff]  ;;  %v6379_v4 = vmul.f32 %v11912_v12, %v6123_v49  ;;  %v12001_v21 = vld [vmem:[#allocation5 + $0x30] sm:$0xff] }
 0x73e   : > { %v11940_v37 = vmax.f32 %v11934_v29, %v4890_v7  ;;  %v12020_v49 = vld [vmem:[#allocation5 + $0xb0] sm:$0xff] }
 0x73f   : > { %6092 = vst.msk [vmem:[#allocation5 + $0x88] sm:$0xff] %vm715_vm1, %v11937_v22  ;;  %6696 = vxpose.xlu1.b32.cont [11/16] (narrow) %v6376_v11, 64  ;;  %5136 = vperm.xlu0 %8393, %v11937_v22   ;;  %v11959_v11 = vld [vmem:[#allocation5 + $0x18] sm:$0xff] }
 0x740   : > { %6091 = vst.msk [vmem:[#allocation5 + $0x80] sm:$0xff] %vm715_vm1, %v11940_v37  ;;  %v4858_v5 = vpop.xlane.xlu0 %4857 }
 0x741   : > { %v11954_v7 = vmax.f32 %v11942_v31, %v4858_v5  ;;  %v4894_v6 = vpop.xlane.xlu1 %4893 }
 0x742   : > { %v11957_v17 = vmax.f32 %v11947_v26, %v4894_v6 }
 0x743   : > { %6075 = vst.msk [vmem:[#allocation5] sm:$0xff] %vm715_vm1, %v11954_v7  ;;  %6697 = vxpose.xlu1.b32.cont [12/16] (narrow) %v6377_v52, 64 }
 0x744   : > { %6093 = vst.msk [vmem:[#allocation5 + $0x90] sm:$0xff] %vm715_vm1, %v11957_v17  ;;  %v4864_v6 = vpop.xlane.xlu0 %4863 }
 0x745   : > { %v11972_v5 = vmax.f32 %v11959_v11, %v4864_v6  ;;  %v4866_v59 = vpop.xlane.xlu1 %4865 }
 0x746   : > { %v11975_v14 = vmax.f32 %v11965_v36, %v4866_v59 }
 0x747   : > { %6078 = vst.msk [vmem:[#allocation5 + $0x18] sm:$0xff] %vm715_vm1, %v11972_v5  ;;  %6698 = vxpose.xlu1.b32.cont [13/16] (narrow) %v6378_v18, 64  ;;  %v11996_v18 = vld [vmem:[#allocation5 + $0x10] sm:$0xff] }
 0x748   : > { %6079 = vst.msk [vmem:[#allocation5 + $0x20] sm:$0xff] %vm715_vm1, %v11975_v14  ;;  %v4896_v59 = vpop.xlane.xlu0 %4895 }
 0x749   : > { %v11991_v6 = vmax.f32 %v11977_v0, %v4896_v59  ;;  %v4898_v52 = vpop.xlane.xlu1 %4897 }
 0x74a   : > { %v11994_v19 = vmax.f32 %v11983_v46, %v4898_v52  ;;  %v6380_v52 = vmul.f32 %v11920_v28, %v6124_v33  ;;  %v4954_v33 = vsub.f32 %v11922_v3, %v11927_v13  ;;  %v12040_v3 = vld [vmem:[#allocation5 + $0x40] sm:$0xff] }
 0x74b   : > { %6094 = vst.msk [vmem:[#allocation5 + $0x98] sm:$0xff] %vm715_vm1, %v11991_v6  ;;  %6699 = vxpose.xlu1.b32.cont [14/16] (narrow) %v6379_v4, 64  ;;  %5146 = vperm.xlu0 %8393, %v11991_v6  }
 0x74c   : > { %6095 = vst.msk [vmem:[#allocation5 + $0xa0] sm:$0xff] %vm715_vm1, %v11994_v19  ;;  %v4862_v12 = vpop.xlane.xlu0 %4861  ;;  %v4987_v13 = vmul.f32 1.442695, %v4954_v33 }
 0x74d   : > { %v12009_v59 = vmax.f32 %v11996_v18, %v4862_v12  ;;  %v4870_v10 = vpop.xlane.xlu1 %4869  ;;  %v6381_v12 = vmul.f32 %v11918_v48, %v6125_v9  ;;  %v4970_v9 = vsub.f32 %v11929_v35, %v11937_v22  ;;  %v12059_v35 = vld [vmem:[#allocation5 + $0xc0] sm:$0xff] }
 0x74e   : > { %v12012_v4 = vmax.f32 %v12001_v21, %v4870_v10  ;;  %8710 = vpow2.f32 %v4987_v13  ;;  %v12074_v13 = vld [vmem:[#allocation5 + $0x50] sm:$0xff] }
 0x74f   : > { %6077 = vst.msk [vmem:[#allocation5 + $0x10] sm:$0xff] %vm715_vm1, %v12009_v59  ;;  %6700 = vxpose.xlu1.b32.cont [15/16] (narrow) %v6380_v52, 64  ;;  %v5019_v22 = vmul.f32 1.442695, %v4970_v9 }
 0x750   : > { %6081 = vst.msk [vmem:[#allocation5 + $0x30] sm:$0xff] %vm715_vm1, %v12012_v4  ;;  %v4868_v10 = vpop.xlane.xlu0 %4867 }
 0x751   : > { %v12030_v41 = vmax.f32 %v12014_v38, %v4868_v10  ;;  %v4902_v15 = vpop.xlane.xlu1 %4901  ;;  %8712 = vpow2.f32 %v5019_v22  ;;  %v4359_v22 = vld [vmem:[%s9361_s10] sm:$0xff] }
 0x752   : > { %v12033_v52 = vmax.f32 %v12020_v49, %v4902_v15  ;;  %v8209_v61 = vpack.c.bf16 %v4360_v27, %v4359_v22  ;;  %v12112_v27 = vld [vmem:[#allocation5 + $0x60] sm:$0xff]  ;;  %v4368_v22 = vld [vmem:[%s9361_s10 + $0x48] sm:$0xff] }
 0x753   : > { %6080 = vst.msk [vmem:[#allocation5 + $0x28] sm:$0xff] %vm715_vm1, %v12030_v41  ;;  %6701 = vxpose.xlu1.b32.end [16/16] (narrow) %v6381_v12, 64  ;;  %5076 = vperm.xlu0 %8393, %v12030_v41  }
 0x754   : > { %6097 = vst.msk [vmem:[#allocation5 + $0xb0] sm:$0xff] %vm715_vm1, %v12033_v52  ;;  %v4900_v15 = vpop.xlane.xlu0 %4899  ;;  %8210 = vmatprep.subr.bf16.mxu0 %v8209_v61 }
 0x755   : > { %v12049_v10 = vmax.f32 %v12035_v53, %v4900_v15  ;;  %v4874_v28 = vpop.xlane.xlu1 %4873  ;;  %8212 = vmatpush3.bf16.xpose.msra.mxu0 %v8209_v61  ;;  %v12126_v61 = vld [vmem:[#allocation5 + $0x58] sm:$0xff] }
 0x756   : > { %v12052_v12 = vmax.f32 %v12040_v3, %v4874_v28  ;;  %13377 = vst [vmem:[#allocation97_spill] sm:$0xff] %v12126_v61 }
 0x757   : > { %6096 = vst.msk [vmem:[#allocation5 + $0xa8] sm:$0xff] %vm715_vm1, %v12049_v10  ;;  %5156 = vperm.xlu0 %8393, %v12049_v10  }
 0x758   : > { %6083 = vst.msk [vmem:[#allocation5 + $0x40] sm:$0xff] %vm715_vm1, %v12052_v12  ;;  %v4872_v33 = vpop.xlane.xlu0 %4871  ;;  %v12100_v16 = vpop.eup %8710 }
 0x759   : > { %v12064_v15 = vmax.f32 %v12054_v45, %v4872_v33  ;;  %v4906_v28 = vpop.xlane.xlu1 %4905  ;;  %13373 = vst [vmem:[#allocation93_spill] sm:$0xff] %v12100_v16 }
 0x75a   : > { %v12067_v48 = vmax.f32 %v12059_v35, %v4906_v28 }
 0x75b   : > { %6082 = vst.msk [vmem:[#allocation5 + $0x38] sm:$0xff] %vm715_vm1, %v12064_v15  ;;  %5086 = vperm.xlu0 %8393, %v12064_v15   ;;  %v12121_v34 = vpop.eup %8712 }
 0x75c   : > { %6099 = vst.msk [vmem:[#allocation5 + $0xc0] sm:$0xff] %vm715_vm1, %v12067_v48  ;;  %v4904_v9 = vpop.xlane.xlu0 %4903  ;;  %13376 = vst [vmem:[#allocation101_spill] sm:$0xff] %v12121_v34 }
 0x75d   : > { %v12079_v33 = vmax.f32 %v12069_v58, %v4904_v9  ;;  %v4878_v28 = vpop.xlane.xlu1 %4877  ;;  %v4972_v9 = vsub.f32 %v11977_v0, %v11991_v6  ;;  %v4367_v6 = vld [vmem:[%s9361_s10 + $0x40] sm:$0xff] }
 0x75e   : > { %v12082_v1 = vmax.f32 %v12074_v13, %v4878_v28  ;;  %v8225_v44 = vpack.c.bf16 %v4368_v22, %v4367_v6  ;;  %v12133_v6 = vld [vmem:[#allocation5 + $0xe0] sm:$0xff]  ;;  %v4361_v22 = vld [vmem:[%s9361_s10 + $0x10] sm:$0xff] }
 0x75f   : > { %6098 = vst.msk [vmem:[#allocation5 + $0xb8] sm:$0xff] %vm715_vm1, %v12079_v33  ;;  %5166 = vperm.xlu0 %8393, %v12079_v33  }
 0x760   : > { %6085 = vst.msk [vmem:[#allocation5 + $0x50] sm:$0xff] %vm715_vm1, %v12082_v1  ;;  %v4876_v28 = vpop.xlane.xlu0 %4875  ;;  %8226 = vmatprep.subr.bf16.mxu1 %v8225_v44 }
 0x761   : > { %v12098_v54 = vmax.f32 %v12084_v47, %v4876_v28  ;;  %v4910_v63 = vpop.xlane.xlu1 %4909  ;;  %v5023_v28 = vmul.f32 1.442695, %v4972_v9  ;;  %8228 = vmatpush3.bf16.xpose.msra.mxu1 %v8225_v44 }
 0x762   : > { %v12103_v62 = vmax.f32 %v12089_v60, %v4910_v63 }
 0x763   : > { %13372 = vst [vmem:[#allocation87_spill] sm:$0xff] %v12098_v54  ;;  %6084 = vst.msk [vmem:[#allocation5 + $0x48] sm:$0xff] %vm715_vm1, %v12098_v54  ;;  %5826 = vperm.xlu0 %8393, %v12100_v16   ;;  %8714 = vpow2.f32 %v5023_v28  ;;  %v12152_v28 = vld [vmem:[#allocation5 + $0x70] sm:$0xff] }
 0x764   : > { %6101 = vst.msk [vmem:[#allocation5 + $0xd0] sm:$0xff] %vm715_vm1, %v12103_v62  ;;  %v4908_v63 = vpop.xlane.xlu0 %4907  ;;  %13379 = vst [vmem:[#allocation103_spill] sm:$0xff] %v12152_v28 }
 0x765   : > { %v12119_v0 = vmax.f32 %v12105_v57, %v4908_v63  ;;  %v4882_v47 = vpop.xlane.xlu1 %4881  ;;  %v4362_v63 = vld [vmem:[%s9361_s10 + $0x18] sm:$0xff] }
 0x766   : > { %v12124_v16 = vmax.f32 %v12112_v27, %v4882_v47  ;;  %v8213_v2 = vpack.c.bf16 %v4362_v63, %v4361_v22  ;;  %v4369_v22 = vld [vmem:[%s9361_s10 + $0x50] sm:$0xff]  ;;  %v4370_v63 = vld [vmem:[%s9361_s10 + $0x58] sm:$0xff] }
 0x767   : > { %13375 = vst [vmem:[#allocation98_spill] sm:$0xff] %v12119_v0  ;;  %6100 = vst.msk [vmem:[#allocation5 + $0xc8] sm:$0xff] %vm715_vm1, %v12119_v0  ;;  %5906 = vperm.xlu0 %8393, %v12121_v34   ;;  %v12145_v34 = vld [vmem:[#allocation5 + $0xd8] sm:$0xff]  ;;  %v8229_v44 = vpack.c.bf16 %v4370_v63, %v4369_v22  ;;  %v4364_v22 = vld [vmem:[%s9361_s10 + $0x28] sm:$0xff] }
 0x768   : > { %6087 = vst.msk [vmem:[#allocation5 + $0x60] sm:$0xff] %vm715_vm1, %v12124_v16  ;;  %v4880_v47 = vpop.xlane.xlu0 %4879  ;;  %13378 = vst [vmem:[#allocation91_spill] sm:$0xff] %v12145_v34  ;;  %8214 = vmatprep.subr.bf16.mxu0 %v8213_v2 }
 0x769   : > { %v12140_v9 = vmax.f32 %v12126_v61, %v4880_v47  ;;  %v4914_v57 = vpop.xlane.xlu1 %4913  ;;  %8216 = vmatpush3.bf16.xpose.msra.mxu0 %v8213_v2  ;;  %v12166_v2 = vld [vmem:[#allocation5 + $0x68] sm:$0xff]  ;;  %8230 = vmatprep.subr.bf16.mxu1 %v8229_v44 }
 0x76a   : > { %v12143_v20 = vmax.f32 %v12133_v6, %v4914_v57  ;;  %v4958_v57 = vsub.f32 %v12014_v38, %v12030_v41  ;;  %13380 = vst [vmem:[#allocation105_spill] sm:$0xff] %v12166_v2  ;;  %v12173_v41 = vld [vmem:[#allocation5 + $0xf0] sm:$0xff]  ;;  %8232 = vmatpush3.bf16.xpose.msra.mxu1 %v8229_v44  ;;  %v4363_v38 = vld [vmem:[%s9361_s10 + $0x20] sm:$0xff] }
 0x76b   : > { %6086 = vst.msk [vmem:[#allocation5 + $0x58] sm:$0xff] %vm715_vm1, %v12140_v9  ;;  %5096 = vperm.xlu0 %8393, %v12098_v54   ;;  %13381 = vst [vmem:[#allocation95_spill] sm:$0xff] %v12173_v41  ;;  %v8217_v43 = vpack.c.bf16 %v4364_v22, %v4363_v38  ;;  %v4372_v38 = vld [vmem:[%s9361_s10 + $0x68] sm:$0xff] }
 0x76c   : > { %6103 = vst.msk [vmem:[#allocation5 + $0xe0] sm:$0xff] %vm715_vm1, %v12143_v20  ;;  %v4912_v47 = vpop.xlane.xlu0 %4911  ;;  %v4995_v63 = vmul.f32 1.442695, %v4958_v57 }
 0x76d   : > { %v12161_v61 = vmax.f32 %v12145_v34, %v4912_v47  ;;  %v4886_v50 = vpop.xlane.xlu1 %4885  ;;  %v12185_v44 = vpop.eup %8714  ;;  %8218 = vmatprep.subr.bf16.mxu0 %v8217_v43 }
 0x76e   : > { %v12164_v54 = vmax.f32 %v12152_v28, %v4886_v50  ;;  %v4974_v50 = vsub.f32 %v12035_v53, %v12049_v10  ;;  %13382 = vst [vmem:[#allocation99_spill] sm:$0xff] %v12185_v44  ;;  %v12190_v28 = vld [vmem:[#allocation5 + $0xe8] sm:$0xff]  ;;  %v4371_v10 = vld [vmem:[%s9361_s10 + $0x60] sm:$0xff]  ;;  %8716 = vpow2.f32 %v4995_v63  ;;  %v12205_v53 = vld [vmem:[#allocation5 + $0x78] sm:$0xff] }
 0x76f   : > { %6102 = vst.msk [vmem:[#allocation5 + $0xd8] sm:$0xff] %vm715_vm1, %v12161_v61  ;;  %5176 = vperm.xlu0 %8393, %v12119_v0   ;;  %13383 = vst [vmem:[#allocation106_spill] sm:$0xff] %v12190_v28  ;;  %v4365_v63 = vld [vmem:[%s9361_s10 + $0x30] sm:$0xff] }
 0x770   : > { %6089 = vst.msk [vmem:[#allocation5 + $0x70] sm:$0xff] %vm715_vm1, %v12164_v54  ;;  %v4884_v47 = vpop.xlane.xlu0 %4883  ;;  %v5027_v22 = vmul.f32 1.442695, %v4974_v50  ;;  %v4366_v50 = vld [vmem:[%s9361_s10 + $0x38] sm:$0xff] }
 0x771   : > { %v12182_v34 = vmax.f32 %v12166_v2, %v4884_v47  ;;  %5051 = vperm.xlu1 %8392, %v11954_v7   ;;  %v4918_v0 = vpop.xlane.xlu1 %4917  ;;  %8220 = vmatpush3.bf16.xpose.msra.mxu0 %v8217_v43  ;;  %v8233_v47 = vpack.c.bf16 %v4372_v38, %v4371_v10  ;;  %v8221_v38 = vpack.c.bf16 %v4366_v50, %v4365_v63 }
 0x772   : > { %v12188_v57 = vmax.f32 %v12173_v41, %v4918_v0  ;;  %8718 = vpow2.f32 %v5027_v22  ;;  %v4373_v22 = vld [vmem:[%s9361_s10 + $0x70] sm:$0xff]  ;;  %v4960_v63 = vsub.f32 %v12054_v45, %v12064_v15  ;;  %v4976_v15 = vsub.f32 %v12069_v58, %v12079_v33 }
 0x773   : > { %6088 = vst.msk [vmem:[#allocation5 + $0x68] sm:$0xff] %vm715_vm1, %v12182_v34  ;;  %5916 = vperm.xlu0 %8393, %v12185_v44   ;;  %8234 = vmatprep.subr.bf16.mxu1 %v8233_v47  ;;  %v12218_v44 = vld [vmem:[#allocation5 + $0xf8] sm:$0xff]  ;;  %v13387_v58 = vsub.f32 %v11934_v29, %v11940_v37  ;;  %v13390_v29 = vsub.f32 %v11959_v11, %v11972_v5 }
 0x774   : > { %6105 = vst.msk [vmem:[#allocation5 + $0xf0] sm:$0xff] %vm715_vm1, %v12188_v57  ;;  %v4916_v0 = vpop.xlane.xlu0 %4915  ;;  %8236 = vmatpush3.bf16.xpose.msra.mxu1 %v8233_v47  ;;  %8222 = vmatprep.subr.bf16.mxu0 %v8221_v38  ;;  %v4374_v47 = vld [vmem:[%s9361_s10 + $0x78] sm:$0xff]  ;;  %v4999_v45 = vmul.f32 1.442695, %v4960_v63 }
 0x775   : > { %v12202_v41 = vmax.f32 %v12190_v28, %v4916_v0  ;;  %5131 = vperm.xlu1 %8392, %v11940_v37   ;;  %v5017_v33 = vmul.f32 1.442695, %v13387_v58  ;;  %v4991_v37 = vmul.f32 1.442695, %v13390_v29 }
 0x776   : > { %8720 = vpow2.f32 %v4999_v45 }
 0x777   : > { %6104 = vst.msk [vmem:[#allocation5 + $0xe8] sm:$0xff] %vm715_vm1, %v12202_v41  ;;  %5106 = vperm.xlu0 %8393, %v12140_v9  }
 0x778   : > { %v4888_v10 = vpop.xlane.xlu0 %4887  ;;  %v12233_v2 = vpop.eup %8716 }
 0x779   : > { %v12215_v0 = vmax.f32 %v12205_v53, %v4888_v10  ;;  %5066 = vperm.xlu1 %8392, %v11972_v5   ;;  %8224 = vmatpush3.bf16.xpose.msra.mxu0 %v8221_v38  ;;  %v8237_v10 = vpack.c.bf16 %v4374_v47, %v4373_v22  ;;  %13384 = vst [vmem:[#allocation108_spill] sm:$0xff] %v12233_v2  ;;  %v5031_v22 = vmul.f32 1.442695, %v4976_v15 }
 0x77a   : > { %v13386_v47 = vsub.f32 %v11942_v31, %v11954_v7  ;;  %v13391_v15 = vsub.f32 %v11996_v18, %v12009_v59 }
 0x77b   : > { %6090 = vst.msk [vmem:[#allocation5 + $0x78] sm:$0xff] %vm715_vm1, %v12215_v0  ;;  %5186 = vperm.xlu0 %8393, %v12161_v61   ;;  %8238 = vmatprep.subr.bf16.mxu1 %v8237_v10  ;;  %8722 = vpow2.f32 %v5031_v22  ;;  %v13392_v22 = vsub.f32 %v11947_v26, %v11957_v17 }
 0x77c   : > { %v4920_v50 = vpop.xlane.xlu0 %4919  ;;  %8240 = vmatpush3.bf16.xpose.msra.mxu1 %v8237_v10  ;;  %v12243_v38 = vpop.eup %8718  ;;  %v4989_v11 = vmul.f32 1.442695, %v13391_v15 }
 0x77d   : > { %v12230_v28 = vmax.f32 %v12218_v44, %v4920_v50  ;;  %5061 = vperm.xlu1 %8392, %v12009_v59   ;;  %13385 = vst [vmem:[#allocation104_spill] sm:$0xff] %v12243_v38  ;;  %v4985_v50 = vmul.f32 1.442695, %v13386_v47  ;;  %v5021_v47 = vmul.f32 1.442695, %v13392_v22 }
 0x77f   : > { %6106 = vst.msk [vmem:[#allocation5 + $0xf8] sm:$0xff] %vm715_vm1, %v12230_v28  ;;  %5846 = vperm.xlu0 %8393, %v12233_v2   ;;  %8724 = vpow2.f32 %v4985_v50 }
 0x780   : > { %v12257_v63 = vpop.eup %8720  ;;  %8726 = vpow2.f32 %v5017_v33 }
 0x781   : > { %5141 = vperm.xlu1 %8392, %v11957_v17   ;;  %13388 = vst [vmem:[#allocation110_spill] sm:$0xff] %v12257_v63  ;;  %8728 = vpow2.f32 %v4991_v37  ;;  %v13395_v17 = vsub.f32 %v11965_v36, %v11975_v14 }
 0x782   : > { %8730 = vpow2.f32 %v4989_v11 }
 0x783   : > { %5926 = vperm.xlu0 %8393, %v12243_v38   ;;  %8732 = vpow2.f32 %v5021_v47  ;;  %v4993_v26 = vmul.f32 1.442695, %v13395_v17  ;;  %v6127_v47 = vld [vmem:[#allocation4 + $0x88] sm:$0xff] }
 0x785   : > { %5071 = vperm.xlu1 %8392, %v11975_v14   ;;  %v12261_v31 = vpop.eup %8722  ;;  %8734 = vpow2.f32 %v4993_v26  ;;  %v6126_v14 = vld [vmem:[#allocation4 + $0x80] sm:$0xff] }
 0x786   : > { %13389 = vst [vmem:[#allocation102_spill] sm:$0xff] %v12261_v31  ;;  %v6382_v36 = vmul.f32 %v11892_v24, %v6126_v14  ;;  %v13398_v24 = vsub.f32 %v12020_v49, %v12033_v52  ;;  %v6131_v49 = vld [vmem:[#allocation4 + $0xa8] sm:$0xff]  ;;  %v6133_v14 = vld [vmem:[#allocation4 + $0xb8] sm:$0xff] }
 0x787   : > { %5116 = vperm.xlu0 %8393, %v12182_v34  }
 0x788   : > { %v5029_v17 = vmul.f32 1.442695, %v13398_v24 }
 0x789   : > { %5151 = vperm.xlu1 %8392, %v11994_v19   ;;  %v12264_v7 = vpop.eup %8724 }
 0x78a   : > { %v12271_v45 = vpop.eup %8726 }
 0x78b   : > { %5196 = vperm.xlu0 %8393, %v12202_v41   ;;  %v12289_v59 = vpop.eup %8728 }
 0x78c   : > { %13393 = vst [vmem:[#allocation107_spill] sm:$0xff] %v12289_v59  ;;  %v12293_v33 = vpop.eup %8730 }
 0x78d   : > { %5081 = vperm.xlu1 %8392, %v12012_v4   ;;  %13394 = vst [vmem:[#allocation112_spill] sm:$0xff] %v12293_v33  ;;  %v12300_v37 = vpop.eup %8732 }
 0x78f   : > { %5856 = vperm.xlu0 %8393, %v12257_v63   ;;  %v12312_v22 = vpop.eup %8734  ;;  %v13425_v63 = vld [vmem:[#allocation147_spill] sm:$0xff] }
 0x791   : > { %5161 = vperm.xlu1 %8392, %v12033_v52   ;;  %v6387_v52 = vmul.f32 %v11898_v56, %v6131_v49  ;;  %v4977_v56 = vsub.f32 %v12059_v35, %v12067_v48 }
 0x793   : > { %5936 = vperm.xlu0 %8393, %v12261_v31  }
 0x795   : > { %5821 = vperm.xlu1 %8392, %v12264_v7  }
 0x797   : > { %5126 = vperm.xlu0 %8393, %v12215_v0   ;;  %v6702_v10 = vpop.trf.xlu1 }
 0x798   : > { %6750 = vst [vmem:[%s12274_s13] sm:$0xff] %v6702_v10  ;;  %v13396_v10 = vsub.f32 %v11983_v46, %v11994_v19  ;;  %v13397_v19 = vsub.f32 %v12001_v21, %v12012_v4  ;;  %v6129_v21 = vld [vmem:[#allocation4 + $0x98] sm:$0xff]  ;;  %v6130_v4 = vld [vmem:[#allocation4 + $0xa0] sm:$0xff] }
 0x799   : > { %5901 = vperm.xlu1 %8392, %v12271_v45  }
 0x79a   : > { %v5025_v15 = vmul.f32 1.442695, %v13396_v10  ;;  %v4997_v46 = vmul.f32 1.442695, %v13397_v19 }
 0x79b   : > { %5206 = vperm.xlu0 %8393, %v12230_v28   ;;  %v6703_v5 = vpop.trf.xlu1 }
 0x79c   : > { %6751 = vst [vmem:[%s12274_s13 + $0x8] sm:$0xff] %v6703_v5  ;;  %8736 = vpow2.f32 %v5025_v15 }
 0x79d   : > { %5091 = vperm.xlu1 %8392, %v12052_v12   ;;  %8738 = vpow2.f32 %v4997_v46  ;;  %v6134_v46 = vld [vmem:[#allocation4 + $0xc0] sm:$0xff] }
 0x79e   : > { %8740 = vpow2.f32 %v5029_v17 }
 0x79f   : > { %v6704_v50 = vpop.trf.xlu1 }
 0x7a0   : > { %6752 = vst [vmem:[%s12274_s13 + $0x10] sm:$0xff] %v6704_v50  ;;  %v6383_v50 = vmul.f32 %v11888_v51, %v6127_v47  ;;  %v6385_v51 = vmul.f32 %v11894_v42, %v6129_v21  ;;  %v6132_v42 = vld [vmem:[#allocation4 + $0xb0] sm:$0xff]  ;;  %v6389_v47 = vmul.f32 %v11902_v23, %v6133_v14  ;;  %v4979_v23 = vsub.f32 %v12089_v60, %v12103_v62 }
 0x7a1   : > { %5171 = vperm.xlu1 %8392, %v12067_v48  }
 0x7a3   : > { %v6705_v18 = vpop.trf.xlu1 }
 0x7a4   : > { %6753 = vst [vmem:[%s12274_s13 + $0x18] sm:$0xff] %v6705_v18 }
 0x7a5   : > { %5836 = vperm.xlu1 %8392, %v12289_v59  }
 0x7a6   : > { %v12319_v18 = vpop.eup %8736 }
 0x7a7   : > { %v6706_v58 = vpop.trf.xlu1  ;;  %v12330_v10 = vpop.eup %8738 }
 0x7a8   : > { %6754 = vst [vmem:[%s12274_s13 + $0x20] sm:$0xff] %v6706_v58  ;;  %v6128_v58 = vld [vmem:[#allocation4 + $0x90] sm:$0xff]  ;;  %v12334_v15 = vpop.eup %8740 }
 0x7a9   : > { %5831 = vperm.xlu1 %8392, %v12293_v33   ;;  %v6384_v26 = vmul.f32 %v11896_v40, %v6128_v58  ;;  %v6170_v40 = vld [vmem:[#allocation3 + $0xe0] sm:$0xff]  ;;  %v6135_v58 = vld [vmem:[#allocation4 + $0xc8] sm:$0xff]  ;;  %v13426_v33 = vld [vmem:[#allocation88_spill] sm:$0xff] }
 0x7aa   : > { %8742 = vrcp.f32 %v6170_v40  ;;  %v6391_v35 = vmul.f32 %v11906_v55, %v6135_v58  ;;  %v4981_v55 = vsub.f32 %v12133_v6, %v12143_v20 }
 0x7ab   : > { %v6707_v29 = vpop.trf.xlu1 }
 0x7ac   : > { %6755 = vst [vmem:[%s12274_s13 + $0x28] sm:$0xff] %v6707_v29  ;;  %v6386_v29 = vmul.f32 %v11900_v32, %v6130_v4  ;;  %v6172_v32 = vld [vmem:[#allocation3 + $0xf0] sm:$0xff] }
 0x7ad   : > { %5911 = vperm.xlu1 %8392, %v12300_v37   ;;  %8744 = vrcp.f32 %v6172_v32  ;;  %v13401_v32 = vld [vmem:[#allocation63_spill] sm:$0xff] }
 0x7af   : > { %v6708_v11 = vpop.trf.xlu1 }
 0x7b0   : > { %6756 = vst [vmem:[%s12274_s13 + $0x30] sm:$0xff] %v6708_v11  ;;  %v4961_v11 = vsub.f32 %v12040_v3, %v12052_v12  ;;  %v5033_v3 = vmul.f32 1.442695, %v4977_v56  ;;  %v6390_v12 = vmul.f32 %v11908_v25, %v6134_v46  ;;  %v4965_v25 = vsub.f32 %v12112_v27, %v12124_v16  ;;  %v13399_v27 = vld [vmem:[#allocation103_spill] sm:$0xff]  ;;  %v13402_v56 = vld [vmem:[#allocation68_spill] sm:$0xff] }
 0x7b1   : > { %5101 = vperm.xlu1 %8392, %v12082_v1   ;;  %v4967_v49 = vsub.f32 %v13399_v27, %v12164_v54 }
 0x7b2   : > { %v5009_v60 = vmul.f32 1.442695, %v4965_v25 }
 0x7b3   : > { %v6709_v5 = vpop.trf.xlu1 }
 0x7b4   : > { %6757 = vst [vmem:[%s12274_s13 + $0x38] sm:$0xff] %v6709_v5  ;;  %v6388_v5 = vmul.f32 %v11904_v30, %v6132_v42  ;;  %v4963_v30 = vsub.f32 %v12074_v13, %v12082_v1  ;;  %v5037_v1 = vmul.f32 1.442695, %v4979_v23 }
 0x7b5   : > { %5181 = vperm.xlu1 %8392, %v12103_v62   ;;  %v6137_v62 = vld [vmem:[#allocation4 + $0xd8] sm:$0xff] }
 0x7b6   : > { %v5005_v48 = vmul.f32 1.442695, %v4963_v30  ;;  %v6393_v4 = vmul.f32 %v11910_v8, %v6137_v62  ;;  %v13400_v8 = vld [vmem:[#allocation95_spill] sm:$0xff] }
 0x7b7   : > { %v4983_v6 = vsub.f32 %v13400_v8, %v12188_v57 }
 0x7b9   : > { %6718 = vxpose.xlu0.b32.start [1/16] (narrow) %v6382_v36, 64  ;;  %5841 = vperm.xlu1 %8392, %v12312_v22   ;;  %v5001_v36 = vmul.f32 1.442695, %v4961_v11  ;;  %v5045_v11 = vmul.f32 1.442695, %v4983_v6 }
 0x7ba   : > { %v5057_v19 = vpop.permute.xlu0 %5056 }
 0x7bb   : > { %8746 = vpow2.f32 %v5001_v36 }
 0x7bc   : > { %8748 = vpow2.f32 %v5033_v3 }
 0x7bd   : > { %6719 = vxpose.xlu0.b32.cont [2/16] (narrow) %v6383_v50, 64  ;;  %5921 = vperm.xlu1 %8392, %v12319_v18   ;;  %v8743_v50 = vpop.eup %8742  ;;  %8750 = vpow2.f32 %v5005_v48 }
 0x7be   : > { %v5137_v24 = vpop.permute.xlu0 %5136  ;;  %v8745_v17 = vpop.eup %8744  ;;  %8752 = vpow2.f32 %v5037_v1 }
 0x7bf   : > { %8754 = vpow2.f32 %v5009_v60  ;;  %v13407_v60 = vld [vmem:[#allocation67_spill] sm:$0xff] }
 0x7c1   : > { %6720 = vxpose.xlu0.b32.cont [3/16] (narrow) %v6384_v26, 64  ;;  %5111 = vperm.xlu1 %8392, %v12124_v16   ;;  %v6136_v26 = vld [vmem:[#allocation4 + $0xd0] sm:$0xff] }
 0x7c2   : > { %v6392_v13 = vmul.f32 %v11914_v39, %v6136_v26  ;;  %v5041_v39 = vmul.f32 1.442695, %v4981_v55 }
 0x7c4   : > { %8756 = vpow2.f32 %v5041_v39 }
 0x7c5   : > { %6721 = vxpose.xlu0.b32.cont [4/16] (narrow) %v6385_v51, 64  ;;  %5191 = vperm.xlu1 %8392, %v12143_v20   ;;  %v12356_v51 = vpop.eup %8746  ;;  %v5013_v20 = vmul.f32 1.442695, %v4967_v49 }
 0x7c6   : > { %v12364_v16 = vpop.eup %8748 }
 0x7c7   : > { %v12369_v40 = vpop.eup %8750  ;;  %8758 = vpow2.f32 %v5013_v20 }
 0x7c8   : > { %v12376_v42 = vpop.eup %8752  ;;  %8760 = vpow2.f32 %v5045_v11 }
 0x7c9   : > { %6722 = vxpose.xlu0.b32.cont [5/16] (narrow) %v6386_v29, 64  ;;  %5851 = vperm.xlu1 %8392, %v12330_v10   ;;  %v12382_v14 = vpop.eup %8754 }
 0x7ca   : > { %v12354_v21 = vpop.permute.xlu0 %5146 }
 0x7cd   : > { %6723 = vxpose.xlu0.b32.cont [6/16] (narrow) %v6387_v52, 64  ;;  %5931 = vperm.xlu1 %8392, %v12334_v15  }
 0x7d1   : > { %6724 = vxpose.xlu0.b32.cont [7/16] (narrow) %v6388_v5, 64  ;;  %5121 = vperm.xlu1 %8392, %v12164_v54   ;;  %v5210_v5 = vsub.f32 %v13401_v32, %v5057_v19  ;;  %v13404_v19 = vld [vmem:[#allocation72_spill] sm:$0xff] }
 0x7d2   : > { %v12362_v29 = vpop.permute.xlu0 %5076  ;;  %v13409_v32 = vld [vmem:[#allocation76_spill] sm:$0xff] }
 0x7d3   : > { %v5243_v46 = vmul.f32 1.442695, %v5210_v5 }
 0x7d5   : > { %6725 = vxpose.xlu0.b32.cont [8/16] (narrow) %v6389_v47, 64  ;;  %5201 = vperm.xlu1 %8392, %v12188_v57   ;;  %v13403_v57 = vld [vmem:[#allocation70_spill] sm:$0xff] }
 0x7d6   : > { %v12371_v52 = vpop.permute.xlu0 %5156  ;;  %v5226_v3 = vsub.f32 %v13403_v57, %v5137_v24  ;;  %v13405_v24 = vld [vmem:[#allocation65_spill] sm:$0xff] }
 0x7d8   : > { %v5275_v23 = vmul.f32 1.442695, %v5226_v3 }
 0x7d9   : > { %6726 = vxpose.xlu0.b32.cont [9/16] (narrow) %v6390_v12, 64  ;;  %6348 = vperm.xlu1 %8392, %v8743_v50   ;;  %v12387_v12 = vpop.eup %8756 }
 0x7da   : > { %v12380_v54 = vpop.permute.xlu0 %5086 }
 0x7dd   : > { %6727 = vxpose.xlu0.b32.cont [10/16] (narrow) %v6391_v35, 64  ;;  %6358 = vperm.xlu1 %8392, %v8745_v17   ;;  %v12393_v17 = vpop.eup %8758 }
 0x7de   : > { %v12389_v58 = vpop.permute.xlu0 %5166 }
 0x7e1   : > { %6728 = vxpose.xlu0.b32.cont [11/16] (narrow) %v6392_v13, 64  ;;  %5861 = vperm.xlu1 %8392, %v12356_v51   ;;  %v12399_v13 = vpop.eup %8760 }
 0x7e2   : > { %v12397_v25 = vpop.permute.xlu0 %5826  ;;  %13406 = vst [vmem:[#allocation131_spill] sm:$0xff] %v12399_v13 }
 0x7e5   : > { %6729 = vxpose.xlu0.b32.cont [12/16] (narrow) %v6393_v4, 64  ;;  %5941 = vperm.xlu1 %8392, %v12364_v16   ;;  %v13408_v4 = vld [vmem:[#allocation74_spill] sm:$0xff] }
 0x7e6   : > { %v5228_v39 = vsub.f32 %v13408_v4, %v12354_v21  ;;  %v12410_v11 = vpop.permute.xlu0 %5906 }
 0x7e9   : > { %5871 = vperm.xlu1 %8392, %v12369_v40  }
 0x7ed   : > { %5951 = vperm.xlu1 %8392, %v12376_v42  }
 0x7f0   : > { %v5052_v36 = vpop.permute.xlu1 %5051 }
 0x7f1   : > { %v5209_v47 = vsub.f32 %v13402_v56, %v5052_v36  ;;  %5881 = vperm.xlu1 %8392, %v12382_v14   ;;  %v5279_v36 = vmul.f32 1.442695, %v5228_v39  ;;  %v13410_v56 = vld [vmem:[#allocation69_spill] sm:$0xff] }
 0x7f2   : > { %v5214_v21 = vsub.f32 %v13410_v56, %v12362_v29  ;;  %v5097_v29 = vpop.permute.xlu0 %5096 }
 0x7f3   : > { %v5241_v30 = vmul.f32 1.442695, %v5209_v47 }
 0x7f4   : > { %v5132_v50 = vpop.permute.xlu1 %5131 }
 0x7f5   : > { %8762 = vpow2.f32 %v5241_v30  ;;  %v5225_v48 = vsub.f32 %v13404_v19, %v5132_v50  ;;  %5961 = vperm.xlu1 %8392, %v12387_v12   ;;  %v13411_v30 = vld [vmem:[#allocation71_spill] sm:$0xff]  ;;  %v5251_v19 = vmul.f32 1.442695, %v5214_v21 }
 0x7f6   : > { %8764 = vpow2.f32 %v5243_v46 }
 0x7f7   : > { %v5273_v35 = vmul.f32 1.442695, %v5225_v48  ;;  %v13412_v48 = vld [vmem:[#allocation78_spill] sm:$0xff] }
 0x7f8   : > { %v5067_v26 = vpop.permute.xlu1 %5066 }
 0x7f9   : > { %8766 = vpow2.f32 %v5273_v35  ;;  %5891 = vperm.xlu1 %8392, %v12393_v17   ;;  %v5212_v1 = vsub.f32 %v13405_v24, %v5067_v26  ;;  %v13413_v24 = vld [vmem:[#allocation80_spill] sm:$0xff] }
 0x7fa   : > { %8768 = vpow2.f32 %v5275_v23  ;;  %v5230_v23 = vsub.f32 %v13412_v48, %v12371_v52  ;;  %v5177_v52 = vpop.permute.xlu0 %5176 }
 0x7fb   : > { %v5247_v27 = vmul.f32 1.442695, %v5212_v1 }
 0x7fc   : > { %v5062_v62 = vpop.permute.xlu1 %5061 }
 0x7fd   : > { %v5211_v55 = vsub.f32 %v13407_v60, %v5062_v62  ;;  %5971 = vperm.xlu1 %8392, %v12399_v13   ;;  %v5283_v62 = vmul.f32 1.442695, %v5230_v23  ;;  %v13414_v60 = vld [vmem:[#allocation73_spill] sm:$0xff] }
 0x7fe   : > { %v12441_v23 = vpop.permute.xlu0 %5916 }
 0x7ff   : > { %v12405_v49 = vpop.eup %8762  ;;  %v5245_v20 = vmul.f32 1.442695, %v5211_v55  ;;  %v5216_v55 = vsub.f32 %v13414_v60, %v12380_v54 }
 0x800   : > { %v12407_v8 = vpop.eup %8764  ;;  %7985 = vmatprep.mubr.f32.mxu0 %v12405_v49  ;;  %v5142_v6 = vpop.permute.xlu1 %5141 }
 0x801   : > { %8770 = vpow2.f32 %v5245_v20  ;;  %v5227_v5 = vsub.f32 %v13409_v32, %v5142_v6  ;;  %7986 = vmatmul.mubr.f32.vlgmr.msra.gmra.mrb[80].mxu0 %v12407_v8  ;;  %v13415_v6 = vld [vmem:[#allocation75_spill] sm:$0xff] }
 0x802   : > { %8772 = vpow2.f32 %v5247_v27  ;;  %v5107_v60 = vpop.permute.xlu0 %5106 }
 0x803   : > { %v12416_v47 = vpop.eup %8766  ;;  %v5277_v46 = vmul.f32 1.442695, %v5227_v5  ;;  %v5255_v5 = vmul.f32 1.442695, %v5216_v55  ;;  %v13418_v55 = vld [vmem:[#allocation77_spill] sm:$0xff] }
 0x804   : > { %v12418_v57 = vpop.eup %8768  ;;  %8025 = vmatprep.mubr.f32.mxu1 %v12416_v47  ;;  %v5072_v3 = vpop.permute.xlu1 %5071 }
 0x805   : > { %8774 = vpow2.f32 %v5277_v46  ;;  %v5213_v50 = vsub.f32 %v13411_v30, %v5072_v3  ;;  %8026 = vmatmul.mubr.f32.vlgmr.msra.gmra.mrb[80].mxu1 %v12418_v57  ;;  %v13417_v30 = vld [vmem:[#allocation126_spill] sm:$0xff] }
 0x806   : > { %8776 = vpow2.f32 %v5279_v36  ;;  %v13416_v36 = vld [vmem:[#allocation79_spill] sm:$0xff] }
 0x807   : > { %v5249_v35 = vmul.f32 1.442695, %v5213_v50  ;;  %v5232_v56 = vsub.f32 %v13416_v36, %v12389_v58 }
 0x808   : > { %v5152_v26 = vpop.permute.xlu1 %5151 }
 0x809   : > { %8778 = vpow2.f32 %v5249_v35  ;;  %v5229_v1 = vsub.f32 %v13413_v24, %v5152_v26 }
 0x80a   : > { %8780 = vpow2.f32 %v5251_v19  ;;  %v5287_v19 = vmul.f32 1.442695, %v5232_v56 }
 0x80b   : > { %v12428_v4 = vpop.eup %8770  ;;  %v5281_v39 = vmul.f32 1.442695, %v5229_v1 }
 0x80c   : > { %v12430_v27 = vpop.eup %8772  ;;  %7988 = vmatprep.mubr.f32.mxu0 %v12428_v4  ;;  %v5082_v20 = vpop.permute.xlu1 %5081 }
 0x80d   : > { %8782 = vpow2.f32 %v5281_v39  ;;  %v5215_v32 = vsub.f32 %v13415_v6, %v5082_v20  ;;  %7989 = vmatmul.mubr.f32.gmra.mrb[82].mxu0 %v12430_v27  ;;  %v5218_v39 = vsub.f32 %v13418_v55, %v5097_v29  ;;  %v13421_v29 = vld [vmem:[#allocation129_spill] sm:$0xff] }
 0x80e   : > { %8784 = vpow2.f32 %v5283_v62 }
 0x80f   : > { %v8775_v54 = vpop.eup %8774  ;;  %v5253_v21 = vmul.f32 1.442695, %v5215_v32  ;;  %v5259_v56 = vmul.f32 1.442695, %v5218_v39 }
 0x810   : > { %v12437_v46 = vpop.eup %8776  ;;  %8028 = vmatprep.mubr.f32.mxu1 %v8775_v54  ;;  %v5162_v3 = vpop.permute.xlu1 %5161 }
 0x811   : > { %8786 = vpow2.f32 %v5253_v21  ;;  %v5231_v50 = vsub.f32 %v13417_v30, %v5162_v3  ;;  %8029 = vmatmul.mubr.f32.gmra.mrb[82].mxu1 %v12437_v46  ;;  %v13420_v21 = vld [vmem:[#allocation130_spill] sm:$0xff] }
 0x812   : > { %8788 = vpow2.f32 %v5255_v5  ;;  %v13419_v5 = vld [vmem:[#allocation81_spill] sm:$0xff]  ;;  %v5234_v3 = vsub.f32 %v13420_v21, %v5177_v52 }
 0x813   : > { %v8779_v48 = vpop.eup %8778  ;;  %v5285_v35 = vmul.f32 1.442695, %v5231_v50  ;;  %v5187_v50 = vpop.permute.xlu0 %5186 }
 0x814   : > { %v12443_v26 = vpop.eup %8780  ;;  %7991 = vmatprep.mubr.f32.mxu0 %v8779_v48  ;;  %v12445_v58 = vpop.permute.xlu1 %5821  ;;  %v5236_v38 = vsub.f32 %v13425_v63, %v5187_v50  ;;  %v13427_v63 = vld [vmem:[#allocation142_spill] sm:$0xff] }
 0x815   : > { %8790 = vpow2.f32 %v5285_v35  ;;  %7992 = vmatmul.mubr.f32.gmra.mrb[84].mxu0 %v12443_v26 }
 0x816   : > { %8792 = vpow2.f32 %v5287_v19 }
 0x817   : > { %v8783_v24 = vpop.eup %8782  ;;  %v12466_v52 = vpop.permute.xlu0 %5846 }
 0x818   : > { %v12448_v1 = vpop.eup %8784  ;;  %8031 = vmatprep.mubr.f32.mxu1 %v8783_v24  ;;  %v12450_v62 = vpop.permute.xlu1 %5901 }
 0x819   : > { %8032 = vmatmul.mubr.f32.gmra.mrb[84].mxu1 %v12448_v1 }
 0x81b   : > { %v8787_v20 = vpop.eup %8786 }
 0x81c   : > { %v12454_v6 = vpop.eup %8788  ;;  %7994 = vmatprep.mubr.f32.mxu0 %v8787_v20  ;;  %v5092_v32 = vpop.permute.xlu1 %5091 }
 0x81d   : > { %v5217_v36 = vsub.f32 %v13419_v5, %v5092_v32  ;;  %7995 = vmatmul.mubr.f32.gmra.mrb[86].mxu0 %v12454_v6  ;;  %v5291_v32 = vmul.f32 1.442695, %v5234_v3  ;;  %v13423_v3 = vld [vmem:[#allocation127_spill] sm:$0xff] }
 0x81f   : > { %v8791_v30 = vpop.eup %8790  ;;  %v5257_v19 = vmul.f32 1.442695, %v5217_v36 }
 0x820   : > { %v12459_v35 = vpop.eup %8792  ;;  %8034 = vmatprep.mubr.f32.mxu1 %v8791_v30  ;;  %v5172_v43 = vpop.permute.xlu1 %5171 }
 0x821   : > { %8794 = vpow2.f32 %v5257_v19  ;;  %v5233_v55 = vsub.f32 %v13421_v29, %v5172_v43  ;;  %5369 = vadd.xlane.f32.xlu1 %v12405_v49  ;;  %8035 = vmatmul.mubr.f32.gmra.mrb[86].mxu1 %v12459_v35  ;;  %v12471_v43 = vpop.permute.xlu0 %5926  ;;  %v5220_v19 = vsub.f32 %v13423_v3, %v5107_v60  ;;  %v5295_v60 = vmul.f32 1.442695, %v5236_v38  ;;  %v13429_v38 = vld [vmem:[#allocation83_spill] sm:$0xff] }
 0x822   : > { %8796 = vpow2.f32 %v5259_v56 }
 0x823   : > { %v5289_v5 = vmul.f32 1.442695, %v5233_v55  ;;  %v5263_v31 = vmul.f32 1.442695, %v5220_v19 }
 0x824   : > { %v12464_v39 = vpop.permute.xlu1 %5836 }
 0x825   : > { %8798 = vpow2.f32 %v5289_v5  ;;  %5401 = vadd.xlane.f32.xlu1 %v12416_v47 }
 0x826   : > { %8800 = vpow2.f32 %v5291_v32  ;;  %v5117_v32 = vpop.permute.xlu0 %5116 }
 0x827   : > { %v5222_v50 = vsub.f32 %v13427_v63, %v5117_v32 }
 0x828   : > { %v12469_v36 = vpop.permute.xlu1 %5831 }
 0x829   : > { %5405 = vadd.xlane.f32.xlu1 %v8775_v54  ;;  %v13424_v54 = vld [vmem:[#allocation128_spill] sm:$0xff] }
 0x82a   : > { %v5197_v3 = vpop.permute.xlu0 %5196 }
 0x82b   : > { %v8795_v21 = vpop.eup %8794 }
 0x82c   : > { %v12473_v49 = vpop.eup %8796  ;;  %7997 = vmatprep.mubr.f32.mxu0 %v8795_v21  ;;  %v12475_v56 = vpop.permute.xlu1 %5911 }
 0x82d   : > { %13422 = vst [vmem:[#allocation113_spill] sm:$0xff] %v12473_v49  ;;  %5377 = vadd.xlane.f32.xlu1 %v8779_v48  ;;  %7998 = vmatmul.mubr.f32.gmra.mrb[88].mxu0 %v12473_v49 }
 0x82e   : > { %v12489_v19 = vpop.permute.xlu0 %5856 }
 0x82f   : > { %v8799_v29 = vpop.eup %8798 }
 0x830   : > { %v12479_v55 = vpop.eup %8800  ;;  %8037 = vmatprep.mubr.f32.mxu1 %v8799_v29  ;;  %v5102_v47 = vpop.permute.xlu1 %5101 }
 0x831   : > { %v5219_v5 = vsub.f32 %v13424_v54, %v5102_v47  ;;  %5409 = vadd.xlane.f32.xlu1 %v8783_v24  ;;  %8038 = vmatmul.mubr.f32.gmra.mrb[88].mxu1 %v12479_v55 }
 0x832   : > { %v12497_v54 = vpop.permute.xlu0 %5936 }
 0x833   : > { %v5261_v2 = vmul.f32 1.442695, %v5219_v5 }
 0x834   : > { %v5182_v48 = vpop.permute.xlu1 %5181 }
 0x835   : > { %8802 = vpow2.f32 %v5261_v2  ;;  %v5235_v59 = vsub.f32 %v13426_v33, %v5182_v48  ;;  %5381 = vadd.xlane.f32.xlu1 %v8787_v20  ;;  %v13432_v48 = vld [vmem:[#allocation90_spill] sm:$0xff] }
 0x836   : > { %8804 = vpow2.f32 %v5263_v31 }
 0x837   : > { %v5293_v13 = vmul.f32 1.442695, %v5235_v59  ;;  %v5267_v59 = vmul.f32 1.442695, %v5222_v50 }
 0x838   : > { %v12485_v49 = vpop.permute.xlu1 %5841 }
 0x839   : > { %8806 = vpow2.f32 %v5293_v13  ;;  %5413 = vadd.xlane.f32.xlu1 %v8791_v30  ;;  %v13430_v13 = vld [vmem:[#allocation86_spill] sm:$0xff] }
 0x83a   : > { %8808 = vpow2.f32 %v5295_v60  ;;  %v5238_v20 = vsub.f32 %v13430_v13, %v5197_v3  ;;  %v5127_v3 = vpop.permute.xlu0 %5126 }
 0x83c   : > { %v12487_v24 = vpop.permute.xlu1 %5921 }
 0x83d   : > { %5385 = vadd.xlane.f32.xlu1 %v8795_v21 }
 0x83f   : > { %v8803_v2 = vpop.eup %8802 }
 0x840   : > { %v12492_v47 = vpop.eup %8804  ;;  %8000 = vmatprep.mubr.f32.mxu0 %v8803_v2  ;;  %v5112_v31 = vpop.permute.xlu1 %5111 }
 0x841   : > { %13428 = vst [vmem:[#allocation132_spill] sm:$0xff] %v12492_v47  ;;  %v5221_v33 = vsub.f32 %v13429_v38, %v5112_v31  ;;  %5417 = vadd.xlane.f32.xlu1 %v8799_v29  ;;  %8001 = vmatmul.mubr.f32.gmra.mrb[90].mxu0 %v12492_v47  ;;  %v5299_v29 = vmul.f32 1.442695, %v5238_v20  ;;  %v13434_v38 = vld [vmem:[#allocation85_spill] sm:$0xff] }
 0x843   : > { %v8807_v30 = vpop.eup %8806  ;;  %v5265_v5 = vmul.f32 1.442695, %v5221_v33  ;;  %v5224_v33 = vsub.f32 %v13434_v38, %v5127_v3  ;;  %v13438_v38 = vld [vmem:[#allocation94_spill] sm:$0xff] }
 0x844   : > { %v12499_v21 = vpop.eup %8808  ;;  %8040 = vmatprep.mubr.f32.mxu1 %v8807_v30  ;;  %v5192_v32 = vpop.permute.xlu1 %5191 }
 0x845   : > { %13431 = vst [vmem:[#allocation114_spill] sm:$0xff] %v12499_v21  ;;  %8810 = vpow2.f32 %v5265_v5  ;;  %v5237_v60 = vsub.f32 %v13432_v48, %v5192_v32  ;;  %5389 = vadd.xlane.f32.xlu1 %v8803_v2  ;;  %8041 = vmatmul.mubr.f32.gmra.mrb[90].mxu1 %v12499_v21  ;;  %v5207_v5 = vpop.permute.xlu0 %5206  ;;  %v5271_v32 = vmul.f32 1.442695, %v5224_v33  ;;  %v13437_v48 = vld [vmem:[#allocation89_spill] sm:$0xff] }
 0x846   : > { %8812 = vpow2.f32 %v5267_v59  ;;  %v13436_v59 = vld [vmem:[#allocation92_spill] sm:$0xff] }
 0x847   : > { %v5297_v63 = vmul.f32 1.442695, %v5237_v60  ;;  %v5240_v60 = vsub.f32 %v13437_v48, %v5207_v5  ;;  %v6139_v5 = vld [vmem:[#allocation4 + $0xe8] sm:$0xff] }
 0x848   : > { %v12503_v50 = vpop.permute.xlu1 %5851 }
 0x849   : > { %8814 = vpow2.f32 %v5297_v63  ;;  %5421 = vadd.xlane.f32.xlu1 %v8807_v30 }
 0x84a   : > { %8816 = vpow2.f32 %v5299_v29 }
 0x84c   : > { %v12505_v31 = vpop.permute.xlu1 %5931 }
 0x84d   : > { %13433 = vst [vmem:[#allocation133_spill] sm:$0xff] %v12505_v31 }
 0x84f   : > { %v8811_v13 = vpop.eup %8810 }
 0x850   : > { %v12508_v47 = vpop.eup %8812  ;;  %5393 = vadd.xlane.f32.xlu1 %v8811_v13  ;;  %8003 = vmatprep.mubr.f32.mxu0 %v8811_v13  ;;  %v5122_v2 = vpop.permute.xlu1 %5121  ;;  %v5303_v13 = vmul.f32 1.442695, %v5240_v60 }
 0x851   : > { %13435 = vst [vmem:[#allocation115_spill] sm:$0xff] %v12508_v47  ;;  %v5223_v20 = vsub.f32 %v13436_v59, %v5122_v2  ;;  %8004 = vmatmul.mubr.f32.gmra.mrb[92].mxu0 %v12508_v47  ;;  %v6138_v59 = vld [vmem:[#allocation4 + $0xe0] sm:$0xff] }
 0x853   : > { %v8815_v30 = vpop.eup %8814  ;;  %v5269_v29 = vmul.f32 1.442695, %v5223_v20  ;;  %v13439_v20 = vld [vmem:[#allocation96_spill] sm:$0xff] }
 0x854   : > { %v12513_v63 = vpop.eup %8816  ;;  %5425 = vadd.xlane.f32.xlu1 %v8815_v30  ;;  %8043 = vmatprep.mubr.f32.mxu1 %v8815_v30  ;;  %v5202_v3 = vpop.permute.xlu1 %5201  ;;  %v6395_v48 = vmul.f32 %v13439_v20, %v6139_v5  ;;  %v13446_v20 = vld [vmem:[#allocation100_spill] sm:$0xff] }
 0x855   : > { %8818 = vpow2.f32 %v5269_v29  ;;  %v5239_v21 = vsub.f32 %v13438_v38, %v5202_v3  ;;  %8044 = vmatmul.mubr.f32.gmra.mrb[92].mxu1 %v12513_v63  ;;  %v6140_v3 = vld [vmem:[#allocation4 + $0xf0] sm:$0xff] }
 0x856   : > { %8820 = vpow2.f32 %v5271_v32  ;;  %v13442_v38 = vld [vmem:[#allocation84_spill] sm:$0xff] }
 0x857   : > { %v5301_v2 = vmul.f32 1.442695, %v5239_v21 }
 0x858   : > { %v6349_v47 = vpop.permute.xlu1 %6348 }
 0x859   : > { %8822 = vpow2.f32 %v5301_v2  ;;  %v6394_v33 = vmul.f32 %v6349_v47, %v6138_v59  ;;  %v6141_v47 = vld [vmem:[#allocation4 + $0xf8] sm:$0xff]  ;;  %v13443_v59 = vld [vmem:[#allocation82_spill] sm:$0xff] }
 0x85a   : > { %8824 = vpow2.f32 %v5303_v13  ;;  %v6397_v13 = vmul.f32 %v13442_v38, %v6141_v47 }
 0x85b   : > { %6730 = vxpose.xlu0.b32.cont [13/16] (narrow) %v6394_v33, 64  ;;  %v13444_v33 = vld [vmem:[#allocation87_spill] sm:$0xff] }
 0x85c   : > { %v6359_v31 = vpop.permute.xlu1 %6358  ;;  %v13445_v5 = vsub.f32 %v13443_v59, %v13444_v33 }
 0x85d   : > { %v6396_v32 = vmul.f32 %v6359_v31, %v6140_v3 }
 0x85e   : > { %v5003_v31 = vmul.f32 1.442695, %v13445_v5  ;;  %v13453_v5 = vld [vmem:[#allocation105_spill] sm:$0xff] }
 0x85f   : > { %v8819_v30 = vpop.eup %8818  ;;  %6731 = vxpose.xlu0.b32.cont [14/16] (narrow) %v6395_v48, 64  ;;  %v13447_v48 = vld [vmem:[#allocation98_spill] sm:$0xff] }
 0x860   : > { %v12518_v29 = vpop.eup %8820  ;;  %5397 = vadd.xlane.f32.xlu1 %v8819_v30  ;;  %8006 = vmatprep.mubr.f32.mxu0 %v8819_v30  ;;  %v12525_v2 = vpop.permute.xlu1 %5861  ;;  %8826 = vpow2.f32 %v5003_v31  ;;  %v13448_v30 = vsub.f32 %v13446_v20, %v13447_v48  ;;  %v13454_v31 = vsub.f32 %v13453_v5, %v12182_v34  ;;  %v13457_v34 = vsub.f32 %v12205_v53, %v12215_v0 }
 0x861   : > { %13440 = vst [vmem:[#allocation134_spill] sm:$0xff] %v12518_v29  ;;  %8007 = vmatmul.mubr.f32.gmra.mrb[94].mxu0 %v12518_v29 }
 0x862   : > { %v5035_v3 = vmul.f32 1.442695, %v13448_v30  ;;  %v5011_v20 = vmul.f32 1.442695, %v13454_v31  ;;  %v13455_v30 = vld [vmem:[#allocation106_spill] sm:$0xff] }
 0x863   : > { %v8823_v21 = vpop.eup %8822  ;;  %6732 = vxpose.xlu0.b32.cont [15/16] (narrow) %v6396_v32, 64 }
 0x864   : > { %v12521_v60 = vpop.eup %8824  ;;  %5429 = vadd.xlane.f32.xlu1 %v8823_v21  ;;  %8046 = vmatprep.mubr.f32.mxu1 %v8823_v21  ;;  %v12533_v32 = vpop.permute.xlu1 %5941  ;;  %8828 = vpow2.f32 %v5035_v3  ;;  %v13449_v21 = vld [vmem:[#allocation97_spill] sm:$0xff] }
 0x865   : > { %13441 = vst [vmem:[#allocation116_spill] sm:$0xff] %v12521_v60  ;;  %8047 = vmatmul.mubr.f32.gmra.mrb[94].mxu1 %v12521_v60  ;;  %v13450_v47 = vsub.f32 %v13449_v21, %v12140_v9 }
 0x867   : > { %6733 = vxpose.xlu0.b32.end [16/16] (narrow) %v6397_v13, 64  ;;  %v5007_v38 = vmul.f32 1.442695, %v13450_v47  ;;  %v13451_v13 = vld [vmem:[#allocation91_spill] sm:$0xff]  ;;  %v5015_v47 = vmul.f32 1.442695, %v13457_v34 }
 0x868   : > { %v12538_v60 = vpop.permute.xlu1 %5871  ;;  %v13452_v29 = vsub.f32 %v13451_v13, %v12161_v61  ;;  %v13456_v61 = vsub.f32 %v13455_v30, %v12202_v41  ;;  %v13459_v41 = vsub.f32 %v12218_v44, %v12230_v28  ;;  %v5305_v44 = vld [vmem:[#allocation6] sm:$0xff] }
 0x869   : > { %8830 = vpow2.f32 %v5007_v38  ;;  %v5321_v34 = vld [vmem:[#allocation6 + $0x80] sm:$0xff] }
 0x86a   : > { %v5039_v59 = vmul.f32 1.442695, %v13452_v29  ;;  %v12543_v33 = vpop.eup %8826  ;;  %v5043_v29 = vmul.f32 1.442695, %v13456_v61  ;;  %v5047_v13 = vmul.f32 1.442695, %v13459_v41  ;;  %v5337_v61 = vmul.f32 %v12264_v7, %v5305_v44 }
 0x86c   : > { %8832 = vpow2.f32 %v5039_v59  ;;  %v12549_v48 = vpop.permute.xlu1 %5951 }
 0x86d   : > { %8834 = vpow2.f32 %v5011_v20 }
 0x86e   : > { %v12551_v9 = vpop.eup %8828  ;;  %8836 = vpow2.f32 %v5043_v29 }
 0x86f   : > { %8838 = vpow2.f32 %v5015_v47 }
 0x870   : > { %v12559_v21 = vpop.permute.xlu1 %5881  ;;  %8840 = vpow2.f32 %v5047_v13  ;;  %v5353_v13 = vmul.f32 %v12271_v45, %v5321_v34  ;;  %v5325_v34 = vld [vmem:[#allocation6 + $0xa0] sm:$0xff] }
 0x873   : > { %v12557_v3 = vpop.eup %8830 }
 0x874   : > { %v12571_v59 = vpop.permute.xlu1 %5961 }
 0x876   : > { %v12565_v38 = vpop.eup %8832 }
 0x877   : > { %13458 = vst [vmem:[#allocation135_spill] sm:$0xff] %v12565_v38  ;;  %v12573_v5 = vpop.eup %8834 }
 0x878   : > { %13460 = vst [vmem:[#allocation117_spill] sm:$0xff] %v12573_v5  ;;  %v12576_v31 = vpop.eup %8836  ;;  %v12578_v53 = vpop.permute.xlu1 %5891 }
 0x879   : > { %13461 = vst [vmem:[#allocation136_spill] sm:$0xff] %v12576_v31  ;;  %v12581_v0 = vpop.eup %8838 }
 0x87a   : > { %13462 = vst [vmem:[#allocation118_spill] sm:$0xff] %v12581_v0  ;;  %v12586_v20 = vpop.eup %8840 }
 0x87b   : > { %13463 = vst [vmem:[#allocation137_spill] sm:$0xff] %v12586_v20 }
 0x87c   : > { %v12584_v28 = vpop.permute.xlu1 %5971 }
 0x890   : > { %5866 = vperm.xlu0 %8393, %v12543_v33  }
 0x894   : > { %5946 = vperm.xlu0 %8393, %v12551_v9  }
 0x898   : > { %5876 = vperm.xlu0 %8393, %v12557_v3  }
 0x89c   : > { %5956 = vperm.xlu0 %8393, %v12565_v38  }
 0x8a0   : > { %5886 = vperm.xlu0 %8393, %v12573_v5  }
 0x8a4   : > { %5966 = vperm.xlu0 %8393, %v12576_v31   ;;  %v5323_v31 = vld [vmem:[#allocation6 + $0x90] sm:$0xff] }
 0x8a5   : > { %v5355_v7 = vmul.f32 %v12300_v37, %v5323_v31  ;;  %v5357_v37 = vmul.f32 %v12319_v18, %v5325_v34 }
 0x8a8   : > { %5896 = vperm.xlu0 %8393, %v12581_v0  }
 0x8ab   : > { %v6734_v30 = vpop.trf.xlu0 }
 0x8ac   : > { %5976 = vperm.xlu0 %8393, %v12586_v20   ;;  %6758 = vst [vmem:[%s12274_s13 + $0x40] sm:$0xff] %v6734_v30  ;;  %v5309_v30 = vld [vmem:[#allocation6 + $0x20] sm:$0xff] }
 0x8ad   : > { %v5341_v45 = vmul.f32 %v12312_v22, %v5309_v30 }
 0x8ae   : > { %v5370_v29 = vpop.xlane.xlu1 %5369 }
 0x8af   : > { %v5433_v47 = vadd.f32 %v5370_v29, %v5337_v61  ;;  %v6735_v41 = vpop.trf.xlu0 }
 0x8b0   : > { %6759 = vst [vmem:[%s12274_s13 + $0x48] sm:$0xff] %v6735_v41  ;;  %v5311_v41 = vld [vmem:[#allocation6 + $0x30] sm:$0xff] }
 0x8b1   : > { %5465 = vst.msk [vmem:[#allocation6] sm:$0xff] %vm715_vm1, %v5433_v47  ;;  %v5343_v22 = vmul.f32 %v12330_v10, %v5311_v41 }
 0x8b2   : > { %v5402_v0 = vpop.xlane.xlu1 %5401 }
 0x8b3   : > { %v5449_v5 = vadd.f32 %v5402_v0, %v5353_v13  ;;  %v6736_v38 = vpop.trf.xlu0 }
 0x8b4   : > { %6760 = vst [vmem:[%s12274_s13 + $0x50] sm:$0xff] %v6736_v38 }
 0x8b5   : > { %5481 = vst.msk [vmem:[#allocation6 + $0x80] sm:$0xff] %vm715_vm1, %v5449_v5 }
 0x8b6   : > { %v5406_v44 = vpop.xlane.xlu1 %5405 }
 0x8b7   : > { %v5451_v61 = vadd.f32 %v5406_v44, %v5355_v7  ;;  %v6737_v29 = vpop.trf.xlu0  ;;  %v5327_v44 = vld [vmem:[#allocation6 + $0xb0] sm:$0xff] }
 0x8b8   : > { %v6430_v20 = vld [vmem:[#allocation6] sm:$0xff]  ;;  %6761 = vst [vmem:[%s12274_s13 + $0x58] sm:$0xff] %v6737_v29  ;;  %v5359_v18 = vmul.f32 %v12334_v15, %v5327_v44 }
 0x8b9   : > { %8842 = vrcp.f32 %v6430_v20  ;;  %5483 = vst.msk [vmem:[#allocation6 + $0x90] sm:$0xff] %vm715_vm1, %v5451_v61 }
 0x8ba   : > { %v5378_v0 = vpop.xlane.xlu1 %5377 }
 0x8bb   : > { %v5437_v38 = vadd.f32 %v5378_v0, %v5341_v45  ;;  %v6738_v47 = vpop.trf.xlu0  ;;  %v5313_v0 = vld [vmem:[#allocation6 + $0x40] sm:$0xff] }
 0x8bc   : > { %v6446_v5 = vld [vmem:[#allocation6 + $0x80] sm:$0xff]  ;;  %6762 = vst [vmem:[%s12274_s13 + $0x60] sm:$0xff] %v6738_v47  ;;  %v5345_v10 = vmul.f32 %v12356_v51, %v5313_v0 }
 0x8bd   : > { %8844 = vrcp.f32 %v6446_v5  ;;  %5469 = vst.msk [vmem:[#allocation6 + $0x20] sm:$0xff] %vm715_vm1, %v5437_v38 }
 0x8be   : > { %v5410_v31 = vpop.xlane.xlu1 %5409 }
 0x8bf   : > { %v5453_v20 = vadd.f32 %v5410_v31, %v5357_v37  ;;  %v6739_v13 = vpop.trf.xlu0  ;;  %v5329_v37 = vld [vmem:[#allocation6 + $0xc0] sm:$0xff] }
 0x8c0   : > { %6763 = vst [vmem:[%s12274_s13 + $0x68] sm:$0xff] %v6739_v13  ;;  %v5361_v15 = vmul.f32 %v12364_v16, %v5329_v37  ;;  %v5317_v37 = vld [vmem:[#allocation6 + $0x60] sm:$0xff] }
 0x8c1   : > { %5485 = vst.msk [vmem:[#allocation6 + $0xa0] sm:$0xff] %vm715_vm1, %v5453_v20  ;;  %v5315_v20 = vld [vmem:[#allocation6 + $0x50] sm:$0xff] }
 0x8c2   : > { %v5382_v7 = vpop.xlane.xlu1 %5381  ;;  %v5347_v51 = vmul.f32 %v12369_v40, %v5315_v20 }
 0x8c3   : > { %v8843_v30 = vpop.eup %8842  ;;  %v5439_v61 = vadd.f32 %v5382_v7, %v5343_v22  ;;  %v6740_v29 = vpop.trf.xlu0  ;;  %v5788_v22 = vld [vmem:[#allocation7 + $0x8] sm:$0xff]  ;;  %v5787_v7 = vld [vmem:[#allocation7] sm:$0xff] }
 0x8c4   : > { %6496 = vperm.xlu1 %8392, %v8843_v30   ;;  %6764 = vst [vmem:[%s12274_s13 + $0x70] sm:$0xff] %v6740_v29  ;;  %v5331_v30 = vld [vmem:[#allocation6 + $0xd0] sm:$0xff]  ;;  %v5804_v29 = vld [vmem:[#allocation7 + $0x88] sm:$0xff]  ;;  %v5979_v16 = vmul.f32 %v12445_v58, %v5787_v7 }
 0x8c5   : > { %5471 = vst.msk [vmem:[#allocation6 + $0x30] sm:$0xff] %vm715_vm1, %v5439_v61  ;;  %v5980_v61 = vmul.f32 %v12397_v25, %v5788_v22 }
 0x8c6   : > { %v5414_v45 = vpop.xlane.xlu1 %5413 }
 0x8c7   : > { %v8845_v34 = vpop.eup %8844  ;;  %v5455_v38 = vadd.f32 %v5414_v45, %v5359_v18  ;;  %v6741_v47 = vpop.trf.xlu0  ;;  %v5803_v45 = vld [vmem:[#allocation7 + $0x80] sm:$0xff] }
 0x8c8   : > { %6576 = vperm.xlu1 %8392, %v8845_v34   ;;  %6765 = vst [vmem:[%s12274_s13 + $0x78] sm:$0xff] %v6741_v47  ;;  %v5363_v34 = vmul.f32 %v12376_v42, %v5331_v30  ;;  %v5996_v47 = vmul.f32 %v12410_v11, %v5804_v29  ;;  %v5790_v11 = vld [vmem:[#allocation7 + $0x18] sm:$0xff] }
 0x8c9   : > { %5487 = vst.msk [vmem:[#allocation6 + $0xb0] sm:$0xff] %vm715_vm1, %v5455_v38  ;;  %v5982_v20 = vmul.f32 %v12464_v39, %v5790_v11 }
 0x8ca   : > { %v5386_v5 = vpop.xlane.xlu1 %5385 }
 0x8cb   : > { %v5441_v31 = vadd.f32 %v5386_v5, %v5345_v10  ;;  %5371 = vadd.xlane.f32.xlu0 %v12407_v8 }
 0x8cd   : > { %5473 = vst.msk [vmem:[#allocation6 + $0x40] sm:$0xff] %vm715_vm1, %v5441_v31  ;;  %v5789_v31 = vld [vmem:[#allocation7 + $0x10] sm:$0xff] }
 0x8ce   : > { %v5418_v41 = vpop.xlane.xlu1 %5417  ;;  %v5981_v22 = vmul.f32 %v12469_v36, %v5789_v31  ;;  %v5791_v36 = vld [vmem:[#allocation7 + $0x20] sm:$0xff]  ;;  %v5810_v31 = vld [vmem:[#allocation7 + $0xb8] sm:$0xff] }
 0x8cf   : > { %v5457_v13 = vadd.f32 %v5418_v41, %v5361_v15  ;;  %5403 = vadd.xlane.f32.xlu0 %v12418_v57  ;;  %v5333_v15 = vld [vmem:[#allocation6 + $0xe0] sm:$0xff] }
 0x8d1   : > { %5489 = vst.msk [vmem:[#allocation6 + $0xc0] sm:$0xff] %vm715_vm1, %v5457_v13  ;;  %v5806_v13 = vld [vmem:[#allocation7 + $0x98] sm:$0xff] }
 0x8d2   : > { %v5390_v44 = vpop.xlane.xlu1 %5389  ;;  %v5998_v29 = vmul.f32 %v12441_v23, %v5806_v13  ;;  %v5808_v23 = vld [vmem:[#allocation7 + $0xa8] sm:$0xff] }
 0x8d3   : > { %v5443_v8 = vadd.f32 %v5390_v44, %v5347_v51  ;;  %5375 = vadd.xlane.f32.xlu0 %v12430_v27  ;;  %v5995_v27 = vmul.f32 %v12450_v62, %v5803_v45  ;;  %v5805_v51 = vld [vmem:[#allocation7 + $0x90] sm:$0xff] }
 0x8d4   : > { %v7987_v18 = vpop.f32.mrb[80].mxu0  ;;  %v5997_v39 = vmul.f32 %v12475_v56, %v5805_v51 }
 0x8d5   : > { %5475 = vst.msk [vmem:[#allocation6 + $0x50] sm:$0xff] %vm715_vm1, %v5443_v8  ;;  %v6012_v57 = vadd.f32 %v7987_v18, %v5980_v61  ;;  %v5563_v0 = vpop.f32.mrb[81].mxu0 }
 0x8d6   : > { %v6011_v38 = vadd.f32 %v5979_v16, %v5563_v0  ;;  %v5422_v40 = vpop.xlane.xlu1 %5421  ;;  %v5807_v0 = vld [vmem:[#allocation7 + $0xa0] sm:$0xff] }
 0x8d7   : > { %6044 = vst.msk [vmem:[#allocation7 + $0x8] sm:$0xff] %vm780_vm0, %v6012_v57  ;;  %v5459_v25 = vadd.f32 %v5422_v40, %v5363_v34  ;;  %5407 = vadd.xlane.f32.xlu0 %v12437_v46  ;;  %v5349_v46 = vmul.f32 %v12382_v14, %v5317_v37  ;;  %v5319_v40 = vld [vmem:[#allocation6 + $0x70] sm:$0xff] }
 0x8d8   : > { %6043 = vst.msk [vmem:[#allocation7] sm:$0xff] %vm780_vm0, %v6011_v38  ;;  %v8027_v58 = vpop.f32.mrb[80].mxu1 }
 0x8d9   : > { %5491 = vst.msk [vmem:[#allocation6 + $0xd0] sm:$0xff] %vm715_vm1, %v5459_v25  ;;  %v6028_v10 = vadd.f32 %v8027_v58, %v5996_v47  ;;  %v5708_v5 = vpop.f32.mrb[81].mxu1  ;;  %v6000_v25 = vmul.f32 %v12471_v43, %v5808_v23  ;;  %v5793_v58 = vld [vmem:[#allocation7 + $0x30] sm:$0xff] }
 0x8da   : > { %v6027_v42 = vadd.f32 %v5995_v27, %v5708_v5  ;;  %v5351_v27 = vmul.f32 %v12393_v17, %v5319_v40  ;;  %v5812_v40 = vld [vmem:[#allocation7 + $0xc8] sm:$0xff] }
 0x8db   : > { %6060 = vst.msk [vmem:[#allocation7 + $0x88] sm:$0xff] %vm780_vm0, %v6028_v10  ;;  %5373 = vadd.xlane.f32.xlu0 %v12428_v4  ;;  %v5365_v4 = vmul.f32 %v12387_v12, %v5333_v15 }
 0x8dc   : > { %6059 = vst.msk [vmem:[#allocation7 + $0x80] sm:$0xff] %vm780_vm0, %v6027_v42  ;;  %v5335_v42 = vld [vmem:[#allocation6 + $0xf0] sm:$0xff] }
 0x8dd   : > { %v5394_v62 = vpop.xlane.xlu1 %5393 }
 0x8de   : > { %v5445_v41 = vadd.f32 %v5394_v62, %v5349_v46  ;;  %v13465_v62 = vld [vmem:[#allocation131_spill] sm:$0xff] }
 0x8df   : > { %5379 = vadd.xlane.f32.xlu0 %v12443_v26  ;;  %v5792_v26 = vld [vmem:[#allocation7 + $0x28] sm:$0xff]  ;;  %v5367_v15 = vmul.f32 %v13465_v62, %v5335_v42 }
 0x8e0   : > { %5477 = vst.msk [vmem:[#allocation6 + $0x60] sm:$0xff] %vm715_vm1, %v5445_v41  ;;  %v7990_v7 = vpop.f32.mrb[82].mxu0  ;;  %v5984_v57 = vmul.f32 %v12466_v52, %v5792_v26  ;;  %v5794_v52 = vld [vmem:[#allocation7 + $0x38] sm:$0xff]  ;;  %v5809_v41 = vld [vmem:[#allocation7 + $0xb0] sm:$0xff] }
 0x8e1   : > { %v6014_v44 = vadd.f32 %v7990_v7, %v5982_v20  ;;  %v5573_v30 = vpop.f32.mrb[83].mxu0  ;;  %v5426_v14 = vpop.xlane.xlu1 %5425  ;;  %v5986_v43 = vmul.f32 %v12489_v19, %v5794_v52 }
 0x8e2   : > { %v6013_v61 = vadd.f32 %v5981_v22, %v5573_v30  ;;  %v5461_v8 = vadd.f32 %v5426_v14, %v5365_v4  ;;  %v6002_v4 = vmul.f32 %v12497_v54, %v5810_v31  ;;  %v13468_v54 = vld [vmem:[#allocation114_spill] sm:$0xff] }
 0x8e3   : > { %6046 = vst.msk [vmem:[#allocation7 + $0x18] sm:$0xff] %vm780_vm0, %v6014_v44  ;;  %5411 = vadd.xlane.f32.xlu0 %v12448_v1  ;;  %v5983_v1 = vmul.f32 %v12485_v49, %v5791_v36 }
 0x8e4   : > { %6045 = vst.msk [vmem:[#allocation7 + $0x10] sm:$0xff] %vm780_vm0, %v6013_v61  ;;  %v8030_v12 = vpop.f32.mrb[82].mxu1 }
 0x8e5   : > { %5493 = vst.msk [vmem:[#allocation6 + $0xe0] sm:$0xff] %vm715_vm1, %v5461_v8  ;;  %v6030_v16 = vadd.f32 %v8030_v12, %v5998_v29  ;;  %v5718_v18 = vpop.f32.mrb[83].mxu1  ;;  %v13467_v8 = vld [vmem:[#allocation132_spill] sm:$0xff]  ;;  %v5795_v29 = vld [vmem:[#allocation7 + $0x40] sm:$0xff] }
 0x8e6   : > { %v6029_v45 = vadd.f32 %v5997_v39, %v5718_v18  ;;  %v5987_v26 = vmul.f32 %v12525_v2, %v5795_v29  ;;  %v5811_v12 = vld [vmem:[#allocation7 + $0xc0] sm:$0xff]  ;;  %v5796_v2 = vld [vmem:[#allocation7 + $0x48] sm:$0xff]  ;;  %v5802_v29 = vld [vmem:[#allocation7 + $0x78] sm:$0xff] }
 0x8e7   : > { %6062 = vst.msk [vmem:[#allocation7 + $0x98] sm:$0xff] %vm780_vm0, %v6030_v16  ;;  %5383 = vadd.xlane.f32.xlu0 %v12454_v6  ;;  %v5999_v6 = vmul.f32 %v12487_v24, %v5807_v0  ;;  %v5985_v24 = vmul.f32 %v12503_v50, %v5793_v58  ;;  %v13466_v50 = vld [vmem:[#allocation133_spill] sm:$0xff]  ;;  %v6003_v18 = vmul.f32 %v12533_v32, %v5811_v12 }
 0x8e8   : > { %6061 = vst.msk [vmem:[#allocation7 + $0x90] sm:$0xff] %vm780_vm0, %v6029_v45  ;;  %v7993_v56 = vpop.f32.mrb[84].mxu0  ;;  %v6001_v51 = vmul.f32 %v13466_v50, %v5809_v41  ;;  %v5818_v12 = vld [vmem:[#allocation7 + $0xf8] sm:$0xff] }
 0x8e9   : > { %v6016_v34 = vadd.f32 %v7993_v56, %v5984_v57  ;;  %v5583_v38 = vpop.f32.mrb[85].mxu0  ;;  %v13471_v56 = vld [vmem:[#allocation116_spill] sm:$0xff] }
 0x8ea   : > { %v6015_v47 = vadd.f32 %v5983_v1, %v5583_v38  ;;  %v13470_v1 = vld [vmem:[#allocation134_spill] sm:$0xff]  ;;  %v5797_v38 = vld [vmem:[#allocation7 + $0x50] sm:$0xff] }
 0x8eb   : > { %6048 = vst.msk [vmem:[#allocation7 + $0x28] sm:$0xff] %vm780_vm0, %v6016_v34  ;;  %5415 = vadd.xlane.f32.xlu0 %v12459_v35  ;;  %v13464_v35 = vld [vmem:[#allocation113_spill] sm:$0xff]  ;;  %v5989_v32 = vmul.f32 %v12538_v60, %v5797_v38 }
 0x8ec   : > { %6047 = vst.msk [vmem:[#allocation7 + $0x20] sm:$0xff] %vm780_vm0, %v6015_v47  ;;  %v8033_v49 = vpop.f32.mrb[84].mxu1  ;;  %v5814_v60 = vld [vmem:[#allocation7 + $0xd8] sm:$0xff] }
 0x8ed   : > { %v6032_v10 = vadd.f32 %v8033_v49, %v6000_v25  ;;  %v5728_v5 = vpop.f32.mrb[85].mxu1  ;;  %v5398_v37 = vpop.xlane.xlu1 %5397  ;;  %v13472_v38 = vld [vmem:[#allocation93_spill] sm:$0xff] }
 0x8ee   : > { %v6031_v11 = vadd.f32 %v5999_v6, %v5728_v5  ;;  %v5447_v46 = vadd.f32 %v5398_v37, %v5351_v27  ;;  %v5813_v6 = vld [vmem:[#allocation7 + $0xd0] sm:$0xff]  ;;  %v5798_v27 = vld [vmem:[#allocation7 + $0x58] sm:$0xff] }
 0x8ef   : > { %6064 = vst.msk [vmem:[#allocation7 + $0xa8] sm:$0xff] %vm780_vm0, %v6032_v10  ;;  %5387 = vadd.xlane.f32.xlu0 %v13464_v35  ;;  %v6005_v37 = vmul.f32 %v12549_v48, %v5813_v6  ;;  %v5800_v48 = vld [vmem:[#allocation7 + $0x68] sm:$0xff]  ;;  %v5308_v6 = vld [vmem:[#allocation6 + $0x18] sm:$0xff] }
 0x8f0   : > { %6063 = vst.msk [vmem:[#allocation7 + $0xa0] sm:$0xff] %vm780_vm0, %v6031_v11  ;;  %v7996_v17 = vpop.f32.mrb[86].mxu0 }
 0x8f1   : > { %5479 = vst.msk [vmem:[#allocation6 + $0x70] sm:$0xff] %vm715_vm1, %v5447_v46  ;;  %v6018_v20 = vadd.f32 %v7996_v17, %v5986_v43  ;;  %v5593_v13 = vpop.f32.mrb[87].mxu0  ;;  %v5430_v22 = vpop.xlane.xlu1 %5429 }
 0x8f2   : > { %v6017_v7 = vadd.f32 %v5985_v24, %v5593_v13  ;;  %v5463_v19 = vadd.f32 %v5430_v22, %v5367_v15  ;;  %v5799_v15 = vld [vmem:[#allocation7 + $0x60] sm:$0xff]  ;;  %v5816_v13 = vld [vmem:[#allocation7 + $0xe8] sm:$0xff] }
 0x8f3   : > { %6050 = vst.msk [vmem:[#allocation7 + $0x38] sm:$0xff] %vm780_vm0, %v6018_v20  ;;  %5419 = vadd.xlane.f32.xlu0 %v12479_v55  ;;  %v13469_v55 = vld [vmem:[#allocation115_spill] sm:$0xff]  ;;  %v5991_v20 = vmul.f32 %v12559_v21, %v5799_v15 }
 0x8f4   : > { %6049 = vst.msk [vmem:[#allocation7 + $0x30] sm:$0xff] %vm780_vm0, %v6017_v7  ;;  %v8036_v44 = vpop.f32.mrb[86].mxu1 }
 0x8f5   : > { %5495 = vst.msk [vmem:[#allocation6 + $0xf0] sm:$0xff] %vm715_vm1, %v5463_v19  ;;  %v6034_v30 = vadd.f32 %v8036_v44, %v6002_v4  ;;  %v5738_v14 = vpop.f32.mrb[87].mxu1  ;;  %v5815_v19 = vld [vmem:[#allocation7 + $0xe0] sm:$0xff] }
 0x8f6   : > { %v6033_v61 = vadd.f32 %v6001_v51, %v5738_v14 }
 0x8f7   : > { %6066 = vst.msk [vmem:[#allocation7 + $0xb8] sm:$0xff] %vm780_vm0, %v6034_v30  ;;  %5391 = vadd.xlane.f32.xlu0 %v13467_v8  ;;  %v6007_v30 = vmul.f32 %v12571_v59, %v5815_v19  ;;  %v5817_v59 = vld [vmem:[#allocation7 + $0xf0] sm:$0xff] }
 0x8f8   : > { %6065 = vst.msk [vmem:[#allocation7 + $0xb0] sm:$0xff] %vm780_vm0, %v6033_v61 }
 0x8fb   : > { %5423 = vadd.xlane.f32.xlu0 %v13468_v54 }
 0x8ff   : > { %5395 = vadd.xlane.f32.xlu0 %v13469_v55  ;;  %v5801_v55 = vld [vmem:[#allocation7 + $0x70] sm:$0xff] }
 0x900   : > { %v7999_v39 = vpop.f32.mrb[88].mxu0 }
 0x901   : > { %v5603_v36 = vpop.f32.mrb[89].mxu0 }
 0x902   : > { %v6019_v16 = vadd.f32 %v5987_v26, %v5603_v36 }
 0x903   : > { %5427 = vadd.xlane.f32.xlu0 %v12513_v63 }
 0x904   : > { %6051 = vst.msk [vmem:[#allocation7 + $0x40] sm:$0xff] %vm780_vm0, %v6019_v16  ;;  %v8039_v45 = vpop.f32.mrb[88].mxu1 }
 0x905   : > { %v5748_v57 = vpop.f32.mrb[89].mxu1 }
 0x906   : > { %v6035_v23 = vadd.f32 %v6003_v18, %v5748_v57 }
 0x907   : > { %5399 = vadd.xlane.f32.xlu0 %v13470_v1  ;;  %v6009_v1 = vmul.f32 %v12584_v28, %v5817_v59  ;;  %v6434_v59 = vld [vmem:[#allocation6 + $0x20] sm:$0xff] }
 0x908   : > { %6067 = vst.msk [vmem:[#allocation7 + $0xc0] sm:$0xff] %vm780_vm0, %v6035_v23 }
 0x90b   : > { %5431 = vadd.xlane.f32.xlu0 %v13471_v56 }
 0x90f   : > { %v5867_v0 = vpop.permute.xlu0 %5866 }
 0x910   : > { %v5988_v34 = vmul.f32 %v5867_v0, %v5796_v2 }
 0x912   : > { %v6020_v47 = vadd.f32 %v7999_v39, %v5988_v34  ;;  %v5993_v39 = vmul.f32 %v12578_v53, %v5801_v55  ;;  %v5306_v53 = vld [vmem:[#allocation6 + $0x8] sm:$0xff] }
 0x913   : > { %v5947_v63 = vpop.permute.xlu0 %5946 }
 0x914   : > { %6052 = vst.msk [vmem:[#allocation7 + $0x48] sm:$0xff] %vm780_vm0, %v6020_v47  ;;  %v6004_v25 = vmul.f32 %v5947_v63, %v5812_v40  ;;  %v8002_v52 = vpop.f32.mrb[90].mxu0  ;;  %v5338_v40 = vmul.f32 %v13472_v38, %v5306_v53  ;;  %v5322_v63 = vld [vmem:[#allocation6 + $0x88] sm:$0xff] }
 0x915   : > { %v5613_v49 = vpop.f32.mrb[91].mxu0  ;;  %v5330_v38 = vld [vmem:[#allocation6 + $0xc8] sm:$0xff] }
 0x916   : > { %v6036_v58 = vadd.f32 %v8039_v45, %v6004_v25  ;;  %v6021_v10 = vadd.f32 %v5989_v32, %v5613_v49  ;;  %v13473_v25 = vld [vmem:[#allocation101_spill] sm:$0xff] }
 0x917   : > { %v5877_v5 = vpop.permute.xlu0 %5876  ;;  %v5354_v28 = vmul.f32 %v13473_v25, %v5322_v63  ;;  %v5362_v25 = vmul.f32 %v12551_v9, %v5330_v38  ;;  %v6458_v38 = vld [vmem:[#allocation6 + $0xe0] sm:$0xff] }
 0x918   : > { %6068 = vst.msk [vmem:[#allocation7 + $0xc8] sm:$0xff] %vm780_vm0, %v6036_v58  ;;  %6053 = vst.msk [vmem:[#allocation7 + $0x50] sm:$0xff] %vm780_vm0, %v6021_v10  ;;  %v5990_v42 = vmul.f32 %v5877_v5, %v5798_v27  ;;  %v8042_v11 = vpop.f32.mrb[90].mxu1  ;;  %v13474_v27 = vld [vmem:[#allocation107_spill] sm:$0xff]  ;;  %v5324_v5 = vld [vmem:[#allocation6 + $0x98] sm:$0xff] }
 0x919   : > { %v5758_v46 = vpop.f32.mrb[91].mxu1  ;;  %v5340_v58 = vmul.f32 %v13474_v27, %v5308_v6  ;;  %v5316_v6 = vld [vmem:[#allocation6 + $0x58] sm:$0xff] }
 0x91a   : > { %v6022_v43 = vadd.f32 %v8002_v52, %v5990_v42  ;;  %v6037_v35 = vadd.f32 %v6005_v37, %v5758_v46 }
 0x91b   : > { %v5957_v31 = vpop.permute.xlu0 %5956 }
 0x91c   : > { %6054 = vst.msk [vmem:[#allocation7 + $0x58] sm:$0xff] %vm780_vm0, %v6022_v43  ;;  %6069 = vst.msk [vmem:[#allocation7 + $0xd0] sm:$0xff] %vm780_vm0, %v6037_v35  ;;  %v6006_v24 = vmul.f32 %v5957_v31, %v5814_v60  ;;  %v5307_v43 = vld [vmem:[#allocation6 + $0x10] sm:$0xff] }
 0x91e   : > { %v6038_v17 = vadd.f32 %v8042_v11, %v6006_v24  ;;  %v13475_v11 = vld [vmem:[#allocation99_spill] sm:$0xff]  ;;  %v13476_v24 = vld [vmem:[#allocation112_spill] sm:$0xff] }
 0x91f   : > { %v5887_v62 = vpop.permute.xlu0 %5886  ;;  %v5356_v46 = vmul.f32 %v13475_v11, %v5324_v5 }
 0x920   : > { %6070 = vst.msk [vmem:[#allocation7 + $0xd8] sm:$0xff] %vm780_vm0, %v6038_v17  ;;  %v5992_v41 = vmul.f32 %v5887_v62, %v5800_v48  ;;  %v5339_v17 = vmul.f32 %v13476_v24, %v5307_v43  ;;  %v5310_v48 = vld [vmem:[#allocation6 + $0x28] sm:$0xff] }
 0x921   : > { %v13481_v43 = vld [vmem:[#allocation135_spill] sm:$0xff] }
 0x923   : > { %v5967_v22 = vpop.permute.xlu0 %5966 }
 0x924   : > { %v8005_v7 = vpop.f32.mrb[92].mxu0  ;;  %v6008_v44 = vmul.f32 %v5967_v22, %v5816_v13 }
 0x925   : > { %v6024_v4 = vadd.f32 %v8005_v7, %v5992_v41  ;;  %v5623_v50 = vpop.f32.mrb[93].mxu0  ;;  %v5326_v7 = vld [vmem:[#allocation6 + $0xa8] sm:$0xff] }
 0x926   : > { %v6023_v51 = vadd.f32 %v5991_v20, %v5623_v50  ;;  %v13477_v20 = vld [vmem:[#allocation108_spill] sm:$0xff] }
 0x927   : > { %6056 = vst.msk [vmem:[#allocation7 + $0x68] sm:$0xff] %vm780_vm0, %v6024_v4  ;;  %v5897_v21 = vpop.permute.xlu0 %5896  ;;  %v5342_v13 = vmul.f32 %v13477_v20, %v5310_v48 }
 0x928   : > { %6055 = vst.msk [vmem:[#allocation7 + $0x60] sm:$0xff] %vm780_vm0, %v6023_v51  ;;  %v8045_v14 = vpop.f32.mrb[92].mxu1  ;;  %v5994_v26 = vmul.f32 %v5897_v21, %v5802_v29  ;;  %v13478_v51 = vld [vmem:[#allocation104_spill] sm:$0xff]  ;;  %v13479_v29 = vld [vmem:[#allocation110_spill] sm:$0xff] }
 0x929   : > { %v6040_v61 = vadd.f32 %v8045_v14, %v6008_v44  ;;  %v5768_v8 = vpop.f32.mrb[93].mxu1  ;;  %v5358_v44 = vmul.f32 %v13478_v51, %v5326_v7  ;;  %v5312_v14 = vld [vmem:[#allocation6 + $0x38] sm:$0xff]  ;;  %v6448_v21 = vld [vmem:[#allocation6 + $0x90] sm:$0xff]  ;;  %v5334_v7 = vld [vmem:[#allocation6 + $0xe8] sm:$0xff] }
 0x92a   : > { %v6039_v54 = vadd.f32 %v6007_v30, %v5768_v8  ;;  %v5344_v55 = vmul.f32 %v13479_v29, %v5312_v14  ;;  %v6440_v51 = vld [vmem:[#allocation6 + $0x50] sm:$0xff] }
 0x92b   : > { %6072 = vst.msk [vmem:[#allocation7 + $0xe8] sm:$0xff] %vm780_vm0, %v6040_v61  ;;  %v5977_v36 = vpop.permute.xlu0 %5976 }
 0x92c   : > { %6071 = vst.msk [vmem:[#allocation7 + $0xe0] sm:$0xff] %vm780_vm0, %v6039_v54  ;;  %v6010_v23 = vmul.f32 %v5977_v36, %v5818_v12 }
 0x934   : > { %v8008_v16 = vpop.f32.mrb[94].mxu0 }
 0x935   : > { %v6026_v18 = vadd.f32 %v8008_v16, %v5994_v26  ;;  %v5633_v45 = vpop.f32.mrb[95].mxu0 }
 0x936   : > { %v6025_v57 = vadd.f32 %v5993_v39, %v5633_v45  ;;  %v5328_v39 = vld [vmem:[#allocation6 + $0xb8] sm:$0xff] }
 0x937   : > { %6058 = vst.msk [vmem:[#allocation7 + $0x78] sm:$0xff] %vm780_vm0, %v6026_v18  ;;  %v13480_v18 = vld [vmem:[#allocation102_spill] sm:$0xff] }
 0x938   : > { %6057 = vst.msk [vmem:[#allocation7 + $0x70] sm:$0xff] %vm780_vm0, %v6025_v57  ;;  %v8048_v56 = vpop.f32.mrb[94].mxu1  ;;  %v5360_v45 = vmul.f32 %v13480_v18, %v5328_v39 }
 0x939   : > { %v6042_v2 = vadd.f32 %v8048_v56, %v6010_v23  ;;  %v5778_v0 = vpop.f32.mrb[95].mxu1  ;;  %v5314_v23 = vld [vmem:[#allocation6 + $0x48] sm:$0xff] }
 0x93a   : > { %v6041_v34 = vadd.f32 %v6009_v1, %v5778_v0  ;;  %v6450_v0 = vld [vmem:[#allocation6 + $0xa0] sm:$0xff] }
 0x93b   : > { %6074 = vst.msk [vmem:[#allocation7 + $0xf8] sm:$0xff] %vm780_vm0, %v6042_v2 }
 0x93c   : > { %6073 = vst.msk [vmem:[#allocation7 + $0xf0] sm:$0xff] %vm780_vm0, %v6041_v34  ;;  %v5346_v34 = vmul.f32 %v12543_v33, %v5314_v23  ;;  %v13485_v23 = vld [vmem:[#allocation137_spill] sm:$0xff] }
 0x958   : > { %v5372_v47 = vpop.xlane.xlu0 %5371 }
 0x959   : > { %v5434_v32 = vadd.f32 %v5372_v47, %v5338_v40 }
 0x95b   : > { %5466 = vst.msk [vmem:[#allocation6 + $0x8] sm:$0xff] %vm715_vm1, %v5434_v32  ;;  %v6436_v32 = vld [vmem:[#allocation6 + $0x30] sm:$0xff] }
 0x95c   : > { %v5404_v52 = vpop.xlane.xlu0 %5403 }
 0x95d   : > { %v5450_v49 = vadd.f32 %v5404_v52, %v5354_v28 }
 0x95f   : > { %5482 = vst.msk [vmem:[#allocation6 + $0x88] sm:$0xff] %vm715_vm1, %v5450_v49 }
 0x960   : > { %v5376_v10 = vpop.xlane.xlu0 %5375 }
 0x961   : > { %v5436_v37 = vadd.f32 %v5376_v10, %v5340_v58  ;;  %v6452_v58 = vld [vmem:[#allocation6 + $0xb0] sm:$0xff]  ;;  %v5348_v10 = vmul.f32 %v12557_v3, %v5316_v6 }
 0x962   : > { %v6431_v42 = vld [vmem:[#allocation6 + $0x8] sm:$0xff] }
 0x963   : > { %8846 = vrcp.f32 %v6431_v42  ;;  %5468 = vst.msk [vmem:[#allocation6 + $0x18] sm:$0xff] %vm715_vm1, %v5436_v37  ;;  %v5332_v42 = vld [vmem:[#allocation6 + $0xd8] sm:$0xff] }
 0x964   : > { %v5408_v60 = vpop.xlane.xlu0 %5407 }
 0x965   : > { %v5452_v35 = vadd.f32 %v5408_v60, %v5356_v46  ;;  %v6438_v60 = vld [vmem:[#allocation6 + $0x40] sm:$0xff] }
 0x966   : > { %v6447_v31 = vld [vmem:[#allocation6 + $0x88] sm:$0xff] }
 0x967   : > { %8848 = vrcp.f32 %v6447_v31  ;;  %5484 = vst.msk [vmem:[#allocation6 + $0x98] sm:$0xff] %vm715_vm1, %v5452_v35  ;;  %v5364_v35 = vmul.f32 %v13481_v43, %v5332_v42  ;;  %v6497_v42 = vpop.permute.xlu1 %6496 }
 0x968   : > { %v5374_v62 = vpop.xlane.xlu0 %5373 }
 0x969   : > { %v5435_v15 = vadd.f32 %v5374_v62, %v5339_v17  ;;  %v5318_v17 = vld [vmem:[#allocation6 + $0x68] sm:$0xff] }
 0x96a   : > { %v6433_v41 = vld [vmem:[#allocation6 + $0x18] sm:$0xff] }
 0x96b   : > { %8850 = vrcp.f32 %v6433_v41  ;;  %5467 = vst.msk [vmem:[#allocation6 + $0x10] sm:$0xff] %vm715_vm1, %v5435_v15  ;;  %v6454_v15 = vld [vmem:[#allocation6 + $0xc0] sm:$0xff]  ;;  %v13482_v41 = vld [vmem:[#allocation117_spill] sm:$0xff] }
 0x96c   : > { %v5380_v22 = vpop.xlane.xlu0 %5379  ;;  %v5350_v20 = vmul.f32 %v13482_v41, %v5318_v17  ;;  %v6415_v17 = vld [vmem:[#allocation7 + $0x88] sm:$0xff]  ;;  %v6400_v41 = vld [vmem:[#allocation7 + $0x10] sm:$0xff] }
 0x96d   : > { %v8847_v19 = vpop.eup %8846  ;;  %v5438_v4 = vadd.f32 %v5380_v22, %v5342_v13 }
 0x96e   : > { %v6449_v50 = vld [vmem:[#allocation6 + $0x98] sm:$0xff]  ;;  %6501 = vperm.xlu0 %8393, %v8847_v19  }
 0x96f   : > { %8852 = vrcp.f32 %v6449_v50  ;;  %5470 = vst.msk [vmem:[#allocation6 + $0x28] sm:$0xff] %vm715_vm1, %v5438_v4 }
 0x970   : > { %v5412_v30 = vpop.xlane.xlu0 %5411 }
 0x971   : > { %v8849_v61 = vpop.eup %8848  ;;  %v5454_v8 = vadd.f32 %v5412_v30, %v5358_v44  ;;  %v13483_v44 = vld [vmem:[#allocation136_spill] sm:$0xff] }
 0x972   : > { %v6432_v54 = vld [vmem:[#allocation6 + $0x10] sm:$0xff]  ;;  %6581 = vperm.xlu0 %8393, %v8849_v61   ;;  %v5366_v30 = vmul.f32 %v13483_v44, %v5334_v7  ;;  %v6417_v44 = vld [vmem:[#allocation7 + $0x98] sm:$0xff] }
 0x973   : > { %8854 = vrcp.f32 %v6432_v54  ;;  %5486 = vst.msk [vmem:[#allocation6 + $0xa8] sm:$0xff] %vm715_vm1, %v5454_v8  ;;  %v5320_v8 = vld [vmem:[#allocation6 + $0x78] sm:$0xff] }
 0x974   : > { %v5384_v26 = vpop.xlane.xlu0 %5383  ;;  %8856 = vrcp.f32 %v6448_v21 }
 0x975   : > { %v8851_v12 = vpop.eup %8850  ;;  %v5440_v36 = vadd.f32 %v5384_v26, %v5344_v55  ;;  %v6456_v55 = vld [vmem:[#allocation6 + $0xd0] sm:$0xff]  ;;  %v13484_v26 = vld [vmem:[#allocation118_spill] sm:$0xff] }
 0x976   : > { %v6435_v16 = vld [vmem:[#allocation6 + $0x28] sm:$0xff]  ;;  %6511 = vperm.xlu0 %8393, %v8851_v12   ;;  %v5352_v39 = vmul.f32 %v13484_v26, %v5320_v8 }
 0x977   : > { %8858 = vrcp.f32 %v6435_v16  ;;  %5472 = vst.msk [vmem:[#allocation6 + $0x38] sm:$0xff] %vm715_vm1, %v5440_v36  ;;  %v5336_v16 = vld [vmem:[#allocation6 + $0xf8] sm:$0xff] }
 0x978   : > { %v5416_v57 = vpop.xlane.xlu0 %5415  ;;  %8860 = vrcp.f32 %v6434_v59 }
 0x979   : > { %v8853_v1 = vpop.eup %8852  ;;  %v5456_v56 = vadd.f32 %v5416_v57, %v5360_v45  ;;  %v6442_v57 = vld [vmem:[#allocation6 + $0x60] sm:$0xff] }
 0x97a   : > { %v6451_v2 = vld [vmem:[#allocation6 + $0xa8] sm:$0xff]  ;;  %6591 = vperm.xlu0 %8393, %v8853_v1   ;;  %v5368_v1 = vmul.f32 %v13485_v23, %v5336_v16  ;;  %v6405_v23 = vld [vmem:[#allocation7 + $0x38] sm:$0xff] }
 0x97b   : > { %8862 = vrcp.f32 %v6451_v2  ;;  %5488 = vst.msk [vmem:[#allocation6 + $0xb8] sm:$0xff] %vm715_vm1, %v5456_v56 }
 0x97c   : > { %v5388_v53 = vpop.xlane.xlu0 %5387  ;;  %8864 = vrcp.f32 %v6450_v0 }
 0x97d   : > { %v8855_v40 = vpop.eup %8854  ;;  %v5442_v47 = vadd.f32 %v5388_v53, %v5346_v34 }
 0x97e   : > { %v6437_v63 = vld [vmem:[#allocation6 + $0x38] sm:$0xff]  ;;  %6506 = vperm.xlu1 %8392, %v8855_v40   ;;  %v8857_v28 = vpop.eup %8856 }
 0x97f   : > { %8866 = vrcp.f32 %v6437_v63  ;;  %5474 = vst.msk [vmem:[#allocation6 + $0x48] sm:$0xff] %vm715_vm1, %v5442_v47 }
 0x980   : > { %v5420_v52 = vpop.xlane.xlu0 %5419  ;;  %8868 = vrcp.f32 %v6436_v32  ;;  %v6444_v32 = vld [vmem:[#allocation6 + $0x70] sm:$0xff] }
 0x981   : > { %v8859_v49 = vpop.eup %8858  ;;  %v5458_v27 = vadd.f32 %v5420_v52, %v5362_v25 }
 0x982   : > { %v6453_v33 = vld [vmem:[#allocation6 + $0xb8] sm:$0xff]  ;;  %6521 = vperm.xlu0 %8393, %v8859_v49   ;;  %6586 = vperm.xlu1 %8392, %v8857_v28   ;;  %v8861_v5 = vpop.eup %8860  ;;  %v6460_v49 = vld [vmem:[#allocation6 + $0xf0] sm:$0xff] }
 0x983   : > { %8870 = vrcp.f32 %v6453_v33  ;;  %5490 = vst.msk [vmem:[#allocation6 + $0xc8] sm:$0xff] %vm715_vm1, %v5458_v27 }
 0x984   : > { %v5392_v37 = vpop.xlane.xlu0 %5391  ;;  %8872 = vrcp.f32 %v6452_v58 }
 0x985   : > { %v8863_v11 = vpop.eup %8862  ;;  %v5444_v9 = vadd.f32 %v5392_v37, %v5348_v10 }
 0x986   : > { %v6439_v46 = vld [vmem:[#allocation6 + $0x48] sm:$0xff]  ;;  %6601 = vperm.xlu0 %8393, %v8863_v11   ;;  %6516 = vperm.xlu1 %8392, %v8861_v5   ;;  %v8865_v31 = vpop.eup %8864  ;;  %v6398_v11 = vld [vmem:[#allocation7] sm:$0xff] }
 0x987   : > { %8874 = vrcp.f32 %v6439_v46  ;;  %5476 = vst.msk [vmem:[#allocation6 + $0x58] sm:$0xff] %vm715_vm1, %v5444_v9  ;;  %v6654_v9 = vmul.f32 %v6497_v42, %v6398_v11  ;;  %v6577_v46 = vpop.permute.xlu1 %6576 }
 0x988   : > { %v5424_v24 = vpop.xlane.xlu0 %5423  ;;  %8876 = vrcp.f32 %v6438_v60  ;;  %v6414_v60 = vld [vmem:[#allocation7 + $0x80] sm:$0xff] }
 0x989   : > { %v8867_v62 = vpop.eup %8866  ;;  %v5460_v3 = vadd.f32 %v5424_v24, %v5364_v35  ;;  %v6670_v43 = vmul.f32 %v6577_v46, %v6414_v60  ;;  %v6399_v35 = vld [vmem:[#allocation7 + $0x8] sm:$0xff] }
 0x98a   : > { %v6455_v48 = vld [vmem:[#allocation6 + $0xc8] sm:$0xff]  ;;  %6531 = vperm.xlu0 %8393, %v8867_v62   ;;  %6596 = vperm.xlu1 %8392, %v8865_v31   ;;  %v8869_v13 = vpop.eup %8868 }
 0x98b   : > { %8878 = vrcp.f32 %v6455_v48  ;;  %5492 = vst.msk [vmem:[#allocation6 + $0xd8] sm:$0xff] %vm715_vm1, %v5460_v3 }
 0x98c   : > { %v5396_v22 = vpop.xlane.xlu0 %5395  ;;  %8880 = vrcp.f32 %v6454_v15 }
 0x98d   : > { %v8871_v19 = vpop.eup %8870  ;;  %v5446_v4 = vadd.f32 %v5396_v22, %v5350_v20  ;;  %v6401_v22 = vld [vmem:[#allocation7 + $0x18] sm:$0xff] }
 0x98e   : > { %v6441_v50 = vld [vmem:[#allocation6 + $0x58] sm:$0xff]  ;;  %6611 = vperm.xlu0 %8393, %v8871_v19   ;;  %6526 = vperm.xlu1 %8392, %v8869_v13   ;;  %v8873_v14 = vpop.eup %8872  ;;  %v6416_v19 = vld [vmem:[#allocation7 + $0x90] sm:$0xff] }
 0x98f   : > { %8882 = vrcp.f32 %v6441_v50  ;;  %5478 = vst.msk [vmem:[#allocation6 + $0x68] sm:$0xff] %vm715_vm1, %v5446_v4 }
 0x990   : > { %v5428_v61 = vpop.xlane.xlu0 %5427  ;;  %8884 = vrcp.f32 %v6440_v51 }
 0x991   : > { %v8875_v54 = vpop.eup %8874  ;;  %v5462_v21 = vadd.f32 %v5428_v61, %v5366_v30 }
 0x992   : > { %v6457_v29 = vld [vmem:[#allocation6 + $0xd8] sm:$0xff]  ;;  %6541 = vperm.xlu0 %8393, %v8875_v54   ;;  %6606 = vperm.xlu1 %8392, %v8873_v14   ;;  %v8877_v12 = vpop.eup %8876  ;;  %v6402_v14 = vld [vmem:[#allocation7 + $0x20] sm:$0xff] }
 0x993   : > { %8886 = vrcp.f32 %v6457_v29  ;;  %5494 = vst.msk [vmem:[#allocation6 + $0xe8] sm:$0xff] %vm715_vm1, %v5462_v21  ;;  %v6403_v21 = vld [vmem:[#allocation7 + $0x28] sm:$0xff] }
 0x994   : > { %v5400_v36 = vpop.xlane.xlu0 %5399  ;;  %8888 = vrcp.f32 %v6456_v55  ;;  %v6418_v55 = vld [vmem:[#allocation7 + $0xa0] sm:$0xff] }
 0x995   : > { %v8879_v59 = vpop.eup %8878  ;;  %v5448_v18 = vadd.f32 %v5400_v36, %v5352_v39  ;;  %v6419_v36 = vld [vmem:[#allocation7 + $0xa8] sm:$0xff] }
 0x996   : > { %v6443_v45 = vld [vmem:[#allocation6 + $0x68] sm:$0xff]  ;;  %6621 = vperm.xlu0 %8393, %v8879_v59   ;;  %6536 = vperm.xlu1 %8392, %v8877_v12   ;;  %v8881_v56 = vpop.eup %8880  ;;  %v6404_v59 = vld [vmem:[#allocation7 + $0x30] sm:$0xff] }
 0x997   : > { %8890 = vrcp.f32 %v6443_v45  ;;  %5480 = vst.msk [vmem:[#allocation6 + $0x78] sm:$0xff] %vm715_vm1, %v5448_v18 }
 0x998   : > { %v5432_v2 = vpop.xlane.xlu0 %5431  ;;  %8892 = vrcp.f32 %v6442_v57 }
 0x999   : > { %v8883_v0 = vpop.eup %8882  ;;  %v5464_v34 = vadd.f32 %v5432_v2, %v5368_v1 }
 0x99a   : > { %v6459_v53 = vld [vmem:[#allocation6 + $0xe8] sm:$0xff]  ;;  %6551 = vperm.xlu0 %8393, %v8883_v0   ;;  %6616 = vperm.xlu1 %8392, %v8881_v56   ;;  %v8885_v40 = vpop.eup %8884  ;;  %v6420_v56 = vld [vmem:[#allocation7 + $0xb0] sm:$0xff] }
 0x99b   : > { %8894 = vrcp.f32 %v6459_v53  ;;  %5496 = vst.msk [vmem:[#allocation6 + $0xf8] sm:$0xff] %vm715_vm1, %v5464_v34  ;;  %v6421_v53 = vld [vmem:[#allocation7 + $0xb8] sm:$0xff] }
 0x99c   : > { %8896 = vrcp.f32 %v6458_v38 }
 0x99d   : > { %v8887_v47 = vpop.eup %8886 }
 0x99e   : > { %v6445_v63 = vld [vmem:[#allocation6 + $0x78] sm:$0xff]  ;;  %6631 = vperm.xlu0 %8393, %v8887_v47   ;;  %6546 = vperm.xlu1 %8392, %v8885_v40   ;;  %v8889_v25 = vpop.eup %8888  ;;  %v6406_v40 = vld [vmem:[#allocation7 + $0x40] sm:$0xff] }
 0x99f   : > { %8898 = vrcp.f32 %v6445_v63 }
 0x9a0   : > { %8900 = vrcp.f32 %v6444_v32 }
 0x9a1   : > { %v8891_v28 = vpop.eup %8890 }
 0x9a2   : > { %v6461_v52 = vld [vmem:[#allocation6 + $0xf8] sm:$0xff]  ;;  %6561 = vperm.xlu0 %8393, %v8891_v28   ;;  %6626 = vperm.xlu1 %8392, %v8889_v25   ;;  %v8893_v6 = vpop.eup %8892  ;;  %v6407_v25 = vld [vmem:[#allocation7 + $0x48] sm:$0xff] }
 0x9a3   : > { %8902 = vrcp.f32 %v6461_v52  ;;  %v6422_v52 = vld [vmem:[#allocation7 + $0xc0] sm:$0xff] }
 0x9a4   : > { %8904 = vrcp.f32 %v6460_v49 }
 0x9a5   : > { %v8895_v27 = vpop.eup %8894 }
 0x9a6   : > { %6641 = vperm.xlu0 %8393, %v8895_v27   ;;  %6556 = vperm.xlu1 %8392, %v8893_v6   ;;  %v8897_v33 = vpop.eup %8896 }
 0x9a9   : > { %v8899_v58 = vpop.eup %8898 }
 0x9aa   : > { %6571 = vperm.xlu0 %8393, %v8899_v58   ;;  %6636 = vperm.xlu1 %8392, %v8897_v33   ;;  %v8901_v10 = vpop.eup %8900  ;;  %v6423_v33 = vld [vmem:[#allocation7 + $0xc8] sm:$0xff] }
 0x9ad   : > { %v8903_v5 = vpop.eup %8902 }
 0x9ae   : > { %6651 = vperm.xlu0 %8393, %v8903_v5   ;;  %6566 = vperm.xlu1 %8392, %v8901_v10   ;;  %v8905_v37 = vpop.eup %8904  ;;  %v6408_v10 = vld [vmem:[#allocation7 + $0x50] sm:$0xff] }
 0x9b2   : > { %6646 = vperm.xlu1 %8392, %v8905_v37  }
 0x9cc   : > { %6766 = vxpose.xlu0.b32.start [1/16] (narrow) %v6654_v9, 64 }
 0x9db   : > { %6798 = vxpose.xlu1.b32.start [1/16] (narrow) %v6670_v43, 64 }
 0x9ed   : > { %v6502_v31 = vpop.permute.xlu0 %6501 }
 0x9ee   : > { %v6655_v24 = vmul.f32 %v6502_v31, %v6399_v35 }
 0x9f0   : > { %6767 = vxpose.xlu0.b32.cont [2/16] (narrow) %v6655_v24, 64 }
 0x9f1   : > { %v6582_v62 = vpop.permute.xlu0 %6581 }
 0x9f2   : > { %v6671_v3 = vmul.f32 %v6582_v62, %v6415_v17 }
 0x9f4   : > { %6799 = vxpose.xlu1.b32.cont [2/16] (narrow) %v6671_v3, 64 }
 0x9f5   : > { %v6512_v48 = vpop.permute.xlu0 %6511 }
 0x9f6   : > { %v6657_v50 = vmul.f32 %v6512_v48, %v6401_v22 }
 0x9f9   : > { %v6592_v15 = vpop.permute.xlu0 %6591 }
 0x9fa   : > { %v6673_v8 = vmul.f32 %v6592_v15, %v6417_v44 }
 0x9fd   : > { %v6507_v20 = vpop.permute.xlu1 %6506 }
 0x9fe   : > { %v6656_v13 = vmul.f32 %v6507_v20, %v6400_v41 }
 0xa00   : > { %6768 = vxpose.xlu0.b32.cont [3/16] (narrow) %v6656_v13, 64 }
 0xa01   : > { %v6522_v7 = vpop.permute.xlu0 %6521  ;;  %v6587_v4 = vpop.permute.xlu1 %6586 }
 0xa02   : > { %v6672_v51 = vmul.f32 %v6587_v4, %v6416_v19  ;;  %v6659_v39 = vmul.f32 %v6522_v7, %v6403_v21 }
 0xa04   : > { %6769 = vxpose.xlu0.b32.cont [4/16] (narrow) %v6657_v50, 64  ;;  %6800 = vxpose.xlu1.b32.cont [3/16] (narrow) %v6672_v51, 64 }
 0xa05   : > { %v6602_v30 = vpop.permute.xlu0 %6601  ;;  %v6517_v61 = vpop.permute.xlu1 %6516 }
 0xa06   : > { %v6658_v54 = vmul.f32 %v6517_v61, %v6402_v14  ;;  %v6675_v45 = vmul.f32 %v6602_v30, %v6419_v36 }
 0xa08   : > { %6801 = vxpose.xlu1.b32.cont [4/16] (narrow) %v6673_v8, 64  ;;  %6770 = vxpose.xlu0.b32.cont [5/16] (narrow) %v6658_v54, 64 }
 0xa09   : > { %v6532_v29 = vpop.permute.xlu0 %6531  ;;  %v6597_v26 = vpop.permute.xlu1 %6596 }
 0xa0a   : > { %v6674_v12 = vmul.f32 %v6597_v26, %v6418_v55  ;;  %v6661_v0 = vmul.f32 %v6532_v29, %v6405_v23 }
 0xa0c   : > { %6771 = vxpose.xlu0.b32.cont [6/16] (narrow) %v6659_v39, 64  ;;  %6802 = vxpose.xlu1.b32.cont [5/16] (narrow) %v6674_v12, 64 }
 0xa0d   : > { %v6612_v16 = vpop.permute.xlu0 %6611  ;;  %v6527_v18 = vpop.permute.xlu1 %6526 }
 0xa0e   : > { %v6660_v57 = vmul.f32 %v6527_v18, %v6404_v59  ;;  %v6677_v63 = vmul.f32 %v6612_v16, %v6421_v53 }
 0xa10   : > { %6803 = vxpose.xlu1.b32.cont [6/16] (narrow) %v6675_v45, 64  ;;  %6772 = vxpose.xlu0.b32.cont [7/16] (narrow) %v6660_v57, 64 }
 0xa11   : > { %v6542_v1 = vpop.permute.xlu0 %6541  ;;  %v6607_v2 = vpop.permute.xlu1 %6606 }
 0xa12   : > { %v6676_v34 = vmul.f32 %v6607_v2, %v6420_v56  ;;  %v6663_v49 = vmul.f32 %v6542_v1, %v6407_v25 }
 0xa14   : > { %6773 = vxpose.xlu0.b32.cont [8/16] (narrow) %v6661_v0, 64  ;;  %6804 = vxpose.xlu1.b32.cont [7/16] (narrow) %v6676_v34, 64 }
 0xa15   : > { %v6622_v38 = vpop.permute.xlu0 %6621  ;;  %v6537_v47 = vpop.permute.xlu1 %6536 }
 0xa16   : > { %v6662_v32 = vmul.f32 %v6537_v47, %v6406_v40 }
 0xa18   : > { %6805 = vxpose.xlu1.b32.cont [8/16] (narrow) %v6677_v63, 64  ;;  %6774 = vxpose.xlu0.b32.cont [9/16] (narrow) %v6662_v32, 64 }
 0xa19   : > { %v6552_v28 = vpop.permute.xlu0 %6551  ;;  %v6617_v6 = vpop.permute.xlu1 %6616 }
 0xa1a   : > { %v6678_v27 = vmul.f32 %v6617_v6, %v6422_v52 }
 0xa1c   : > { %6775 = vxpose.xlu0.b32.cont [10/16] (narrow) %v6663_v49, 64  ;;  %6806 = vxpose.xlu1.b32.cont [9/16] (narrow) %v6678_v27, 64 }
 0xa1d   : > { %v6632_v58 = vpop.permute.xlu0 %6631  ;;  %v6547_v5 = vpop.permute.xlu1 %6546 }
 0xa1e   : > { %8919 = shalt.err (!%p8916_p8)
}
 0xa1f   : > { %s8920_s0 = scalar_lea.hbm %s12740_s26, 2048  ;;  %s8924_s21 = scalar_lea.hbm %s12857_s6, 4096 }
 0xa20   : > { %p8921_p10 = scmp.ne.s32.totalorder %s12740_s26, %s8920_s0  ;;  %p8925_p1 = scmp.lt.u32.totalorder %s12740_s26, %s12857_s6 }
 0xa21   : > { %p8926_p2 = scmp.lt.u32.totalorder %s8924_s21, %s8920_s0  ;;  %p8928_p4 = scmp.lt.u32.totalorder %s8920_s0, %s12740_s26 }
 0xa22   : > { %p8922_p13 = pnand %p8921_p10, %p9166_p9 }
 0xa23   : > { %p8927_p3 = por %p8926_p2, %p8925_p1 }
 0xa24   : > { %p8923_p0 = pneg %p8922_p13 }
 0xa25   : > { %p8929_p5 = por %p8928_p4, %p8927_p3 }
 0xa27   : > { %p8930_p6 = pnand %p8929_p5, %p8923_p0 }
 0xa29   : > { %8933 = shalt.err (!%p8930_p6)
}
 0xa2a   : > { %s9068_s19 = smov 128   ;;  %s9069_s22 = smov 8   ;;  %v6679_v37 = vmul.f32 %v6622_v38, %v6423_v33  ;;  %v6664_v42 = vmul.f32 %v6547_v5, %v6408_v10  ;;  %v6409_v11 = vld [vmem:[#allocation7 + $0x58] sm:$0xff]  ;;  %v6562_v9 = vpop.permute.xlu0 %6561  ;;  %v6424_v46 = vld [vmem:[#allocation7 + $0xd0] sm:$0xff]  ;;  %v6627_v60 = vpop.permute.xlu1 %6626  ;;  %v6410_v24 = vld [vmem:[#allocation7 + $0x60] sm:$0xff] }
 0xa2b   : > { %8297 = dma.vmem_to_hbm [thread:$0]  (%p9166_p9), %s12743_s17, 2048, %s12740_s26, %s6847_s8, %s9068_s19, %s9068_s19, %s9069_s22   ;;  %v6665_v43 = vmul.f32 %v6552_v28, %v6409_v11  ;;  %v6680_v35 = vmul.f32 %v6627_v60, %v6424_v46  ;;  %v6425_v31 = vld [vmem:[#allocation7 + $0xd8] sm:$0xff]  ;;  %v6411_v15 = vld [vmem:[#allocation7 + $0x68] sm:$0xff]  ;;  %v6426_v41 = vld [vmem:[#allocation7 + $0xe0] sm:$0xff] }
 0xa2c   : > { %6807 = vxpose.xlu1.b32.cont [10/16] (narrow) %v6679_v37, 64  ;;  %6776 = vxpose.xlu0.b32.cont [11/16] (narrow) %v6664_v42, 64  ;;  %v6681_v62 = vmul.f32 %v6632_v58, %v6425_v31  ;;  %v6667_v13 = vmul.f32 %v6562_v9, %v6411_v15  ;;  %v6427_v7 = vld [vmem:[#allocation7 + $0xe8] sm:$0xff]  ;;  %v6412_v4 = vld [vmem:[#allocation7 + $0x70] sm:$0xff]  ;;  %v6413_v30 = vld [vmem:[#allocation7 + $0x78] sm:$0xff]  ;;  %s12773_s26 = scalar_lea.vmem [#allocation20], %s9328_s20  ;;  %s12796_s11 = scalar_lea.hbm %s12858_s7, %s7278_s18 }
 0xa2d   : > { %v6428_v14 = vld [vmem:[#allocation7 + $0xf0] sm:$0xff]  ;;  %v6429_v29 = vld [vmem:[#allocation7 + $0xf8] sm:$0xff]  ;;  %s6885_s20 = sshll.u32 %s12773_s26, 4  ;;  %s6852_s9 = scalar_lea.sflag [#allocation21], %s9325_s28  ;;  %s12798_s20 = int_to_ptr.vmem [resolvable:$true] %s6885_s20 }
 0xa2e   : > { %v6557_v17 = vpop.permute.xlu1 %6556  ;;  %v6642_v48 = vpop.permute.xlu0 %6641  ;;  %s8934_s15 = scalar_lea.vmem %s12798_s20, 2048  ;;  %s9070_s12 = smov [#allocation20]  }
 0xa2f   : > { %v6666_v3 = vmul.f32 %v6557_v17, %v6410_v24  ;;  %v6683_v51 = vmul.f32 %v6642_v48, %v6427_v7  ;;  %p8935_p7 = scmp.ne.s32.totalorder %s12798_s20, %s8934_s15  ;;  %s8938_s27 = sshll.u32 %s9070_s12, 4  ;;  %s8939_s27 = int_to_ptr.vmem [resolvable:$false] %s8938_s27 }
 0xa30   : > { %6777 = vxpose.xlu0.b32.cont [12/16] (narrow) %v6665_v43, 64  ;;  %6808 = vxpose.xlu1.b32.cont [11/16] (narrow) %v6680_v35, 64  ;;  %s8940_s0 = scalar_lea.vmem %s8939_s27, 4096  ;;  %p8941_p13 = scmp.lt.s32.totalorder %s12798_s20, %s8939_s27 }
 0xa31   : > { %p8936_p8 = pnand %p8935_p7, %p9166_p9  ;;  %p8942_p0 = scmp.lt.s32.totalorder %s8940_s0, %s8934_s15 }
 0xa32   : > { %v6637_v20 = vpop.permute.xlu1 %6636  ;;  %v6572_v19 = vpop.permute.xlu0 %6571 }
 0xa33   : > { %v6682_v22 = vmul.f32 %v6637_v20, %v6426_v41  ;;  %v6669_v8 = vmul.f32 %v6572_v19, %v6413_v30  ;;  %p8937_p10 = pneg %p8936_p8  ;;  %p8943_p1 = por %p8942_p0, %p8941_p13 }
 0xa34   : > { %6809 = vxpose.xlu1.b32.cont [12/16] (narrow) %v6681_v62, 64  ;;  %6778 = vxpose.xlu0.b32.cont [13/16] (narrow) %v6666_v3, 64 }
 0xa35   : > { %p8944_p2 = pnand %p8943_p1, %p8937_p10 }
 0xa36   : > { %v6567_v50 = vpop.permute.xlu1 %6566  ;;  %v6652_v21 = vpop.permute.xlu0 %6651 }
 0xa37   : > { %v6668_v44 = vmul.f32 %v6567_v50, %v6412_v4  ;;  %v6685_v55 = vmul.f32 %v6652_v21, %v6429_v29 }
 0xa38   : > { %6779 = vxpose.xlu0.b32.cont [14/16] (narrow) %v6667_v13, 64  ;;  %6810 = vxpose.xlu1.b32.cont [13/16] (narrow) %v6682_v22, 64 }
 0xa3a   : > { %v6647_v61 = vpop.permute.xlu1 %6646 }
 0xa3b   : > { %v6684_v54 = vmul.f32 %v6647_v61, %v6428_v14 }
 0xa3c   : > { %6811 = vxpose.xlu1.b32.cont [14/16] (narrow) %v6683_v51, 64  ;;  %6780 = vxpose.xlu0.b32.cont [15/16] (narrow) %v6668_v44, 64 }
 0xa40   : > { %6781 = vxpose.xlu0.b32.end [16/16] (narrow) %v6669_v8, 64  ;;  %6812 = vxpose.xlu1.b32.cont [15/16] (narrow) %v6684_v54, 64 }
 0xa44   : > { %6813 = vxpose.xlu1.b32.end [16/16] (narrow) %v6685_v55, 64 }
 0xa84   : > { %v6782_v26 = vpop.trf.xlu0 }
 0xa85   : > { %6830 = vst [vmem:[%s12773_s26] sm:$0xff] %v6782_v26 }
 0xa88   : > { %v6814_v39 = vpop.trf.xlu1  ;;  %v6783_v12 = vpop.trf.xlu0 }
 0xa89   : > { %6838 = vst [vmem:[%s12773_s26 + $0x40] sm:$0xff] %v6814_v39  ;;  %6831 = vst [vmem:[%s12773_s26 + $0x8] sm:$0xff] %v6783_v12 }
 0xa8c   : > { %v6815_v36 = vpop.trf.xlu1  ;;  %v6784_v16 = vpop.trf.xlu0 }
 0xa8d   : > { %6839 = vst [vmem:[%s12773_s26 + $0x48] sm:$0xff] %v6815_v36  ;;  %6832 = vst [vmem:[%s12773_s26 + $0x10] sm:$0xff] %v6784_v16 }
 0xa90   : > { %v6816_v59 = vpop.trf.xlu1  ;;  %v6785_v18 = vpop.trf.xlu0 }
 0xa91   : > { %6840 = vst [vmem:[%s12773_s26 + $0x50] sm:$0xff] %v6816_v59  ;;  %6833 = vst [vmem:[%s12773_s26 + $0x18] sm:$0xff] %v6785_v18 }
 0xa94   : > { %v6817_v45 = vpop.trf.xlu1  ;;  %v6786_v57 = vpop.trf.xlu0 }
 0xa95   : > { %6841 = vst [vmem:[%s12773_s26 + $0x58] sm:$0xff] %v6817_v45  ;;  %6834 = vst [vmem:[%s12773_s26 + $0x20] sm:$0xff] %v6786_v57 }
 0xa98   : > { %v6818_v23 = vpop.trf.xlu1  ;;  %v6787_v1 = vpop.trf.xlu0 }
 0xa99   : > { %6842 = vst [vmem:[%s12773_s26 + $0x60] sm:$0xff] %v6818_v23  ;;  %6835 = vst [vmem:[%s12773_s26 + $0x28] sm:$0xff] %v6787_v1 }
 0xa9c   : > { %v6819_v56 = vpop.trf.xlu1  ;;  %v6788_v2 = vpop.trf.xlu0 }
 0xa9d   : > { %6843 = vst [vmem:[%s12773_s26 + $0x68] sm:$0xff] %v6819_v56  ;;  %6836 = vst [vmem:[%s12773_s26 + $0x30] sm:$0xff] %v6788_v2 }
 0xaa0   : > { %v6820_v0 = vpop.trf.xlu1  ;;  %v6789_v34 = vpop.trf.xlu0 }
 0xaa1   : > { %6844 = vst [vmem:[%s12773_s26 + $0x70] sm:$0xff] %v6820_v0  ;;  %6837 = vst [vmem:[%s12773_s26 + $0x38] sm:$0xff] %v6789_v34 }
 0xaa4   : > { %v6821_v53 = vpop.trf.xlu1 }
 0xaa5   : > { %6845 = vst [vmem:[%s12773_s26 + $0x78] sm:$0xff] %v6821_v53 }
 0xaa6   : > { %8947 = shalt.err (!%p8944_p2)
}
 0xaa7   : > { %s8948_s18 = scalar_lea.hbm %s12796_s11, 2048  ;;  %s8952_s21 = scalar_lea.hbm %s12858_s7, 4096 }
 0xaa8   : > { %p8949_p3 = scmp.ne.s32.totalorder %s12796_s11, %s8948_s18  ;;  %p8953_p6 = scmp.lt.u32.totalorder %s12796_s11, %s12858_s7 }
 0xaa9   : > { %p8954_p7 = scmp.lt.u32.totalorder %s8952_s21, %s8948_s18  ;;  %p8956_p10 = scmp.lt.u32.totalorder %s8948_s18, %s12796_s11 }
 0xaaa   : > { %p8950_p4 = pnand %p8949_p3, %p9166_p9 }
 0xaab   : > { %p8955_p8 = por %p8954_p7, %p8953_p6 }
 0xaac   : > { %p8951_p5 = pneg %p8950_p4 }
 0xaad   : > { %p8957_p13 = por %p8956_p10, %p8955_p8 }
 0xaaf   : > { %p8958_p0 = pnand %p8957_p13, %p8951_p5 }
 0xab1   : > { %8961 = shalt.err (!%p8958_p0)
}
 0xab2   : > { %8298 = dma.vmem_to_hbm [thread:$0]  (%p9166_p9), %s12798_s20, 2048, %s12796_s11, %s6852_s9, %s9068_s19, %s9068_s19, %s9069_s22  }
 0xab3 PF: > { %s6900_s26 = sand.u32 1, %s9012_s24   ;;  %p8302_p1 = pnand %p7133_p12, %p9173_p11 }
 0xab4   : > { %s6901_s17 = scalar_lea.sflag [#allocation10], %s6900_s26 }
 0xab5   : > { %9003 = dma.done.wait (!%p8302_p1), %s6901_s17, 2048  }
 0xab6   : > { %9005 = vsyncadd (!%p8302_p1), %s6901_s17, 4294965248  ;;  %s6910_s14 = scalar_lea.sflag [#allocation21], %s6900_s26 }
 0xab7   : > { %9007 = dma.done.wait (!%p8302_p1), %s6910_s14, 2048  }
 0xab8   : > { %9009 = vsyncadd (!%p8302_p1), %s6910_s14, 4294965248  ;;  %s36_s29 = sadd.s32 1, %s9032_s29   ;;  %s13486_s28 = sld [smem:[#allocation46_spill]] }
 0xab9   : > { %p33_p2 = scmp.ge.s32.totalorder %s36_s29, 4   ;;  %s13487_s26 = sld [smem:[#allocation49_spill]] }
 0xaba   : > { %s13488_s27 = sld [smem:[#allocation47_spill]]  ;;  %s13489_s19 = sld [smem:[#allocation48_spill]] }
 0xabb   : > { %s13490_s24 = smov %s9016_s25  ;;  %35 = sbr.rel (!%p33_p2) target bundleno = 16 (0x10), region = 205 }
 0xabe   : > { %s13491_s25 = smov %s13486_s28 }
 0xac0   : > { %s13492_s28 = smov %s13489_s19 }
 0xac2   :  { %6915 = vsyncpa [#allocation9], 1 }
 0xac3   :  { %6917 = vsyncpa [#allocation9 + $0x1], 1 }
 0xac4   :  { %6918 = vsyncpa [#allocation12], 1 }
 0xac5   :  { %6920 = vsyncpa [#allocation12 + $0x1], 1 }
 0xac6   :  { %6921 = vsyncpa [#allocation15], 1 }
 0xac7   :  { %6923 = vsyncpa [#allocation15 + $0x1], 1 }
 0xac8   :  { %6924 = vsyncpa [#allocation18], 1 }
 0xac9   :  { %6926 = vsyncpa [#allocation18 + $0x1], 1 }
 0xaca   :  { %6927 = vsyncpa [#allocation10], 1 }
 0xacb   :  { %6929 = vsyncpa [#allocation10 + $0x1], 1 }
 0xacc   :  { %6930 = vsyncpa [#allocation21], 1 }
 0xacd   :  { %6932 = vsyncpa [#allocation21 + $0x1], 1 }

</bundles_post_ra>
